<compile_context>
chip_gen: v5e
topology: v5e:2x2
jax: 0.10.0
libtpu: 0.0.40
codegen_flags: <defaults>
</compile_context>

<pallas_src>
import functools

import numpy as np

import jax
import jax.numpy as jnp
from jax import lax
from jax.experimental import pallas as pl
from jax.experimental.pallas import tpu as pltpu


_MXU_DTYPE = jnp.bfloat16      # MXU operand dtype (f32 accumulate); jnp.float32 for exact mode


# --------------------------------------------------------------------------------------
# Kernel
# --------------------------------------------------------------------------------------
def _gat_layer(x, w_aug, bias, row_mask, col_mask, inv_n, *, n_head, f_out, eps):
    """Masked InstanceNorm1d over nodes + BatchMultiHeadGraphAttention (one layer).

    x: (B, N, f_in) f32 with B = S_blk * T.  Returns (B, N, n_head * f_out) f32.
    """
    B, N, f_in = x.shape
    H = n_head
    HF = H * f_out

    # InstanceNorm1d(affine=False): per (scene, timestep) & channel, stats over VALID nodes.
    xm = jnp.where(row_mask, x, 0.0)
    mean = jnp.sum(xm, axis=1, keepdims=True) * inv_n
    diff = jnp.where(row_mask, x - mean, 0.0)
    var = jnp.sum(diff * diff, axis=1, keepdims=True) * inv_n            # biased variance
    xn = jnp.where(row_mask, (x - mean) * lax.rsqrt(var + eps), 0.0)     # zero padded rows

    # ONE bf16 MXU matmul: all heads + folded a_src/a_dst (+ constant-1 helper column).
    xe = jnp.concatenate([xn.reshape(B * N, f_in),
                          jnp.ones((B * N, 1), jnp.float32)], axis=-1)
    hp_all = jnp.dot(xe.astype(_MXU_DTYPE), w_aug,
                     preferred_element_type=jnp.float32).reshape(B, N, HF + 3 * H)

    neg_big = jnp.float32(-1e30)
    outs = []
    for h in range(H):                                                   # static, tiny head count
        hp = hp_all[:, :, h * f_out:(h + 1) * f_out]                     # (B, N, f_out) lane slice
        # Trailing columns for head h are [asrc, 1, adst]; e[b,i,j] = asrc_i + adst_j comes
        # from one K=2 batched matmul  [asrc,1]_i . [1,adst]_j  (kept f32: tiny, accuracy-critical).
        src1 = hp_all[:, :, HF + 3 * h:HF + 3 * h + 2]                   # (B, N, 2) = [asrc, 1]
        one_dst = hp_all[:, :, HF + 3 * h + 1:HF + 3 * h + 3]            # (B, N, 2) = [1, adst]
        e = lax.dot_general(src1, one_dst, (((2,), (2,)), ((0,), (0,))),
                            preferred_element_type=jnp.float32)          # (B, N, N)
        e = jnp.where(e > 0.0, e, 0.2 * e)                               # LeakyReLU(0.2)
        e = jnp.where(col_mask, e, neg_big)                              # mask padded columns
        e = e - jnp.max(e, axis=-1, keepdims=True)                       # stable softmax (dim=-1)
        p = jnp.exp(e)
        p = p * pl.reciprocal(jnp.sum(p, axis=-1, keepdims=True), approx=True)
        # TODO(synk): attention dropout skipped (identity in eval-mode forward).
        outs.append(lax.dot_general(p.astype(_MXU_DTYPE), hp.astype(_MXU_DTYPE),
                                    (((2,), (1,)), ((0,), (0,))),
                                    preferred_element_type=jnp.float32))  # (B, N, f_out)
    out = outs[0] if H == 1 else jnp.concatenate(outs, axis=-1)          # heads on lanes
    return out + bias[None]                                              # bias tiled per head


def _gat_encoder_kernel(lens_ref, x_ref, w1_ref, b1_ref, w2_ref, b2_ref, o_ref,
                        *, s_blk, n_head1, f1, f2, eps):
    blk = pl.program_id(0)
    s_b, T, N, f_in = x_ref.shape
    B = s_b * T
    x = x_ref[...].astype(jnp.float32).reshape(B, N, f_in)

    # Valid-node counts (SMEM scalars) broadcast onto the flattened (scene * timestep) batch.
    b_iota = lax.broadcasted_iota(jnp.int32, (B, 1, 1), 0)
    n_b = jnp.zeros((B, 1, 1), jnp.int32)
    for k in range(s_blk):
        in_scene = (b_iota >= k * T) & (b_iota < (k + 1) * T)
        n_b = jnp.where(in_scene, lens_ref[blk * s_blk + k], n_b)
    inv_n = 1.0 / jnp.maximum(n_b, 1).astype(jnp.float32)
    row_mask = lax.broadcasted_iota(jnp.int32, (1, N, 1), 1) < n_b       # valid node rows
    col_mask = lax.broadcasted_iota(jnp.int32, (1, 1, N), 2) < n_b       # valid attention cols

    # Layer 1: InstanceNorm + multi-head attention (heads concatenated on lanes).
    h1 = _gat_layer(x, w1_ref[...], b1_ref[...], row_mask, col_mask, inv_n,
                    n_head=n_head1, f_out=f1, eps=eps)
    # Inter-layer F.elu; F.dropout is identity in eval mode.
    h1 = jnp.where(h1 > 0.0, h1, jnp.exp(jnp.minimum(h1, 0.0)) - 1.0)

    # Layer 2: InstanceNorm + single-head attention (PyTorch's squeeze(dim=1) is implicit).
    h2 = _gat_layer(h1, w2_ref[...], b2_ref[...], row_mask, col_mask, inv_n,
                    n_head=1, f_out=f2, eps=eps)

    # Lane-dense store: (s_blk, T, N*f2) has a multiple-of-128 last dim (unmasked vst).
    o_ref[...] = h2.reshape(s_b, T, N * f2).astype(o_ref.dtype)


# --------------------------------------------------------------------------------------
# Parameter preparation & wrappers
# --------------------------------------------------------------------------------------
def _prepare_layer(w, a_src, a_dst, bias):
    """PyTorch shapes -> kernel layout.

    w: (H, f_in, f_out); a_src/a_dst: (H, f_out, 1); bias: (f_out,).
    Returns (w_aug, bias_cat, H, f_out):
      w_aug   : (f_in+1, H*f_out + 3H) bf16; columns = [heads | per-head (w@a_src, 1, w@a_dst)]
      bias_cat: (1, H*f_out) f32, bias tiled across heads (added after the head concat).
    """
    w = jnp.asarray(w, jnp.float32)
    a_src = jnp.asarray(a_src, jnp.float32)
    a_dst = jnp.asarray(a_dst, jnp.float32)
    bias = jnp.asarray(bias, jnp.float32)
    H, f_in, f_out = w.shape

    w_heads = jnp.transpose(w, (1, 0, 2)).reshape(f_in, H * f_out)       # heads on lanes
    wa_src = jnp.einsum('hio,ho->ih', w, a_src[:, :, 0])                 # (f_in, H) = w @ a_src
    wa_dst = jnp.einsum('hio,ho->ih', w, a_dst[:, :, 0])

    zeros_row = jnp.zeros((1, H), jnp.float32)
    src_col = jnp.concatenate([wa_src, zeros_row], axis=0)               # (f_in+1, H)
    dst_col = jnp.concatenate([wa_dst, zeros_row], axis=0)
    one_col = jnp.concatenate([jnp.zeros((f_in, H), jnp.float32),
                               jnp.ones((1, H), jnp.float32)], axis=0)   # picks up the 1-feature
    trip = jnp.stack([src_col, one_col, dst_col], axis=-1).reshape(f_in + 1, 3 * H)

    w_main = jnp.concatenate([w_heads, jnp.zeros((1, H * f_out), jnp.float32)], axis=0)
    w_aug = jnp.concatenate([w_main, trip], axis=1).astype(_MXU_DTYPE)

    bias_cat = jnp.tile(bias.reshape(1, f_out), (1, H))
    return w_aug, bias_cat, H, f_out


def gat_encoder_fused(lens, x_pad, layer1, layer2, *, s_blk, eps=1e-5):
    """lens: (S_pad,) int32 valid node counts.  x_pad: (S_pad, T, N_pad, f_in) float32."""
    w1, b1, H1, f1 = layer1
    w2, b2, H2, f2 = layer2
    del H2
    S_pad, T, N, f_in = x_pad.shape
    assert S_pad % s_blk == 0
    grid = S_pad // s_blk

    kernel = functools.partial(_gat_encoder_kernel, s_blk=s_blk, n_head1=H1,
                               f1=f1, f2=f2, eps=eps)

    def resident(shape):                      # whole (tiny) parameter stays VMEM-resident
        nd = len(shape)
        return pl.BlockSpec(shape, lambda b, lens_ref: (0,) * nd)

    return pl.pallas_call(
        kernel,
        out_shape=jax.ShapeDtypeStruct((S_pad, T, N * f2), jnp.float32),
        grid_spec=pltpu.PrefetchScalarGridSpec(
            num_scalar_prefetch=1,
            grid=(grid,),
            in_specs=[
                pl.BlockSpec((s_blk, T, N, f_in), lambda b, lens_ref: (b, 0, 0, 0)),
                resident(w1.shape), resident(b1.shape),
                resident(w2.shape), resident(b2.shape),
            ],
            out_specs=pl.BlockSpec((s_blk, T, N * f2), lambda b, lens_ref: (b, 0, 0)),
        ),
        compiler_params=pltpu.CompilerParams(dimension_semantics=("parallel",)),
    )(lens, x_pad, w1, b1, w2, b2)


def gat_encoder_forward(obs_traj_embedding, seq_start_end, params, *, eps=1e-5, s_blk=None):
    """GATEncoder.forward.  obs_traj_embedding: (T, N_total, f_in);
    seq_start_end: static iterable of (start, end) python ints."""
    seq = [(int(s), int(e)) for s, e in seq_start_end]
    sizes = np.asarray([e - s for s, e in seq], np.int32)
    starts = np.asarray([s for s, _ in seq], np.int32)
    S = len(seq)
    T, N_total, _ = obs_traj_embedding.shape

    n_pad = max(8, -(-int(sizes.max()) // 8) * 8)          # nodes -> sublane multiple
    if s_blk is None:
        s_blk = int(max(1, min(8, -(-S // 2))))            # >=2 grid steps when S>=2 (megacore)
    s_blk = min(s_blk, S)
    s_padded = (-(-S // s_blk)) * s_blk

    # One gather builds the padded (S_pad, T, N_pad, f_in) scene tensor; padded rows/scenes
    # are neutralized inside the kernel by the `lens` masks.
    node_idx = np.minimum(starts[:, None] + np.arange(n_pad)[None, :], N_total - 1)
    if s_padded > S:
        node_idx = np.concatenate(
            [node_idx, np.zeros((s_padded - S, n_pad), node_idx.dtype)], axis=0)
    x_pad = jnp.transpose(obs_traj_embedding[:, node_idx, :], (1, 0, 2, 3)).astype(jnp.float32)

    lens_np = np.zeros((s_padded,), np.int32)
    lens_np[:S] = sizes
    lens = jnp.asarray(lens_np)

    assert len(params) == 2, "STGAT's GAT encoder has exactly two attention layers"
    layer1 = _prepare_layer(*params[0])
    layer2 = _prepare_layer(*params[1])
    assert layer2[2] == 1, "last GAT layer must be single-head (module squeezes dim=1)"
    f2 = layer2[3]

    out_pad = gat_encoder_fused(lens, x_pad, layer1, layer2, s_blk=s_blk, eps=eps)

    # Un-pad with one gather: (S_pad, T, N_pad*f2) -> (T, N_total, f2), scene order preserved.
    out_nodes = out_pad.reshape(s_padded, T, n_pad, f2).transpose(1, 0, 2, 3)
    out_nodes = out_nodes.reshape(T, s_padded * n_pad, f2)
    flat_idx = np.concatenate([si * n_pad + np.arange(n) for si, n in enumerate(sizes)])
    return out_nodes[:, flat_idx.astype(np.int32), :]


# --------------------------------------------------------------------------------------
# Parameters (synthetic xavier_uniform(gain=1.414) matching the PyTorch shapes)
# --------------------------------------------------------------------------------------
def init_gat_params(key, n_units, n_heads):
    params = []
    n_layer = len(n_units) - 1
    gain = 1.414
    for i in range(n_layer):
        f_in = n_units[i] * n_heads[i - 1] if i else n_units[i]
        f_out = n_units[i + 1]
        H = n_heads[i]
        key, k1, k2, k3 = jax.random.split(key, 4)
        bw = gain * (6.0 / (f_in * f_out + H * f_out)) ** 0.5            # fan of (H, f_in, f_out)
        w = jax.random.uniform(k1, (H, f_in, f_out), jnp.float32, -bw, bw)
        ba = gain * (6.0 / (f_out + H)) ** 0.5                           # fan of (H, f_out, 1)
        a_src = jax.random.uniform(k2, (H, f_out, 1), jnp.float32, -ba, ba)
        a_dst = jax.random.uniform(k3, (H, f_out, 1), jnp.float32, -ba, ba)
        bias = jnp.zeros((f_out,), jnp.float32)                          # nn.init.constant_(bias, 0)
        params.append((w, a_src, a_dst, bias))
    return params


# --------------------------------------------------------------------------------------
# Pure-JAX reference (mirrors the PyTorch module) for a runtime correctness check
# --------------------------------------------------------------------------------------
def _gat_reference(x, params, eps=1e-5):
    hi = lax.Precision.HIGHEST
    n_layer = len(params)
    for i, (w, a_src, a_dst, bias) in enumerate(params):
        mean = jnp.mean(x, axis=1, keepdims=True)
        var = jnp.mean((x - mean) ** 2, axis=1, keepdims=True)
        x = (x - mean) / jnp.sqrt(var + eps)
        hp = jnp.einsum('tnf,hfo->thno', x, w, precision=hi)
        attn_src = jnp.einsum('thno,hoz->thnz', hp, a_src, precision=hi)
        attn_dst = jnp.einsum('thno,hoz->thnz', hp, a_dst, precision=hi)
        attn = attn_src + jnp.swapaxes(attn_dst, -1, -2)
        attn = jnp.where(attn > 0, attn, 0.2 * attn)
        attn = jax.nn.softmax(attn, axis=-1)
        out = jnp.einsum('thij,thjo->thio', attn, hp, precision=hi) + bias
        if i + 1 == n_layer:
            x = out[:, 0]
        else:
            T, H, n, fo = out.shape
            x = jax.nn.elu(jnp.transpose(out, (0, 2, 1, 3)).reshape(T, n, H * fo))
    return x


def gat_encoder_reference(obs_traj_embedding, seq_start_end, params):
    outs = [_gat_reference(obs_traj_embedding[:, s:e, :], params) for s, e in seq_start_end]
    return jnp.concatenate(outs, axis=1)


# --------------------------------------------------------------------------------------
if __name__ == "__main__":
    key = jax.random.PRNGKey(0)
    n_units = [32, 16, 32]
    n_heads = [4, 1]
    # dropout / alpha of the reference module are inert in an eval-mode forward.

    params = init_gat_params(jax.random.PRNGKey(1), n_units, n_heads)

    T, N_total = 8, 12
    obs_traj_embedding = jax.random.normal(key, (T, N_total, n_units[0]), jnp.float32)
    # Three scenes (3, 4, 5 pedestrians) -> exercises node padding, scene batching (S_blk=2)
    # and the zero-length padding scene.
    seq_start_end = [(0, 3), (3, 7), (7, 12)]

    out = jax.block_until_ready(gat_encoder_forward(obs_traj_embedding, seq_start_end, params))
    assert out.shape == (T, N_total, n_units[-1]), out.shape
    assert bool(jnp.all(jnp.isfinite(out)))

    ref = gat_encoder_reference(obs_traj_embedding, seq_start_end, params)
    # bf16 MXU operands (per perf review) + approx softmax reciprocal loosen agreement with
    # the f32 reference slightly; observed error is ~1e-2, tolerance kept at 5e-2.
    max_err = float(jnp.max(jnp.abs(out - ref)))
    assert bool(jnp.allclose(out, ref, rtol=5e-2, atol=5e-2)), max_err

    print("KERNEL_OK")
</pallas_src>

<mosaic_0001>
module attributes {stable_mosaic.version = 11 : i64} {
  func.func @_gat_encoder_kernel(%arg0: i32, %arg1: memref<4xi32, #tpu.memory_space<smem>>, %arg2: memref<2x8x8x32xf32, #tpu.memory_space<vmem>>, %arg3: memref<33x76xbf16, #tpu.memory_space<vmem>>, %arg4: memref<1x64xf32, #tpu.memory_space<vmem>>, %arg5: memref<65x35xbf16, #tpu.memory_space<vmem>>, %arg6: memref<1x32xf32, #tpu.memory_space<vmem>>, %arg7: memref<2x8x256xf32, #tpu.memory_space<vmem>>) attributes {dimension_semantics = [#tpu.dimension_semantics<parallel>], iteration_bounds = array<i64: 2>, scalar_prefetch = 1 : i64, scratch_operands = 0 : i64, tpu.core_type = #tpu.core_type<tc>, window_params = [{transform_indices = @transform_0, window_bounds = array<i64: 2, 8, 8, 32>}, {pipeline_mode = #tpu.pipeline_mode<synchronous>, transform_indices = @transform_1, window_bounds = array<i64: 33, 76>}, {pipeline_mode = #tpu.pipeline_mode<synchronous>, transform_indices = @transform_2, window_bounds = array<i64: 1, 64>}, {pipeline_mode = #tpu.pipeline_mode<synchronous>, transform_indices = @transform_3, window_bounds = array<i64: 65, 35>}, {pipeline_mode = #tpu.pipeline_mode<synchronous>, transform_indices = @transform_4, window_bounds = array<i64: 1, 32>}, {transform_indices = @transform_5, window_bounds = array<i64: 2, 8, 256>}]} {
    %c0 = arith.constant 0 : index
    %c0_0 = arith.constant 0 : index
    %c0_1 = arith.constant 0 : index
    %c0_2 = arith.constant 0 : index
    %0 = vector.load %arg2[%c0, %c0_0, %c0_1, %c0_2] : memref<2x8x8x32xf32, #tpu.memory_space<vmem>>, vector<2x8x8x32xf32>
    %1 = vector.shape_cast %0 : vector<2x8x8x32xf32> to vector<16x8x32xf32>
    %2 = tpu.iota {dimensions = array<i32: 0>} : vector<16x1x1xi32>
    %c0_i32 = arith.constant 0 : i32
    %3 = vector.broadcast %c0_i32 : i32 to vector<16x1x1xi32>
    %c0_i32_3 = arith.constant 0 : i32
    %4 = vector.broadcast %c0_i32_3 : i32 to vector<16x1x1xi32>
    %5 = arith.cmpi sge, %2, %4 : vector<16x1x1xi32>
    %c8_i32 = arith.constant 8 : i32
    %6 = vector.broadcast %c8_i32 : i32 to vector<16x1x1xi32>
    %7 = arith.cmpi slt, %2, %6 : vector<16x1x1xi32>
    %8 = arith.andi %5, %7 : vector<16x1x1xi1>
    %c2_i32 = arith.constant 2 : i32
    %9 = arith.muli %arg0, %c2_i32 : i32
    %c0_i32_4 = arith.constant 0 : i32
    %10 = arith.addi %9, %c0_i32_4 : i32
    %11 = arith.index_cast %10 : i32 to index
    %12 = memref.load %arg1[%11] : memref<4xi32, #tpu.memory_space<smem>>
    %13 = vector.broadcast %12 : i32 to vector<16x1x1xi32>
    %14 = arith.select %8, %13, %3 : vector<16x1x1xi1>, vector<16x1x1xi32>
    %c8_i32_5 = arith.constant 8 : i32
    %15 = vector.broadcast %c8_i32_5 : i32 to vector<16x1x1xi32>
    %16 = arith.cmpi sge, %2, %15 : vector<16x1x1xi32>
    %c16_i32 = arith.constant 16 : i32
    %17 = vector.broadcast %c16_i32 : i32 to vector<16x1x1xi32>
    %18 = arith.cmpi slt, %2, %17 : vector<16x1x1xi32>
    %19 = arith.andi %16, %18 : vector<16x1x1xi1>
    %c2_i32_6 = arith.constant 2 : i32
    %20 = arith.muli %arg0, %c2_i32_6 : i32
    %c1_i32 = arith.constant 1 : i32
    %21 = arith.addi %20, %c1_i32 : i32
    %22 = arith.index_cast %21 : i32 to index
    %23 = memref.load %arg1[%22] : memref<4xi32, #tpu.memory_space<smem>>
    %24 = vector.broadcast %23 : i32 to vector<16x1x1xi32>
    %25 = arith.select %19, %24, %14 : vector<16x1x1xi1>, vector<16x1x1xi32>
    %c1_i32_7 = arith.constant 1 : i32
    %26 = vector.broadcast %c1_i32_7 : i32 to vector<16x1x1xi32>
    %27 = arith.maxsi %25, %26 : vector<16x1x1xi32>
    %28 = arith.sitofp %27 : vector<16x1x1xi32> to vector<16x1x1xf32>
    %cst = arith.constant 1.000000e+00 : f32
    %29 = vector.broadcast %cst : f32 to vector<16x1x1xf32>
    %30 = arith.divf %29, %28 : vector<16x1x1xf32>
    %31 = tpu.iota {dimensions = array<i32: 1>} : vector<1x8x1xi32>
    %32 = vector.broadcast %31 : vector<1x8x1xi32> to vector<16x8x1xi32>
    %33 = vector.broadcast %25 : vector<16x1x1xi32> to vector<16x8x1xi32>
    %34 = arith.cmpi slt, %32, %33 : vector<16x8x1xi32>
    %35 = tpu.iota {dimensions = array<i32: 2>} : vector<1x1x8xi32>
    %36 = vector.broadcast %35 : vector<1x1x8xi32> to vector<16x1x8xi32>
    %37 = vector.broadcast %25 : vector<16x1x1xi32> to vector<16x1x8xi32>
    %38 = arith.cmpi slt, %36, %37 : vector<16x1x8xi32>
    %c0_8 = arith.constant 0 : index
    %c0_9 = arith.constant 0 : index
    %39 = vector.load %arg3[%c0_8, %c0_9] : memref<33x76xbf16, #tpu.memory_space<vmem>>, vector<33x76xbf16>
    %c0_10 = arith.constant 0 : index
    %c0_11 = arith.constant 0 : index
    %40 = vector.load %arg4[%c0_10, %c0_11] : memref<1x64xf32, #tpu.memory_space<vmem>>, vector<1x64xf32>
    %cst_12 = arith.constant 0.000000e+00 : f32
    %41 = vector.shape_cast %34 : vector<16x8x1xi1> to vector<16x8x1xi1>
    %42 = vector.broadcast %41 : vector<16x8x1xi1> to vector<16x8x32xi1>
    %43 = vector.broadcast %cst_12 : f32 to vector<16x8x32xf32>
    %44 = arith.select %42, %1, %43 : vector<16x8x32xi1>, vector<16x8x32xf32>
    %cst_13 = arith.constant dense<0.000000e+00> : vector<16x32xf32>
    %45 = vector.multi_reduction <add>, %44, %cst_13 [1] : vector<16x8x32xf32> to vector<16x32xf32>
    %46 = vector.shape_cast %45 : vector<16x32xf32> to vector<16x1x32xf32>
    %47 = vector.broadcast %30 : vector<16x1x1xf32> to vector<16x1x32xf32>
    %48 = arith.mulf %46, %47 : vector<16x1x32xf32>
    %49 = vector.broadcast %48 : vector<16x1x32xf32> to vector<16x8x32xf32>
    %50 = arith.subf %1, %49 : vector<16x8x32xf32>
    %cst_14 = arith.constant 0.000000e+00 : f32
    %51 = vector.shape_cast %34 : vector<16x8x1xi1> to vector<16x8x1xi1>
    %52 = vector.broadcast %51 : vector<16x8x1xi1> to vector<16x8x32xi1>
    %53 = vector.broadcast %cst_14 : f32 to vector<16x8x32xf32>
    %54 = arith.select %52, %50, %53 : vector<16x8x32xi1>, vector<16x8x32xf32>
    %55 = arith.mulf %54, %54 : vector<16x8x32xf32>
    %cst_15 = arith.constant dense<0.000000e+00> : vector<16x32xf32>
    %56 = vector.multi_reduction <add>, %55, %cst_15 [1] : vector<16x8x32xf32> to vector<16x32xf32>
    %57 = vector.shape_cast %56 : vector<16x32xf32> to vector<16x1x32xf32>
    %58 = vector.broadcast %30 : vector<16x1x1xf32> to vector<16x1x32xf32>
    %59 = arith.mulf %57, %58 : vector<16x1x32xf32>
    %60 = vector.broadcast %48 : vector<16x1x32xf32> to vector<16x8x32xf32>
    %61 = arith.subf %1, %60 : vector<16x8x32xf32>
    %cst_16 = arith.constant 9.99999974E-6 : f32
    %62 = vector.broadcast %cst_16 : f32 to vector<16x1x32xf32>
    %63 = arith.addf %59, %62 : vector<16x1x32xf32>
    %64 = math.rsqrt %63 : vector<16x1x32xf32>
    %65 = vector.broadcast %64 : vector<16x1x32xf32> to vector<16x8x32xf32>
    %66 = arith.mulf %61, %65 : vector<16x8x32xf32>
    %cst_17 = arith.constant 0.000000e+00 : f32
    %67 = vector.shape_cast %34 : vector<16x8x1xi1> to vector<16x8x1xi1>
    %68 = vector.broadcast %67 : vector<16x8x1xi1> to vector<16x8x32xi1>
    %69 = vector.broadcast %cst_17 : f32 to vector<16x8x32xf32>
    %70 = arith.select %68, %66, %69 : vector<16x8x32xi1>, vector<16x8x32xf32>
    %71 = vector.shape_cast %70 : vector<16x8x32xf32> to vector<128x32xf32>
    %cst_18 = arith.constant 1.000000e+00 : f32
    %72 = vector.broadcast %cst_18 : f32 to vector<128x1xf32>
    %73 = tpu.concatenate %71, %72 in 1 : vector<128x32xf32>, vector<128x1xf32> -> vector<128x33xf32>
    %74 = arith.truncf %73 : vector<128x33xf32> to vector<128x33xbf16>
    %cst_19 = arith.constant dense<0.000000e+00> : vector<128x76xf32>
    %75 = tpu.matmul %74, %39, %cst_19 {dimension_numbers = #tpu.dot_dimension_numbers<[1], [0], [0], [1], [0, 0, 1, 1], [], []>} : vector<128x33xbf16>, vector<33x76xbf16>, vector<128x76xf32> -> vector<128x76xf32>
    %76 = vector.shape_cast %75 : vector<128x76xf32> to vector<16x8x76xf32>
    %77 = vector.extract_strided_slice %76 {offsets = [0, 0, 0], sizes = [16, 8, 16], strides = [1, 1, 1]} : vector<16x8x76xf32> to vector<16x8x16xf32>
    %78 = vector.extract_strided_slice %76 {offsets = [0, 0, 64], sizes = [16, 8, 2], strides = [1, 1, 1]} : vector<16x8x76xf32> to vector<16x8x2xf32>
    %79 = vector.extract_strided_slice %76 {offsets = [0, 0, 65], sizes = [16, 8, 2], strides = [1, 1, 1]} : vector<16x8x76xf32> to vector<16x8x2xf32>
    %cst_20 = arith.constant dense<0.000000e+00> : vector<16x8x8xf32>
    %80 = tpu.matmul %78, %79, %cst_20 {dimension_numbers = #tpu.dot_dimension_numbers<[2], [2], [1], [1], [0, 0, 0, 1, 1, 1], [0], [0]>} : vector<16x8x2xf32>, vector<16x8x2xf32>, vector<16x8x8xf32> -> vector<16x8x8xf32>
    %cst_21 = arith.constant 0.000000e+00 : f32
    %81 = vector.broadcast %cst_21 : f32 to vector<16x8x8xf32>
    %82 = arith.cmpf ogt, %80, %81 : vector<16x8x8xf32>
    %cst_22 = arith.constant 2.000000e-01 : f32
    %83 = vector.broadcast %cst_22 : f32 to vector<16x8x8xf32>
    %84 = arith.mulf %83, %80 : vector<16x8x8xf32>
    %85 = arith.select %82, %80, %84 : vector<16x8x8xi1>, vector<16x8x8xf32>
    %cst_23 = arith.constant -1.000000e+30 : f32
    %86 = vector.shape_cast %38 : vector<16x1x8xi1> to vector<16x1x8xi1>
    %87 = vector.broadcast %86 : vector<16x1x8xi1> to vector<16x8x8xi1>
    %88 = vector.broadcast %cst_23 : f32 to vector<16x8x8xf32>
    %89 = arith.select %87, %85, %88 : vector<16x8x8xi1>, vector<16x8x8xf32>
    %cst_24 = arith.constant dense<0xFF800000> : vector<16x8xf32>
    %90 = vector.multi_reduction <maximumf>, %89, %cst_24 [2] : vector<16x8x8xf32> to vector<16x8xf32>
    %91 = vector.shape_cast %90 : vector<16x8xf32> to vector<16x8x1xf32>
    %92 = vector.broadcast %91 : vector<16x8x1xf32> to vector<16x8x8xf32>
    %93 = arith.subf %89, %92 : vector<16x8x8xf32>
    %94 = math.exp %93 : vector<16x8x8xf32>
    %cst_25 = arith.constant dense<0.000000e+00> : vector<16x8xf32>
    %95 = vector.multi_reduction <add>, %94, %cst_25 [2] : vector<16x8x8xf32> to vector<16x8xf32>
    %96 = vector.shape_cast %95 : vector<16x8xf32> to vector<16x8x1xf32>
    %97 = tpu.reciprocal %96 {approx = true} : vector<16x8x1xf32> -> vector<16x8x1xf32>
    %98 = vector.broadcast %97 : vector<16x8x1xf32> to vector<16x8x8xf32>
    %99 = arith.mulf %94, %98 : vector<16x8x8xf32>
    %100 = arith.truncf %99 : vector<16x8x8xf32> to vector<16x8x8xbf16>
    %101 = arith.truncf %77 : vector<16x8x16xf32> to vector<16x8x16xbf16>
    %cst_26 = arith.constant dense<0.000000e+00> : vector<16x8x16xf32>
    %102 = tpu.matmul %100, %101, %cst_26 {dimension_numbers = #tpu.dot_dimension_numbers<[2], [1], [1], [2], [0, 0, 0, 1, 1, 2], [0], [0]>} : vector<16x8x8xbf16>, vector<16x8x16xbf16>, vector<16x8x16xf32> -> vector<16x8x16xf32>
    %103 = vector.extract_strided_slice %76 {offsets = [0, 0, 16], sizes = [16, 8, 16], strides = [1, 1, 1]} : vector<16x8x76xf32> to vector<16x8x16xf32>
    %104 = vector.extract_strided_slice %76 {offsets = [0, 0, 67], sizes = [16, 8, 2], strides = [1, 1, 1]} : vector<16x8x76xf32> to vector<16x8x2xf32>
    %105 = vector.extract_strided_slice %76 {offsets = [0, 0, 68], sizes = [16, 8, 2], strides = [1, 1, 1]} : vector<16x8x76xf32> to vector<16x8x2xf32>
    %cst_27 = arith.constant dense<0.000000e+00> : vector<16x8x8xf32>
    %106 = tpu.matmul %104, %105, %cst_27 {dimension_numbers = #tpu.dot_dimension_numbers<[2], [2], [1], [1], [0, 0, 0, 1, 1, 1], [0], [0]>} : vector<16x8x2xf32>, vector<16x8x2xf32>, vector<16x8x8xf32> -> vector<16x8x8xf32>
    %cst_28 = arith.constant 0.000000e+00 : f32
    %107 = vector.broadcast %cst_28 : f32 to vector<16x8x8xf32>
    %108 = arith.cmpf ogt, %106, %107 : vector<16x8x8xf32>
    %cst_29 = arith.constant 2.000000e-01 : f32
    %109 = vector.broadcast %cst_29 : f32 to vector<16x8x8xf32>
    %110 = arith.mulf %109, %106 : vector<16x8x8xf32>
    %111 = arith.select %108, %106, %110 : vector<16x8x8xi1>, vector<16x8x8xf32>
    %cst_30 = arith.constant -1.000000e+30 : f32
    %112 = vector.shape_cast %38 : vector<16x1x8xi1> to vector<16x1x8xi1>
    %113 = vector.broadcast %112 : vector<16x1x8xi1> to vector<16x8x8xi1>
    %114 = vector.broadcast %cst_30 : f32 to vector<16x8x8xf32>
    %115 = arith.select %113, %111, %114 : vector<16x8x8xi1>, vector<16x8x8xf32>
    %cst_31 = arith.constant dense<0xFF800000> : vector<16x8xf32>
    %116 = vector.multi_reduction <maximumf>, %115, %cst_31 [2] : vector<16x8x8xf32> to vector<16x8xf32>
    %117 = vector.shape_cast %116 : vector<16x8xf32> to vector<16x8x1xf32>
    %118 = vector.broadcast %117 : vector<16x8x1xf32> to vector<16x8x8xf32>
    %119 = arith.subf %115, %118 : vector<16x8x8xf32>
    %120 = math.exp %119 : vector<16x8x8xf32>
    %cst_32 = arith.constant dense<0.000000e+00> : vector<16x8xf32>
    %121 = vector.multi_reduction <add>, %120, %cst_32 [2] : vector<16x8x8xf32> to vector<16x8xf32>
    %122 = vector.shape_cast %121 : vector<16x8xf32> to vector<16x8x1xf32>
    %123 = tpu.reciprocal %122 {approx = true} : vector<16x8x1xf32> -> vector<16x8x1xf32>
    %124 = vector.broadcast %123 : vector<16x8x1xf32> to vector<16x8x8xf32>
    %125 = arith.mulf %120, %124 : vector<16x8x8xf32>
    %126 = arith.truncf %125 : vector<16x8x8xf32> to vector<16x8x8xbf16>
    %127 = arith.truncf %103 : vector<16x8x16xf32> to vector<16x8x16xbf16>
    %cst_33 = arith.constant dense<0.000000e+00> : vector<16x8x16xf32>
    %128 = tpu.matmul %126, %127, %cst_33 {dimension_numbers = #tpu.dot_dimension_numbers<[2], [1], [1], [2], [0, 0, 0, 1, 1, 2], [0], [0]>} : vector<16x8x8xbf16>, vector<16x8x16xbf16>, vector<16x8x16xf32> -> vector<16x8x16xf32>
    %129 = vector.extract_strided_slice %76 {offsets = [0, 0, 32], sizes = [16, 8, 16], strides = [1, 1, 1]} : vector<16x8x76xf32> to vector<16x8x16xf32>
    %130 = vector.extract_strided_slice %76 {offsets = [0, 0, 70], sizes = [16, 8, 2], strides = [1, 1, 1]} : vector<16x8x76xf32> to vector<16x8x2xf32>
    %131 = vector.extract_strided_slice %76 {offsets = [0, 0, 71], sizes = [16, 8, 2], strides = [1, 1, 1]} : vector<16x8x76xf32> to vector<16x8x2xf32>
    %cst_34 = arith.constant dense<0.000000e+00> : vector<16x8x8xf32>
    %132 = tpu.matmul %130, %131, %cst_34 {dimension_numbers = #tpu.dot_dimension_numbers<[2], [2], [1], [1], [0, 0, 0, 1, 1, 1], [0], [0]>} : vector<16x8x2xf32>, vector<16x8x2xf32>, vector<16x8x8xf32> -> vector<16x8x8xf32>
    %cst_35 = arith.constant 0.000000e+00 : f32
    %133 = vector.broadcast %cst_35 : f32 to vector<16x8x8xf32>
    %134 = arith.cmpf ogt, %132, %133 : vector<16x8x8xf32>
    %cst_36 = arith.constant 2.000000e-01 : f32
    %135 = vector.broadcast %cst_36 : f32 to vector<16x8x8xf32>
    %136 = arith.mulf %135, %132 : vector<16x8x8xf32>
    %137 = arith.select %134, %132, %136 : vector<16x8x8xi1>, vector<16x8x8xf32>
    %cst_37 = arith.constant -1.000000e+30 : f32
    %138 = vector.shape_cast %38 : vector<16x1x8xi1> to vector<16x1x8xi1>
    %139 = vector.broadcast %138 : vector<16x1x8xi1> to vector<16x8x8xi1>
    %140 = vector.broadcast %cst_37 : f32 to vector<16x8x8xf32>
    %141 = arith.select %139, %137, %140 : vector<16x8x8xi1>, vector<16x8x8xf32>
    %cst_38 = arith.constant dense<0xFF800000> : vector<16x8xf32>
    %142 = vector.multi_reduction <maximumf>, %141, %cst_38 [2] : vector<16x8x8xf32> to vector<16x8xf32>
    %143 = vector.shape_cast %142 : vector<16x8xf32> to vector<16x8x1xf32>
    %144 = vector.broadcast %143 : vector<16x8x1xf32> to vector<16x8x8xf32>
    %145 = arith.subf %141, %144 : vector<16x8x8xf32>
    %146 = math.exp %145 : vector<16x8x8xf32>
    %cst_39 = arith.constant dense<0.000000e+00> : vector<16x8xf32>
    %147 = vector.multi_reduction <add>, %146, %cst_39 [2] : vector<16x8x8xf32> to vector<16x8xf32>
    %148 = vector.shape_cast %147 : vector<16x8xf32> to vector<16x8x1xf32>
    %149 = tpu.reciprocal %148 {approx = true} : vector<16x8x1xf32> -> vector<16x8x1xf32>
    %150 = vector.broadcast %149 : vector<16x8x1xf32> to vector<16x8x8xf32>
    %151 = arith.mulf %146, %150 : vector<16x8x8xf32>
    %152 = arith.truncf %151 : vector<16x8x8xf32> to vector<16x8x8xbf16>
    %153 = arith.truncf %129 : vector<16x8x16xf32> to vector<16x8x16xbf16>
    %cst_40 = arith.constant dense<0.000000e+00> : vector<16x8x16xf32>
    %154 = tpu.matmul %152, %153, %cst_40 {dimension_numbers = #tpu.dot_dimension_numbers<[2], [1], [1], [2], [0, 0, 0, 1, 1, 2], [0], [0]>} : vector<16x8x8xbf16>, vector<16x8x16xbf16>, vector<16x8x16xf32> -> vector<16x8x16xf32>
    %155 = vector.extract_strided_slice %76 {offsets = [0, 0, 48], sizes = [16, 8, 16], strides = [1, 1, 1]} : vector<16x8x76xf32> to vector<16x8x16xf32>
    %156 = vector.extract_strided_slice %76 {offsets = [0, 0, 73], sizes = [16, 8, 2], strides = [1, 1, 1]} : vector<16x8x76xf32> to vector<16x8x2xf32>
    %157 = vector.extract_strided_slice %76 {offsets = [0, 0, 74], sizes = [16, 8, 2], strides = [1, 1, 1]} : vector<16x8x76xf32> to vector<16x8x2xf32>
    %cst_41 = arith.constant dense<0.000000e+00> : vector<16x8x8xf32>
    %158 = tpu.matmul %156, %157, %cst_41 {dimension_numbers = #tpu.dot_dimension_numbers<[2], [2], [1], [1], [0, 0, 0, 1, 1, 1], [0], [0]>} : vector<16x8x2xf32>, vector<16x8x2xf32>, vector<16x8x8xf32> -> vector<16x8x8xf32>
    %cst_42 = arith.constant 0.000000e+00 : f32
    %159 = vector.broadcast %cst_42 : f32 to vector<16x8x8xf32>
    %160 = arith.cmpf ogt, %158, %159 : vector<16x8x8xf32>
    %cst_43 = arith.constant 2.000000e-01 : f32
    %161 = vector.broadcast %cst_43 : f32 to vector<16x8x8xf32>
    %162 = arith.mulf %161, %158 : vector<16x8x8xf32>
    %163 = arith.select %160, %158, %162 : vector<16x8x8xi1>, vector<16x8x8xf32>
    %cst_44 = arith.constant -1.000000e+30 : f32
    %164 = vector.shape_cast %38 : vector<16x1x8xi1> to vector<16x1x8xi1>
    %165 = vector.broadcast %164 : vector<16x1x8xi1> to vector<16x8x8xi1>
    %166 = vector.broadcast %cst_44 : f32 to vector<16x8x8xf32>
    %167 = arith.select %165, %163, %166 : vector<16x8x8xi1>, vector<16x8x8xf32>
    %cst_45 = arith.constant dense<0xFF800000> : vector<16x8xf32>
    %168 = vector.multi_reduction <maximumf>, %167, %cst_45 [2] : vector<16x8x8xf32> to vector<16x8xf32>
    %169 = vector.shape_cast %168 : vector<16x8xf32> to vector<16x8x1xf32>
    %170 = vector.broadcast %169 : vector<16x8x1xf32> to vector<16x8x8xf32>
    %171 = arith.subf %167, %170 : vector<16x8x8xf32>
    %172 = math.exp %171 : vector<16x8x8xf32>
    %cst_46 = arith.constant dense<0.000000e+00> : vector<16x8xf32>
    %173 = vector.multi_reduction <add>, %172, %cst_46 [2] : vector<16x8x8xf32> to vector<16x8xf32>
    %174 = vector.shape_cast %173 : vector<16x8xf32> to vector<16x8x1xf32>
    %175 = tpu.reciprocal %174 {approx = true} : vector<16x8x1xf32> -> vector<16x8x1xf32>
    %176 = vector.broadcast %175 : vector<16x8x1xf32> to vector<16x8x8xf32>
    %177 = arith.mulf %172, %176 : vector<16x8x8xf32>
    %178 = arith.truncf %177 : vector<16x8x8xf32> to vector<16x8x8xbf16>
    %179 = arith.truncf %155 : vector<16x8x16xf32> to vector<16x8x16xbf16>
    %cst_47 = arith.constant dense<0.000000e+00> : vector<16x8x16xf32>
    %180 = tpu.matmul %178, %179, %cst_47 {dimension_numbers = #tpu.dot_dimension_numbers<[2], [1], [1], [2], [0, 0, 0, 1, 1, 2], [0], [0]>} : vector<16x8x8xbf16>, vector<16x8x16xbf16>, vector<16x8x16xf32> -> vector<16x8x16xf32>
    %181 = tpu.concatenate %102, %128, %154, %180 in 2 : vector<16x8x16xf32>, vector<16x8x16xf32>, vector<16x8x16xf32>, vector<16x8x16xf32> -> vector<16x8x64xf32>
    %182 = vector.shape_cast %40 : vector<1x64xf32> to vector<1x1x64xf32>
    %183 = vector.broadcast %182 : vector<1x1x64xf32> to vector<16x8x64xf32>
    %184 = arith.addf %181, %183 : vector<16x8x64xf32>
    %cst_48 = arith.constant 0.000000e+00 : f32
    %185 = vector.broadcast %cst_48 : f32 to vector<16x8x64xf32>
    %186 = arith.cmpf ogt, %184, %185 : vector<16x8x64xf32>
    %cst_49 = arith.constant 0.000000e+00 : f32
    %187 = vector.broadcast %cst_49 : f32 to vector<16x8x64xf32>
    %188 = arith.minimumf %184, %187 : vector<16x8x64xf32>
    %189 = math.exp %188 : vector<16x8x64xf32>
    %cst_50 = arith.constant 1.000000e+00 : f32
    %190 = vector.broadcast %cst_50 : f32 to vector<16x8x64xf32>
    %191 = arith.subf %189, %190 : vector<16x8x64xf32>
    %192 = arith.select %186, %184, %191 : vector<16x8x64xi1>, vector<16x8x64xf32>
    %c0_51 = arith.constant 0 : index
    %c0_52 = arith.constant 0 : index
    %193 = vector.load %arg5[%c0_51, %c0_52] : memref<65x35xbf16, #tpu.memory_space<vmem>>, vector<65x35xbf16>
    %c0_53 = arith.constant 0 : index
    %c0_54 = arith.constant 0 : index
    %194 = vector.load %arg6[%c0_53, %c0_54] : memref<1x32xf32, #tpu.memory_space<vmem>>, vector<1x32xf32>
    %cst_55 = arith.constant 0.000000e+00 : f32
    %195 = vector.shape_cast %34 : vector<16x8x1xi1> to vector<16x8x1xi1>
    %196 = vector.broadcast %195 : vector<16x8x1xi1> to vector<16x8x64xi1>
    %197 = vector.broadcast %cst_55 : f32 to vector<16x8x64xf32>
    %198 = arith.select %196, %192, %197 : vector<16x8x64xi1>, vector<16x8x64xf32>
    %cst_56 = arith.constant dense<0.000000e+00> : vector<16x64xf32>
    %199 = vector.multi_reduction <add>, %198, %cst_56 [1] : vector<16x8x64xf32> to vector<16x64xf32>
    %200 = vector.shape_cast %199 : vector<16x64xf32> to vector<16x1x64xf32>
    %201 = vector.broadcast %30 : vector<16x1x1xf32> to vector<16x1x64xf32>
    %202 = arith.mulf %200, %201 : vector<16x1x64xf32>
    %203 = vector.broadcast %202 : vector<16x1x64xf32> to vector<16x8x64xf32>
    %204 = arith.subf %192, %203 : vector<16x8x64xf32>
    %cst_57 = arith.constant 0.000000e+00 : f32
    %205 = vector.shape_cast %34 : vector<16x8x1xi1> to vector<16x8x1xi1>
    %206 = vector.broadcast %205 : vector<16x8x1xi1> to vector<16x8x64xi1>
    %207 = vector.broadcast %cst_57 : f32 to vector<16x8x64xf32>
    %208 = arith.select %206, %204, %207 : vector<16x8x64xi1>, vector<16x8x64xf32>
    %209 = arith.mulf %208, %208 : vector<16x8x64xf32>
    %cst_58 = arith.constant dense<0.000000e+00> : vector<16x64xf32>
    %210 = vector.multi_reduction <add>, %209, %cst_58 [1] : vector<16x8x64xf32> to vector<16x64xf32>
    %211 = vector.shape_cast %210 : vector<16x64xf32> to vector<16x1x64xf32>
    %212 = vector.broadcast %30 : vector<16x1x1xf32> to vector<16x1x64xf32>
    %213 = arith.mulf %211, %212 : vector<16x1x64xf32>
    %214 = vector.broadcast %202 : vector<16x1x64xf32> to vector<16x8x64xf32>
    %215 = arith.subf %192, %214 : vector<16x8x64xf32>
    %cst_59 = arith.constant 9.99999974E-6 : f32
    %216 = vector.broadcast %cst_59 : f32 to vector<16x1x64xf32>
    %217 = arith.addf %213, %216 : vector<16x1x64xf32>
    %218 = math.rsqrt %217 : vector<16x1x64xf32>
    %219 = vector.broadcast %218 : vector<16x1x64xf32> to vector<16x8x64xf32>
    %220 = arith.mulf %215, %219 : vector<16x8x64xf32>
    %cst_60 = arith.constant 0.000000e+00 : f32
    %221 = vector.shape_cast %34 : vector<16x8x1xi1> to vector<16x8x1xi1>
    %222 = vector.broadcast %221 : vector<16x8x1xi1> to vector<16x8x64xi1>
    %223 = vector.broadcast %cst_60 : f32 to vector<16x8x64xf32>
    %224 = arith.select %222, %220, %223 : vector<16x8x64xi1>, vector<16x8x64xf32>
    %225 = vector.shape_cast %224 : vector<16x8x64xf32> to vector<128x64xf32>
    %cst_61 = arith.constant 1.000000e+00 : f32
    %226 = vector.broadcast %cst_61 : f32 to vector<128x1xf32>
    %227 = tpu.concatenate %225, %226 in 1 : vector<128x64xf32>, vector<128x1xf32> -> vector<128x65xf32>
    %228 = arith.truncf %227 : vector<128x65xf32> to vector<128x65xbf16>
    %cst_62 = arith.constant dense<0.000000e+00> : vector<128x35xf32>
    %229 = tpu.matmul %228, %193, %cst_62 {dimension_numbers = #tpu.dot_dimension_numbers<[1], [0], [0], [1], [0, 0, 1, 1], [], []>} : vector<128x65xbf16>, vector<65x35xbf16>, vector<128x35xf32> -> vector<128x35xf32>
    %230 = vector.shape_cast %229 : vector<128x35xf32> to vector<16x8x35xf32>
    %231 = vector.extract_strided_slice %230 {offsets = [0, 0, 0], sizes = [16, 8, 32], strides = [1, 1, 1]} : vector<16x8x35xf32> to vector<16x8x32xf32>
    %232 = vector.extract_strided_slice %230 {offsets = [0, 0, 32], sizes = [16, 8, 2], strides = [1, 1, 1]} : vector<16x8x35xf32> to vector<16x8x2xf32>
    %233 = vector.extract_strided_slice %230 {offsets = [0, 0, 33], sizes = [16, 8, 2], strides = [1, 1, 1]} : vector<16x8x35xf32> to vector<16x8x2xf32>
    %cst_63 = arith.constant dense<0.000000e+00> : vector<16x8x8xf32>
    %234 = tpu.matmul %232, %233, %cst_63 {dimension_numbers = #tpu.dot_dimension_numbers<[2], [2], [1], [1], [0, 0, 0, 1, 1, 1], [0], [0]>} : vector<16x8x2xf32>, vector<16x8x2xf32>, vector<16x8x8xf32> -> vector<16x8x8xf32>
    %cst_64 = arith.constant 0.000000e+00 : f32
    %235 = vector.broadcast %cst_64 : f32 to vector<16x8x8xf32>
    %236 = arith.cmpf ogt, %234, %235 : vector<16x8x8xf32>
    %cst_65 = arith.constant 2.000000e-01 : f32
    %237 = vector.broadcast %cst_65 : f32 to vector<16x8x8xf32>
    %238 = arith.mulf %237, %234 : vector<16x8x8xf32>
    %239 = arith.select %236, %234, %238 : vector<16x8x8xi1>, vector<16x8x8xf32>
    %cst_66 = arith.constant -1.000000e+30 : f32
    %240 = vector.shape_cast %38 : vector<16x1x8xi1> to vector<16x1x8xi1>
    %241 = vector.broadcast %240 : vector<16x1x8xi1> to vector<16x8x8xi1>
    %242 = vector.broadcast %cst_66 : f32 to vector<16x8x8xf32>
    %243 = arith.select %241, %239, %242 : vector<16x8x8xi1>, vector<16x8x8xf32>
    %cst_67 = arith.constant dense<0xFF800000> : vector<16x8xf32>
    %244 = vector.multi_reduction <maximumf>, %243, %cst_67 [2] : vector<16x8x8xf32> to vector<16x8xf32>
    %245 = vector.shape_cast %244 : vector<16x8xf32> to vector<16x8x1xf32>
    %246 = vector.broadcast %245 : vector<16x8x1xf32> to vector<16x8x8xf32>
    %247 = arith.subf %243, %246 : vector<16x8x8xf32>
    %248 = math.exp %247 : vector<16x8x8xf32>
    %cst_68 = arith.constant dense<0.000000e+00> : vector<16x8xf32>
    %249 = vector.multi_reduction <add>, %248, %cst_68 [2] : vector<16x8x8xf32> to vector<16x8xf32>
    %250 = vector.shape_cast %249 : vector<16x8xf32> to vector<16x8x1xf32>
    %251 = tpu.reciprocal %250 {approx = true} : vector<16x8x1xf32> -> vector<16x8x1xf32>
    %252 = vector.broadcast %251 : vector<16x8x1xf32> to vector<16x8x8xf32>
    %253 = arith.mulf %248, %252 : vector<16x8x8xf32>
    %254 = arith.truncf %253 : vector<16x8x8xf32> to vector<16x8x8xbf16>
    %255 = arith.truncf %231 : vector<16x8x32xf32> to vector<16x8x32xbf16>
    %cst_69 = arith.constant dense<0.000000e+00> : vector<16x8x32xf32>
    %256 = tpu.matmul %254, %255, %cst_69 {dimension_numbers = #tpu.dot_dimension_numbers<[2], [1], [1], [2], [0, 0, 0, 1, 1, 2], [0], [0]>} : vector<16x8x8xbf16>, vector<16x8x32xbf16>, vector<16x8x32xf32> -> vector<16x8x32xf32>
    %257 = vector.shape_cast %194 : vector<1x32xf32> to vector<1x1x32xf32>
    %258 = vector.broadcast %257 : vector<1x1x32xf32> to vector<16x8x32xf32>
    %259 = arith.addf %256, %258 : vector<16x8x32xf32>
    %260 = vector.shape_cast %259 : vector<16x8x32xf32> to vector<2x8x256xf32>
    %c0_70 = arith.constant 0 : index
    %c0_71 = arith.constant 0 : index
    %c0_72 = arith.constant 0 : index
    %261 = vector.load %arg7[%c0_70, %c0_71, %c0_72] : memref<2x8x256xf32, #tpu.memory_space<vmem>>, vector<2x8x256xf32>
    tpu.vector_store %arg7[%c0_70, %c0_71, %c0_72], %260 {strides = array<i32>} : memref<2x8x256xf32, #tpu.memory_space<vmem>>, vector<2x8x256xf32>,
    return
  }
  func.func @transform_0(%arg0: i32, %arg1: memref<4xi32, #tpu.memory_space<smem>>) -> (i32, i32, i32, i32) {
    %c0_i32 = arith.constant 0 : i32
    %c0_i32_0 = arith.constant 0 : i32
    %c0_i32_1 = arith.constant 0 : i32
    %c0_i32_2 = arith.constant 0 : i32
    return %arg0, %c0_i32, %c0_i32_0, %c0_i32_1 : i32, i32, i32, i32
  }
  func.func @transform_1(%arg0: i32, %arg1: memref<4xi32, #tpu.memory_space<smem>>) -> (i32, i32) {
    %c0_i32 = arith.constant 0 : i32
    %c0_i32_0 = arith.constant 0 : i32
    %c0_i32_1 = arith.constant 0 : i32
    return %c0_i32, %c0_i32_0 : i32, i32
  }
  func.func @transform_2(%arg0: i32, %arg1: memref<4xi32, #tpu.memory_space<smem>>) -> (i32, i32) {
    %c0_i32 = arith.constant 0 : i32
    %c0_i32_0 = arith.constant 0 : i32
    %c0_i32_1 = arith.constant 0 : i32
    return %c0_i32, %c0_i32_0 : i32, i32
  }
  func.func @transform_3(%arg0: i32, %arg1: memref<4xi32, #tpu.memory_space<smem>>) -> (i32, i32) {
    %c0_i32 = arith.constant 0 : i32
    %c0_i32_0 = arith.constant 0 : i32
    %c0_i32_1 = arith.constant 0 : i32
    return %c0_i32, %c0_i32_0 : i32, i32
  }
  func.func @transform_4(%arg0: i32, %arg1: memref<4xi32, #tpu.memory_space<smem>>) -> (i32, i32) {
    %c0_i32 = arith.constant 0 : i32
    %c0_i32_0 = arith.constant 0 : i32
    %c0_i32_1 = arith.constant 0 : i32
    return %c0_i32, %c0_i32_0 : i32, i32
  }
  func.func @transform_5(%arg0: i32, %arg1: memref<4xi32, #tpu.memory_space<smem>>) -> (i32, i32, i32) {
    %c0_i32 = arith.constant 0 : i32
    %c0_i32_0 = arith.constant 0 : i32
    %c0_i32_1 = arith.constant 0 : i32
    return %arg0, %c0_i32, %c0_i32_0 : i32, i32, i32
  }
}

</mosaic_0001>

<bundles_post_ra>
// kernel: tpu_custom_call.1
= control target key start
LH: loop header
LB: loop body
LE: loop exit
PB: predicated region body
PF: predicated region fallthrough
CT: control target
= control target key end

     0   :  { %s8570_s24 = smov [#allocation3]   ;;  %s12489_s0 = inlined_call_operand.vmem [shape: s32[4], index: 0, kind: input, shape index: {}]   ;;  %s12490_s1 = inlined_call_operand.hbm [shape: f32[4,8,8,32], index: 1, kind: input, shape index: {}]   ;;  %s12491_s2 = inlined_call_operand.vmem [shape: bf16[33,76], index: 2, kind: input, shape index: {}]   ;;  %s12492_s3 = inlined_call_operand.vmem [shape: f32[1,64], index: 3, kind: input, shape index: {}]   ;;  %s12493_s4 = inlined_call_operand.vmem [shape: bf16[65,35], index: 4, kind: input, shape index: {}]   ;;  %s12494_s5 = inlined_call_operand.vmem [shape: f32[1,32], index: 5, kind: input, shape index: {}]   ;;  %s12495_s6 = inlined_call_operand.hbm [shape: f32[4,8,256], index: 6, kind: output, shape index: {}]  }
   0x1   :  { %s12_s23 = sshll.u32 %s12489_s0, 4  ;;  %s13_s23 = int_to_ptr.vmem [resolvable:$true] %s12_s23 }
   0x2   :  { %15 = dma.vmem_to_smem %s13_s23, 16, %s8570_s24, [#allocation2] }
   0x3   :  { %8544 = dma.done.wait [#allocation2], 16 }
   0x4   :  { %8545 = vsyncadd [#allocation2], 4294967280 }
   0x5   :  { %18 = sfence }
   0x6   :  { %19 = vsyncpa [#allocation5], 0 }
   0x7   :  { %21 = vsyncpa [#allocation5 + $0x1], 0 }
   0x8   :  { %22 = vsyncpa [#allocation6], 0 }
   0x9   :  { %24 = vsyncpa [#allocation6 + $0x1], 0  ;;  %s8630_s25 = smov 0   ;;  %s8632_s26 = smov 0  }
   0xa   :  { %s8634_s27 = smov 0   ;;  %s8636_s28 = smov 0  }
   0xb LB: > { %s8651_s0 = sadd.s32 4294967295, %s8568_s28   ;;  %s7644_s29 = sadd.s32 4294967294, %s8568_s28   ;;  %s8568_s28 = sphi %s8636_s28, %s12781_s28   ;;  %s8564_s27 = sphi %s8634_s27, %s12780_s27   ;;  %s8560_s26 = sphi %s8632_s26, %s12779_s26   ;;  %s8556_s25 = sphi %s8630_s25, %s12778_s25  }
   0xc   : > { %s8655_s30 = sadd.s32 1, %s8568_s28   ;;  %s37_s7 = sadd.s32 1, %s8564_s27 }
   0xd   : > { %s34_s8 = ssub.s32 %s8568_s28, %s8655_s30  ;;  %p44_p0 = scmp.ne.s32.totalorder %s8564_s27, %s8560_s26 }
   0xe   : > { %p35_p1 = scmp.eq.s32.totalorder %s34_s8, 0  ;;  %p45_p2 = scmp.eq.s32.totalorder %s8568_s28, 0 }
   0xf   : > { %p50_p3 = scmp.ne.s32.totalorder %s8560_s26, %s8556_s25  ;;  %p51_p4 = scmp.eq.s32.totalorder %s8651_s0, 0 }
  0x10   : > { %s8667_s9 = scalar_select %p35_p1, %s8564_s27, %s37_s7  }
  0x11   : > { %p8669_p5 = por %p45_p2, %p44_p0  ;;  %p8673_p6 = por %p51_p4, %p50_p3 }
  0x12   : > { %p158_p7 = scmp.eq.s32.totalorder %s8651_s0, 1  ;;  %p164_p8 = scmp.eq.s32.totalorder %s7644_s29, 1 }
  0x13   : > { %p7979_p10 = scmp.lt.s32.totalorder %s8568_s28, 2  ;;  %s196_s14 = sand.u32 1, %s8564_s27  }
  0x14   : > { %p8680_p11 = por %p158_p7, %p44_p0  ;;  %p8684_p12 = por %p164_p8, %p50_p3 }
  0x15   : > { %s7958_s15 = sshll.u32 %s8568_s28, 7  ;;  %s7647_s16 = sshll.u32 %s196_s14, 7 }
  0x16   : > { %s206_s19 = scalar_lea.hbm %s12490_s1, %s7958_s15  ;;  %s200_s21 = scalar_lea.vmem [#allocation4], %s7647_s16 }
  0x17   : > { %s207_s20 = sshll.u32 %s206_s19, 4  ;;  %s209_s22 = sshll.u32 %s200_s21, 4  ;;  %s208_s20 = int_to_ptr.hbm [resolvable:$true] %s207_s20  ;;  %s210_s22 = int_to_ptr.vmem [resolvable:$true] %s209_s22 }
  0x18   : > { %p8695_p13 = pnand %p7979_p10, %p8669_p5  ;;  %p7651_p0 = scmp.ge.s32.totalorder %s8568_s28, 1 }
  0x19   : > { %p217_p1 = scmp.lt.s32.totalorder %s8568_s28, 3  ;;  %s197_s24 = scalar_lea.sflag [#allocation5], %s196_s14 }
  0x1a   : > { %s8470_s29 = sshra.s32 %s208_s20, 4  ;;  %p8474_p3 = pneg %p8695_p13  ;;  %s8471_s29 = int_to_ptr.hbm [resolvable:$true] %s8470_s29 }
  0x1b   : > { %s8472_s7 = scalar_lea.hbm %s8471_s29, 128  ;;  %s8477_s10 = scalar_lea.hbm %s12490_s1, 256 }
  0x1c   : > { %p8473_p2 = scmp.ne.s32.totalorder %s8471_s29, %s8472_s7  ;;  %p8478_p5 = scmp.lt.s32.totalorder %s8471_s29, %s12490_s1 }
  0x1d   : > { %p8479_p8 = scmp.lt.s32.totalorder %s8477_s10, %s8472_s7 }
  0x1e   : > { %p8475_p4 = pnand %p8474_p3, %p8473_p2 }
  0x1f   : > { %p8480_p10 = por %p8479_p8, %p8478_p5 }
  0x20   : > { %p8476_p7 = pneg %p8475_p4 }
  0x22   : > { %p8481_p9 = pnand %p8480_p10, %p8476_p7 }
  0x24   : > { %8484 = shalt.err (!%p8481_p9)
}
  0x25   : > { %s8571_s14 = smov 128   ;;  %s8572_s18 = smov 8  }
  0x26   : > { %7974 = dma.hbm_to_vmem [thread:$0]  (!%p8695_p13), %s208_s20, 2048, %s210_s22, %s197_s24, %s8571_s14, %s8571_s14, %s8572_s18  }
  0x27   : > { %p218_p2 = pnand %p7651_p0, %p217_p1 }
  0x29   : > { %221 = sbr.rel (%p218_p2) target bundleno = 4400 (0x1130), region = 40 }
  0x2e   : > { %s8716_s19 = sand.u32 1, %s8560_s26  }
  0x2f   : > { %s7652_s21 = sshll.u32 %s8716_s19, 7  ;;  %s224_s29 = scalar_lea.sflag [#allocation5], %s8716_s19 }
  0x30   : > { %s8720_s7 = scalar_lea.vmem [#allocation4], %s7652_s21 }
  0x31   : > { %8547 = dma.done.wait (%p8673_p6), %s224_s29, 2048  }
  0x32   : > { %8549 = vsyncadd (%p8673_p6), %s224_s29, 4294965248  ;;  %s7654_s20 = sshll.u32 %s8651_s0, 1  ;;  %v316_v0 = vlaneseq  ;;  %vm927_vm0 = vcmask 1040384   ;;  %v328_v3 = vld [vmem:[%s12491_s2 + $0x10] sm:$0x1]  ;;  %vm12496_vm1 = vcmask 261120  }
  0x33   : > { %s275_s22 = sld [smem:[#allocation3 + %s7654_s20]]  ;;  %v896_v5 = vunpack.c.l.b16 %v328_v3  ;;  %v8573_v6 = vmov 0   ;;  %v8739_v8 = vld [vmem:[%s8720_s7] sm:$0xff]  ;;  %v8742_v9 = vld [vmem:[%s8720_s7 + $0x8] sm:$0xff]  ;;  %v12556_v10 = vmov 0  ;;  %v8761_v15 = vld [vmem:[%s8720_s7 + $0x10] sm:$0xff] }
  0x34   : > { %v8729_v1 = vshrl.u32 %v316_v0, 7  ;;  %v8731_v2 = vand.u32 127, %v316_v0  ;;  %v8736_v7 = vsel %vm927_vm0, 65535, %v8573_v6  ;;  %v8764_v16 = vld [vmem:[%s8720_s7 + $0x18] sm:$0xff]  ;;  %v7960_v27 = vld [vmem:[%s12491_s2 + $0x8] sm:$0xff]  ;;  %v8781_v32 = vld [vmem:[%s8720_s7 + $0x20] sm:$0xff] }
  0x35   : > { %12555 = vst [vmem:[#allocation11_spill] sm:$0xff] %v8736_v7  ;;  %v899_v17 = vpack.c.b16 %v896_v5, %v896_v5  ;;  %v8784_v33 = vld [vmem:[%s8720_s7 + $0x28] sm:$0xff]  ;;  %v7959_v43 = vld [vmem:[%s12491_s2] sm:$0xff]  ;;  %s277_s16 = sadd.s32 1, %s7654_s20  ;;  %s8574_s14 = smov 63  }
  0x36   : > { %s8864_s17 = sld [smem:[#allocation3 + %s277_s16]]  ;;  %s8575_s18 = smov 64  }
  0x37   : > { %v931_v24 = vand.u32 %v8736_v7, %v899_v17  ;;  %s8576_s21 = smov 61   ;;  %s8577_s29 = smov 60  }
  0x38   : > { %s8579_s20 = smov 57   ;;  %s8581_s23 = smov 96  }
  0x39   : > { %v276_v4 = vstv %s275_s22  ;;  %938 = vmatpush.bf16.msra.mxu0 %v931_v24  ;;  %s8580_s22 = smov 58   ;;  %s8582_s24 = smov 55  }
  0x3a   : > { %vm280_vm2 = vcmp.gt.s32.totalorder %v276_v4, 1  ;;  %vm8745_vm3 = vcmp.lt.s32.totalorder %v8729_v1, %v276_v4  ;;  %vm8750_vm4 = vcmp.lt.s32.totalorder %v8731_v2, %v276_v4  ;;  %s8583_s11 = smov 54   ;;  %s8584_s8 = smov 80  }
  0x3b   : > { %v12557_v10 = vsel %vm8745_vm3, 4294967295, %v12556_v10  ;;  %v281_v11 = vsel %vm280_vm2, %v276_v4, 1  ;;  %v334_v13 = vsel %vm8745_vm3, %v8739_v8, 0.0  ;;  %v335_v14 = vsel %vm8745_vm3, %v8742_v9, 0.0  ;;  %s8585_s15 = smov 16   ;;  %s8586_s10 = smov 32  }
  0x3c   : > { %12558 = vst [vmem:[#allocation12_spill] sm:$0xff] %v12557_v10  ;;  %v284_v18 = vcvt.s32.f32 %v281_v11  ;;  %v351_v19 = vsel %vm12496_vm1, %v334_v13, 0.0  ;;  %v358_v21 = vsel %vm12496_vm1, %v335_v14, 0.0  ;;  %v336_v22 = vsel %vm8745_vm3, %v8761_v15, 0.0 }
  0x3d   : > { %v352_v20 = vrot.slane %v351_v19, 4  ;;  %v337_v23 = vsel %vm8745_vm3, %v8764_v16, 0.0  ;;  %v359_v26 = vrot.slane %v358_v21, 4  ;;  %v365_v28 = vsel %vm12496_vm1, %v336_v22, 0.0  ;;  %939 = vmatpush.bf16.msra.mxu0 %v7960_v27 }
  0x3e   : > { %8037 = vrcp.f32 %v284_v18  ;;  %v372_v29 = vsel %vm12496_vm1, %v337_v23, 0.0  ;;  %vm291_vm5 = vweird.f32 %v284_v18  ;;  %v366_v34 = vrot.slane %v365_v28, 4 }
  0x3f   : > { %v353_v25 = vadd.f32 %v352_v20, %v351_v19  ;;  %v360_v31 = vadd.f32 %v359_v26, %v358_v21  ;;  %v373_v35 = vrot.slane %v372_v29, 4  ;;  %v338_v36 = vsel %vm8745_vm3, %v8781_v32, 0.0 }
  0x40   : > { %v339_v37 = vsel %vm8745_vm3, %v8784_v33, 0.0  ;;  %v379_v40 = vsel %vm12496_vm1, %v338_v36, 0.0  ;;  %v367_v44 = vadd.f32 %v366_v34, %v365_v28  ;;  %v295_v49 = vand.u32 2147483647, %v284_v18 }
  0x41   : > { %v354_v30 = vrot.slane %v353_v25, 2  ;;  %v361_v39 = vrot.slane %v360_v31, 2  ;;  %v386_v41 = vsel %vm12496_vm1, %v339_v37, 0.0  ;;  %v374_v45 = vadd.f32 %v373_v35, %v372_v29  ;;  %940 = vmatpush.bf16.msra.mxu0 %v7959_v43  ;;  %v8819_v37 = vld [vmem:[%s8720_s7 + $0x30] sm:$0xff] }
  0x42   : > { %v380_v46 = vrot.slane %v379_v40, 4  ;;  %v387_v47 = vrot.slane %v386_v41, 4  ;;  %v297_v50 = vand.u32 2147483648, %v284_v18  ;;  %v368_v52 = vrot.slane %v367_v44, 2 }
  0x43   : > { %v355_v38 = vadd.f32 %v354_v30, %v353_v25  ;;  %v362_v51 = vadd.f32 %v361_v39, %v360_v31  ;;  %v375_v53 = vrot.slane %v374_v45, 2  ;;  %vm296_vm8 = vcmp.eq.f32.partialorder %v295_v49, 8.507059e+37 }
  0x44   : > { %v8038_v42 = vpop.eup %8037  ;;  %v381_v54 = vadd.f32 %v380_v46, %v379_v40  ;;  %v388_v55 = vadd.f32 %v387_v47, %v386_v41  ;;  %v369_v59 = vadd.f32 %v368_v52, %v367_v44  ;;  %v298_v0 = vor.u32 1.1754944e-38, %v297_v50 }
  0x45   : > { %v287_v48 = vmul.f32 %v8038_v42, %v284_v18  ;;  %vm292_vm6 = vweird.f32 %v8038_v42  ;;  %v356_v57 = vrot.slane %v355_v38, 1  ;;  %v363_v58 = vrot.slane %v362_v51, 1 }
  0x46   : > { %v376_v60 = vadd.f32 %v375_v53, %v374_v45  ;;  %v382_v61 = vrot.slane %v381_v54, 2  ;;  %v389_v62 = vrot.slane %v388_v55, 2  ;;  %vm293_vm7 = vmor %vm291_vm5, %vm292_vm6  ;;  %v370_v3 = vrot.slane %v369_v59, 1 }
  0x47   : > { %v288_v56 = vsub.f32 1.0, %v287_v48  ;;  %v357_v13 = vadd.f32 %v356_v57, %v355_v38  ;;  %v364_v14 = vadd.f32 %v363_v58, %v362_v51  ;;  %v8822_v38 = vld [vmem:[%s8720_s7 + $0x38] sm:$0xff] }
  0x48   : > { %v377_v4 = vrot.slane %v376_v60, 1  ;;  %v383_v5 = vadd.f32 %v382_v61, %v381_v54  ;;  %v390_v6 = vadd.f32 %v389_v62, %v388_v55  ;;  %v371_v17 = vadd.f32 %v370_v3, %v369_v59 }
  0x49   : > { %v289_v63 = vmul.f32 %v8038_v42, %v288_v56 }
  0x4a   : > { %v378_v19 = vadd.f32 %v377_v4, %v376_v60  ;;  %v384_v20 = vrot.slane %v383_v5, 1  ;;  %v391_v21 = vrot.slane %v390_v6, 1 }
  0x4b   : > { %v290_v11 = vadd.f32 %v8038_v42, %v289_v63 }
  0x4c   : > { %v385_v24 = vadd.f32 %v384_v20, %v383_v5  ;;  %v392_v18 = vadd.f32 %v391_v21, %v390_v6 }
  0x4d   : > { %v294_v22 = vsel %vm293_vm7, %v8038_v42, %v290_v11  ;;  %vm902_vm7 = vcmask 269312  }
  0x4e   : > { %v8798_v23 = vsel %vm296_vm8, %v298_v0, %v294_v22 }
  0x4f   : > { %12561 = vst [vmem:[#allocation13_spill] sm:$0xff] %v8798_v23  ;;  %v463_v25 = vmul.f32 %v357_v13, %v8798_v23  ;;  %v464_v26 = vmul.f32 %v364_v14, %v8798_v23  ;;  %v465_v27 = vmul.f32 %v371_v17, %v8798_v23  ;;  %v466_v28 = vmul.f32 %v378_v19, %v8798_v23 }
  0x50   : > { %v467_v29 = vmul.f32 %v385_v24, %v8798_v23  ;;  %v468_v30 = vmul.f32 %v392_v18, %v8798_v23 }
  0x51   : > { %v8807_v31 = vsub.f32 %v8739_v8, %v463_v25  ;;  %v8810_v34 = vsub.f32 %v8742_v9, %v464_v26  ;;  %v8813_v35 = vsub.f32 %v8761_v15, %v465_v27  ;;  %v8816_v36 = vsub.f32 %v8764_v16, %v466_v28 }
  0x52   : > { %v8825_v39 = vsub.f32 %v8781_v32, %v467_v29  ;;  %v8828_v40 = vsub.f32 %v8784_v33, %v468_v30  ;;  %v340_v8 = vsel %vm8745_vm3, %v8819_v37, 0.0  ;;  %v341_v9 = vsel %vm8745_vm3, %v8822_v38, 0.0 }
  0x53   : > { %v495_v15 = vsel %vm8745_vm3, %v8807_v31, 0.0  ;;  %v496_v16 = vsel %vm8745_vm3, %v8810_v34, 0.0  ;;  %v497_v32 = vsel %vm8745_vm3, %v8813_v35, 0.0  ;;  %v498_v33 = vsel %vm8745_vm3, %v8816_v36, 0.0 }
  0x54   : > { %v511_v41 = vmul.f32 %v495_v15, %v495_v15  ;;  %v512_v42 = vmul.f32 %v496_v16, %v496_v16  ;;  %v513_v43 = vmul.f32 %v497_v32, %v497_v32  ;;  %v514_v44 = vmul.f32 %v498_v33, %v498_v33 }
  0x55   : > { %v499_v45 = vsel %vm8745_vm3, %v8825_v39, 0.0  ;;  %v500_v46 = vsel %vm8745_vm3, %v8828_v40, 0.0  ;;  %v393_v47 = vsel %vm12496_vm1, %v340_v8, 0.0  ;;  %v400_v48 = vsel %vm12496_vm1, %v341_v9, 0.0 }
  0x56   : > { %v527_v49 = vsel %vm12496_vm1, %v511_v41, 0.0  ;;  %v534_v50 = vsel %vm12496_vm1, %v512_v42, 0.0  ;;  %v541_v51 = vsel %vm12496_vm1, %v513_v43, 0.0  ;;  %v548_v52 = vsel %vm12496_vm1, %v514_v44, 0.0 }
  0x57   : > { %v528_v53 = vrot.slane %v527_v49, 4  ;;  %v535_v54 = vrot.slane %v534_v50, 4  ;;  %v542_v55 = vrot.slane %v541_v51, 4  ;;  %v549_v56 = vrot.slane %v548_v52, 4 }
  0x58   : > { %v515_v57 = vmul.f32 %v499_v45, %v499_v45  ;;  %v516_v58 = vmul.f32 %v500_v46, %v500_v46  ;;  %v394_v59 = vrot.slane %v393_v47, 4  ;;  %v401_v60 = vrot.slane %v400_v48, 4 }
  0x59   : > { %v529_v61 = vadd.f32 %v528_v53, %v527_v49  ;;  %v536_v62 = vadd.f32 %v535_v54, %v534_v50  ;;  %v543_v63 = vadd.f32 %v542_v55, %v541_v51  ;;  %v550_v0 = vadd.f32 %v549_v56, %v548_v52 }
  0x5a   : > { %v555_v3 = vsel %vm12496_vm1, %v515_v57, 0.0  ;;  %v562_v4 = vsel %vm12496_vm1, %v516_v58, 0.0  ;;  %v395_v5 = vadd.f32 %v394_v59, %v393_v47  ;;  %v402_v6 = vadd.f32 %v401_v60, %v400_v48 }
  0x5b   : > { %v530_v11 = vrot.slane %v529_v61, 2  ;;  %v537_v13 = vrot.slane %v536_v62, 2  ;;  %v544_v14 = vrot.slane %v543_v63, 2  ;;  %v551_v17 = vrot.slane %v550_v0, 2 }
  0x5c   : > { %v556_v19 = vrot.slane %v555_v3, 4  ;;  %v563_v20 = vrot.slane %v562_v4, 4  ;;  %v396_v21 = vrot.slane %v395_v5, 2  ;;  %v403_v22 = vrot.slane %v402_v6, 2 }
  0x5d   : > { %v531_v24 = vadd.f32 %v530_v11, %v529_v61  ;;  %v538_v18 = vadd.f32 %v537_v13, %v536_v62  ;;  %v545_v25 = vadd.f32 %v544_v14, %v543_v63  ;;  %v552_v26 = vadd.f32 %v551_v17, %v550_v0 }
  0x5e   : > { %v557_v27 = vadd.f32 %v556_v19, %v555_v3  ;;  %v564_v28 = vadd.f32 %v563_v20, %v562_v4  ;;  %v397_v29 = vadd.f32 %v396_v21, %v395_v5  ;;  %v404_v41 = vadd.f32 %v403_v22, %v402_v6 }
  0x5f   : > { %v532_v30 = vrot.slane %v531_v24, 1  ;;  %v539_v8 = vrot.slane %v538_v18, 1  ;;  %v546_v9 = vrot.slane %v545_v25, 1  ;;  %v553_v15 = vrot.slane %v552_v26, 1 }
  0x60   : > { %v558_v16 = vrot.slane %v557_v27, 2  ;;  %v565_v32 = vrot.slane %v564_v28, 2  ;;  %v398_v33 = vrot.slane %v397_v29, 1  ;;  %v405_v49 = vrot.slane %v404_v41, 1 }
  0x61   : > { %v533_v42 = vadd.f32 %v532_v30, %v531_v24  ;;  %v540_v43 = vadd.f32 %v539_v8, %v538_v18  ;;  %v547_v44 = vadd.f32 %v546_v9, %v545_v25  ;;  %v554_v45 = vadd.f32 %v553_v15, %v552_v26 }
  0x62   : > { %v559_v46 = vadd.f32 %v558_v16, %v557_v27  ;;  %v566_v47 = vadd.f32 %v565_v32, %v564_v28  ;;  %v399_v48 = vadd.f32 %v398_v33, %v397_v29  ;;  %v406_v56 = vadd.f32 %v405_v49, %v404_v41 }
  0x63   : > { %v639_v50 = vmul.f32 %v533_v42, %v8798_v23  ;;  %v640_v51 = vmul.f32 %v540_v43, %v8798_v23  ;;  %v641_v52 = vmul.f32 %v547_v44, %v8798_v23  ;;  %v642_v53 = vmul.f32 %v554_v45, %v8798_v23 }
  0x64   : > { %v560_v54 = vrot.slane %v559_v46, 1  ;;  %v567_v55 = vrot.slane %v566_v47, 1  ;;  %v469_v57 = vmul.f32 %v399_v48, %v8798_v23  ;;  %v8878_v61 = vstv %s8864_s17 }
  0x65   : > { %v8871_v58 = vadd.f32 1e-05, %v639_v50  ;;  %v8873_v59 = vadd.f32 1e-05, %v640_v51  ;;  %v8875_v60 = vadd.f32 1e-05, %v641_v52  ;;  %v470_v3 = vmul.f32 %v406_v56, %v8798_v23 }
  0x66   : > { %v8880_v62 = vadd.f32 1e-05, %v642_v53  ;;  %v561_v63 = vadd.f32 %v560_v54, %v559_v46  ;;  %v568_v0 = vadd.f32 %v567_v55, %v566_v47  ;;  %v8889_v6 = vsub.f32 %v8819_v37, %v469_v57  ;;  %v9021_v52 = vld [vmem:[%s8720_s7 + $0x48] sm:$0xff] }
  0x67   : > { %8039 = vrsqrt.f32 %v8871_v58  ;;  %v8892_v11 = vsub.f32 %v8822_v38, %v470_v3  ;;  %vm282_vm9 = vcmp.gt.s32.totalorder %v8878_v61, 1  ;;  %vm677_vm10 = vweird.f32 %v8871_v58 }
  0x68   : > { %8041 = vrsqrt.f32 %v8873_v59  ;;  %v643_v4 = vmul.f32 %v561_v63, %v8798_v23  ;;  %v644_v5 = vmul.f32 %v568_v0, %v8798_v23  ;;  %v283_v17 = vsel %vm282_vm9, %v8878_v61, 1 }
  0x69   : > { %8043 = vrsqrt.f32 %v8875_v60  ;;  %v501_v37 = vsel %vm8745_vm3, %v8889_v6, 0.0  ;;  %v502_v38 = vsel %vm8745_vm3, %v8892_v11, 0.0  ;;  %vm8910_vm11 = vcmp.lt.s32.totalorder %v8729_v1, %v8878_v61 }
  0x6a   : > { %8045 = vrsqrt.f32 %v8880_v62  ;;  %v8896_v13 = vadd.f32 1e-05, %v643_v4  ;;  %v8898_v14 = vadd.f32 1e-05, %v644_v5  ;;  %v12562_v19 = vmov 0 }
  0x6b   : > { %v12563_v19 = vsel %vm8910_vm11, 4294967295, %v12562_v19  ;;  %vm687_vm12 = vweird.f32 %v8873_v59  ;;  %v517_v20 = vmul.f32 %v501_v37, %v501_v37  ;;  %v518_v21 = vmul.f32 %v502_v38, %v502_v38 }
  0x6c   : > { %12564 = vst [vmem:[#allocation14_spill] sm:$0xff] %v12563_v19  ;;  %8047 = vrsqrt.f32 %v8896_v13  ;;  %vm697_vm13 = vweird.f32 %v8875_v60  ;;  %vm707_vm14 = vweird.f32 %v8880_v62  ;;  %v8919_v24 = vcvt.s32.f32 %v283_v17 }
  0x6d   : > { %v8040_v22 = vpop.eup %8039  ;;  %8049 = vrsqrt.f32 %v8898_v14  ;;  %v569_v25 = vsel %vm12496_vm1, %v517_v20, 0.0  ;;  %v576_v26 = vsel %vm12496_vm1, %v518_v21, 0.0  ;;  %v343_v63 = vsel %vm8910_vm11, %v9021_v52, 0.0 }
  0x6e   : > { %v8042_v18 = vpop.eup %8041  ;;  %v672_v1 = vmul.f32 %v8040_v22, %v8871_v58  ;;  %vm678_vm15 = vweird.f32 %v8040_v22  ;;  %v570_v29 = vrot.slane %v569_v25, 4  ;;  %v577_v30 = vrot.slane %v576_v26, 4 }
  0x6f   : > { %v8044_v27 = vpop.eup %8043  ;;  %v682_v28 = vmul.f32 %v8042_v18, %v8873_v59  ;;  %vm688_vm0 = vweird.f32 %v8042_v18  ;;  %vm8938_vm1 = vmor %vm677_vm10, %vm678_vm15  ;;  %8051 = vrcp.f32 %v8919_v24 }
  0x70   : > { %v8046_v8 = vpop.eup %8045  ;;  %v673_v9 = vmul.f32 %v8040_v22, %v672_v1  ;;  %v692_v15 = vmul.f32 %v8044_v27, %v8875_v60  ;;  %vm698_vm2 = vweird.f32 %v8044_v27  ;;  %v571_v43 = vadd.f32 %v570_v29, %v569_v25  ;;  %vm8946_vm5 = vmor %vm687_vm12, %vm688_vm0 }
  0x71   : > { %v683_v16 = vmul.f32 %v8042_v18, %v682_v28  ;;  %v702_v32 = vmul.f32 %v8046_v8, %v8880_v62  ;;  %vm708_vm6 = vweird.f32 %v8046_v8  ;;  %v578_v44 = vadd.f32 %v577_v30, %v576_v26  ;;  %vm8953_vm10 = vmor %vm697_vm13, %vm698_vm2 }
  0x72   : > { %v8929_v33 = vpop.eup %8047  ;;  %v674_v41 = vmul.f32 0.5, %v673_v9  ;;  %v693_v42 = vmul.f32 %v8044_v27, %v692_v15  ;;  %v572_v56 = vrot.slane %v571_v43, 2  ;;  %vm8962_vm12 = vmor %vm707_vm14, %vm708_vm6  ;;  %vm12576_vm14 = vweird.f32 %v8898_v14 }
  0x73   : > { %v8050_v45 = vpop.eup %8049  ;;  %v684_v46 = vmul.f32 0.5, %v683_v16  ;;  %v703_v47 = vmul.f32 %v8046_v8, %v702_v32  ;;  %v712_v48 = vmul.f32 %v8929_v33, %v8896_v13  ;;  %vm718_vm8 = vweird.f32 %v8929_v33 }
  0x74   : > { %v675_v49 = vsub.f32 1.5, %v674_v41  ;;  %v694_v50 = vmul.f32 0.5, %v693_v42  ;;  %v722_v51 = vmul.f32 %v8050_v45, %v8898_v14  ;;  %vm728_vm9 = vweird.f32 %v8050_v45 }
  0x75   : > { %v685_v53 = vsub.f32 1.5, %v684_v46  ;;  %v704_v54 = vmul.f32 0.5, %v703_v47  ;;  %v713_v55 = vmul.f32 %v8929_v33, %v712_v48  ;;  %v579_v3 = vrot.slane %v578_v44, 2  ;;  %vm8989_vm15 = vmor %vm12576_vm14, %vm728_vm9 }
  0x76   : > { %v676_v57 = vmul.f32 %v8040_v22, %v675_v49  ;;  %v695_v0 = vsub.f32 1.5, %v694_v50  ;;  %v723_v58 = vmul.f32 %v8050_v45, %v722_v51  ;;  %v573_v38 = vadd.f32 %v572_v56, %v571_v43 }
  0x77   : > { %v686_v4 = vmul.f32 %v8042_v18, %v685_v53  ;;  %v705_v17 = vsub.f32 1.5, %v704_v54  ;;  %v714_v37 = vmul.f32 0.5, %v713_v55  ;;  %v580_v60 = vadd.f32 %v579_v3, %v578_v44  ;;  %v9004_v44 = vld [vmem:[%s8720_s7 + $0x40] sm:$0xff] }
  0x78   : > { %v680_v59 = vsel %vm8938_vm1, %v8040_v22, %v676_v57  ;;  %v696_v20 = vmul.f32 %v8044_v27, %v695_v0  ;;  %v724_v1 = vmul.f32 0.5, %v723_v58  ;;  %vm12573_vm1 = vweird.f32 %v8896_v13  ;;  %v9042_v0 = vld [vmem:[%s8720_s7 + $0x50] sm:$0xff]  ;;  %v9045_v58 = vld [vmem:[%s8720_s7 + $0x58] sm:$0xff] }
  0x79   : > { %v690_v25 = vsel %vm8946_vm5, %v8042_v18, %v686_v4  ;;  %v831_v26 = vmul.f32 %v680_v59, %v8807_v31  ;;  %v706_v28 = vmul.f32 %v8046_v8, %v705_v17  ;;  %v715_v29 = vsub.f32 1.5, %v714_v37  ;;  %vm8976_vm13 = vmor %vm12573_vm1, %vm718_vm8  ;;  %v9054_v37 = vld [vmem:[%s8720_s7 + $0x60] sm:$0xff] }
  0x7a   : > { %v832_v30 = vmul.f32 %v690_v25, %v8810_v34  ;;  %v700_v22 = vsel %vm8953_vm10, %v8044_v27, %v696_v20  ;;  %v725_v9 = vsub.f32 1.5, %v724_v1  ;;  %v574_v18 = vrot.slane %v573_v38, 1 }
  0x7b   : > { %v847_v31 = vsel %vm8745_vm3, %v831_v26, 0.0  ;;  %v710_v34 = vsel %vm8962_vm12, %v8046_v8, %v706_v28  ;;  %v833_v15 = vmul.f32 %v700_v22, %v8813_v35  ;;  %v716_v27 = vmul.f32 %v8929_v33, %v715_v29  ;;  %v8052_v28 = vpop.eup %8051 }
  0x7c   : > { %v848_v16 = vsel %vm8745_vm3, %v832_v30, 0.0  ;;  %vm12579_vm0 = vcmask 261120   ;;  %v834_v41 = vmul.f32 %v710_v34, %v8816_v36  ;;  %v726_v8 = vmul.f32 %v8050_v45, %v725_v9  ;;  %v9075_v9 = vld [vmem:[%s8720_s7 + $0x68] sm:$0xff] }
  0x7d   : > { %v863_v32 = vsel %vm12579_vm0, %v847_v31, 1.0  ;;  %vm12580_vm2 = vmmov %vm12579_vm0  ;;  %v849_v42 = vsel %vm8745_vm3, %v833_v15, 0.0  ;;  %v720_v14 = vsel %vm8976_vm13, %v8929_v33, %v716_v27  ;;  %v575_v43 = vadd.f32 %v574_v18, %v573_v38 }
  0x7e   : > { %v864_v35 = vsel %vm12580_vm2, %v848_v16, 1.0  ;;  %v850_v47 = vsel %vm8745_vm3, %v834_v41, 0.0  ;;  %vm12581_vm5 = vmmov %vm12579_vm0  ;;  %v730_v36 = vsel %vm8989_vm15, %v8050_v45, %v726_v8  ;;  %v835_v50 = vmul.f32 %v720_v14, %v8825_v39 }
  0x7f   : > { %v879_v46 = vpack.c.bf16 %v864_v35, %v863_v32  ;;  %v9009_v48 = vsel %vm12581_vm5, %v849_v42, 1.0  ;;  %vm12582_vm6 = vmmov %vm12579_vm0  ;;  %v9018_v33 = vmul.f32 %v730_v36, %v8828_v40  ;;  %v581_v51 = vrot.slane %v580_v60, 1 }
  0x80   : > { %v9014_v49 = vsel %vm12582_vm6, %v850_v47, 1.0  ;;  %v645_v53 = vmul.f32 %v575_v43, %v8798_v23  ;;  %v312_v45 = vand.u32 2147483648, %v8919_v24  ;;  %v342_v39 = vsel %vm8910_vm11, %v9004_v44, 0.0  ;;  %vm12583_vm9 = vmmov %vm12579_vm0 }
  0x81   : > { %7663 = vmatmul.msk.bf16.vlgmr.msra.gmra.mxu0 %vm902_vm7, %v879_v46  ;;  %v582_v54 = vadd.f32 %v581_v51, %v580_v60  ;;  %vm306_vm8 = vweird.f32 %v8919_v24  ;;  %v310_v40 = vand.u32 2147483647, %v8919_v24  ;;  %v880_v55 = vpack.c.bf16 %v9014_v49, %v9009_v48  ;;  %vm12584_vm10 = vmmov %vm12579_vm0 }
  0x82   : > { %v851_v56 = vsel %vm8745_vm3, %v835_v50, 0.0  ;;  %v9036_v57 = vadd.f32 1e-05, %v645_v53  ;;  %v852_v3 = vsel %vm8745_vm3, %v9018_v33, 0.0  ;;  %v407_v5 = vsel %vm12583_vm9, %v342_v39, 0.0  ;;  %vm12587_vm1 = vmmov %vm12579_vm0 }
  0x83   : > { %v646_v4 = vmul.f32 %v582_v54, %v8798_v23  ;;  %v414_v17 = vsel %vm12584_vm10, %v343_v63, 0.0  ;;  %v313_v38 = vor.u32 1.1754944e-38, %v312_v45  ;;  %v408_v59 = vrot.slane %v407_v5, 4  ;;  %vm12588_vm13 = vmmov %vm12579_vm0 }
  0x84   : > { %8053 = vrsqrt.f32 %v9036_v57  ;;  %v415_v20 = vrot.slane %v414_v17, 4  ;;  %vm9059_vm12 = vcmp.eq.f32.partialorder %v310_v40, 8.507059e+37  ;;  %v344_v60 = vsel %vm8910_vm11, %v9042_v0, 0.0  ;;  %vm12589_vm14 = vmmov %vm12579_vm0 }
  0x85   : > { %v9057_v21 = vadd.f32 1e-05, %v646_v4  ;;  %v345_v25 = vsel %vm8910_vm11, %v9045_v58, 0.0  ;;  %v346_v26 = vsel %vm8910_vm11, %v9054_v37, 0.0  ;;  %v409_v29 = vadd.f32 %v408_v59, %v407_v5  ;;  %vm12590_vm2 = vmmov %vm12587_vm1 }
  0x86   : > { %v416_v30 = vadd.f32 %v415_v20, %v414_v17  ;;  %v421_v22 = vsel %vm12587_vm1, %v344_v60, 0.0  ;;  %v428_v62 = vsel %vm12588_vm13, %v345_v25, 0.0  ;;  %v9078_v18 = vsel %vm12589_vm14, %v851_v56, 1.0  ;;  %vm12593_vm10 = vmmov %vm12587_vm1 }
  0x87   : > { %vm737_vm15 = vweird.f32 %v9036_v57  ;;  %8055 = vrsqrt.f32 %v9057_v21  ;;  %v302_v31 = vmul.f32 %v8052_v28, %v8919_v24  ;;  %v410_v34 = vrot.slane %v409_v29, 2  ;;  %vm12601_vm14 = vmmov %vm12590_vm2 }
  0x88   : > { %v417_v15 = vrot.slane %v416_v30, 2  ;;  %v422_v27 = vrot.slane %v421_v22, 4  ;;  %v429_v13 = vrot.slane %v428_v62, 4  ;;  %vm307_vm0 = vweird.f32 %v8052_v28 }
  0x89   : > { %v303_v16 = vsub.f32 1.0, %v302_v31  ;;  %v347_v32 = vsel %vm8910_vm11, %v9075_v9, 0.0  ;;  %v435_v41 = vsel %vm12590_vm2, %v346_v26, 0.0  ;;  %vm747_vm5 = vweird.f32 %v9057_v21  ;;  %vm9095_vm9 = vmor %vm306_vm8, %vm307_vm0 }
  0x8a   : > { %v9087_v8 = vpop.eup %8053  ;;  %v411_v35 = vadd.f32 %v410_v34, %v409_v29  ;;  %v418_v42 = vadd.f32 %v417_v15, %v416_v30  ;;  %v423_v14 = vadd.f32 %v422_v27, %v421_v22  ;;  %v430_v43 = vadd.f32 %v429_v13, %v428_v62  ;;  %vm12603_vm0 = vmmov %vm12590_vm2 }
  0x8b   : > { %v732_v46 = vmul.f32 %v9087_v8, %v9036_v57  ;;  %vm738_vm6 = vweird.f32 %v9087_v8  ;;  %v304_v47 = vmul.f32 %v8052_v28, %v303_v16  ;;  %v436_v36 = vrot.slane %v435_v41, 4 }
  0x8c   : > { %v412_v51 = vrot.slane %v411_v35, 1  ;;  %v419_v53 = vrot.slane %v418_v42, 1  ;;  %v424_v45 = vrot.slane %v423_v14, 2  ;;  %v431_v39 = vrot.slane %v430_v43, 2  ;;  %vm9124_vm13 = vmor %vm737_vm15, %vm738_vm6 }
  0x8d   : > { %v8056_v54 = vpop.eup %8055  ;;  %v733_v40 = vmul.f32 %v9087_v8, %v732_v46  ;;  %v305_v56 = vadd.f32 %v8052_v28, %v304_v47  ;;  %v437_v63 = vadd.f32 %v436_v36, %v435_v41  ;;  %v442_v4 = vsel %vm12593_vm10, %v347_v32, 0.0  ;;  %vm12602_vm15 = vmmov %vm12590_vm2 }
  0x8e   : > { %v742_v5 = vmul.f32 %v8056_v54, %v9057_v21  ;;  %vm748_vm1 = vweird.f32 %v8056_v54  ;;  %v413_v17 = vadd.f32 %v412_v51, %v411_v35  ;;  %v420_v24 = vadd.f32 %v419_v53, %v418_v42  ;;  %vm12604_vm2 = vmmov %vm12603_vm0 }
  0x8f   : > { %v734_v59 = vmul.f32 0.5, %v733_v40  ;;  %v309_v20 = vsel %vm9095_vm9, %v8052_v28, %v305_v56  ;;  %v425_v60 = vadd.f32 %v424_v45, %v423_v14  ;;  %v432_v25 = vadd.f32 %v431_v39, %v430_v43  ;;  %vm12606_vm6 = vmmov %vm12603_vm0 }
  0x90   : > { %v743_v26 = vmul.f32 %v8056_v54, %v742_v5  ;;  %v9110_v29 = vsel %vm9059_vm12, %v313_v38, %v309_v20  ;;  %vm9114_vm8 = vcmp.lt.s32.totalorder %v8731_v2, %v8878_v61  ;;  %v438_v22 = vrot.slane %v437_v63, 2  ;;  %vm9141_vm12 = vmor %vm747_vm5, %vm748_vm1 }
  0x91   : > { %7664 = vmatmul.msk.bf16.gmra.mxu0 %vm902_vm7, %v880_v55  ;;  %12594 = vst [vmem:[#allocation15_spill] sm:$0xff] %v9110_v29  ;;  %v735_v28 = vsub.f32 1.5, %v734_v59  ;;  %v471_v62 = vmul.f32 %v413_v17, %v9110_v29  ;;  %v472_v31 = vmul.f32 %v420_v24, %v9110_v29  ;;  %v426_v48 = vrot.slane %v425_v60, 1  ;;  %vm12605_vm5 = vmmov %vm12603_vm0 }
  0x92   : > { %v744_v55 = vmul.f32 0.5, %v743_v26  ;;  %v433_v2 = vrot.slane %v432_v25, 1  ;;  %v439_v61 = vadd.f32 %v438_v22, %v437_v63  ;;  %v443_v38 = vrot.slane %v442_v4, 4  ;;  %v9195_v22 = vld [vmem:[%s8720_s7 + $0x78] sm:$0xff]  ;;  %vm12607_vm9 = vmmov %vm12603_vm0 }
  0x93   : > { %v736_v1 = vmul.f32 %v9087_v8, %v735_v28  ;;  %v9130_v34 = vsub.f32 %v9004_v44, %v471_v62  ;;  %v9133_v15 = vsub.f32 %v9021_v52, %v472_v31  ;;  %v427_v27 = vadd.f32 %v426_v48, %v425_v60  ;;  %vm12608_vm10 = vmmov %vm12603_vm0 }
  0x94   : > { %v745_v13 = vsub.f32 1.5, %v744_v55  ;;  %v434_v16 = vadd.f32 %v433_v2, %v432_v25  ;;  %v440_v57 = vrot.slane %v439_v61, 1  ;;  %v444_v32 = vadd.f32 %v443_v38, %v442_v4  ;;  %vm12609_vm1 = vmmov %vm12603_vm0 }
  0x95   : > { %v740_v41 = vsel %vm9124_vm13, %v9087_v8, %v736_v1  ;;  %v503_v44 = vsel %vm8910_vm11, %v9130_v34, 0.0  ;;  %v504_v52 = vsel %vm8910_vm11, %v9133_v15, 0.0  ;;  %v473_v42 = vmul.f32 %v427_v27, %v9110_v29  ;;  %vm12610_vm13 = vmmov %vm12603_vm0 }
  0x96   : > { %v868_v21 = vsel %vm12601_vm14, %v852_v3, 1.0  ;;  %v746_v8 = vmul.f32 %v8056_v54, %v745_v13  ;;  %v519_v14 = vmul.f32 %v503_v44, %v503_v44  ;;  %v520_v43 = vmul.f32 %v504_v52, %v504_v52 }
  0x97   : > { %v474_v46 = vmul.f32 %v434_v16, %v9110_v29  ;;  %v9159_v47 = vsub.f32 %v9042_v0, %v473_v42  ;;  %v441_v36 = vadd.f32 %v440_v57, %v439_v61  ;;  %v445_v50 = vrot.slane %v444_v32, 2 }
  0x98   : > { %v750_v51 = vsel %vm9141_vm12, %v8056_v54, %v746_v8  ;;  %v9164_v53 = vmul.f32 %v740_v41, %v8889_v6  ;;  %v583_v33 = vsel %vm12602_vm15, %v519_v14, 0.0  ;;  %v590_v3 = vsel %vm12603_vm0, %v520_v43, 0.0  ;;  %vm12611_vm12 = vmmov %vm12603_vm0 }
  0x99   : > { %v9169_v45 = vmul.f32 %v750_v51, %v8892_v11  ;;  %v584_v39 = vrot.slane %v583_v33, 4  ;;  %v591_v40 = vrot.slane %v590_v3, 4  ;;  %v9172_v0 = vsub.f32 %v9045_v58, %v474_v46  ;;  %v9180_v11 = vld [vmem:[%s8720_s7 + $0x70] sm:$0xff]  ;;  %s8578_s7 = smov 112  }
  0x9a   : > { %v505_v56 = vsel %vm8910_vm11, %v9159_v47, 0.0  ;;  %v446_v54 = vadd.f32 %v445_v50, %v444_v32  ;;  %v475_v6 = vmul.f32 %v441_v36, %v9110_v29  ;;  %v881_v63 = vpack.c.bf16 %v868_v21, %v9078_v18 }
  0x9b   : > { %v585_v4 = vadd.f32 %v584_v39, %v583_v33  ;;  %v592_v5 = vadd.f32 %v591_v40, %v590_v3  ;;  %v521_v17 = vmul.f32 %v505_v56, %v505_v56  ;;  %v853_v58 = vsel %vm8745_vm3, %v9164_v53, 0.0 }
  0x9c   : > { %v506_v24 = vsel %vm8910_vm11, %v9172_v0, 0.0  ;;  %v447_v59 = vrot.slane %v446_v54, 1  ;;  %v9189_v20 = vsub.f32 %v9054_v37, %v475_v6  ;;  %v854_v18 = vsel %vm8745_vm3, %v9169_v45, 0.0 }
  0x9d   : > { %v586_v60 = vrot.slane %v585_v4, 2  ;;  %v593_v25 = vrot.slane %v592_v5, 2  ;;  %v522_v26 = vmul.f32 %v506_v24, %v506_v24  ;;  %v597_v28 = vsel %vm12604_vm2, %v521_v17, 0.0 }
  0x9e   : > { %v448_v62 = vadd.f32 %v447_v59, %v446_v54  ;;  %v507_v31 = vsel %vm8910_vm11, %v9189_v20, 0.0  ;;  %v348_v37 = vsel %vm8910_vm11, %v9180_v11, 0.0  ;;  %v598_v55 = vrot.slane %v597_v28, 4 }
  0x9f   : > { %v587_v48 = vadd.f32 %v586_v60, %v585_v4  ;;  %v594_v49 = vadd.f32 %v593_v25, %v592_v5  ;;  %v604_v2 = vsel %vm12605_vm5, %v522_v26, 0.0  ;;  %v523_v1 = vmul.f32 %v507_v31, %v507_v31 }
  0xa0   : > { %v605_v61 = vrot.slane %v604_v2, 4  ;;  %v476_v38 = vmul.f32 %v448_v62, %v9110_v29  ;;  %v349_v27 = vsel %vm8910_vm11, %v9195_v22, 0.0  ;;  %v599_v57 = vadd.f32 %v598_v55, %v597_v28 }
  0xa1   : > { %7665 = vmatmul.msk.bf16.gmra.mxu0 %vm902_vm7, %v881_v63  ;;  %v588_v13 = vrot.slane %v587_v48, 1  ;;  %v595_v16 = vrot.slane %v594_v49, 1  ;;  %v449_v32 = vsel %vm12606_vm6, %v348_v37, 0.0  ;;  %v611_v44 = vsel %vm12607_vm9, %v523_v1, 0.0 }
  0xa2   : > { %v606_v41 = vadd.f32 %v605_v61, %v604_v2  ;;  %v9212_v35 = vsub.f32 %v9075_v9, %v476_v38  ;;  %v450_v52 = vrot.slane %v449_v32, 4  ;;  %v600_v8 = vrot.slane %v599_v57, 2 }
  0xa3   : > { %v589_v42 = vadd.f32 %v588_v13, %v587_v48  ;;  %v596_v21 = vadd.f32 %v595_v16, %v594_v49  ;;  %v612_v14 = vrot.slane %v611_v44, 4  ;;  %v456_v50 = vsel %vm12608_vm10, %v349_v27, 0.0 }
  0xa4   : > { %v607_v43 = vrot.slane %v606_v41, 2  ;;  %v508_v46 = vsel %vm8910_vm11, %v9212_v35, 0.0  ;;  %v451_v36 = vadd.f32 %v450_v52, %v449_v32  ;;  %v601_v53 = vadd.f32 %v600_v8, %v599_v57 }
  0xa5   : > { %v647_v51 = vmul.f32 %v589_v42, %v9110_v29  ;;  %v648_v9 = vmul.f32 %v596_v21, %v9110_v29  ;;  %v524_v33 = vmul.f32 %v508_v46, %v508_v46  ;;  %v613_v45 = vadd.f32 %v612_v14, %v611_v44 }
  0xa6   : > { %v608_v3 = vadd.f32 %v607_v43, %v606_v41  ;;  %v452_v39 = vrot.slane %v451_v36, 2  ;;  %v457_v40 = vrot.slane %v456_v50, 4  ;;  %v602_v6 = vrot.slane %v601_v53, 1 }
  0xa7   : > { %v9221_v56 = vadd.f32 1e-05, %v647_v51  ;;  %v9223_v54 = vadd.f32 1e-05, %v648_v9  ;;  %v618_v63 = vsel %vm12609_vm1, %v524_v33, 0.0  ;;  %v614_v5 = vrot.slane %v613_v45, 2 }
  0xa8   : > { %v609_v4 = vrot.slane %v608_v3, 1  ;;  %v619_v17 = vrot.slane %v618_v63, 4  ;;  %v453_v24 = vadd.f32 %v452_v39, %v451_v36  ;;  %v869_v59 = vsel %vm12610_vm13, %v853_v58, 1.0 }
  0xa9   : > { %v870_v60 = vsel %vm12611_vm12, %v854_v18, 1.0  ;;  %8057 = vrsqrt.f32 %v9221_v56  ;;  %v603_v25 = vadd.f32 %v602_v6, %v601_v53  ;;  %v615_v28 = vadd.f32 %v614_v5, %v613_v45 }
  0xaa   : > { %8059 = vrsqrt.f32 %v9223_v54  ;;  %v610_v26 = vadd.f32 %v609_v4, %v608_v3  ;;  %v620_v62 = vadd.f32 %v619_v17, %v618_v63  ;;  %v454_v37 = vrot.slane %v453_v24, 1 }
  0xab   : > { %v649_v31 = vmul.f32 %v603_v25, %v9110_v29  ;;  %v458_v48 = vadd.f32 %v457_v40, %v456_v50  ;;  %v882_v49 = vpack.c.bf16 %v870_v60, %v869_v59  ;;  %v616_v2 = vrot.slane %v615_v28, 1 }
  0xac   : > { %v650_v55 = vmul.f32 %v610_v26, %v9110_v29  ;;  %v621_v61 = vrot.slane %v620_v62, 2  ;;  %v455_v18 = vadd.f32 %v454_v37, %v453_v24  ;;  %vm757_vm14 = vweird.f32 %v9221_v56 }
  0xad   : > { %v9232_v58 = vadd.f32 1e-05, %v649_v31  ;;  %v459_v38 = vrot.slane %v458_v48, 2  ;;  %v617_v27 = vadd.f32 %v616_v2, %v615_v28  ;;  %vm767_vm15 = vweird.f32 %v9223_v54 }
  0xae   : > { %v9234_v1 = vadd.f32 1e-05, %v650_v55  ;;  %v622_v13 = vadd.f32 %v621_v61, %v620_v62  ;;  %v477_v32 = vmul.f32 %v455_v18, %v9110_v29 }
  0xaf   : > { %v8058_v16 = vpop.eup %8057  ;;  %8061 = vrsqrt.f32 %v9232_v58  ;;  %v460_v57 = vadd.f32 %v459_v38, %v458_v48  ;;  %v651_v21 = vmul.f32 %v617_v27, %v9110_v29  ;;  %vm777_vm0 = vweird.f32 %v9232_v58 }
  0xb0   : > { %v8060_v41 = vpop.eup %8059  ;;  %v752_v44 = vmul.f32 %v8058_v16, %v9221_v56  ;;  %8063 = vrsqrt.f32 %v9234_v1  ;;  %v623_v42 = vrot.slane %v622_v13, 1  ;;  %v9246_v43 = vsub.f32 %v9180_v11, %v477_v32 }
  0xb1   : > { %7666 = vmatmul.msk.bf16.gmra.mxu0 %vm902_vm7, %v882_v49  ;;  %v762_v52 = vmul.f32 %v8060_v41, %v9223_v54  ;;  %v461_v14 = vrot.slane %v460_v57, 1  ;;  %v9249_v50 = vadd.f32 1e-05, %v651_v21  ;;  %vm758_vm2 = vweird.f32 %v8058_v16 }
  0xb2   : > { %v753_v8 = vmul.f32 %v8058_v16, %v752_v44  ;;  %v624_v36 = vadd.f32 %v623_v42, %v622_v13  ;;  %vm768_vm5 = vweird.f32 %v8060_v41  ;;  %v509_v11 = vsel %vm8910_vm11, %v9246_v43, 0.0  ;;  %vm9261_vm9 = vmor %vm757_vm14, %vm758_vm2 }
  0xb3   : > { %v763_v46 = vmul.f32 %v8060_v41, %v762_v52  ;;  %v462_v9 = vadd.f32 %v461_v14, %v460_v57  ;;  %8065 = vrsqrt.f32 %v9249_v50  ;;  %vm787_vm6 = vweird.f32 %v9234_v1  ;;  %vm9271_vm1 = vmor %vm767_vm15, %vm768_vm5 }
  0xb4   : > { %v754_v51 = vmul.f32 0.5, %v753_v8  ;;  %v652_v3 = vmul.f32 %v624_v36, %v9110_v29  ;;  %v525_v25 = vmul.f32 %v509_v11, %v509_v11  ;;  %vm12618_vm15 = vmmov %vm12611_vm12 }
  0xb5   : > { %v8062_v53 = vpop.eup %8061  ;;  %v764_v33 = vmul.f32 0.5, %v763_v46  ;;  %v478_v6 = vmul.f32 %v462_v9, %v9110_v29  ;;  %vm12619_vm2 = vmmov %vm12611_vm12 }
  0xb6   : > { %v8064_v45 = vpop.eup %8063  ;;  %v755_v39 = vsub.f32 1.5, %v754_v51  ;;  %v772_v40 = vmul.f32 %v8062_v53, %v9232_v58  ;;  %vm778_vm10 = vweird.f32 %v8062_v53  ;;  %v9266_v17 = vadd.f32 1e-05, %v652_v3 }
  0xb7   : > { %v765_v4 = vsub.f32 1.5, %v764_v33  ;;  %v782_v5 = vmul.f32 %v8064_v45, %v9234_v1  ;;  %v9276_v56 = vsub.f32 %v9195_v22, %v478_v6  ;;  %vm788_vm13 = vweird.f32 %v8064_v45  ;;  %vm9298_vm14 = vmor %vm777_vm0, %vm778_vm10 }
  0xb8   : > { %v756_v24 = vmul.f32 %v8058_v16, %v755_v39  ;;  %v773_v60 = vmul.f32 %v8062_v53, %v772_v40  ;;  %8067 = vrsqrt.f32 %v9266_v17  ;;  %v625_v37 = vsel %vm12611_vm12, %v525_v25, 0.0  ;;  %vm9309_vm5 = vmor %vm787_vm6, %vm788_vm13 }
  0xb9   : > { %v766_v26 = vmul.f32 %v8060_v41, %v765_v4  ;;  %v783_v28 = vmul.f32 %v8064_v45, %v782_v5  ;;  %v510_v54 = vsel %vm8910_vm11, %v9276_v56, 0.0  ;;  %v9285_v48 = vpop.eup %8065  ;;  %vm12622_vm0 = vmmov %vm12619_vm2  ;;  %vm797_vm6 = vweird.f32 %v9249_v50 }
  0xba   : > { %v760_v62 = vsel %vm9261_vm9, %v8058_v16, %v756_v24  ;;  %v774_v31 = vmul.f32 0.5, %v773_v60  ;;  %v526_v2 = vmul.f32 %v510_v54, %v510_v54  ;;  %v792_v38 = vmul.f32 %v9285_v48, %v9249_v50  ;;  %vm12623_vm13 = vmmov %vm12622_vm0 }
  0xbb   : > { %v770_v22 = vsel %vm9271_vm1, %v8060_v41, %v766_v26  ;;  %v839_v49 = vmul.f32 %v760_v62, %v9130_v34  ;;  %v784_v55 = vmul.f32 0.5, %v783_v28  ;;  %v626_v34 = vrot.slane %v625_v37, 4  ;;  %vm12624_vm12 = vmmov %vm12622_vm0 }
  0xbc   : > { %v840_v61 = vmul.f32 %v770_v22, %v9133_v15  ;;  %v775_v18 = vsub.f32 1.5, %v774_v31  ;;  %v632_v57 = vsel %vm12618_vm15, %v526_v2, 0.0  ;;  %v793_v1 = vmul.f32 %v9285_v48, %v792_v38 }
  0xbd   : > { %v855_v27 = vsel %vm8910_vm11, %v839_v49, 0.0  ;;  %v785_v16 = vsub.f32 1.5, %v784_v55  ;;  %v627_v21 = vadd.f32 %v626_v34, %v625_v37  ;;  %v633_v8 = vrot.slane %v632_v57, 4 }
  0xbe   : > { %v856_v15 = vsel %vm8910_vm11, %v840_v61, 0.0  ;;  %v871_v32 = vsel %vm12619_vm2, %v855_v27, 1.0  ;;  %v776_v41 = vmul.f32 %v8062_v53, %v775_v18  ;;  %v8068_v58 = vpop.eup %8067  ;;  %v794_v6 = vmul.f32 0.5, %v793_v1  ;;  %vm12625_vm2 = vmmov %vm12622_vm0 }
  0xbf   : > { %v872_v52 = vsel %vm12622_vm0, %v856_v15, 1.0  ;;  %v786_v42 = vmul.f32 %v8064_v45, %v785_v16  ;;  %v802_v46 = vmul.f32 %v8068_v58, %v9266_v17  ;;  %v628_v9 = vrot.slane %v627_v21, 2 }
  0xc0   : > { %v883_v14 = vpack.c.bf16 %v872_v52, %v871_v32  ;;  %v780_v36 = vsel %vm9298_vm14, %v8062_v53, %v776_v41  ;;  %v634_v3 = vadd.f32 %v633_v8, %v632_v57  ;;  %v795_v60 = vsub.f32 1.5, %v794_v6 }
  0xc1   : > { %v790_v51 = vsel %vm9309_vm5, %v8064_v45, %v786_v42  ;;  %v803_v33 = vmul.f32 %v8068_v58, %v802_v46  ;;  %v629_v11 = vadd.f32 %v628_v9, %v627_v21  ;;  %v841_v39 = vmul.f32 %v780_v36, %v9159_v47  ;;  %vm12626_vm5 = vmmov %vm12622_vm0 }
  0xc2   : > { %7667 = vmatmul.msk.bf16.gmra.mxu0 %vm902_vm7, %v883_v14  ;;  %v842_v40 = vmul.f32 %v790_v51, %v9172_v0  ;;  %v635_v5 = vrot.slane %v634_v3, 2  ;;  %vm798_vm9 = vweird.f32 %v9285_v48  ;;  %vm807_vm10 = vweird.f32 %v9266_v17 }
  0xc3   : > { %v804_v63 = vmul.f32 0.5, %v803_v33  ;;  %v630_v4 = vrot.slane %v629_v11, 1  ;;  %v857_v45 = vsel %vm8910_vm11, %v841_v39, 0.0  ;;  %vm808_vm1 = vweird.f32 %v8068_v58  ;;  %vm799_vm14 = vmor %vm797_vm6, %vm798_vm9 }
  0xc4   : > { %v636_v24 = vadd.f32 %v635_v5, %v634_v3  ;;  %v858_v59 = vsel %vm8910_vm11, %v842_v40, 0.0  ;;  %v873_v47 = vsel %vm12623_vm13, %v857_v45, 1.0  ;;  %v796_v54 = vmul.f32 %v9285_v48, %v795_v60  ;;  %vm809_vm15 = vmor %vm807_vm10, %vm808_vm1 }
  0xc5   : > { %v631_v53 = vadd.f32 %v630_v4, %v629_v11  ;;  %v805_v25 = vsub.f32 1.5, %v804_v63  ;;  %v874_v0 = vsel %vm12624_vm12, %v858_v59, 1.0  ;;  %vm12627_vm12 = vmmov %vm12625_vm2 }
  0xc6   : > { %v637_v26 = vrot.slane %v636_v24, 1  ;;  %v884_v49 = vpack.c.bf16 %v874_v0, %v873_v47  ;;  %v800_v55 = vsel %vm799_vm14, %v9285_v48, %v796_v54  ;;  %vm12628_vm14 = vmmov %vm12625_vm2 }
  0xc7   : > { %v653_v28 = vmul.f32 %v631_v53, %v9110_v29  ;;  %v806_v37 = vmul.f32 %v8068_v58, %v805_v25  ;;  %v843_v61 = vmul.f32 %v800_v55, %v9189_v20 }
  0xc8   : > { %v638_v62 = vadd.f32 %v637_v26, %v636_v24 }
  0xc9   : > { %v669_v31 = vadd.f32 1e-05, %v653_v28  ;;  %v810_v17 = vsel %vm809_vm15, %v8068_v58, %v806_v37  ;;  %v859_v16 = vsel %vm8910_vm11, %v843_v61, 0.0  ;;  %vm1727_vm15 = vcmask 1043456  }
  0xca   : > { %v654_v22 = vmul.f32 %v638_v62, %v9110_v29  ;;  %v844_v18 = vmul.f32 %v810_v17, %v9212_v35  ;;  %v875_v41 = vsel %vm12625_vm2, %v859_v16, 1.0 }
  0xcb   : > { %8069 = vrsqrt.f32 %v669_v31  ;;  %vm817_vm0 = vweird.f32 %v669_v31 }
  0xcc   : > { %v670_v50 = vadd.f32 1e-05, %v654_v22  ;;  %v860_v34 = vsel %vm8910_vm11, %v844_v18, 0.0 }
  0xcd   : > { %v876_v44 = vsel %vm12626_vm5, %v860_v34, 1.0 }
  0xce   : > { %8071 = vrsqrt.f32 %v670_v50  ;;  %vm827_vm9 = vweird.f32 %v670_v50  ;;  %v885_v58 = vpack.c.bf16 %v876_v44, %v875_v41 }
  0xd1   : > { %v8070_v2 = vpop.eup %8069 }
  0xd2   : > { %7668 = vmatmul.msk.bf16.gmra.mxu0 %vm902_vm7, %v884_v49  ;;  %v812_v38 = vmul.f32 %v8070_v2, %v669_v31  ;;  %vm818_vm6 = vweird.f32 %v8070_v2 }
  0xd3   : > { %vm819_vm1 = vmor %vm817_vm0, %vm818_vm6  ;;  %vm1515_vm0 = vcmask 64512  }
  0xd4   : > { %v813_v27 = vmul.f32 %v8070_v2, %v812_v38  ;;  %v8072_v13 = vpop.eup %8071 }
  0xd5   : > { %v822_v48 = vmul.f32 %v8072_v13, %v670_v50  ;;  %vm828_vm10 = vweird.f32 %v8072_v13 }
  0xd6   : > { %v814_v57 = vmul.f32 0.5, %v813_v27  ;;  %vm829_vm13 = vmor %vm827_vm9, %vm828_vm10 }
  0xd7   : > { %v823_v32 = vmul.f32 %v8072_v13, %v822_v48 }
  0xd8   : > { %v815_v15 = vsub.f32 1.5, %v814_v57 }
  0xd9   : > { %v824_v20 = vmul.f32 0.5, %v823_v32 }
  0xda   : > { %v816_v35 = vmul.f32 %v8070_v2, %v815_v15 }
  0xdb   : > { %v825_v52 = vsub.f32 1.5, %v824_v20 }
  0xdc   : > { %v820_v21 = vsel %vm819_vm1, %v8070_v2, %v816_v35 }
  0xdd   : > { %v826_v42 = vmul.f32 %v8072_v13, %v825_v52  ;;  %v845_v14 = vmul.f32 %v820_v21, %v9246_v43 }
  0xdf   : > { %v830_v8 = vsel %vm829_vm13, %v8072_v13, %v826_v42  ;;  %v861_v36 = vsel %vm8910_vm11, %v845_v14, 0.0 }
  0xe0   : > { %v846_v46 = vmul.f32 %v830_v8, %v9276_v56  ;;  %v877_v1 = vsel %vm12627_vm12, %v861_v36, 1.0 }
  0xe2   : > { %7669 = vmatmul.msk.bf16.gmra.mxu0 %vm902_vm7, %v885_v58  ;;  %v862_v51 = vsel %vm8910_vm11, %v846_v46, 0.0 }
  0xe3   : > { %v878_v9 = vsel %vm12628_vm14, %v862_v51, 1.0 }
  0xe4   : > { %v886_v33 = vpack.c.bf16 %v878_v9, %v877_v1 }
  0xf2   : > { %7670 = vmatmul.msk.bf16.gmra.mxu0 %vm902_vm7, %v886_v33  ;;  %vm987_vm7 = vcmask 15360  }
  0xfe   : > { %v9355_v3 = vpop.f32.mrf.mxu0 }
  0xff   : > { %12629 = vst [vmem:[#allocation16_spill] sm:$0xff] %v9355_v3  ;;  %985 = vrot.lane.b32.xlu0 %v9355_v3, %s8574_s14  ;;  %v9500_v57 = vpack.c.bf16 %v9355_v3, %v9355_v3 }
 0x101   : > { %v1729_v32 = vsel %vm1727_vm15, %v9500_v57, 0 }
 0x106   : > { %v9359_v43 = vpop.f32.mrf.mxu0 }
 0x107   : > { %12630 = vst [vmem:[#allocation17_spill] sm:$0xff] %v9359_v43  ;;  %1013 = vrot.lane.b32.xlu2 %v9359_v43, %s8575_s18  ;;  %1015 = vrot.lane.b32.xlu1 %v9359_v43, %s8574_s14  ;;  %v9523_v14 = vpack.c.bf16 %v9359_v43, %v9359_v43 }
 0x109   : > { %v1748_v51 = vsel %vm1727_vm15, %v9523_v14, 0 }
 0x10e   : > { %v9365_v56 = vpop.f32.mrf.mxu0 }
 0x10f   : > { %12631 = vst [vmem:[#allocation18_spill] sm:$0xff] %v9365_v56  ;;  %983 = vrot.lane.b32.xlu1 %v9355_v3, %s8575_s18  ;;  %1042 = vrot.lane.b32.xlu2 %v9365_v56, %s8575_s18  ;;  %v9536_v9 = vpack.c.bf16 %v9365_v56, %v9365_v56 }
 0x110   : > { %1044 = vrot.lane.b32.xlu0 %v9365_v56, %s8574_s14 }
 0x116   : > { %v9373_v11 = vpop.f32.mrf.mxu0 }
 0x117   : > { %12632 = vst [vmem:[#allocation19_spill] sm:$0xff] %v9373_v11  ;;  %v9508_v41 = vpack.c.bf16 %v9373_v11, %v9373_v11 }
 0x118   : > { %1073 = vrot.lane.b32.xlu0 %v9373_v11, %s8574_s14 }
 0x119   : > { %v1786_v35 = vsel %vm1727_vm15, %v9508_v41, 0 }
 0x11e   : > { %v9377_v39 = vpop.f32.mrf.mxu0 }
 0x11f   : > { %12633 = vst [vmem:[#allocation20_spill] sm:$0xff] %v9377_v39  ;;  %1102 = vrot.lane.b32.xlu2 %v9377_v39, %s8574_s14  ;;  %v9532_v1 = vpack.c.bf16 %v9377_v39, %v9377_v39 }
 0x120   : > { %1071 = vrot.lane.b32.xlu0 %v9373_v11, %s8575_s18 }
 0x126   : > { %v9383_v40 = vpop.f32.mrf.mxu0 }
 0x127   : > { %12634 = vst [vmem:[#allocation21_spill] sm:$0xff] %v9383_v40  ;;  %1100 = vrot.lane.b32.xlu2 %v9377_v39, %s8575_s18  ;;  %1131 = vrot.lane.b32.xlu1 %v9383_v40, %s8574_s14 }
 0x12e   : > { %v9389_v6 = vpop.f32.mrf.mxu0 }
 0x12f   : > { %12635 = vst [vmem:[#allocation22_spill] sm:$0xff] %v9389_v6  ;;  %1129 = vrot.lane.b32.xlu1 %v9383_v40, %s8575_s18  ;;  %1160 = vrot.lane.b32.xlu0 %v9389_v6, %s8574_s14 }
 0x136   : > { %v9395_v63 = vpop.f32.mrf.mxu0 }
 0x137   : > { %12636 = vst [vmem:[#allocation23_spill] sm:$0xff] %v9395_v63  ;;  %1158 = vrot.lane.b32.xlu0 %v9389_v6, %s8575_s18  ;;  %1189 = vrot.lane.b32.xlu2 %v9395_v63, %s8574_s14 }
 0x13f   : > { %1187 = vrot.lane.b32.xlu2 %v9395_v63, %s8575_s18  ;;  %v9403_v4 = vpop.f32.mrf.mxu0 }
 0x140   : > { %12637 = vst [vmem:[#allocation24_spill] sm:$0xff] %v9403_v4  ;;  %1218 = vrot.lane.b32.xlu1 %v9403_v4, %s8574_s14 }
 0x147   : > { %v9407_v5 = vpop.f32.mrf.mxu0 }
 0x148   : > { %12638 = vst [vmem:[#allocation25_spill] sm:$0xff] %v9407_v5  ;;  %1216 = vrot.lane.b32.xlu1 %v9403_v4, %s8575_s18  ;;  %1247 = vrot.lane.b32.xlu0 %v9407_v5, %s8574_s14 }
 0x14f   : > { %v9413_v53 = vpop.f32.mrf.mxu0 }
 0x150   : > { %12639 = vst [vmem:[#allocation26_spill] sm:$0xff] %v9413_v53  ;;  %1245 = vrot.lane.b32.xlu0 %v9407_v5, %s8575_s18  ;;  %1276 = vrot.lane.b32.xlu2 %v9413_v53, %s8574_s14 }
 0x157   : > { %v9419_v24 = vpop.f32.mrf.mxu0 }
 0x158   : > { %12640 = vst [vmem:[#allocation27_spill] sm:$0xff] %v9419_v24  ;;  %1305 = vrot.lane.b32.xlu1 %v9419_v24, %s8574_s14  ;;  %1274 = vrot.lane.b32.xlu2 %v9413_v53, %s8575_s18 }
 0x15f   : > { %v9425_v45 = vpop.f32.mrf.mxu0 }
 0x160   : > { %12641 = vst [vmem:[#allocation28_spill] sm:$0xff] %v9425_v45  ;;  %1303 = vrot.lane.b32.xlu1 %v9419_v24, %s8575_s18  ;;  %1334 = vrot.lane.b32.xlu0 %v9425_v45, %s8574_s14 }
 0x161   : > { %v1014_v59 = vpop.permute.xlu2 %1013 }
 0x167   : > { %v9431_v60 = vpop.f32.mrf.mxu0 }
 0x168   : > { %12642 = vst [vmem:[#allocation29_spill] sm:$0xff] %v9431_v60  ;;  %1332 = vrot.lane.b32.xlu0 %v9425_v45, %s8575_s18  ;;  %1363 = vrot.lane.b32.xlu2 %v9431_v60, %s8574_s14 }
 0x169   : > { %v1043_v26 = vpop.permute.xlu2 %1042 }
 0x16f   : > { %v9437_v25 = vpop.f32.mrf.mxu0 }
 0x170   : > { %12643 = vst [vmem:[#allocation30_spill] sm:$0xff] %v9437_v25  ;;  %1361 = vrot.lane.b32.xlu2 %v9431_v60, %s8575_s18  ;;  %1392 = vrot.lane.b32.xlu1 %v9437_v25, %s8574_s14 }
 0x171   : > { %v986_v28 = vpop.permute.xlu0 %985 }
 0x172   : > { %7671 = vmatpush.xpose.msk.msra.mxu1 %vm987_vm7, %v986_v28  ;;  %v1805_v28 = vsel %vm1727_vm15, %v9532_v1, 0 }
 0x177   : > { %v9444_v47 = vpop.f32.mrf.mxu0 }
 0x178   : > { %2057 = vrot.lane.b32.xlu2 %v9359_v43, %s8576_s21  ;;  %1390 = vrot.lane.b32.xlu1 %v9437_v25, %s8575_s18 }
 0x179   : > { %v1016_v0 = vpop.permute.xlu1 %1015  ;;  %v1103_v62 = vpop.permute.xlu2 %1102  ;;  %1421 = vrot.lane.b32.xlu0 %v9444_v47, %s8574_s14  ;;  %s8587_s14 = smov 48  }
 0x17a   : > { %7673 = vmatpush.xpose.msk.msra.mxu2 %vm987_vm7, %v1016_v0  ;;  %v1767_v0 = vsel %vm1727_vm15, %v9536_v9, 0 }
 0x17d   : > { %7674 = vmatmul.msk.f32.vlgmr.msra.gmra.mxu2 %vm987_vm7, %v1014_v59 }
 0x17e   : > { %7679 = vmatpush.xpose.msk.msrb.mxu2 %vm987_vm7, %v1103_v62  ;;  %v9547_v62 = vpack.c.bf16 %v9383_v40, %v9383_v40 }
 0x180   : > { %2085 = vrot.lane.b32.xlu2 %v9365_v56, %s8576_s21  ;;  %1419 = vrot.lane.b32.xlu1 %v9444_v47, %s8575_s18 }
 0x181   : > { %v984_v31 = vpop.permute.xlu1 %983  ;;  %2059 = vrot.lane.b32.xlu0 %v9359_v43, %s8577_s29  ;;  %v1101_v37 = vpop.permute.xlu2 %1100 }
 0x182   : > { %v1045_v54 = vpop.permute.xlu0 %1044  ;;  %7672 = vmatmul.msk.f32.vlgmr.msra.gmra.mxu1 %vm987_vm7, %v984_v31 }
 0x183   : > { %7675 = vmatpush.xpose.msk.msra.mxu3 %vm987_vm7, %v1045_v54  ;;  %v1824_v54 = vsel %vm1727_vm15, %v9547_v62, 0 }
 0x185   : > { %7680 = vmatmul.msk.f32.vlgmr.msrb.gmra.mxu2 %vm987_vm7, %v1101_v37 }
 0x186   : > { %7676 = vmatmul.msk.f32.vlgmr.msra.gmra.mxu3 %vm987_vm7, %v1043_v26 }
 0x188   : > { %2283 = vrot.lane.b32.xlu2 %v9407_v5, %s8577_s29  ;;  %2031 = vrot.lane.b32.xlu1 %v9355_v3, %s8577_s29 }
 0x189   : > { %2029 = vrot.lane.b32.xlu0 %v9355_v3, %s8576_s21 }
 0x18a   : > { %v1074_v22 = vpop.permute.xlu0 %1073 }
 0x18b   : > { %7677 = vmatpush.xpose.msk.msrb.mxu1 %vm987_vm7, %v1074_v22 }
 0x190   : > { %2115 = vrot.lane.b32.xlu2 %v9373_v11, %s8577_s29  ;;  %2087 = vrot.lane.b32.xlu1 %v9365_v56, %s8577_s29 }
 0x191   : > { %v1190_v49 = vpop.permute.xlu2 %1189  ;;  %2171 = vrot.lane.b32.xlu0 %v9383_v40, %s8577_s29 }
 0x192   : > { %v1072_v50 = vpop.permute.xlu0 %1071  ;;  %7685 = vmatpush.xpose.msk.msra.mxu2 %vm987_vm7, %v1190_v49 }
 0x193   : > { %7678 = vmatmul.msk.f32.vlgmr.msrb.gmra.mxu1 %vm987_vm7, %v1072_v50 }
 0x198   : > { %2169 = vrot.lane.b32.xlu1 %v9383_v40, %s8576_s21 }
 0x199   : > { %v1132_v55 = vpop.permute.xlu1 %1131  ;;  %v1188_v17 = vpop.permute.xlu2 %1187  ;;  %2199 = vrot.lane.b32.xlu0 %v9389_v6, %s8577_s29 }
 0x19a   : > { %7681 = vmatpush.xpose.msk.msrb.mxu3 %vm987_vm7, %v1132_v55  ;;  %7686 = vmatmul.msk.f32.vlgmr.msra.gmra.mxu2 %vm987_vm7, %v1188_v17 }
 0x1a0   : > { %2197 = vrot.lane.b32.xlu1 %v9389_v6, %s8576_s21 }
 0x1a1   : > { %v1130_v2 = vpop.permute.xlu1 %1129  ;;  %v1161_v61 = vpop.permute.xlu0 %1160  ;;  %2281 = vrot.lane.b32.xlu0 %v9407_v5, %s8576_s21 }
 0x1a2   : > { %7682 = vmatmul.msk.f32.vlgmr.msrb.gmra.mxu3 %vm987_vm7, %v1130_v2  ;;  %7683 = vmatpush.xpose.msk.msra.mxu1 %vm987_vm7, %v1161_v61 }
 0x1a9   : > { %v1159_v18 = vpop.permute.xlu0 %1158 }
 0x1aa   : > { %7684 = vmatmul.msk.f32.vlgmr.msra.gmra.mxu1 %vm987_vm7, %v1159_v18  ;;  %v1277_v38 = vpop.permute.xlu2 %1276 }
 0x1ab   : > { %7691 = vmatpush.xpose.msk.msrb.mxu2 %vm987_vm7, %v1277_v38 }
 0x1b2   : > { %v1219_v27 = vpop.permute.xlu1 %1218  ;;  %v1275_v13 = vpop.permute.xlu2 %1274 }
 0x1b3   : > { %7687 = vmatpush.xpose.msk.msra.mxu3 %vm987_vm7, %v1219_v27  ;;  %7692 = vmatmul.msk.f32.vlgmr.msrb.gmra.mxu2 %vm987_vm7, %v1275_v13 }
 0x1ba   : > { %v1217_v16 = vpop.permute.xlu1 %1216  ;;  %v1248_v34 = vpop.permute.xlu0 %1247 }
 0x1bb   : > { %7688 = vmatmul.msk.f32.vlgmr.msra.gmra.mxu3 %vm987_vm7, %v1217_v16  ;;  %7689 = vmatpush.xpose.msk.msrb.mxu1 %vm987_vm7, %v1248_v34 }
 0x1c2   : > { %v1246_v48 = vpop.permute.xlu0 %1245  ;;  %v1364_v15 = vpop.permute.xlu2 %1363 }
 0x1c3   : > { %7690 = vmatmul.msk.f32.vlgmr.msrb.gmra.mxu1 %vm987_vm7, %v1246_v48  ;;  %7697 = vmatpush.xpose.msk.msra.mxu2 %vm987_vm7, %v1364_v15 }
 0x1c7   : > { %1738 = vmatpush.bf16.msrb.mxu2 %v1729_v32 }
 0x1ca   : > { %v1306_v44 = vpop.permute.xlu1 %1305  ;;  %v1362_v20 = vpop.permute.xlu2 %1361 }
 0x1cb   : > { %7698 = vmatmul.msk.f32.vlgmr.msra.gmra.mxu2 %vm987_vm7, %v1362_v20  ;;  %7693 = vmatpush.xpose.msk.msrb.mxu3 %vm987_vm7, %v1306_v44 }
 0x1cc   : > { %1795 = vmatpush.bf16.msra.mxu2 %v1786_v35 }
 0x1d2   : > { %v1304_v58 = vpop.permute.xlu1 %1303  ;;  %v1335_v52 = vpop.permute.xlu0 %1334 }
 0x1d3   : > { %v9514_v42 = vpop.permute.xlu2 %2057  ;;  %7694 = vmatmul.msk.f32.vlgmr.msrb.gmra.mxu3 %vm987_vm7, %v1304_v58  ;;  %7695 = vmatpush.xpose.msk.msra.mxu1 %vm987_vm7, %v1335_v52 }
 0x1da   : > { %v1333_v21 = vpop.permute.xlu0 %1332 }
 0x1db   : > { %v9518_v8 = vpop.permute.xlu2 %2085  ;;  %7696 = vmatmul.msk.f32.vlgmr.msra.gmra.mxu1 %vm987_vm7, %v1333_v21 }
 0x1e2   : > { %v1393_v46 = vpop.permute.xlu1 %1392 }
 0x1e3   : > { %v9525_v36 = vpop.permute.xlu2 %2283  ;;  %7699 = vmatpush.xpose.msk.msra.mxu3 %vm987_vm7, %v1393_v46 }
 0x1e7   : > { %1757 = vmatpush.bf16.msrb.mxu3 %v1748_v51 }
 0x1ea   : > { %v1391_v33 = vpop.permute.xlu1 %1390 }
 0x1eb   : > { %v2116_v59 = vpop.permute.xlu2 %2115  ;;  %v1422_v26 = vpop.permute.xlu0 %1421  ;;  %7700 = vmatmul.msk.f32.vlgmr.msra.gmra.mxu3 %vm987_vm7, %v1391_v33 }
 0x1ec   : > { %7701 = vmatpush.xpose.msk.msrb.mxu1 %vm987_vm7, %v1422_v26  ;;  %1814 = vmatpush.bf16.msra.mxu3 %v1805_v28 }
 0x1ed   : > { %7725 = vmatpush.xpose.msk.msrb.mxu0 %vm987_vm7, %v2116_v59 }
 0x1f0   : > { %1776 = vmatpush.bf16.msra.mxu1 %v1767_v0 }
 0x1f2   : > { %v1420_v31 = vpop.permute.xlu1 %1419 }
 0x1f3   : > { %7702 = vmatmul.msk.f32.vlgmr.msrb.gmra.mxu1 %vm987_vm7, %v1420_v31 }
 0x1f4   : > { %1833 = vmatpush.bf16.msrb.mxu1 %v1824_v54 }
 0x1ff   : > { %v1009_v37 = vpop.f32.mrf.mxu1 }
 0x200   : > { %vm1447_vm2 = vcmp.gt.f32.partialorder %v1009_v37, 0.0  ;;  %v1463_v22 = vmul.f32 0.2, %v1009_v37  ;;  %v1038_v49 = vpop.f32.mrf.mxu2 }
 0x201   : > { %vm1448_vm5 = vcmp.gt.f32.partialorder %v1038_v49, 0.0  ;;  %v1464_v50 = vmul.f32 0.2, %v1038_v49 }
 0x202   : > { %v1479_v55 = vsel %vm1447_vm2, %v1009_v37, %v1463_v22 }
 0x203   : > { %v9554_v17 = vsel %vm8750_vm4, %v1479_v55, -1e+30  ;;  %v1480_v2 = vsel %vm1448_vm5, %v1038_v49, %v1464_v50 }
 0x204   : > { %v1516_v61 = vsel %vm1515_vm0, %v9554_v17, -inf  ;;  %v9560_v18 = vsel %vm8750_vm4, %v1480_v2, -1e+30 }
 0x205   : > { %1517 = vmax.xlane.f32.xlu2 %v1516_v61  ;;  %v1519_v38 = vsel %vm1515_vm0, %v9560_v18, -inf }
 0x206   : > { %1520 = vmax.xlane.f32.xlu1 %v1519_v38 }
 0x208   : > { %v1125_v13 = vpop.f32.mrf.mxu2 }
 0x209   : > { %v1067_v27 = vpop.f32.mrf.mxu3  ;;  %v1467_v34 = vmul.f32 0.2, %v1125_v13  ;;  %vm1451_vm9 = vcmp.gt.f32.partialorder %v1125_v13, 0.0 }
 0x20a   : > { %vm1449_vm6 = vcmp.gt.f32.partialorder %v1067_v27, 0.0  ;;  %v1465_v16 = vmul.f32 0.2, %v1067_v27 }
 0x20b   : > { %v1483_v20 = vsel %vm1451_vm9, %v1125_v13, %v1467_v34 }
 0x20c   : > { %v1481_v48 = vsel %vm1449_vm6, %v1067_v27, %v1465_v16  ;;  %v9572_v52 = vsel %vm8750_vm4, %v1483_v20, -1e+30 }
 0x20d   : > { %v9566_v15 = vsel %vm8750_vm4, %v1481_v48, -1e+30  ;;  %v1528_v51 = vsel %vm1515_vm0, %v9572_v52, -inf }
 0x20e   : > { %v1522_v32 = vsel %vm1515_vm0, %v9566_v15, -inf }
 0x20f   : > { %1523 = vmax.xlane.f32.xlu0 %v1522_v32 }
 0x210   : > { %v1096_v44 = vpop.f32.mrf.mxu1 }
 0x211   : > { %v1466_v35 = vmul.f32 0.2, %v1096_v44  ;;  %vm1450_vm10 = vcmp.gt.f32.partialorder %v1096_v44, 0.0 }
 0x213   : > { %v1482_v58 = vsel %vm1450_vm10, %v1096_v44, %v1466_v35 }
 0x214   : > { %v9576_v21 = vsel %vm8750_vm4, %v1482_v58, -1e+30 }
 0x215   : > { %v1525_v46 = vsel %vm1515_vm0, %v9576_v21, -inf }
 0x216   : > { %1526 = vmax.xlane.f32.xlu2 %v1525_v46 }
 0x217   : > { %1529 = vmax.xlane.f32.xlu0 %v1528_v51 }
 0x21d   : > { %v1212_v33 = vpop.f32.mrf.mxu2 }
 0x21e   : > { %vm1454_vm1 = vcmp.gt.f32.partialorder %v1212_v33, 0.0  ;;  %v1470_v59 = vmul.f32 0.2, %v1212_v33 }
 0x220   : > { %v1486_v26 = vsel %vm1454_vm1, %v1212_v33, %v1470_v59 }
 0x221   : > { %v9584_v28 = vsel %vm8750_vm4, %v1486_v26, -1e+30 }
 0x222   : > { %v1537_v0 = vsel %vm1515_vm0, %v9584_v28, -inf }
 0x223   : > { %1538 = vmax.xlane.f32.xlu0 %v1537_v0  ;;  %v9618_v0 = vpop.permute.xlu0 %2059 }
 0x225   : > { %v1154_v31 = vpop.f32.mrf.mxu3 }
 0x226   : > { %v1468_v54 = vmul.f32 0.2, %v1154_v31  ;;  %vm1452_vm13 = vcmp.gt.f32.partialorder %v1154_v31, 0.0 }
 0x227   : > { %v1183_v37 = vpop.f32.mrf.mxu1 }
 0x228   : > { %vm1453_vm12 = vcmp.gt.f32.partialorder %v1183_v37, 0.0  ;;  %v1469_v22 = vmul.f32 0.2, %v1183_v37  ;;  %v1484_v49 = vsel %vm1452_vm13, %v1154_v31, %v1468_v54  ;;  %v9620_v31 = vpop.permute.xlu1 %2031 }
 0x229   : > { %v9590_v50 = vsel %vm8750_vm4, %v1484_v49, -1e+30 }
 0x22a   : > { %v1531_v55 = vsel %vm1515_vm0, %v9590_v50, -inf  ;;  %v1485_v2 = vsel %vm1453_vm12, %v1183_v37, %v1469_v22 }
 0x22b   : > { %1532 = vmax.xlane.f32.xlu2 %v1531_v55  ;;  %v9596_v61 = vsel %vm8750_vm4, %v1485_v2, -1e+30 }
 0x22c   : > { %v1534_v38 = vsel %vm1515_vm0, %v9596_v61, -inf }
 0x22d   : > { %1535 = vmax.xlane.f32.xlu1 %v1534_v38 }
 0x236   : > { %v1299_v16 = vpop.f32.mrf.mxu2 }
 0x237   : > { %v1473_v20 = vmul.f32 0.2, %v1299_v16  ;;  %vm1457_vm5 = vcmp.gt.f32.partialorder %v1299_v16, 0.0 }
 0x239   : > { %v1489_v33 = vsel %vm1457_vm5, %v1299_v16, %v1473_v20 }
 0x23a   : > { %v9614_v59 = vsel %vm9114_vm8, %v1489_v33, -1e+30 }
 0x23b   : > { %v1546_v26 = vsel %vm1515_vm0, %v9614_v59, -inf }
 0x23e   : > { %v1241_v27 = vpop.f32.mrf.mxu3 }
 0x23f   : > { %vm1455_vm14 = vcmp.gt.f32.partialorder %v1241_v27, 0.0  ;;  %v1471_v13 = vmul.f32 0.2, %v1241_v27 }
 0x240   : > { %v1270_v34 = vpop.f32.mrf.mxu1 }
 0x241   : > { %v1472_v48 = vmul.f32 0.2, %v1270_v34  ;;  %v1487_v32 = vsel %vm1455_vm14, %v1241_v27, %v1471_v13  ;;  %vm1456_vm2 = vcmp.gt.f32.partialorder %v1270_v34, 0.0  ;;  %v9626_v13 = vpop.permute.xlu0 %2029 }
 0x242   : > { %v9602_v44 = vsel %vm9114_vm8, %v1487_v32, -1e+30 }
 0x243   : > { %v1540_v35 = vsel %vm1515_vm0, %v9602_v44, -inf  ;;  %v1488_v58 = vsel %vm1456_vm2, %v1270_v34, %v1472_v48  ;;  %v9630_v48 = vpop.permute.xlu1 %2087 }
 0x244   : > { %1541 = vmax.xlane.f32.xlu2 %v1540_v35  ;;  %v9608_v46 = vsel %vm9114_vm8, %v1488_v58, -1e+30 }
 0x245   : > { %v1543_v51 = vsel %vm1515_vm0, %v9608_v46, -inf }
 0x246   : > { %1544 = vmax.xlane.f32.xlu1 %v1543_v51 }
 0x249   : > { %v9644_v33 = vpop.permute.xlu0 %2171 }
 0x24e   : > { %1547 = vmax.xlane.f32.xlu1 %v1546_v26  ;;  %v1386_v37 = vpop.f32.mrf.mxu2  ;;  %v9646_v26 = vpop.permute.xlu1 %2169 }
 0x24f   : > { %v1476_v38 = vmul.f32 0.2, %v1386_v37  ;;  %vm1460_vm10 = vcmp.gt.f32.partialorder %v1386_v37, 0.0 }
 0x251   : > { %v1492_v35 = vsel %vm1460_vm10, %v1386_v37, %v1476_v38 }
 0x252   : > { %v9640_v58 = vsel %vm9114_vm8, %v1492_v35, -1e+30 }
 0x253   : > { %v1555_v51 = vsel %vm1515_vm0, %v9640_v58, -inf }
 0x256   : > { %v1328_v54 = vpop.f32.mrf.mxu3 }
 0x257   : > { %v1474_v22 = vmul.f32 0.2, %v1328_v54  ;;  %vm1458_vm6 = vcmp.gt.f32.partialorder %v1328_v54, 0.0 }
 0x258   : > { %v1357_v49 = vpop.f32.mrf.mxu1 }
 0x259   : > { %v1475_v55 = vmul.f32 0.2, %v1357_v49  ;;  %v1490_v2 = vsel %vm1458_vm6, %v1328_v54, %v1474_v22  ;;  %vm1459_vm9 = vcmp.gt.f32.partialorder %v1357_v49, 0.0  ;;  %v9648_v22 = vpop.permute.xlu0 %2199 }
 0x25a   : > { %v9624_v27 = vsel %vm9114_vm8, %v1490_v2, -1e+30 }
 0x25b   : > { %v1549_v16 = vsel %vm1515_vm0, %v9624_v27, -inf  ;;  %v1491_v34 = vsel %vm1459_vm9, %v1357_v49, %v1475_v55  ;;  %v9650_v55 = vpop.permute.xlu1 %2197 }
 0x25c   : > { %1550 = vmax.xlane.f32.xlu0 %v1549_v16  ;;  %v9634_v32 = vsel %vm9114_vm8, %v1491_v34, -1e+30 }
 0x25d   : > { %v1552_v20 = vsel %vm1515_vm0, %v9634_v32, -inf }
 0x25e   : > { %1553 = vmax.xlane.f32.xlu1 %v1552_v20 }
 0x261   : > { %v9665_v19 = vpop.permute.xlu0 %2281 }
 0x262   : > { %12644 = vst [vmem:[#allocation31_spill] sm:$0xff] %v9665_v19 }
 0x266   : > { %1556 = vmax.xlane.f32.xlu1 %v1555_v51 }
 0x26e   : > { %v1415_v54 = vpop.f32.mrf.mxu3 }
 0x26f   : > { %v1477_v49 = vmul.f32 0.2, %v1415_v54  ;;  %vm1461_vm1 = vcmp.gt.f32.partialorder %v1415_v54, 0.0 }
 0x270   : > { %v1444_v37 = vpop.f32.mrf.mxu1 }
 0x271   : > { %v1478_v2 = vmul.f32 0.2, %v1444_v37  ;;  %v1493_v38 = vsel %vm1461_vm1, %v1415_v54, %v1477_v49  ;;  %vm1462_vm13 = vcmp.gt.f32.partialorder %v1444_v37, 0.0 }
 0x272   : > { %v9654_v16 = vsel %vm9114_vm8, %v1493_v38, -1e+30 }
 0x273   : > { %v1558_v34 = vsel %vm1515_vm0, %v9654_v16, -inf  ;;  %v1494_v20 = vsel %vm1462_vm13, %v1444_v37, %v1478_v2 }
 0x274   : > { %1559 = vmax.xlane.f32.xlu0 %v1558_v34  ;;  %v9660_v35 = vsel %vm9114_vm8, %v1494_v20, -1e+30 }
 0x275   : > { %v1561_v51 = vsel %vm1515_vm0, %v9660_v35, -inf }
 0x276   : > { %1562 = vmax.xlane.f32.xlu1 %v1561_v51 }
 0x278   : > { %v1518_v29 = vpop.xlane.xlu2 %1517 }
 0x279   : > { %v1564_v54 = vsub.f32 %v9554_v17, %v1518_v29  ;;  %v1521_v49 = vpop.xlane.xlu1 %1520 }
 0x27a   : > { %v1565_v38 = vsub.f32 %v9560_v18, %v1521_v49 }
 0x27b   : > { %v1580_v23 = vmul.f32 1.442695, %v1564_v54 }
 0x27c   : > { %v1582_v10 = vmul.f32 1.442695, %v1565_v38 }
 0x27d   : > { %8073 = vpow2.f32 %v1580_v23 }
 0x27e   : > { %8075 = vpow2.f32 %v1582_v10 }
 0x282   : > { %v1524_v37 = vpop.xlane.xlu0 %1523 }
 0x283   : > { %v9668_v2 = vpop.eup %8073  ;;  %v1566_v34 = vsub.f32 %v9566_v15, %v1524_v37 }
 0x284   : > { %v9671_v20 = vpop.eup %8075  ;;  %v1612_v51 = vsel %vm1515_vm0, %v9668_v2, 0.0 }
 0x285   : > { %v1584_v29 = vmul.f32 1.442695, %v1566_v34  ;;  %1613 = vadd.xlane.f32.xlu2 %v1612_v51  ;;  %v1615_v17 = vsel %vm1515_vm0, %v9671_v20, 0.0 }
 0x286   : > { %1616 = vadd.xlane.f32.xlu0 %v1615_v17 }
 0x287   : > { %8077 = vpow2.f32 %v1584_v29 }
 0x289   : > { %v1527_v18 = vpop.xlane.xlu2 %1526 }
 0x28a   : > { %v1567_v10 = vsub.f32 %v9576_v21, %v1527_v18  ;;  %v1530_v23 = vpop.xlane.xlu0 %1529 }
 0x28b   : > { %v1568_v54 = vsub.f32 %v9572_v52, %v1530_v23 }
 0x28c   : > { %v1586_v49 = vmul.f32 1.442695, %v1567_v10 }
 0x28d   : > { %v9679_v15 = vpop.eup %8077  ;;  %v1588_v38 = vmul.f32 1.442695, %v1568_v54 }
 0x28e   : > { %8079 = vpow2.f32 %v1586_v49  ;;  %v1618_v37 = vsel %vm1515_vm0, %v9679_v15, 0.0 }
 0x28f   : > { %8081 = vpow2.f32 %v1588_v38  ;;  %1619 = vadd.xlane.f32.xlu2 %v1618_v37 }
 0x294   : > { %v9683_v34 = vpop.eup %8079 }
 0x295   : > { %v9685_v51 = vpop.eup %8081  ;;  %v1621_v21 = vsel %vm1515_vm0, %v9683_v34, 0.0 }
 0x296   : > { %v1624_v52 = vsel %vm1515_vm0, %v9685_v51, 0.0  ;;  %v1539_v29 = vpop.xlane.xlu0 %1538 }
 0x297   : > { %1622 = vadd.xlane.f32.xlu2 %v1621_v21  ;;  %1625 = vadd.xlane.f32.xlu0 %v1624_v52  ;;  %v1571_v17 = vsub.f32 %v9584_v28, %v1539_v29 }
 0x299   : > { %v1594_v18 = vmul.f32 1.442695, %v1571_v17 }
 0x29b   : > { %8083 = vpow2.f32 %v1594_v18 }
 0x29e   : > { %v1533_v10 = vpop.xlane.xlu2 %1532 }
 0x29f   : > { %v1569_v23 = vsub.f32 %v9590_v50, %v1533_v10 }
 0x2a0   : > { %v1536_v54 = vpop.xlane.xlu1 %1535 }
 0x2a1   : > { %v1590_v49 = vmul.f32 1.442695, %v1569_v23  ;;  %v1570_v38 = vsub.f32 %v9596_v61, %v1536_v54  ;;  %v9694_v37 = vpop.eup %8083 }
 0x2a2   : > { %v1633_v7 = vsel %vm1515_vm0, %v9694_v37, 0.0 }
 0x2a3   : > { %8085 = vpow2.f32 %v1590_v49  ;;  %1634 = vadd.xlane.f32.xlu1 %v1633_v7  ;;  %v1592_v21 = vmul.f32 1.442695, %v1570_v38 }
 0x2a5   : > { %8087 = vpow2.f32 %v1592_v21 }
 0x2a9   : > { %v9698_v52 = vpop.eup %8085 }
 0x2aa   : > { %v1627_v28 = vsel %vm1515_vm0, %v9698_v52, 0.0 }
 0x2ab   : > { %1628 = vadd.xlane.f32.xlu2 %v1627_v28  ;;  %v9702_v50 = vpop.eup %8087 }
 0x2ac   : > { %v1630_v61 = vsel %vm1515_vm0, %v9702_v50, 0.0 }
 0x2b3   : > { %1631 = vadd.xlane.f32.xlu2 %v1630_v61 }
 0x2b7   : > { %v1542_v29 = vpop.xlane.xlu2 %1541 }
 0x2b8   : > { %v1572_v17 = vsub.f32 %v9602_v44, %v1542_v29 }
 0x2b9   : > { %v1545_v18 = vpop.xlane.xlu1 %1544 }
 0x2ba   : > { %v1596_v10 = vmul.f32 1.442695, %v1572_v17  ;;  %v1573_v7 = vsub.f32 %v9608_v46, %v1545_v18 }
 0x2bc   : > { %8089 = vpow2.f32 %v1596_v10  ;;  %v1598_v23 = vmul.f32 1.442695, %v1573_v7 }
 0x2be   : > { %8091 = vpow2.f32 %v1598_v23 }
 0x2c1   : > { %v1548_v54 = vpop.xlane.xlu1 %1547 }
 0x2c2   : > { %v9708_v49 = vpop.eup %8089  ;;  %v1574_v38 = vsub.f32 %v9614_v59, %v1548_v54 }
 0x2c3   : > { %v1636_v21 = vsel %vm1515_vm0, %v9708_v49, 0.0 }
 0x2c4   : > { %v9713_v28 = vpop.eup %8091  ;;  %v1600_v61 = vmul.f32 1.442695, %v1574_v38  ;;  %1637 = vadd.xlane.f32.xlu0 %v1636_v21 }
 0x2c5   : > { %v1639_v44 = vsel %vm1515_vm0, %v9713_v28, 0.0 }
 0x2c6   : > { %8093 = vpow2.f32 %v1600_v61  ;;  %1640 = vadd.xlane.f32.xlu2 %v1639_v44 }
 0x2cc   : > { %v9717_v46 = vpop.eup %8093 }
 0x2cd   : > { %v1642_v29 = vsel %vm1515_vm0, %v9717_v46, 0.0 }
 0x2ce   : > { %1643 = vadd.xlane.f32.xlu1 %v1642_v29 }
 0x2cf   : > { %v1551_v59 = vpop.xlane.xlu0 %1550 }
 0x2d0   : > { %v1575_v17 = vsub.f32 %v9624_v27, %v1551_v59 }
 0x2d1   : > { %v1554_v10 = vpop.xlane.xlu1 %1553 }
 0x2d2   : > { %v1602_v7 = vmul.f32 1.442695, %v1575_v17  ;;  %v1576_v23 = vsub.f32 %v9634_v32, %v1554_v10  ;;  %v9737_v17 = vpack.c.bf16 %v9389_v6, %v9389_v6  ;;  %v9742_v10 = vpack.c.bf16 %v9395_v63, %v9395_v63 }
 0x2d4   : > { %8095 = vpow2.f32 %v1602_v7  ;;  %v1604_v21 = vmul.f32 1.442695, %v1576_v23 }
 0x2d8   : > { %2113 = vrot.lane.b32.xlu0 %v9373_v11, %s8576_s21 }
 0x2d9   : > { %v1557_v61 = vpop.xlane.xlu1 %1556 }
 0x2da   : > { %v9731_v44 = vpop.eup %8095  ;;  %v1577_v27 = vsub.f32 %v9640_v58, %v1557_v61 }
 0x2de   : > { %2141 = vrot.lane.b32.xlu2 %v9377_v39, %s8576_s21 }
 0x2e7   : > { %2143 = vrot.lane.b32.xlu1 %v9377_v39, %s8577_s29  ;;  %v9728_v18 = vpop.xlane.xlu0 %1559 }
 0x2f8   : > { %v1614_v54 = vpop.xlane.xlu2 %1613 }
 0x2f9   : > { %8097 = vrcp.f32 %v1614_v54  ;;  %v1617_v38 = vpop.xlane.xlu0 %1616  ;;  %v1645_v54 = vsel %vm1515_vm0, %v9731_v44, 0.0 }
 0x2fa   : > { %8099 = vrcp.f32 %v1617_v38 }
 0x2fb   : > { %8101 = vpow2.f32 %v1604_v21 }
 0x2ff   : > { %v8098_v29 = vpop.eup %8097 }
 0x300   : > { %v8100_v19 = vpop.eup %8099  ;;  %v1676_v59 = vmul.f32 %v8098_v29, %v9668_v2  ;;  %v1606_v2 = vmul.f32 1.442695, %v1577_v27 }
 0x301   : > { %v1677_v32 = vmul.f32 %v8100_v19, %v9671_v20  ;;  %v9746_v58 = vpop.eup %8101  ;;  %v1843_v19 = vsel %vm1727_vm15, %v9737_v17, 0  ;;  %v1862_v20 = vsel %vm1727_vm15, %v9742_v10, 0 }
 0x302   : > { %v1692_v7 = vpack.c.bf16 %v1676_v59, %v1676_v59  ;;  %v1620_v23 = vpop.xlane.xlu2 %1619  ;;  %1646 = vadd.xlane.f32.xlu0 %v1645_v54  ;;  %v1648_v21 = vsel %vm1515_vm0, %v9746_v58, 0.0 }
 0x303   : > { %v1693_v38 = vpack.c.bf16 %v1677_v32, %v1677_v32  ;;  %8103 = vrcp.f32 %v1620_v23  ;;  %v9759_v32 = vpack.c.bf16 %v9403_v4, %v9403_v4 }
 0x304   : > { %7703 = vmatmul.msk.bf16.vlgmr.msrb.gmra.mxu2 %vm1515_vm0, %v1692_v7  ;;  %8105 = vpow2.f32 %v1606_v2 }
 0x305   : > { %1852 = vmatpush.bf16.msrb.mxu2 %v1843_v19  ;;  %7704 = vmatmul.msk.bf16.vlgmr.msrb.gmra.mxu3 %vm1515_vm0, %v1693_v38  ;;  %v1881_v54 = vsel %vm1727_vm15, %v9759_v32, 0  ;;  %v9766_v38 = vpop.xlane.xlu1 %1562 }
 0x306   : > { %1871 = vmatpush.bf16.msrb.mxu3 %v1862_v20 }
 0x307   : > { %1649 = vadd.xlane.f32.xlu2 %v1648_v21  ;;  %v9773_v21 = vpack.c.bf16 %v9407_v5, %v9407_v5 }
 0x309   : > { %v8104_v61 = vpop.eup %8103 }
 0x30a   : > { %v1678_v29 = vmul.f32 %v8104_v61, %v9679_v15  ;;  %v1623_v27 = vpop.xlane.xlu2 %1622  ;;  %v1626_v59 = vpop.xlane.xlu0 %1625 }
 0x30b   : > { %8107 = vrcp.f32 %v1623_v27  ;;  %v9761_v23 = vpop.eup %8105  ;;  %v9778_v27 = vpack.c.bf16 %v9413_v53, %v9413_v53 }
 0x30c   : > { %v1694_v7 = vpack.c.bf16 %v1678_v29, %v1678_v29  ;;  %8109 = vrcp.f32 %v1626_v59  ;;  %v1651_v2 = vsel %vm1515_vm0, %v9761_v23, 0.0 }
 0x30e   : > { %7705 = vmatmul.msk.bf16.vlgmr.msra.gmra.mxu1 %vm1515_vm0, %v1694_v7  ;;  %v1900_v7 = vsel %vm1727_vm15, %v9773_v21, 0 }
 0x30f   : > { %1890 = vmatpush.bf16.msra.mxu1 %v1881_v54 }
 0x311   : > { %v8108_v15 = vpop.eup %8107  ;;  %1652 = vadd.xlane.f32.xlu1 %v1651_v2 }
 0x312   : > { %v8110_v19 = vpop.eup %8109  ;;  %v1679_v20 = vmul.f32 %v8108_v15, %v9683_v34 }
 0x313   : > { %v1680_v61 = vmul.f32 %v8110_v19, %v9685_v51  ;;  %v1919_v51 = vsel %vm1727_vm15, %v9778_v27, 0  ;;  %v9795_v19 = vpack.c.bf16 %v9431_v60, %v9431_v60 }
 0x314   : > { %v1695_v29 = vpack.c.bf16 %v1679_v20, %v1679_v20 }
 0x315   : > { %v1696_v59 = vpack.c.bf16 %v1680_v61, %v1680_v61 }
 0x316   : > { %7706 = vmatmul.msk.bf16.vlgmr.msra.gmra.mxu2 %vm1515_vm0, %v1695_v29  ;;  %2395 = vrot.lane.b32.xlu0 %v9431_v60, %s8577_s29  ;;  %v1635_v34 = vpop.xlane.xlu1 %1634 }
 0x317   : > { %1909 = vmatpush.bf16.msra.mxu2 %v1900_v7  ;;  %7707 = vmatmul.msk.bf16.vlgmr.msra.gmra.mxu3 %vm1515_vm0, %v1696_v59  ;;  %8111 = vrcp.f32 %v1635_v34  ;;  %v9800_v7 = vpack.c.bf16 %v9419_v24, %v9419_v24 }
 0x318   : > { %1928 = vmatpush.bf16.msra.mxu3 %v1919_v51 }
 0x31d   : > { %v8112_v15 = vpop.eup %8111 }
 0x31e   : > { %v1629_v54 = vpop.xlane.xlu2 %1628  ;;  %2227 = vrot.lane.b32.xlu0 %v9395_v63, %s8577_s29  ;;  %v1683_v2 = vmul.f32 %v8112_v15, %v9694_v37  ;;  %v1976_v37 = vsel %vm1727_vm15, %v9795_v19, 0  ;;  %v9817_v15 = vpack.c.bf16 %v9425_v45, %v9425_v45 }
 0x31f   : > { %8113 = vrcp.f32 %v1629_v54  ;;  %2309 = vrot.lane.b32.xlu2 %v9413_v53, %s8576_s21 }
 0x320   : > { %v1699_v61 = vpack.c.bf16 %v1683_v2, %v1683_v2 }
 0x325   : > { %v8114_v20 = vpop.eup %8113 }
 0x326   : > { %v1681_v29 = vmul.f32 %v8114_v20, %v9698_v52  ;;  %v1632_v59 = vpop.xlane.xlu2 %1631  ;;  %2253 = vrot.lane.b32.xlu0 %v9403_v4, %s8576_s21  ;;  %v1938_v52 = vsel %vm1727_vm15, %v9800_v7, 0  ;;  %v1957_v20 = vsel %vm1727_vm15, %v9817_v15, 0 }
 0x327   : > { %8115 = vrcp.f32 %v1632_v59  ;;  %7710 = vmatmul.msk.bf16.vlgmr.msrb.gmra.mxu3 %vm1515_vm0, %v1699_v61  ;;  %2255 = vrot.lane.b32.xlu2 %v9403_v4, %s8577_s29 }
 0x328   : > { %v1697_v34 = vpack.c.bf16 %v1681_v29, %v1681_v29  ;;  %1985 = vmatpush.bf16.msrb.mxu3 %v1976_v37 }
 0x32a   : > { %7708 = vmatmul.msk.bf16.vlgmr.msrb.gmra.mxu1 %vm1515_vm0, %v1697_v34  ;;  %2311 = vrot.lane.b32.xlu1 %v9413_v53, %s8577_s29  ;;  %v9839_v34 = vpack.c.bf16 %v9437_v25, %v9437_v25 }
 0x32b   : > { %1947 = vmatpush.bf16.msrb.mxu1 %v1938_v52 }
 0x32d   : > { %v8116_v51 = vpop.eup %8115 }
 0x32e   : > { %v1682_v54 = vmul.f32 %v8116_v51, %v9702_v50  ;;  %2339 = vrot.lane.b32.xlu0 %v9419_v24, %s8577_s29 }
 0x32f   : > { %2423 = vrot.lane.b32.xlu2 %v9437_v25, %s8577_s29 }
 0x330   : > { %v1698_v2 = vpack.c.bf16 %v1682_v54, %v1682_v54 }
 0x332   : > { %7709 = vmatmul.msk.bf16.vlgmr.msrb.gmra.mxu2 %vm1515_vm0, %v1698_v2  ;;  %2393 = vrot.lane.b32.xlu1 %v9431_v60, %s8576_s21  ;;  %v9844_v2 = vpack.c.bf16 %v9444_v47, %v9444_v47 }
 0x333   : > { %1966 = vmatpush.bf16.msrb.mxu2 %v1957_v20  ;;  %v1995_v20 = vsel %vm1727_vm15, %v9839_v34, 0 }
 0x336   : > { %2365 = vrot.lane.b32.xlu0 %v9425_v45, %s8576_s21 }
 0x337   : > { %2367 = vrot.lane.b32.xlu2 %v9425_v45, %s8577_s29  ;;  %v1638_v50 = vpop.xlane.xlu0 %1637 }
 0x338   : > { %8117 = vrcp.f32 %v1638_v50 }
 0x339   : > { %v1641_v61 = vpop.xlane.xlu2 %1640 }
 0x33a   : > { %8119 = vrcp.f32 %v1641_v61  ;;  %2225 = vrot.lane.b32.xlu1 %v9395_v63, %s8576_s21 }
 0x33e   : > { %v8118_v29 = vpop.eup %8117 }
 0x33f   : > { %v1684_v59 = vmul.f32 %v8118_v29, %v9708_v49  ;;  %2451 = vrot.lane.b32.xlu2 %v9444_v47, %s8577_s29  ;;  %s8588_s29 = smov 95  }
 0x340   : > { %v8120_v37 = vpop.eup %8119 }
 0x341   : > { %v1700_v52 = vpack.c.bf16 %v1684_v59, %v1684_v59  ;;  %v1685_v51 = vmul.f32 %v8120_v37, %v9713_v28  ;;  %v1644_v54 = vpop.xlane.xlu1 %1643  ;;  %v2014_v28 = vsel %vm1727_vm15, %v9844_v2, 0  ;;  %v2854_v37 = vunpack.c.l.b16 %v9547_v62  ;;  %v9878_v62 = vpop.permute.xlu2 %2141 }
 0x342   : > { %8121 = vrcp.f32 %v1644_v54  ;;  %2421 = vrot.lane.b32.xlu1 %v9437_v25, %s8576_s21 }
 0x343   : > { %v1701_v49 = vpack.c.bf16 %v1685_v51, %v1685_v51  ;;  %7711 = vmatmul.msk.bf16.vlgmr.msra.gmra.mxu1 %vm1515_vm0, %v1700_v52  ;;  %v9864_v52 = vpack.c.b16 %v2854_v37, %v2854_v37 }
 0x344   : > { %2004 = vmatpush.bf16.msra.mxu1 %v1995_v20 }
 0x345   : > { %7712 = vmatmul.msk.bf16.vlgmr.msra.gmra.mxu2 %vm1515_vm0, %v1701_v49 }
 0x346   : > { %2023 = vmatpush.bf16.msra.mxu2 %v2014_v28 }
 0x348   : > { %v8122_v50 = vpop.eup %8121 }
 0x349   : > { %v1686_v61 = vmul.f32 %v8122_v50, %v9717_v46  ;;  %v2806_v46 = vunpack.c.l.b16 %v9508_v41 }
 0x34a   : > { %2337 = vrot.lane.b32.xlu1 %v9419_v24, %s8576_s21  ;;  %v2114_v29 = vpop.permute.xlu0 %2113 }
 0x34b   : > { %v1702_v59 = vpack.c.bf16 %v1686_v61, %v1686_v61  ;;  %7726 = vmatmul.msk.f32.vlgmr.msrb.gmra.mxu0 %vm987_vm7, %v2114_v29  ;;  %v9869_v51 = vpack.c.b16 %v2806_v46, %v2806_v46 }
 0x34d   : > { %7713 = vmatmul.msk.bf16.vlgmr.msra.gmra.mxu3 %vm1515_vm0, %v1702_v59 }
 0x34e   : > { %7719 = vmatpush.xpose.msk.msra.mxu3 %vm987_vm7, %v9620_v31  ;;  %v2974_v31 = vunpack.c.l.b16 %v9778_v27 }
 0x350   : > { %v9874_v54 = vpack.c.b16 %v2974_v31, %v2974_v31 }
 0x352   : > { %2449 = vrot.lane.b32.xlu1 %v9444_v47, %s8576_s21 }
 0x359   : > { %v9884_v27 = vpop.permute.xlu1 %2143 }
 0x35a   : > { %2856 = vrot.lane.b32.xlu1 %v9864_v52, %s8578_s7 }
 0x362   : > { %2808 = vrot.lane.b32.xlu1 %v9869_v51, %s8578_s7 }
 0x36a   : > { %2976 = vrot.lane.b32.xlu1 %v9874_v54, %s8578_s7 }
 0x372   : > { %3147 = vrot.lane.b32.xlu1 %v9359_v43, %s8579_s20 }
 0x375   : > { %v1647_v49 = vpop.xlane.xlu0 %1646 }
 0x376   : > { %8123 = vrcp.f32 %v1647_v49 }
 0x37a   : > { %v1650_v41 = vpop.xlane.xlu2 %1649  ;;  %3231 = vrot.lane.b32.xlu1 %v9377_v39, %s8579_s20 }
 0x37b   : > { %8125 = vrcp.f32 %v1650_v41 }
 0x37c   : > { %v8124_v20 = vpop.eup %8123 }
 0x37d   : > { %v1687_v28 = vmul.f32 %v8124_v20, %v9731_v44 }
 0x37f   : > { %v1703_v50 = vpack.c.bf16 %v1687_v28, %v1687_v28 }
 0x381   : > { %v8126_v61 = vpop.eup %8125  ;;  %7714 = vmatmul.msk.bf16.vlgmr.msrb.gmra.mxu1 %vm1515_vm0, %v1703_v50 }
 0x382   : > { %v1688_v29 = vmul.f32 %v8126_v61, %v9746_v58  ;;  %7721 = vmatpush.xpose.msk.msrb.mxu1 %vm987_vm7, %v9618_v0  ;;  %3315 = vrot.lane.b32.xlu1 %v9395_v63, %s8579_s20  ;;  %v2310_v46 = vpop.permute.xlu2 %2309 }
 0x384   : > { %v1704_v59 = vpack.c.bf16 %v1688_v29, %v1688_v29  ;;  %v1653_v37 = vpop.xlane.xlu1 %1652 }
 0x385   : > { %8127 = vrcp.f32 %v1653_v37 }
 0x386   : > { %7715 = vmatmul.msk.bf16.vlgmr.msrb.gmra.mxu2 %vm1515_vm0, %v1704_v59 }
 0x387   : > { %v9894_v31 = vpop.f32.mrf.mxu2  ;;  %7729 = vmatpush.xpose.msk.msrb.mxu2 %vm987_vm7, %v9644_v33 }
 0x388   : > { %12645 = vst [vmem:[#allocation32_spill] sm:$0xff] %v9894_v31  ;;  %v9898_v44 = vpop.f32.mrf.mxu3  ;;  %v9900_v58 = vpop.permute.xlu0 %2395 }
 0x389   : > { %12646 = vst [vmem:[#allocation33_spill] sm:$0xff] %v9898_v44 }
 0x38a   : > { %3481 = vrot.lane.b32.xlu1 %v9431_v60, %s8580_s22  ;;  %v9907_v50 = vpop.permute.xlu2 %2255 }
 0x38b   : > { %v9904_v0 = vpop.f32.mrf.mxu1  ;;  %v8128_v49 = vpop.eup %8127 }
 0x38c   : > { %12647 = vst [vmem:[#allocation34_spill] sm:$0xff] %v9904_v0  ;;  %v1689_v41 = vmul.f32 %v8128_v49, %v9761_v23 }
 0x38e   : > { %v1705_v20 = vpack.c.bf16 %v1689_v41, %v1689_v41 }
 0x38f   : > { %v1742_v28 = vpop.f32.mrf.mxu2 }
 0x390   : > { %v1761_v61 = vpop.f32.mrf.mxu3  ;;  %7716 = vmatmul.msk.bf16.vlgmr.msrb.gmra.mxu3 %vm1515_vm0, %v1705_v20  ;;  %v2228_v33 = vpop.permute.xlu0 %2227 }
 0x391   : > { %7723 = vmatpush.xpose.msk.msrb.mxu3 %vm987_vm7, %v9630_v48  ;;  %7733 = vmatpush.xpose.msk.msra.mxu0 %vm987_vm7, %v2228_v33 }
 0x392   : > { %3511 = vrot.lane.b32.xlu1 %v9437_v25, %s8579_s20  ;;  %v2424_v37 = vpop.permute.xlu2 %2423 }
 0x393   : > { %v1780_v29 = vpop.f32.mrf.mxu1 }
 0x398   : > { %v9915_v59 = vpop.permute.xlu0 %2253 }
 0x399   : > { %v9917_v23 = vpop.f32.mrf.mxu2 }
 0x39a   : > { %12648 = vst [vmem:[#allocation35_spill] sm:$0xff] %v9917_v23  ;;  %v9919_v49 = vpop.f32.mrf.mxu3  ;;  %3509 = vrot.lane.b32.xlu1 %v9437_v25, %s8580_s22  ;;  %v9928_v61 = vpop.permute.xlu2 %2367 }
 0x39b   : > { %12649 = vst [vmem:[#allocation36_spill] sm:$0xff] %v9919_v49 }
 0x39c   : > { %v2312_v41 = vpop.permute.xlu1 %2311 }
 0x3a0   : > { %7720 = vmatmul.msk.f32.vlgmr.msra.gmra.mxu3 %vm987_vm7, %v9626_v13  ;;  %v2340_v48 = vpop.permute.xlu0 %2339 }
 0x3a1   : > { %v1799_v20 = vpop.f32.mrf.mxu2  ;;  %7731 = vmatpush.xpose.msk.msra.mxu3 %vm987_vm7, %v9648_v22  ;;  %7741 = vmatpush.xpose.msk.msrb.mxu0 %vm987_vm7, %v2340_v48 }
 0x3a2   : > { %v1818_v28 = vpop.f32.mrf.mxu3  ;;  %v2452_v49 = vpop.permute.xlu2 %2451 }
 0x3a4   : > { %v9930_v33 = vpop.permute.xlu1 %2393 }
 0x3a7   : > { %v9932_v29 = vpop.f32.mrf.mxu1 }
 0x3a8   : > { %12650 = vst [vmem:[#allocation37_spill] sm:$0xff] %v9932_v29  ;;  %7724 = vmatmul.msk.f32.vlgmr.msrb.gmra.mxu3 %vm987_vm7, %v9518_v8 }
 0x3a9   : > { %7739 = vmatpush.xpose.msk.msrb.mxu3 %vm987_vm7, %v2312_v41 }
 0x3aa   : > { %v9937_v13 = vpop.f32.mrf.mxu3 }
 0x3ab   : > { %12651 = vst [vmem:[#allocation38_spill] sm:$0xff] %v9937_v13 }
 0x3ac   : > { %v2226_v20 = vpop.permute.xlu1 %2225 }
 0x3ad   : > { %7734 = vmatmul.msk.f32.vlgmr.msra.gmra.mxu0 %vm987_vm7, %v2226_v20 }
 0x3ae   : > { %7749 = vmatpush.xpose.msk.msra.mxu0 %vm987_vm7, %v2452_v49 }
 0x3af   : > { %v1837_v22 = vpop.f32.mrf.mxu1 }
 0x3b0   : > { %7732 = vmatmul.msk.f32.vlgmr.msra.gmra.mxu3 %vm987_vm7, %v9650_v55 }
 0x3b1   : > { %7747 = vmatpush.xpose.msk.msra.mxu3 %vm987_vm7, %v2424_v37 }
 0x3b2   : > { %v1875_v48 = vpop.f32.mrf.mxu3 }
 0x3b4   : > { %v2422_v28 = vpop.permute.xlu1 %2421 }
 0x3b5   : > { %v9944_v29 = vpop.f32.mrf.mxu2 }
 0x3b6   : > { %12652 = vst [vmem:[#allocation39_spill] sm:$0xff] %v9944_v29 }
 0x3b8   : > { %7740 = vmatmul.msk.f32.vlgmr.msrb.gmra.mxu3 %vm987_vm7, %v2310_v46 }
 0x3bc   : > { %v2338_v8 = vpop.permute.xlu1 %2337 }
 0x3bd   : > { %v1856_v41 = vpop.f32.mrf.mxu2  ;;  %7742 = vmatmul.msk.f32.vlgmr.msrb.gmra.mxu0 %vm987_vm7, %v2338_v8 }
 0x3c0   : > { %v9948_v13 = vpop.f32.mrf.mxu1  ;;  %7748 = vmatmul.msk.f32.vlgmr.msra.gmra.mxu3 %vm987_vm7, %v2422_v28 }
 0x3c1   : > { %12653 = vst [vmem:[#allocation40_spill] sm:$0xff] %v9948_v13 }
 0x3c4   : > { %v2450_v49 = vpop.permute.xlu1 %2449 }
 0x3c5   : > { %7750 = vmatmul.msk.f32.vlgmr.msra.gmra.mxu0 %vm987_vm7, %v2450_v49 }
 0x3c8   : > { %v1894_v55 = vpop.f32.mrf.mxu1  ;;  %v9952_v20 = vpop.f32.mrf.mxu2 }
 0x3c9   : > { %12654 = vst [vmem:[#allocation41_spill] sm:$0xff] %v9952_v20  ;;  %v2138_v37 = vpop.f32.mrf.mxu0 }
 0x3ca   : > { %v2496_v22 = vmul.f32 0.2, %v2138_v37  ;;  %vm2480_vm12 = vcmp.gt.f32.partialorder %v2138_v37, 0.0 }
 0x3cc   : > { %v9954_v48 = vpop.permute.xlu1 %2856  ;;  %v2512_v46 = vsel %vm2480_vm12, %v2138_v37, %v2496_v22 }
 0x3cd   : > { %v2528_v41 = vsel %vm8750_vm4, %v2512_v46, -1e+30 }
 0x3ce   : > { %v2550_v8 = vsel %vm1515_vm0, %v2528_v41, -inf }
 0x3cf   : > { %2551 = vmax.xlane.f32.xlu0 %v2550_v8 }
 0x3d0   : > { %v1913_v13 = vpop.f32.mrf.mxu2  ;;  %v9959_v28 = vpop.f32.mrf.mxu3 }
 0x3d1   : > { %12655 = vst [vmem:[#allocation42_spill] sm:$0xff] %v9959_v28 }
 0x3d4   : > { %v2809_v29 = vpop.permute.xlu1 %2808 }
 0x3d5   : > { %v2814_v49 = vsel %vm1727_vm15, %v2809_v29, 0 }
 0x3d6   : > { %2823 = vmatpush.bf16.msrb.mxu0 %v2814_v49 }
 0x3d8   : > { %v1932_v55 = vpop.f32.mrf.mxu3 }
 0x3fe   : > { %v9962_v20 = vpop.f32.mrf.mxu1 }
 0x3ff   : > { %12656 = vst [vmem:[#allocation43_spill] sm:$0xff] %v9962_v20 }
 0x406   : > { %v1951_v0 = vpop.f32.mrf.mxu1 }
 0x409   : > { %v9964_v23 = vpop.f32.mrf.mxu2 }
 0x40a   : > { %12657 = vst [vmem:[#allocation44_spill] sm:$0xff] %v9964_v23 }
 0x411   : > { %v1970_v37 = vpop.f32.mrf.mxu2 }
 0x413   : > { %v9966_v22 = vpop.f32.mrf.mxu3 }
 0x414   : > { %12658 = vst [vmem:[#allocation45_spill] sm:$0xff] %v9966_v22 }
 0x41b   : > { %v1989_v46 = vpop.f32.mrf.mxu3 }
 0x41c   : > { %v2758_v46 = vunpack.c.l.b16 %v9523_v14  ;;  %v2950_v14 = vunpack.c.l.b16 %v9773_v21 }
 0x41e   : > { %v9975_v23 = vpack.c.b16 %v2758_v46, %v2758_v46 }
 0x42a   : > { %v2250_v44 = vpop.f32.mrf.mxu0 }
 0x42b   : > { %v2500_v31 = vmul.f32 0.2, %v2250_v44  ;;  %vm2484_vm14 = vcmp.gt.f32.partialorder %v2250_v44, 0.0 }
 0x42d   : > { %v2516_v13 = vsel %vm2484_vm14, %v2250_v44, %v2500_v31  ;;  %v2782_v31 = vunpack.c.l.b16 %v9536_v9  ;;  %v2830_v9 = vunpack.c.l.b16 %v9532_v1 }
 0x42e   : > { %v2532_v8 = vsel %vm8750_vm4, %v2516_v13, -1e+30  ;;  %v2734_v13 = vunpack.c.l.b16 %v9500_v57  ;;  %v9997_v57 = vpop.permute.xlu0 %2365 }
 0x42f   : > { %v2562_v29 = vsel %vm1515_vm0, %v2532_v8, -inf  ;;  %v9980_v44 = vpack.c.b16 %v2782_v31, %v2782_v31 }
 0x430   : > { %2563 = vmax.xlane.f32.xlu2 %v2562_v29  ;;  %v9985_v29 = vpack.c.b16 %v2734_v13, %v2734_v13 }
 0x43a   : > { %v2362_v49 = vpop.f32.mrf.mxu0 }
 0x43b   : > { %v2504_v55 = vmul.f32 0.2, %v2362_v49  ;;  %vm2488_vm2 = vcmp.gt.f32.partialorder %v2362_v49, 0.0 }
 0x43d   : > { %v2520_v0 = vsel %vm2488_vm2, %v2362_v49, %v2504_v55  ;;  %v9995_v49 = vpack.c.b16 %v2830_v9, %v2830_v9  ;;  %v1578_v9 = vsub.f32 %v9654_v16, %v9728_v18  ;;  %v2902_v16 = vunpack.c.l.b16 %v9742_v10 }
 0x43e   : > { %v2536_v37 = vsel %vm9114_vm8, %v2520_v0, -1e+30 }
 0x43f   : > { %v2574_v22 = vsel %vm1515_vm0, %v2536_v37, -inf  ;;  %12659 = vst [vmem:[#allocation46_spill] sm:$0xff] %v9995_v49  ;;  %v1608_v28 = vmul.f32 1.442695, %v1578_v9  ;;  %v10017_v18 = vpack.c.b16 %v2902_v16, %v2902_v16  ;;  %v3046_v16 = vunpack.c.l.b16 %v9795_v19 }
 0x440   : > { %2575 = vmax.xlane.f32.xlu0 %v2574_v22  ;;  %v9990_v22 = vpack.c.b16 %v2950_v14, %v2950_v14  ;;  %v2998_v19 = vunpack.c.l.b16 %v9800_v7 }
 0x442   : > { %v2474_v55 = vpop.f32.mrf.mxu0  ;;  %v2552_v0 = vpop.xlane.xlu0 %2551 }
 0x443   : > { %v2508_v46 = vmul.f32 0.2, %v2474_v55  ;;  %v2592_v31 = vsub.f32 %v2528_v41, %v2552_v0  ;;  %vm2492_vm5 = vcmp.gt.f32.partialorder %v2474_v55, 0.0  ;;  %v2878_v0 = vunpack.c.l.b16 %v9737_v17 }
 0x445   : > { %v2524_v21 = vsel %vm2492_vm5, %v2474_v55, %v2508_v46  ;;  %v2611_v13 = vmul.f32 1.442695, %v2592_v31  ;;  %v10012_v46 = vpack.c.b16 %v2878_v0, %v2878_v0 }
 0x446   : > { %v2540_v14 = vsel %vm9114_vm8, %v2524_v21, -1e+30 }
 0x447   : > { %8129 = vpow2.f32 %v2611_v13  ;;  %v2586_v1 = vsel %vm1515_vm0, %v2540_v14, -inf }
 0x448   : > { %2760 = vrot.lane.b32.xlu2 %v9975_v23, %s8578_s7  ;;  %8131 = vpow2.f32 %v1608_v28 }
 0x44d   : > { %v8130_v20 = vpop.eup %8129 }
 0x44e   : > { %v2646_v25 = vsel %vm1515_vm0, %v8130_v20, 0.0  ;;  %v10007_v41 = vpop.eup %8131 }
 0x44f   : > { %v1654_v55 = vsel %vm1515_vm0, %v10007_v41, 0.0 }
 0x450   : > { %2784 = vrot.lane.b32.xlu2 %v9980_v44, %s8578_s7 }
 0x454   : > { %2736 = vrot.lane.b32.xlu0 %v9985_v29, %s8578_s7 }
 0x45c   : > { %2952 = vrot.lane.b32.xlu0 %v9990_v22, %s8578_s7 }
 0x464   : > { %2832 = vrot.lane.b32.xlu0 %v9995_v49, %s8578_s7 }
 0x479   : > { %2587 = vmax.xlane.f32.xlu2 %v2586_v1 }
 0x481   : > { %2647 = vadd.xlane.f32.xlu2 %v2646_v25 }
 0x48e   : > { %1655 = vadd.xlane.f32.xlu0 %v1654_v55 }
 0x499   : > { %2880 = vrot.lane.b32.xlu2 %v10012_v46, %s8578_s7 }
 0x4a1   : > { %2904 = vrot.lane.b32.xlu2 %v10017_v18, %s8578_s7 }
 0x4a3   : > { %v2564_v25 = vpop.xlane.xlu2 %2563 }
 0x4a4   : > { %v2596_v28 = vsub.f32 %v2532_v8, %v2564_v25  ;;  %v10029_v8 = vpack.c.b16 %v3046_v16, %v3046_v16 }
 0x4a6   : > { %v2619_v31 = vmul.f32 1.442695, %v2596_v28  ;;  %12660 = vst [vmem:[#allocation47_spill] sm:$0xff] %v10029_v8  ;;  %v2926_v28 = vunpack.c.l.b16 %v9759_v32  ;;  %v3070_v32 = vunpack.c.l.b16 %v9839_v34 }
 0x4a8   : > { %8133 = vpow2.f32 %v2619_v31 }
 0x4ab   : > { %v10021_v21 = vpop.permute.xlu2 %2760 }
 0x4ae   : > { %v10023_v13 = vpop.eup %8133 }
 0x4af   : > { %v2658_v17 = vsel %vm1515_vm0, %v10023_v13, 0.0 }
 0x4b0   : > { %2659 = vadd.xlane.f32.xlu0 %v2658_v17  ;;  %v10038_v17 = vpack.c.b16 %v2926_v28, %v2926_v28 }
 0x4b2   : > { %12661 = vst [vmem:[#allocation48_spill] sm:$0xff] %v10038_v17 }
 0x4b3   : > { %v2785_v1 = vpop.permute.xlu2 %2784  ;;  %v2576_v9 = vpop.xlane.xlu0 %2575 }
 0x4b4   : > { %v2790_v10 = vsel %vm1727_vm15, %v2785_v1, 0  ;;  %v2600_v55 = vsub.f32 %v2536_v37, %v2576_v9  ;;  %v10043_v37 = vpack.c.b16 %v2998_v19, %v2998_v19  ;;  %v10050_v1 = vpack.c.b16 %v3070_v32, %v3070_v32 }
 0x4b5   : > { %2799 = vmatpush.bf16.msrb.mxu3 %v2790_v10 }
 0x4b6   : > { %v2627_v0 = vmul.f32 1.442695, %v2600_v55  ;;  %12662 = vst [vmem:[#allocation49_spill] sm:$0xff] %v10043_v37 }
 0x4b7   : > { %12663 = vst [vmem:[#allocation50_spill] sm:$0xff] %v10050_v1 }
 0x4b8   : > { %8135 = vpow2.f32 %v2627_v0 }
 0x4be   : > { %v10033_v25 = vpop.eup %8135 }
 0x4bf   : > { %v2670_v31 = vsel %vm1515_vm0, %v10033_v25, 0.0 }
 0x4c4   : > { %3048 = vrot.lane.b32.xlu0 %v10029_v8, %s8578_s7 }
 0x4c6   : > { %v2737_v10 = vpop.permute.xlu0 %2736 }
 0x4ca   : > { %2671 = vadd.xlane.f32.xlu2 %v2670_v31  ;;  %v1579_v31 = vsub.f32 %v9660_v35, %v9766_v38 }
 0x4cc   : > { %2928 = vrot.lane.b32.xlu0 %v10038_v17, %s8578_s7 }
 0x4ce   : > { %v10058_v55 = vpop.permute.xlu0 %2952 }
 0x4d4   : > { %3000 = vrot.lane.b32.xlu0 %v10043_v37, %s8578_s7 }
 0x4d6   : > { %v2833_v19 = vpop.permute.xlu0 %2832 }
 0x4dc   : > { %3145 = vrot.lane.b32.xlu0 %v9359_v43, %s8580_s22 }
 0x4e2   : > { %3072 = vrot.lane.b32.xlu2 %v10050_v1, %s8578_s7 }
 0x4e4   : > { %3259 = vrot.lane.b32.xlu0 %v9383_v40, %s8579_s20 }
 0x4ec   : > { %3119 = vrot.lane.b32.xlu0 %v9355_v3, %s8579_s20  ;;  %v2588_v7 = vpop.xlane.xlu2 %2587 }
 0x4ed   : > { %v2604_v9 = vsub.f32 %v2540_v14, %v2588_v7 }
 0x4ef   : > { %v2635_v0 = vmul.f32 1.442695, %v2604_v9  ;;  %v1610_v9 = vmul.f32 1.442695, %v1579_v31 }
 0x4f1   : > { %8137 = vpow2.f32 %v2635_v0 }
 0x4f4   : > { %3257 = vrot.lane.b32.xlu0 %v9383_v40, %s8580_s22  ;;  %v2648_v34 = vpop.xlane.xlu2 %2647 }
 0x4f5   : > { %8139 = vrcp.f32 %v2648_v34 }
 0x4f6   : > { %8141 = vpow2.f32 %v1610_v9  ;;  %v10133_v9 = vpop.permute.xlu1 %2976 }
 0x4f7   : > { %v10062_v16 = vpop.eup %8137 }
 0x4f8   : > { %v2682_v28 = vsel %vm1515_vm0, %v10062_v16, 0.0 }
 0x4f9   : > { %2683 = vadd.xlane.f32.xlu1 %v2682_v28 }
 0x4fb   : > { %v8140_v14 = vpop.eup %8139 }
 0x4fc   : > { %v2704_v32 = vmul.f32 %v8140_v14, %v8130_v20  ;;  %3287 = vrot.lane.b32.xlu0 %v9389_v6, %s8579_s20  ;;  %v2881_v7 = vpop.permute.xlu2 %2880  ;;  %v10075_v20 = vpop.eup %8141 }
 0x4fd   : > { %v2886_v0 = vsel %vm1727_vm15, %v2881_v7, 0  ;;  %v1657_v14 = vsel %vm1515_vm0, %v10075_v20, 0.0 }
 0x4fe   : > { %v2720_v34 = vpack.c.bf16 %v2704_v32, %v2704_v32  ;;  %2895 = vmatpush.bf16.msra.mxu3 %v2886_v0 }
 0x500   : > { %7754 = vmatmul.msk.bf16.vlgmr.msrb.gmra.mxu0 %vm1515_vm0, %v2720_v34 }
 0x501   : > { %v1656_v40 = vpop.xlane.xlu0 %1655 }
 0x502   : > { %8143 = vrcp.f32 %v1656_v40  ;;  %v3022_v40 = vunpack.c.l.b16 %v9817_v15 }
 0x504   : > { %3203 = vrot.lane.b32.xlu0 %v9373_v11, %s8579_s20  ;;  %v2905_v35 = vpop.permute.xlu2 %2904 }
 0x505   : > { %v2910_v38 = vsel %vm1727_vm15, %v2905_v35, 0 }
 0x506   : > { %2919 = vmatpush.bf16.msra.mxu0 %v2910_v38  ;;  %v10140_v38 = vpop.permute.xlu1 %3147 }
 0x508   : > { %v8144_v28 = vpop.eup %8143 }
 0x509   : > { %v1690_v31 = vmul.f32 %v8144_v28, %v10007_v41  ;;  %v10094_v41 = vpack.c.b16 %v3022_v40, %v3022_v40  ;;  %v2054_v28 = vpop.f32.mrf.mxu3 }
 0x50a   : > { %vm2477_vm6 = vcmp.gt.f32.partialorder %v2054_v28, 0.0 }
 0x50b   : > { %v1706_v32 = vpack.c.bf16 %v1690_v31, %v1690_v31  ;;  %1658 = vadd.xlane.f32.xlu2 %v1657_v14  ;;  %12664 = vst [vmem:[#allocation51_spill] sm:$0xff] %v10094_v41  ;;  %v2493_v14 = vmul.f32 0.2, %v2054_v28 }
 0x50c   : > { %3369 = vrot.lane.b32.xlu0 %v9407_v5, %s8580_s22 }
 0x50d   : > { %7717 = vmatmul.msk.bf16.vlgmr.msra.gmra.mxu1 %vm1515_vm0, %v1706_v32 }
 0x50e   : > { %7727 = vmatpush.xpose.msk.msra.mxu1 %vm987_vm7, %v9884_v27  ;;  %v10144_v31 = vpop.permute.xlu1 %3231 }
 0x514   : > { %3229 = vrot.lane.b32.xlu0 %v9377_v39, %s8580_s22 }
 0x516   : > { %v3316_v40 = vpop.permute.xlu1 %3315 }
 0x51c   : > { %3483 = vrot.lane.b32.xlu0 %v9431_v60, %s8579_s20 }
 0x51d   : > { %7722 = vmatmul.msk.f32.vlgmr.msrb.gmra.mxu1 %vm987_vm7, %v9514_v42 }
 0x51e   : > { %7735 = vmatpush.xpose.msk.msrb.mxu1 %vm987_vm7, %v9907_v50  ;;  %v2742_v50 = vsel %vm1727_vm15, %v2737_v10, 0 }
 0x523   : > { %3024 = vrot.lane.b32.xlu2 %v10094_v41, %s8578_s7  ;;  %v2660_v27 = vpop.xlane.xlu0 %2659 }
 0x524   : > { %8145 = vrcp.f32 %v2660_v27  ;;  %3397 = vrot.lane.b32.xlu0 %v9413_v53, %s8580_s22 }
 0x525   : > { %7728 = vmatmul.msk.f32.vlgmr.msra.gmra.mxu1 %vm987_vm7, %v9878_v62  ;;  %v3094_v62 = vunpack.c.l.b16 %v9844_v2 }
 0x526   : > { %7743 = vmatpush.xpose.msk.msra.mxu1 %vm987_vm7, %v9928_v61 }
 0x527   : > { %v10114_v61 = vpack.c.b16 %v3094_v62, %v3094_v62 }
 0x529   : > { %12665 = vst [vmem:[#allocation52_spill] sm:$0xff] %v10114_v61 }
 0x52a   : > { %v8146_v42 = vpop.eup %8145 }
 0x52b   : > { %v2708_v15 = vmul.f32 %v8146_v42, %v10023_v13  ;;  %3175 = vrot.lane.b32.xlu2 %v9365_v56, %s8579_s20  ;;  %v2838_v13 = vsel %vm1727_vm15, %v2833_v19, 0 }
 0x52c   : > { %3341 = vrot.lane.b32.xlu0 %v9403_v4, %s8580_s22 }
 0x52d   : > { %v2724_v7 = vpack.c.bf16 %v2708_v15, %v2708_v15  ;;  %7736 = vmatmul.msk.f32.vlgmr.msrb.gmra.mxu1 %vm987_vm7, %v9915_v59  ;;  %v10160_v15 = vpop.permute.xlu1 %3481 }
 0x52e   : > { %2751 = vmatpush.bf16.msrb.mxu1 %v2742_v50 }
 0x52f   : > { %7758 = vmatmul.msk.bf16.vlgmr.msra.gmra.mxu0 %vm1515_vm0, %v2724_v7 }
 0x533   : > { %3096 = vrot.lane.b32.xlu2 %v10114_v61, %s8578_s7  ;;  %s8520_s7 = scalar_lea.hbm %s12495_s6, 64 }
 0x534   : > { %3455 = vrot.lane.b32.xlu0 %v9425_v45, %s8579_s20 }
 0x535   : > { %7744 = vmatmul.msk.f32.vlgmr.msra.gmra.mxu1 %vm987_vm7, %v9997_v57  ;;  %v10168_v62 = vpop.permute.xlu1 %3511 }
 0x536   : > { %2847 = vmatpush.bf16.msra.mxu1 %v2838_v13  ;;  %v10123_v59 = vpop.permute.xlu0 %3048 }
 0x53b   : > { %3173 = vrot.lane.b32.xlu2 %v9365_v56, %s8580_s22 }
 0x53c   : > { %3453 = vrot.lane.b32.xlu0 %v9425_v45, %s8580_s22 }
 0x53d   : > { %v2672_v2 = vpop.xlane.xlu2 %2671 }
 0x53e   : > { %8147 = vrcp.f32 %v2672_v2  ;;  %v10129_v10 = vpop.permute.xlu0 %2928 }
 0x543   : > { %3117 = vrot.lane.b32.xlu2 %v9355_v3, %s8580_s22 }
 0x544   : > { %v8148_v19 = vpop.eup %8147 }
 0x545   : > { %v2712_v57 = vmul.f32 %v8148_v19, %v10033_v25  ;;  %v2509_v25 = vsel %vm2477_vm6, %v2054_v28, %v2493_v14  ;;  %v10166_v7 = vpop.permute.xlu2 %3072 }
 0x546   : > { %v3001_v0 = vpop.permute.xlu0 %3000  ;;  %v10150_v32 = vsel %vm8750_vm4, %v2509_v25, -1e+30 }
 0x547   : > { %v3006_v34 = vsel %vm1727_vm15, %v3001_v0, 0  ;;  %v2728_v35 = vpack.c.bf16 %v2712_v57, %v2712_v57  ;;  %v2541_v27 = vsel %vm1515_vm0, %v10150_v32, -inf  ;;  %v10176_v57 = vpop.permute.xlu1 %3509 }
 0x548   : > { %3015 = vmatpush.bf16.msrb.mxu0 %v3006_v34  ;;  %12667 = vst [vmem:[#allocation54_spill] sm:$0xff] %v10176_v57 }
 0x54b   : > { %7762 = vmatmul.msk.bf16.vlgmr.msrb.gmra.mxu0 %vm1515_vm0, %v2728_v35  ;;  %3371 = vrot.lane.b32.xlu2 %v9407_v5, %s8579_s20 }
 0x54e   : > { %v10156_v42 = vpop.permute.xlu0 %3145 }
 0x553   : > { %3285 = vrot.lane.b32.xlu2 %v9389_v6, %s8580_s22 }
 0x556   : > { %v10162_v50 = vpop.permute.xlu0 %3259 }
 0x55b   : > { %3201 = vrot.lane.b32.xlu2 %v9373_v11, %s8580_s22 }
 0x55e   : > { %v10170_v13 = vpop.permute.xlu0 %3119 }
 0x563   : > { %3399 = vrot.lane.b32.xlu2 %v9413_v53, %s8579_s20 }
 0x566   : > { %2542 = vmax.xlane.f32.xlu0 %v2541_v27  ;;  %v10180_v0 = vpop.permute.xlu0 %3257 }
 0x56b   : > { %3343 = vrot.lane.b32.xlu2 %v9403_v4, %s8579_s20 }
 0x56c   : > { %v2684_v27 = vpop.xlane.xlu1 %2683 }
 0x573   : > { %3313 = vrot.lane.b32.xlu2 %v9395_v63, %s8580_s22 }
 0x57b   : > { %3427 = vrot.lane.b32.xlu2 %v9419_v24, %s8579_s20 }
 0x57d   : > { %v10174_v2 = vpop.f32.mrf.mxu0 }
 0x57e   : > { %12666 = vst [vmem:[#allocation53_spill] sm:$0xff] %v10174_v2  ;;  %v1659_v19 = vpop.xlane.xlu2 %1658 }
 0x57f   : > { %8149 = vrcp.f32 %v1659_v19  ;;  %v10190_v19 = vpop.permute.xlu0 %3287 }
 0x580   : > { %8151 = vrcp.f32 %v2684_v27 }
 0x583   : > { %3425 = vrot.lane.b32.xlu2 %v9419_v24, %s8580_s22 }
 0x585   : > { %v8150_v34 = vpop.eup %8149  ;;  %v2827_v35 = vpop.f32.mrf.mxu0 }
 0x586   : > { %v1691_v28 = vmul.f32 %v8150_v34, %v10075_v20  ;;  %v10183_v14 = vpop.permute.xlu2 %3024  ;;  %v8152_v24 = vpop.eup %8151 }
 0x587   : > { %v2716_v20 = vmul.f32 %v8152_v24, %v10062_v16  ;;  %v3204_v60 = vpop.permute.xlu0 %3203  ;;  %v2110_v16 = vpop.f32.mrf.mxu3 }
 0x588   : > { %v1707_v25 = vpack.c.bf16 %v1691_v28, %v1691_v28  ;;  %vm2479_vm10 = vcmp.gt.f32.partialorder %v2110_v16, 0.0 }
 0x58a   : > { %v10185_v45 = vpop.f32.mrf.mxu1  ;;  %7718 = vmatmul.msk.bf16.vlgmr.msra.gmra.mxu2 %vm1515_vm0, %v1707_v25 }
 0x58b   : > { %12668 = vst [vmem:[#allocation55_spill] sm:$0xff] %v10185_v45  ;;  %7737 = vmatpush.xpose.msk.msra.mxu2 %vm987_vm7, %v9525_v36  ;;  %v2732_v45 = vpack.c.bf16 %v2716_v20, %v2716_v20 }
 0x58e   : > { %v10192_v2 = vpop.permute.xlu2 %3175 }
 0x592   : > { %v2008_v35 = vpop.f32.mrf.mxu1 }
 0x593   : > { %v2495_v35 = vmul.f32 0.2, %v2110_v16 }
 0x596   : > { %v3097_v34 = vpop.permute.xlu2 %3096 }
 0x597   : > { %v3102_v28 = vsel %vm1727_vm15, %v3097_v34, 0 }
 0x598   : > { %3111 = vmatpush.bf16.msra.mxu0 %v3102_v28 }
 0x59a   : > { %v2082_v25 = vpop.f32.mrf.mxu1  ;;  %7730 = vmatmul.msk.f32.vlgmr.msrb.gmra.mxu2 %vm987_vm7, %v9646_v26 }
 0x59b   : > { %vm2478_vm9 = vcmp.gt.f32.partialorder %v2082_v25, 0.0  ;;  %v2494_v36 = vmul.f32 0.2, %v2082_v25  ;;  %7745 = vmatpush.xpose.msk.msrb.mxu2 %vm987_vm7, %v9900_v58  ;;  %7766 = vmatmul.msk.bf16.vlgmr.msra.gmra.mxu0 %vm1515_vm0, %v2732_v45  ;;  %v2766_v58 = vsel %vm1727_vm15, %v10021_v21, 0  ;;  %v12669_v45 = vld [vmem:[#allocation31_spill] sm:$0xff] }
 0x59c   : > { %7773 = vmatpush.xpose.msk.msrb.mxu0 %vm987_vm7, %v3204_v60 }
 0x59d   : > { %v2510_v24 = vsel %vm2478_vm9, %v2082_v25, %v2494_v36  ;;  %v2862_v36 = vsel %vm1727_vm15, %v9954_v48, 0 }
 0x59e   : > { %v10203_v27 = vpop.permute.xlu2 %3173  ;;  %v10207_v60 = vsel %vm8750_vm4, %v2510_v24, -1e+30 }
 0x59f   : > { %v2544_v26 = vsel %vm1515_vm0, %v10207_v60, -inf }
 0x5a0   : > { %7781 = vmatpush.xpose.msk.msra.mxu0 %vm987_vm7, %v3316_v40  ;;  %2545 = vmax.xlane.f32.xlu0 %v2544_v26  ;;  %v2511_v40 = vsel %vm2479_vm10, %v2110_v16, %v2495_v35  ;;  %v2222_v26 = vpop.f32.mrf.mxu3 }
 0x5a1   : > { %v10219_v28 = vsel %vm8750_vm4, %v2511_v40, -1e+30  ;;  %vm2483_vm13 = vcmp.gt.f32.partialorder %v2222_v26, 0.0 }
 0x5a2   : > { %7738 = vmatmul.msk.f32.vlgmr.msra.gmra.mxu2 %vm987_vm7, %v12669_v45  ;;  %v2166_v20 = vpop.f32.mrf.mxu1  ;;  %v2547_v21 = vsel %vm1515_vm0, %v10219_v28, -inf  ;;  %v2499_v45 = vmul.f32 0.2, %v2222_v26 }
 0x5a3   : > { %2775 = vmatpush.bf16.msra.mxu2 %v2766_v58  ;;  %v2497_v25 = vmul.f32 0.2, %v2166_v20  ;;  %vm2481_vm1 = vcmp.gt.f32.partialorder %v2166_v20, 0.0 }
 0x5a5   : > { %v2513_v16 = vsel %vm2481_vm1, %v2166_v20, %v2497_v25 }
 0x5a6   : > { %v10215_v34 = vpop.permute.xlu2 %3117  ;;  %v2529_v58 = vsel %vm8750_vm4, %v2513_v16, -1e+30 }
 0x5a7   : > { %v2553_v48 = vsel %vm1515_vm0, %v2529_v58, -inf }
 0x5a8   : > { %v2334_v41 = vpop.f32.mrf.mxu3 }
 0x5a9   : > { %vm2487_vm6 = vcmp.gt.f32.partialorder %v2334_v41, 0.0 }
 0x5aa   : > { %7746 = vmatmul.msk.f32.vlgmr.msrb.gmra.mxu2 %vm987_vm7, %v9930_v33  ;;  %v2515_v33 = vsel %vm2483_vm13, %v2222_v26, %v2499_v45  ;;  %v2278_v56 = vpop.f32.mrf.mxu1 }
 0x5ab   : > { %2871 = vmatpush.bf16.msrb.mxu2 %v2862_v36  ;;  %v2501_v61 = vmul.f32 0.2, %v2278_v56  ;;  %vm2485_vm2 = vcmp.gt.f32.partialorder %v2278_v56, 0.0 }
 0x5ac   : > { %v10227_v24 = vpop.f32.mrf.mxu0  ;;  %2548 = vmax.xlane.f32.xlu2 %v2547_v21 }
 0x5ad   : > { %12670 = vst [vmem:[#allocation31_spill] sm:$0xff] %v10227_v24  ;;  %v10238_v24 = vsel %vm8750_vm4, %v2515_v33, -1e+30  ;;  %v10251_v33 = vpop.permute.xlu0 %3369 }
 0x5ae   : > { %v10229_v35 = vpop.permute.xlu2 %3371  ;;  %v2559_v20 = vsel %vm1515_vm0, %v10238_v24, -inf }
 0x5b4   : > { %v2923_v40 = vpop.f32.mrf.mxu0  ;;  %2554 = vmax.xlane.f32.xlu2 %v2553_v48 }
 0x5b6   : > { %v10234_v36 = vpop.permute.xlu2 %3285 }
 0x5bc   : > { %2560 = vmax.xlane.f32.xlu2 %v2559_v20  ;;  %v10254_v20 = vpop.permute.xlu0 %3229 }
 0x5be   : > { %v3202_v25 = vpop.permute.xlu2 %3201 }
 0x5bf   : > { %7774 = vmatmul.msk.f32.vlgmr.msrb.gmra.mxu0 %vm987_vm7, %v3202_v25 }
 0x5c4   : > { %v10256_v25 = vpop.permute.xlu0 %3483 }
 0x5c6   : > { %v10243_v21 = vpop.permute.xlu2 %3399 }
 0x5c8   : > { %v10245_v16 = vpop.f32.mrf.mxu0 }
 0x5c9   : > { %12671 = vst [vmem:[#allocation56_spill] sm:$0xff] %v10245_v16 }
 0x5cc   : > { %v10258_v5 = vpop.permute.xlu0 %3397 }
 0x5cd   : > { %12672 = vst [vmem:[#allocation57_spill] sm:$0xff] %v10258_v5 }
 0x5ce   : > { %v10247_v40 = vpop.permute.xlu2 %3343 }
 0x5d0   : > { %v3019_v26 = vpop.f32.mrf.mxu0 }
 0x5d4   : > { %v10260_v16 = vpop.permute.xlu0 %3341 }
 0x5d6   : > { %v3314_v45 = vpop.permute.xlu2 %3313 }
 0x5d7   : > { %7782 = vmatmul.msk.f32.vlgmr.msra.gmra.mxu0 %vm987_vm7, %v3314_v45 }
 0x5dc   : > { %v10264_v8 = vpop.permute.xlu0 %3455 }
 0x5de   : > { %v3428_v48 = vpop.permute.xlu2 %3427 }
 0x5df   : > { %7789 = vmatpush.xpose.msk.msrb.mxu0 %vm987_vm7, %v3428_v48 }
 0x5e4   : > { %v10268_v4 = vpop.permute.xlu0 %3453 }
 0x5e6   : > { %v3426_v53 = vpop.permute.xlu2 %3425 }
 0x5e7   : > { %7790 = vmatmul.msk.f32.vlgmr.msrb.gmra.mxu0 %vm987_vm7, %v3426_v53 }
 0x5ec   : > { %v2543_v3 = vpop.xlane.xlu0 %2542 }
 0x60d   : > { %v10262_v26 = vpop.f32.mrf.mxu2 }
 0x60e   : > { %12673 = vst [vmem:[#allocation58_spill] sm:$0xff] %v10262_v26 }
 0x613   : > { %v2546_v5 = vpop.xlane.xlu0 %2545 }
 0x615   : > { %v2027_v45 = vpop.f32.mrf.mxu2 }
 0x618   : > { %v10266_v49 = vpop.f32.mrf.mxu0 }
 0x619   : > { %12674 = vst [vmem:[#allocation59_spill] sm:$0xff] %v10266_v49 }
 0x61d   : > { %v2194_v48 = vpop.f32.mrf.mxu2 }
 0x61e   : > { %v2498_v63 = vmul.f32 0.2, %v2194_v48  ;;  %vm2482_vm12 = vcmp.gt.f32.partialorder %v2194_v48, 0.0 }
 0x61f   : > { %v2549_v53 = vpop.xlane.xlu2 %2548 }
 0x620   : > { %v3115_v6 = vpop.f32.mrf.mxu0  ;;  %v2514_v39 = vsel %vm2482_vm12, %v2194_v48, %v2498_v63  ;;  %v2517_v48 = vsel %vm2485_vm2, %v2278_v56, %v2501_v61 }
 0x621   : > { %v10272_v11 = vsel %vm8750_vm4, %v2514_v39, -1e+30  ;;  %v2589_v6 = vsub.f32 %v10150_v32, %v2543_v3  ;;  %v10285_v3 = vsel %vm9114_vm8, %v2517_v48, -1e+30 }
 0x622   : > { %v2556_v26 = vsel %vm1515_vm0, %v10272_v11, -inf  ;;  %v2565_v61 = vsel %vm1515_vm0, %v10285_v3, -inf }
 0x623   : > { %2557 = vmax.xlane.f32.xlu1 %v2556_v26  ;;  %v2605_v17 = vmul.f32 1.442695, %v2589_v6 }
 0x625   : > { %v2306_v45 = vpop.f32.mrf.mxu2 }
 0x626   : > { %v2502_v49 = vmul.f32 0.2, %v2306_v45  ;;  %vm2486_vm14 = vcmp.gt.f32.partialorder %v2306_v45, 0.0 }
 0x627   : > { %v2555_v1 = vpop.xlane.xlu2 %2554 }
 0x628   : > { %v2593_v37 = vsub.f32 %v2529_v58, %v2555_v1  ;;  %v2518_v43 = vsel %vm2486_vm14, %v2306_v45, %v2502_v49 }
 0x629   : > { %v10279_v63 = vsel %vm9114_vm8, %v2518_v43, -1e+30  ;;  %v2503_v43 = vmul.f32 0.2, %v2334_v41 }
 0x62a   : > { %v2613_v39 = vmul.f32 1.442695, %v2593_v37  ;;  %v2568_v26 = vsel %vm1515_vm0, %v10279_v63, -inf  ;;  %v2590_v37 = vsub.f32 %v10207_v60, %v2546_v5 }
 0x62b   : > { %2569 = vmax.xlane.f32.xlu1 %v2568_v26  ;;  %v2519_v5 = vsel %vm2487_vm6, %v2334_v41, %v2503_v43  ;;  %v2591_v26 = vsub.f32 %v10219_v28, %v2549_v53  ;;  %v2446_v43 = vpop.f32.mrf.mxu3 }
 0x62c   : > { %8153 = vpow2.f32 %v2613_v39  ;;  %v2607_v60 = vmul.f32 1.442695, %v2590_v37  ;;  %v2535_v6 = vsel %vm9114_vm8, %v2519_v5, -1e+30  ;;  %vm2491_vm10 = vcmp.gt.f32.partialorder %v2446_v43, 0.0 }
 0x62d   : > { %v2418_v57 = vpop.f32.mrf.mxu2  ;;  %8155 = vpow2.f32 %v2605_v17  ;;  %v2571_v48 = vsel %vm1515_vm0, %v2535_v6, -inf }
 0x62e   : > { %vm2490_vm5 = vcmp.gt.f32.partialorder %v2418_v57, 0.0  ;;  %v2506_v49 = vmul.f32 0.2, %v2418_v57  ;;  %8157 = vpow2.f32 %v2607_v60 }
 0x62f   : > { %v2561_v37 = vpop.xlane.xlu2 %2560 }
 0x630   : > { %v2522_v1 = vsel %vm2490_vm5, %v2418_v57, %v2506_v49  ;;  %v2390_v57 = vpop.f32.mrf.mxu1  ;;  %v2595_v28 = vsub.f32 %v10238_v24, %v2561_v37 }
 0x631   : > { %v10290_v32 = vsel %vm9114_vm8, %v2522_v1, -1e+30  ;;  %v2505_v39 = vmul.f32 0.2, %v2390_v57  ;;  %vm2489_vm9 = vcmp.gt.f32.partialorder %v2390_v57, 0.0 }
 0x632   : > { %v10292_v56 = vpop.eup %8153  ;;  %v2580_v58 = vsel %vm1515_vm0, %v10290_v32, -inf  ;;  %v2609_v1 = vmul.f32 1.442695, %v2591_v26  ;;  %v2617_v60 = vmul.f32 1.442695, %v2595_v28 }
 0x633   : > { %2566 = vmax.xlane.f32.xlu1 %v2565_v61  ;;  %2581 = vmax.xlane.f32.xlu0 %v2580_v58  ;;  %v2649_v17 = vsel %vm1515_vm0, %v10292_v56, 0.0  ;;  %v10300_v45 = vpop.eup %8155  ;;  %v2521_v41 = vsel %vm2489_vm9, %v2390_v57, %v2505_v39 }
 0x634   : > { %2650 = vadd.xlane.f32.xlu2 %v2649_v17  ;;  %v2637_v49 = vsel %vm1515_vm0, %v10300_v45, 0.0  ;;  %v10308_v61 = vpop.eup %8157  ;;  %v10312_v58 = vsel %vm9114_vm8, %v2521_v41, -1e+30  ;;  %v2507_v17 = vmul.f32 0.2, %v2446_v43  ;;  %8159 = vpow2.f32 %v2609_v1 }
 0x635   : > { %v2577_v53 = vsel %vm1515_vm0, %v10312_v58, -inf  ;;  %v2640_v5 = vsel %vm1515_vm0, %v10308_v61, 0.0  ;;  %8161 = vpow2.f32 %v2617_v60 }
 0x636   : > { %v2523_v57 = vsel %vm2491_vm10, %v2446_v43, %v2507_v17 }
 0x637   : > { %v10323_v26 = vsel %vm9114_vm8, %v2523_v57, -1e+30 }
 0x638   : > { %v2583_v24 = vsel %vm1515_vm0, %v10323_v26, -inf }
 0x63a   : > { %v10319_v39 = vpop.eup %8159 }
 0x63b   : > { %2572 = vmax.xlane.f32.xlu1 %v2571_v48  ;;  %2638 = vadd.xlane.f32.xlu0 %v2637_v49  ;;  %v2643_v48 = vsel %vm1515_vm0, %v10319_v39, 0.0  ;;  %v10329_v49 = vpop.eup %8161 }
 0x63c   : > { %v2655_v41 = vsel %vm1515_vm0, %v10329_v49, 0.0 }
 0x643   : > { %2578 = vmax.xlane.f32.xlu1 %v2577_v53  ;;  %2641 = vadd.xlane.f32.xlu0 %v2640_v5 }
 0x64b   : > { %2584 = vmax.xlane.f32.xlu1 %v2583_v24  ;;  %2644 = vadd.xlane.f32.xlu0 %v2643_v48 }
 0x653   : > { %2656 = vadd.xlane.f32.xlu0 %v2655_v41 }
 0x696   : > { %v2558_v43 = vpop.xlane.xlu1 %2557 }
 0x697   : > { %v2594_v1 = vsub.f32 %v10272_v11, %v2558_v43 }
 0x699   : > { %v2615_v37 = vmul.f32 1.442695, %v2594_v1 }
 0x69b   : > { %8163 = vpow2.f32 %v2615_v37 }
 0x69e   : > { %v2570_v17 = vpop.xlane.xlu1 %2569 }
 0x69f   : > { %v2598_v28 = vsub.f32 %v10279_v63, %v2570_v17 }
 0x6a1   : > { %v10335_v53 = vpop.eup %8163  ;;  %v2623_v5 = vmul.f32 1.442695, %v2598_v28 }
 0x6a2   : > { %v2652_v57 = vsel %vm1515_vm0, %v10335_v53, 0.0 }
 0x6a3   : > { %8165 = vpow2.f32 %v2623_v5  ;;  %2653 = vadd.xlane.f32.xlu1 %v2652_v57 }
 0x6a6   : > { %v2567_v60 = vpop.xlane.xlu1 %2566  ;;  %v2582_v24 = vpop.xlane.xlu0 %2581 }
 0x6a7   : > { %v2597_v48 = vsub.f32 %v10285_v3, %v2567_v60  ;;  %v2602_v41 = vsub.f32 %v10290_v32, %v2582_v24 }
 0x6a9   : > { %v10341_v11 = vpop.eup %8165  ;;  %v2621_v43 = vmul.f32 1.442695, %v2597_v48  ;;  %v2631_v1 = vmul.f32 1.442695, %v2602_v41 }
 0x6aa   : > { %v2664_v63 = vsel %vm1515_vm0, %v10341_v11, 0.0 }
 0x6ab   : > { %8167 = vpow2.f32 %v2621_v43  ;;  %2665 = vadd.xlane.f32.xlu1 %v2664_v63  ;;  %v2651_v43 = vpop.xlane.xlu2 %2650 }
 0x6ac   : > { %8169 = vpow2.f32 %v2631_v1 }
 0x6ae   : > { %v2573_v37 = vpop.xlane.xlu1 %2572  ;;  %v2639_v17 = vpop.xlane.xlu0 %2638 }
 0x6af   : > { %v2599_v28 = vsub.f32 %v2535_v6, %v2573_v37  ;;  %8171 = vrcp.f32 %v2639_v17 }
 0x6b1   : > { %v10345_v5 = vpop.eup %8167  ;;  %v2625_v57 = vmul.f32 1.442695, %v2599_v28  ;;  %v2934_v28 = vsel %vm1727_vm15, %v10129_v10, 0 }
 0x6b2   : > { %v10347_v3 = vpop.eup %8169  ;;  %v2661_v32 = vsel %vm1515_vm0, %v10345_v5, 0.0 }
 0x6b3   : > { %8173 = vpow2.f32 %v2625_v57  ;;  %2662 = vadd.xlane.f32.xlu2 %v2661_v32  ;;  %v2676_v60 = vsel %vm1515_vm0, %v10347_v3, 0.0 }
 0x6b4   : > { %2677 = vadd.xlane.f32.xlu1 %v2676_v60 }
 0x6b5   : > { %v8172_v24 = vpop.eup %8171 }
 0x6b6   : > { %v2701_v48 = vmul.f32 %v8172_v24, %v10300_v45  ;;  %v2579_v41 = vpop.xlane.xlu1 %2578  ;;  %v2642_v6 = vpop.xlane.xlu0 %2641 }
 0x6b7   : > { %v2601_v1 = vsub.f32 %v10312_v58, %v2579_v41  ;;  %8175 = vrcp.f32 %v2642_v6 }
 0x6b8   : > { %v2717_v63 = vpack.c.bf16 %v2701_v48, %v2701_v48  ;;  %8177 = vrcp.f32 %v2651_v43  ;;  %v2958_v43 = vsel %vm1727_vm15, %v10058_v55, 0  ;;  %v2982_v55 = vsel %vm1727_vm15, %v10133_v9, 0 }
 0x6b9   : > { %v10355_v37 = vpop.eup %8173  ;;  %v2629_v17 = vmul.f32 1.442695, %v2601_v1 }
 0x6ba   : > { %7751 = vmatmul.msk.bf16.vlgmr.msrb.gmra.mxu1 %vm1515_vm0, %v2717_v63  ;;  %v2667_v57 = vsel %vm1515_vm0, %v10355_v37, 0.0 }
 0x6bb   : > { %8179 = vpow2.f32 %v2629_v17  ;;  %2943 = vmatpush.bf16.msrb.mxu1 %v2934_v28  ;;  %2668 = vadd.xlane.f32.xlu2 %v2667_v57 }
 0x6bd   : > { %v8176_v45 = vpop.eup %8175 }
 0x6be   : > { %v2702_v58 = vmul.f32 %v8176_v45, %v10308_v61  ;;  %v2585_v32 = vpop.xlane.xlu1 %2584  ;;  %v2645_v60 = vpop.xlane.xlu0 %2644 }
 0x6bf   : > { %v2603_v24 = vsub.f32 %v10323_v26, %v2585_v32  ;;  %8181 = vrcp.f32 %v2645_v60  ;;  %v8178_v48 = vpop.eup %8177  ;;  %v3078_v32 = vsel %vm1727_vm15, %v10166_v7, 0  ;;  %v3226_v60 = vpop.f32.mrf.mxu0 }
 0x6c0   : > { %v2718_v41 = vpack.c.bf16 %v2702_v58, %v2702_v58  ;;  %v2705_v61 = vmul.f32 %v8178_v48, %v10292_v56  ;;  %v3030_v58 = vsel %vm1727_vm15, %v10183_v14, 0  ;;  %vm3568_vm13 = vcmp.gt.f32.partialorder %v3226_v60, 0.0 }
 0x6c1   : > { %v10364_v10 = vpop.eup %8179  ;;  %v2633_v6 = vmul.f32 1.442695, %v2603_v24 }
 0x6c2   : > { %7752 = vmatmul.msk.bf16.vlgmr.msra.gmra.mxu2 %vm1515_vm0, %v2718_v41  ;;  %v2673_v1 = vsel %vm1515_vm0, %v10364_v10, 0.0  ;;  %v2721_v17 = vpack.c.bf16 %v2705_v61, %v2705_v61 }
 0x6c3   : > { %8183 = vpow2.f32 %v2633_v6  ;;  %2967 = vmatpush.bf16.msra.mxu2 %v2958_v43  ;;  %2674 = vadd.xlane.f32.xlu0 %v2673_v1  ;;  %v3584_v6 = vmul.f32 0.2, %v3226_v60 }
 0x6c5   : > { %v8182_v26 = vpop.eup %8181  ;;  %v3600_v43 = vsel %vm3568_vm13, %v3226_v60, %v3584_v6 }
 0x6c6   : > { %v2703_v63 = vmul.f32 %v8182_v26, %v10319_v39  ;;  %v2657_v57 = vpop.xlane.xlu0 %2656  ;;  %v10409_v61 = vsel %vm8750_vm4, %v3600_v43, -1e+30 }
 0x6c7   : > { %8185 = vrcp.f32 %v2657_v57 }
 0x6c8   : > { %v2719_v28 = vpack.c.bf16 %v2703_v63, %v2703_v63  ;;  %v3638_v63 = vsel %vm1515_vm0, %v10409_v61, -inf }
 0x6c9   : > { %v10373_v45 = vpop.eup %8183 }
 0x6ca   : > { %7753 = vmatmul.msk.bf16.vlgmr.msrb.gmra.mxu3 %vm1515_vm0, %v2719_v28  ;;  %7755 = vmatmul.msk.bf16.vlgmr.msra.gmra.mxu1 %vm1515_vm0, %v2721_v17  ;;  %v2679_v56 = vsel %vm1515_vm0, %v10373_v45, 0.0 }
 0x6cb   : > { %2991 = vmatpush.bf16.msrb.mxu3 %v2982_v55  ;;  %3039 = vmatpush.bf16.msra.mxu1 %v3030_v58 }
 0x6cc   : > { %2680 = vadd.xlane.f32.xlu1 %v2679_v56 }
 0x6cd   : > { %v8186_v39 = vpop.eup %8185 }
 0x6ce   : > { %v2707_v9 = vmul.f32 %v8186_v39, %v10329_v49  ;;  %v3338_v49 = vpop.f32.mrf.mxu0 }
 0x6cf   : > { %v3588_v24 = vmul.f32 0.2, %v3338_v49  ;;  %vm3572_vm1 = vcmp.gt.f32.partialorder %v3338_v49, 0.0 }
 0x6d0   : > { %v2723_v14 = vpack.c.bf16 %v2707_v9, %v2707_v9 }
 0x6d1   : > { %v3604_v7 = vsel %vm3572_vm1, %v3338_v49, %v3588_v24 }
 0x6d2   : > { %v10403_v48 = vsel %vm8750_vm4, %v3604_v7, -1e+30 }
 0x6d3   : > { %3537 = vrot.lane.b32.xlu2 %v9444_v47, %s8580_s22  ;;  %v3650_v41 = vsel %vm1515_vm0, %v10403_v48, -inf }
 0x6d6   : > { %v3450_v1 = vpop.f32.mrf.mxu0 }
 0x6d7   : > { %3842 = vrot.lane.b32.xlu0 %v9975_v23, %s8581_s23  ;;  %v3592_v26 = vmul.f32 0.2, %v3450_v1  ;;  %vm3576_vm12 = vcmp.gt.f32.partialorder %v3450_v1, 0.0 }
 0x6d9   : > { %v3608_v17 = vsel %vm3576_vm12, %v3450_v1, %v3592_v26 }
 0x6da   : > { %7757 = vmatmul.msk.bf16.vlgmr.msra.gmra.mxu3 %vm1515_vm0, %v2723_v14  ;;  %v10415_v28 = vsel %vm9114_vm8, %v3608_v17, -1e+30  ;;  %v3054_v14 = vsel %vm1727_vm15, %v10123_v59, 0 }
 0x6db   : > { %3087 = vmatpush.bf16.msra.mxu3 %v3078_v32  ;;  %v3662_v55 = vsel %vm1515_vm0, %v10415_v28, -inf }
 0x6df   : > { %3821 = vrot.lane.b32.xlu0 %v9985_v29, %s8581_s23 }
 0x6e5   : > { %3539 = vrot.lane.b32.xlu1 %v9444_v47, %s8579_s20 }
 0x6e7   : > { %3926 = vrot.lane.b32.xlu0 %v9864_v52, %s8581_s23 }
 0x6ef   : > { %3968 = vrot.lane.b32.xlu0 %v10017_v18, %s8581_s23 }
 0x6f7   : > { %4031 = vrot.lane.b32.xlu0 %v9874_v54, %s8581_s23 }
 0x6fc   : > { %3651 = vmax.xlane.f32.xlu2 %v3650_v41 }
 0x70f   : > { %3639 = vmax.xlane.f32.xlu1 %v3638_v63 }
 0x714   : > { %3863 = vrot.lane.b32.xlu2 %v9980_v44, %s8581_s23 }
 0x716   : > { %v2654_v57 = vpop.xlane.xlu1 %2653 }
 0x717   : > { %8187 = vrcp.f32 %v2654_v57  ;;  %3663 = vmax.xlane.f32.xlu1 %v3662_v55 }
 0x71c   : > { %3884 = vrot.lane.b32.xlu2 %v9869_v51, %s8581_s23 }
 0x71d   : > { %v8188_v58 = vpop.eup %8187 }
 0x71e   : > { %v2706_v56 = vmul.f32 %v8188_v58, %v10335_v53  ;;  %v2666_v9 = vpop.xlane.xlu1 %2665 }
 0x71f   : > { %8189 = vrcp.f32 %v2666_v9 }
 0x720   : > { %v2722_v39 = vpack.c.bf16 %v2706_v56, %v2706_v56 }
 0x722   : > { %7756 = vmatmul.msk.bf16.vlgmr.msrb.gmra.mxu2 %vm1515_vm0, %v2722_v39 }
 0x723   : > { %3063 = vmatpush.bf16.msrb.mxu2 %v3054_v14 }
 0x724   : > { %3947 = vrot.lane.b32.xlu2 %v10012_v46, %s8581_s23 }
 0x725   : > { %v8190_v60 = vpop.eup %8189 }
 0x726   : > { %v2663_v32 = vpop.xlane.xlu2 %2662  ;;  %v2710_v49 = vmul.f32 %v8190_v60, %v10341_v11 }
 0x727   : > { %8191 = vrcp.f32 %v2663_v32  ;;  %v2678_v6 = vpop.xlane.xlu1 %2677 }
 0x728   : > { %v2726_v59 = vpack.c.bf16 %v2710_v49, %v2710_v49 }
 0x72c   : > { %4010 = vrot.lane.b32.xlu2 %v9990_v22, %s8581_s23 }
 0x72d   : > { %v8192_v53 = vpop.eup %8191 }
 0x72e   : > { %v2709_v24 = vmul.f32 %v8192_v53, %v10345_v5  ;;  %v2669_v7 = vpop.xlane.xlu2 %2668 }
 0x72f   : > { %8193 = vrcp.f32 %v2669_v7 }
 0x730   : > { %v2725_v41 = vpack.c.bf16 %v2709_v24, %v2709_v24  ;;  %8195 = vrcp.f32 %v2678_v6 }
 0x732   : > { %7759 = vmatmul.msk.bf16.vlgmr.msrb.gmra.mxu1 %vm1515_vm0, %v2725_v41  ;;  %7760 = vmatmul.msk.bf16.vlgmr.msra.gmra.mxu2 %vm1515_vm0, %v2726_v59 }
 0x733   : > { %7767 = vmatpush.xpose.msk.msrb.mxu1 %vm987_vm7, %v10170_v13  ;;  %7769 = vmatpush.xpose.msk.msra.mxu2 %vm987_vm7, %v10140_v38 }
 0x735   : > { %v8194_v11 = vpop.eup %8193 }
 0x736   : > { %v2711_v43 = vmul.f32 %v8194_v11, %v10355_v37  ;;  %v2675_v5 = vpop.xlane.xlu0 %2674  ;;  %v8196_v63 = vpop.eup %8195 }
 0x737   : > { %8197 = vrcp.f32 %v2675_v5  ;;  %v10440_v1 = vpop.f32.mrf.mxu1  ;;  %v2714_v17 = vmul.f32 %v8196_v63, %v10347_v3  ;;  %v12683_v63 = vld [vmem:[#allocation51_spill] sm:$0xff] }
 0x738   : > { %12675 = vst [vmem:[#allocation60_spill] sm:$0xff] %v10440_v1  ;;  %v2727_v26 = vpack.c.bf16 %v2711_v43, %v2711_v43  ;;  %v12682_v43 = vld [vmem:[#allocation48_spill] sm:$0xff] }
 0x739   : > { %v2730_v58 = vpack.c.bf16 %v2714_v17, %v2714_v17  ;;  %v12684_v17 = vld [vmem:[#allocation17_spill] sm:$0xff] }
 0x73a   : > { %7761 = vmatmul.msk.bf16.vlgmr.msrb.gmra.mxu3 %vm1515_vm0, %v2727_v26 }
 0x73b   : > { %7771 = vmatpush.xpose.msk.msrb.mxu3 %vm987_vm7, %v10192_v2 }
 0x73d   : > { %v8198_v13 = vpop.eup %8197 }
 0x73e   : > { %v2713_v57 = vmul.f32 %v8198_v13, %v10364_v10 }
 0x73f   : > { %v2681_v38 = vpop.xlane.xlu1 %2680  ;;  %v2755_v55 = vpop.f32.mrf.mxu1 }
 0x740   : > { %v2729_v37 = vpack.c.bf16 %v2713_v57, %v2713_v57  ;;  %8199 = vrcp.f32 %v2681_v38  ;;  %v12687_v57 = vld [vmem:[#allocation52_spill] sm:$0xff] }
 0x742   : > { %7763 = vmatmul.msk.bf16.vlgmr.msra.gmra.mxu1 %vm1515_vm0, %v2729_v37  ;;  %7764 = vmatmul.msk.bf16.vlgmr.msrb.gmra.mxu2 %vm1515_vm0, %v2730_v58  ;;  %v12689_v58 = vld [vmem:[#allocation50_spill] sm:$0xff]  ;;  %v12690_v37 = vld [vmem:[#allocation16_spill] sm:$0xff] }
 0x743   : > { %7775 = vmatpush.xpose.msk.msra.mxu1 %vm987_vm7, %v10144_v31  ;;  %7777 = vmatpush.xpose.msk.msrb.mxu2 %vm987_vm7, %v10162_v50 }
 0x745   : > { %v10453_v2 = vpop.f32.mrf.mxu2 }
 0x746   : > { %12676 = vst [vmem:[#allocation61_spill] sm:$0xff] %v10453_v2  ;;  %v8200_v3 = vpop.eup %8199 }
 0x747   : > { %v2715_v10 = vmul.f32 %v8200_v3, %v10373_v45  ;;  %v10456_v56 = vpop.f32.mrf.mxu1 }
 0x748   : > { %12677 = vst [vmem:[#allocation62_spill] sm:$0xff] %v10456_v56 }
 0x749   : > { %v2731_v39 = vpack.c.bf16 %v2715_v10, %v2715_v10  ;;  %v3843_v50 = vpop.permute.xlu0 %3842 }
 0x74b   : > { %7765 = vmatmul.msk.bf16.vlgmr.msra.gmra.mxu3 %vm1515_vm0, %v2731_v39  ;;  %v12692_v39 = vld [vmem:[#allocation18_spill] sm:$0xff] }
 0x74c   : > { %7779 = vmatpush.xpose.msk.msra.mxu3 %vm987_vm7, %v10190_v19 }
 0x74d   : > { %v2779_v9 = vpop.f32.mrf.mxu2  ;;  %v10461_v14 = vpop.f32.mrf.mxu3 }
 0x74e   : > { %12678 = vst [vmem:[#allocation63_spill] sm:$0xff] %v10461_v14 }
 0x74f   : > { %v2851_v31 = vpop.f32.mrf.mxu1 }
 0x751   : > { %v3822_v19 = vpop.permute.xlu0 %3821 }
 0x752   : > { %7768 = vmatmul.msk.f32.vlgmr.msrb.gmra.mxu1 %vm987_vm7, %v10215_v34  ;;  %7770 = vmatmul.msk.f32.vlgmr.msra.gmra.mxu2 %vm987_vm7, %v10156_v42  ;;  %v3538_v42 = vpop.permute.xlu2 %3537 }
 0x753   : > { %7783 = vmatpush.xpose.msk.msrb.mxu1 %vm987_vm7, %v10247_v40  ;;  %7785 = vmatpush.xpose.msk.msra.mxu2 %vm987_vm7, %v10229_v35 }
 0x755   : > { %v2803_v45 = vpop.f32.mrf.mxu3 }
 0x756   : > { %v12695_v45 = vld [vmem:[#allocation19_spill] sm:$0xff] }
 0x757   : > { %v3540_v32 = vpop.permute.xlu1 %3539 }
 0x758   : > { %7797 = vmatpush.xpose.msk.msra.mxu0 %vm987_vm7, %v3540_v32 }
 0x759   : > { %v3927_v35 = vpop.permute.xlu0 %3926 }
 0x75a   : > { %7776 = vmatmul.msk.f32.vlgmr.msra.gmra.mxu1 %vm987_vm7, %v10254_v20  ;;  %7778 = vmatmul.msk.f32.vlgmr.msrb.gmra.mxu2 %vm987_vm7, %v10180_v0  ;;  %v3827_v0 = vsel %vm1727_vm15, %v3822_v19, 0 }
 0x75b   : > { %7772 = vmatmul.msk.f32.vlgmr.msrb.gmra.mxu3 %vm987_vm7, %v10203_v27  ;;  %7791 = vmatpush.xpose.msk.msra.mxu1 %vm987_vm7, %v10264_v8  ;;  %v3848_v8 = vsel %vm1727_vm15, %v3843_v50, 0 }
 0x75c   : > { %7787 = vmatpush.xpose.msk.msrb.mxu3 %vm987_vm7, %v10243_v21  ;;  %7793 = vmatpush.xpose.msk.msrb.mxu2 %vm987_vm7, %v10256_v25  ;;  %v3932_v21 = vsel %vm1727_vm15, %v3927_v35, 0  ;;  %v12699_v35 = vld [vmem:[#allocation22_spill] sm:$0xff] }
 0x75d   : > { %7798 = vmatmul.msk.f32.vlgmr.msra.gmra.mxu0 %vm987_vm7, %v3538_v42  ;;  %v10485_v34 = vpop.f32.mrf.mxu3 }
 0x75e   : > { %12679 = vst [vmem:[#allocation64_spill] sm:$0xff] %v10485_v34 }
 0x761   : > { %v3969_v60 = vpop.permute.xlu0 %3968 }
 0x762   : > { %7784 = vmatmul.msk.f32.vlgmr.msrb.gmra.mxu1 %vm987_vm7, %v10260_v16  ;;  %7786 = vmatmul.msk.f32.vlgmr.msra.gmra.mxu2 %vm987_vm7, %v10251_v33  ;;  %v12680_v16 = vld [vmem:[#allocation57_spill] sm:$0xff] }
 0x763   : > { %7780 = vmatmul.msk.f32.vlgmr.msra.gmra.mxu3 %vm987_vm7, %v10234_v36  ;;  %3836 = vmatpush.bf16.msrb.mxu1 %v3827_v0  ;;  %v12697_v0 = vld [vmem:[#allocation20_spill] sm:$0xff] }
 0x764   : > { %7795 = vmatpush.xpose.msk.msra.mxu3 %vm987_vm7, %v10168_v62  ;;  %3857 = vmatpush.bf16.msra.mxu2 %v3848_v8  ;;  %v12681_v62 = vld [vmem:[#allocation54_spill] sm:$0xff] }
 0x765   : > { %v2899_v27 = vpop.f32.mrf.mxu3 }
 0x76a   : > { %7792 = vmatmul.msk.f32.vlgmr.msra.gmra.mxu1 %vm987_vm7, %v10268_v4  ;;  %7794 = vmatmul.msk.f32.vlgmr.msrb.gmra.mxu2 %vm987_vm7, %v10160_v15 }
 0x76b   : > { %7788 = vmatmul.msk.f32.vlgmr.msrb.gmra.mxu3 %vm987_vm7, %v12680_v16  ;;  %3941 = vmatpush.bf16.msrb.mxu2 %v3932_v21 }
 0x76f   : > { %v3652_v36 = vpop.xlane.xlu2 %3651 }
 0x770   : > { %v3684_v40 = vsub.f32 %v10403_v48, %v3652_v36  ;;  %v3974_v48 = vsel %vm1727_vm15, %v3969_v60, 0 }
 0x772   : > { %v3707_v33 = vmul.f32 1.442695, %v3684_v40 }
 0x773   : > { %7796 = vmatmul.msk.f32.vlgmr.msra.gmra.mxu3 %vm987_vm7, %v12681_v62  ;;  %v12700_v62 = vld [vmem:[#allocation23_spill] sm:$0xff] }
 0x774   : > { %8201 = vpow2.f32 %v3707_v33 }
 0x777   : > { %v3864_v20 = vpop.permute.xlu2 %3863 }
 0x778   : > { %v3869_v25 = vsel %vm1727_vm15, %v3864_v20, 0 }
 0x779   : > { %3878 = vmatpush.bf16.msrb.mxu3 %v3869_v25 }
 0x77a   : > { %v10508_v4 = vpop.eup %8201 }
 0x77b   : > { %v3746_v15 = vsel %vm1515_vm0, %v10508_v4, 0.0 }
 0x77c   : > { %3747 = vadd.xlane.f32.xlu2 %v3746_v15 }
 0x77f   : > { %v3885_v49 = vpop.permute.xlu2 %3884 }
 0x780   : > { %v3890_v53 = vsel %vm1727_vm15, %v3885_v49, 0 }
 0x781   : > { %3899 = vmatpush.bf16.msrb.mxu0 %v3890_v53 }
 0x782   : > { %v3640_v24 = vpop.xlane.xlu1 %3639 }
 0x783   : > { %v3680_v21 = vsub.f32 %v10409_v61, %v3640_v24  ;;  %v12701_v61 = vld [vmem:[#allocation24_spill] sm:$0xff] }
 0x785   : > { %3983 = vmatpush.bf16.msra.mxu0 %v3974_v48  ;;  %v3699_v36 = vmul.f32 1.442695, %v3680_v21 }
 0x787   : > { %v3948_v7 = vpop.permute.xlu2 %3947 }
 0x788   : > { %v3953_v59 = vsel %vm1727_vm15, %v3948_v7, 0  ;;  %v12702_v7 = vld [vmem:[#allocation46_spill] sm:$0xff] }
 0x789   : > { %3962 = vmatpush.bf16.msra.mxu3 %v3953_v59 }
 0x78a   : > { %v3664_v41 = vpop.xlane.xlu1 %3663 }
 0x78b   : > { %v3688_v6 = vsub.f32 %v10415_v28, %v3664_v41  ;;  %v12686_v28 = vld [vmem:[#allocation49_spill] sm:$0xff] }
 0x78d   : > { %v3715_v11 = vmul.f32 1.442695, %v3688_v6 }
 0x78f   : > { %8203 = vpow2.f32 %v3715_v11  ;;  %v10574_v59 = vpop.permute.xlu2 %4010 }
 0x790   : > { %8205 = vpow2.f32 %v3699_v36 }
 0x794   : > { %3989 = vrot.lane.b32.xlu2 %v12682_v43, %s8581_s23 }
 0x795   : > { %v10518_v5 = vpop.eup %8203 }
 0x796   : > { %v3758_v26 = vsel %vm1515_vm0, %v10518_v5, 0.0  ;;  %v10562_v60 = vpop.eup %8205 }
 0x797   : > { %3759 = vadd.xlane.f32.xlu0 %v3758_v26  ;;  %v3734_v49 = vsel %vm1515_vm0, %v10562_v60, 0.0 }
 0x79c   : > { %4073 = vrot.lane.b32.xlu2 %v12683_v63, %s8581_s23 }
 0x7a4   : > { %4185 = vrot.lane.b32.xlu2 %v12684_v17, %s8582_s24 }
 0x7a5   : > { %v10526_v13 = vpop.f32.mrf.mxu2 }
 0x7a6   : > { %12685 = vst [vmem:[#allocation57_spill] sm:$0xff] %v10526_v13 }
 0x7ab   : > { %4052 = vrot.lane.b32.xlu0 %v12686_v28, %s8581_s23 }
 0x7ac   : > { %4136 = vrot.lane.b32.xlu2 %v12687_v57, %s8581_s23 }
 0x7ad   : > { %v2875_v38 = vpop.f32.mrf.mxu2 }
 0x7af   : > { %v10532_v55 = vpop.f32.mrf.mxu1 }
 0x7b0   : > { %12688 = vst [vmem:[#allocation54_spill] sm:$0xff] %v10532_v55 }
 0x7b3   : > { %4115 = vrot.lane.b32.xlu0 %v12689_v58, %s8581_s23 }
 0x7b4   : > { %4157 = vrot.lane.b32.xlu2 %v12690_v37, %s8582_s24 }
 0x7b5   : > { %v10538_v3 = vpop.f32.mrf.mxu2 }
 0x7b6   : > { %12691 = vst [vmem:[#allocation48_spill] sm:$0xff] %v10538_v3 }
 0x7b7   : > { %v2947_v10 = vpop.f32.mrf.mxu1 }
 0x7b8   : > { %v12703_v10 = vld [vmem:[#allocation47_spill] sm:$0xff] }
 0x7bc   : > { %4213 = vrot.lane.b32.xlu2 %v12692_v39, %s8582_s24 }
 0x7bd   : > { %v2971_v9 = vpop.f32.mrf.mxu2  ;;  %v10542_v31 = vpop.f32.mrf.mxu3 }
 0x7be   : > { %12693 = vst [vmem:[#allocation17_spill] sm:$0xff] %v10542_v31 }
 0x7bf   : > { %v10544_v50 = vpop.f32.mrf.mxu1 }
 0x7c0   : > { %12694 = vst [vmem:[#allocation49_spill] sm:$0xff] %v10544_v50 }
 0x7c4   : > { %4241 = vrot.lane.b32.xlu2 %v12695_v45, %s8582_s24 }
 0x7c5   : > { %v2995_v32 = vpop.f32.mrf.mxu3  ;;  %v10548_v42 = vpop.f32.mrf.mxu2 }
 0x7c6   : > { %12696 = vst [vmem:[#allocation16_spill] sm:$0xff] %v10548_v42 }
 0x7c7   : > { %v3043_v19 = vpop.f32.mrf.mxu1 }
 0x7cc   : > { %4271 = vrot.lane.b32.xlu2 %v12697_v0, %s8583_s11 }
 0x7cd   : > { %v3067_v8 = vpop.f32.mrf.mxu2 }
 0x7ce   : > { %v10552_v27 = vpop.f32.mrf.mxu3 }
 0x7cf   : > { %12698 = vst [vmem:[#allocation18_spill] sm:$0xff] %v10552_v27  ;;  %v10568_v53 = vpop.f32.mrf.mxu1 }
 0x7d0   : > { %vm3565_vm10 = vcmp.gt.f32.partialorder %v10568_v53, 0.0 }
 0x7d4   : > { %4327 = vrot.lane.b32.xlu2 %v12699_v35, %s8583_s11 }
 0x7d5   : > { %v10570_v48 = vpop.f32.mrf.mxu2 }
 0x7d6   : > { %v3091_v16 = vpop.f32.mrf.mxu3 }
 0x7d7   : > { %v3254_v24 = vpop.f32.mrf.mxu1 }
 0x7d8   : > { %v3585_v41 = vmul.f32 0.2, %v3254_v24  ;;  %vm3569_vm2 = vcmp.gt.f32.partialorder %v3254_v24, 0.0 }
 0x7da   : > { %v3562_v40 = vpop.f32.mrf.mxu0  ;;  %v3601_v26 = vsel %vm3569_vm2, %v3254_v24, %v3585_v41 }
 0x7db   : > { %vm3580_vm14 = vcmp.gt.f32.partialorder %v3562_v40, 0.0  ;;  %v3596_v33 = vmul.f32 0.2, %v3562_v40  ;;  %v10584_v9 = vsel %vm8750_vm4, %v3601_v26, -1e+30 }
 0x7dc   : > { %4353 = vrot.lane.b32.xlu2 %v12700_v62, %s8582_s24  ;;  %v3641_v8 = vsel %vm1515_vm0, %v10584_v9, -inf }
 0x7dd   : > { %v3612_v20 = vsel %vm3580_vm14, %v3562_v40, %v3596_v33  ;;  %v10576_v6 = vpop.f32.mrf.mxu2  ;;  %vm3566_vm14 = vcmp.gt.f32.partialorder %v10570_v48, 0.0 }
 0x7de   : > { %v3628_v25 = vsel %vm9114_vm8, %v3612_v20, -1e+30  ;;  %v3198_v38 = vpop.f32.mrf.mxu3  ;;  %vm3570_vm2 = vcmp.gt.f32.partialorder %v10576_v6, 0.0 }
 0x7df   : > { %v3674_v15 = vsel %vm1515_vm0, %v3628_v25, -inf  ;;  %v10578_v11 = vpop.f32.mrf.mxu1  ;;  %v3583_v32 = vmul.f32 0.2, %v3198_v38  ;;  %vm3567_vm5 = vcmp.gt.f32.partialorder %v3198_v38, 0.0 }
 0x7e0   : > { %3675 = vmax.xlane.f32.xlu1 %v3674_v15 }
 0x7e1   : > { %v3599_v16 = vsel %vm3567_vm5, %v3198_v38, %v3583_v32  ;;  %vm3573_vm5 = vcmp.gt.f32.partialorder %v10578_v11, 0.0 }
 0x7e2   : > { %v10594_v40 = vsel %vm8750_vm4, %v3599_v16, -1e+30 }
 0x7e3   : > { %v3635_v15 = vsel %vm1515_vm0, %v10594_v40, -inf }
 0x7e4   : > { %4383 = vrot.lane.b32.xlu2 %v12701_v61, %s8583_s11 }
 0x7e5   : > { %v10588_v21 = vpop.f32.mrf.mxu2 }
 0x7e6   : > { %vm3574_vm1 = vcmp.gt.f32.partialorder %v10588_v21, 0.0 }
 0x7e7   : > { %v3478_v36 = vpop.f32.mrf.mxu1 }
 0x7e8   : > { %3735 = vadd.xlane.f32.xlu1 %v3734_v49  ;;  %v3593_v33 = vmul.f32 0.2, %v3478_v36  ;;  %vm3577_vm6 = vcmp.gt.f32.partialorder %v3478_v36, 0.0 }
 0x7ea   : > { %v3609_v49 = vsel %vm3577_vm6, %v3478_v36, %v3593_v33  ;;  %v12704_v36 = vld [vmem:[#allocation21_spill] sm:$0xff] }
 0x7ed   : > { %v3506_v24 = vpop.f32.mrf.mxu2 }
 0x7ee   : > { %v3594_v41 = vmul.f32 0.2, %v3506_v24  ;;  %vm3578_vm9 = vcmp.gt.f32.partialorder %v3506_v24, 0.0 }
 0x7ef   : > { %v3748_v19 = vpop.xlane.xlu2 %3747 }
 0x7f0   : > { %v3610_v32 = vsel %vm3578_vm9, %v3506_v24, %v3594_v41  ;;  %v10636_v41 = vpop.permute.xlu0 %4031 }
 0x7f7   : > { %v10596_v20 = vpop.permute.xlu2 %3989 }
 0x7ff   : > { %v10608_v38 = vpop.permute.xlu2 %4073 }
 0x801   : > { %3905 = vrot.lane.b32.xlu1 %v12702_v7, %s8581_s23 }
 0x807   : > { %v10618_v16 = vpop.permute.xlu2 %4185 }
 0x809   : > { %4094 = vrot.lane.b32.xlu1 %v12703_v10, %s8581_s23 }
 0x80a   : > { %v3760_v42 = vpop.xlane.xlu0 %3759 }
 0x80d   : > { %3642 = vmax.xlane.f32.xlu2 %v3641_v8  ;;  %v10614_v8 = vsel %vm9114_vm8, %v3610_v32, -1e+30 }
 0x80f   : > { %v4137_v33 = vpop.permute.xlu2 %4136 }
 0x810   : > { %v4142_v55 = vsel %vm1727_vm15, %v4137_v33, 0 }
 0x811   : > { %4187 = vrot.lane.b32.xlu1 %v12684_v17, %s8583_s11  ;;  %v10604_v17 = vsel %vm9114_vm8, %v3609_v49, -1e+30  ;;  %v12705_v49 = vld [vmem:[#allocation25_spill] sm:$0xff] }
 0x812   : > { %v3665_v26 = vsel %vm1515_vm0, %v10604_v17, -inf }
 0x815   : > { %3636 = vmax.xlane.f32.xlu2 %v3635_v15 }
 0x819   : > { %4159 = vrot.lane.b32.xlu1 %v12690_v37, %s8583_s11  ;;  %v3668_v37 = vsel %vm1515_vm0, %v10614_v8, -inf }
 0x81d   : > { %3666 = vmax.xlane.f32.xlu2 %v3665_v26  ;;  %v4053_v50 = vpop.permute.xlu0 %4052 }
 0x821   : > { %4215 = vrot.lane.b32.xlu1 %v12692_v39, %s8583_s11  ;;  %v10626_v39 = vpop.permute.xlu2 %4157 }
 0x825   : > { %3669 = vmax.xlane.f32.xlu2 %v3668_v37 }
 0x829   : > { %4243 = vrot.lane.b32.xlu1 %v12695_v45, %s8583_s11  ;;  %v10630_v15 = vpop.permute.xlu2 %4213 }
 0x831   : > { %4297 = vrot.lane.b32.xlu1 %v12704_v36, %s8582_s24  ;;  %v10634_v24 = vpop.permute.xlu2 %4241 }
 0x839   : > { %4269 = vrot.lane.b32.xlu1 %v12697_v0, %s8582_s24  ;;  %v10638_v37 = vpop.permute.xlu2 %4271 }
 0x841   : > { %4325 = vrot.lane.b32.xlu1 %v12699_v35, %s8582_s24  ;;  %v10645_v31 = vpop.permute.xlu2 %4327 }
 0x849   : > { %4411 = vrot.lane.b32.xlu1 %v12705_v49, %s8583_s11 }
 0x853   : > { %v3676_v45 = vpop.xlane.xlu1 %3675 }
 0x854   : > { %v3692_v26 = vsub.f32 %v3628_v25, %v3676_v45  ;;  %v4058_v45 = vsel %vm1727_vm15, %v4053_v50, 0  ;;  %v3590_v50 = vmul.f32 0.2, %v10588_v21 }
 0x856   : > { %v3723_v32 = vmul.f32 1.442695, %v3692_v26  ;;  %v3581_v26 = vmul.f32 0.2, %v10568_v53 }
 0x858   : > { %8207 = vpow2.f32 %v3723_v32  ;;  %v10651_v32 = vpop.f32.mrf.mxu3 }
 0x859   : > { %vm3571_vm6 = vcmp.gt.f32.partialorder %v10651_v32, 0.0 }
 0x85b   : > { %v3736_v0 = vpop.xlane.xlu1 %3735 }
 0x85c   : > { %8209 = vrcp.f32 %v3736_v0  ;;  %v3597_v0 = vsel %vm3565_vm10, %v10568_v53, %v3581_v26  ;;  %v3606_v26 = vsel %vm3574_vm1, %v10588_v21, %v3590_v50 }
 0x85d   : > { %8211 = vrcp.f32 %v3748_v19 }
 0x85e   : > { %v10640_v3 = vpop.eup %8207  ;;  %8213 = vrcp.f32 %v3760_v42 }
 0x85f   : > { %v3770_v35 = vsel %vm1515_vm0, %v10640_v3, 0.0 }
 0x860   : > { %3771 = vadd.xlane.f32.xlu0 %v3770_v35 }
 0x862   : > { %v8210_v13 = vpop.eup %8209 }
 0x863   : > { %v3792_v27 = vmul.f32 %v8210_v13, %v10562_v60  ;;  %v8212_v35 = vpop.eup %8211  ;;  %v10654_v13 = vpop.permute.xlu2 %4353 }
 0x864   : > { %v3796_v60 = vmul.f32 %v8212_v35, %v10508_v4  ;;  %v10673_v4 = vsel %vm9114_vm8, %v3606_v26, -1e+30 }
 0x865   : > { %v3808_v25 = vpack.c.bf16 %v3792_v27, %v3792_v27  ;;  %v10658_v27 = vsel %vm8750_vm4, %v3597_v0, -1e+30 }
 0x866   : > { %v3629_v19 = vsel %vm1515_vm0, %v10658_v27, -inf  ;;  %v3812_v0 = vpack.c.bf16 %v3796_v60, %v3796_v60  ;;  %v8214_v60 = vpop.eup %8213 }
 0x867   : > { %7802 = vmatmul.msk.bf16.vlgmr.msrb.gmra.mxu0 %vm1515_vm0, %v3808_v25  ;;  %v3422_v25 = vpop.f32.mrf.mxu3 }
 0x868   : > { %4067 = vmatpush.bf16.msrb.mxu0 %v4058_v45  ;;  %v3591_v35 = vmul.f32 0.2, %v3422_v25  ;;  %vm3575_vm13 = vcmp.gt.f32.partialorder %v3422_v25, 0.0 }
 0x86a   : > { %v3607_v33 = vsel %vm3575_vm13, %v3422_v25, %v3591_v35 }
 0x86f   : > { %v3534_v50 = vpop.f32.mrf.mxu3 }
 0x870   : > { %v3595_v42 = vmul.f32 0.2, %v3534_v50  ;;  %vm3579_vm12 = vcmp.gt.f32.partialorder %v3534_v50, 0.0 }
 0x873   : > { %v3906_v45 = vpop.permute.xlu1 %3905  ;;  %3630 = vmax.xlane.f32.xlu1 %v3629_v19  ;;  %v10675_v19 = vpop.permute.xlu2 %4383 }
 0x874   : > { %v3911_v53 = vsel %vm1727_vm15, %v3906_v45, 0  ;;  %4299 = vrot.lane.b32.xlu0 %v12704_v36, %s8583_s11  ;;  %v3656_v36 = vsel %vm1515_vm0, %v10673_v4, -inf  ;;  %v10685_v45 = vsel %vm9114_vm8, %v3607_v33, -1e+30 }
 0x875   : > { %3920 = vmatpush.bf16.msra.mxu1 %v3911_v53  ;;  %v3659_v26 = vsel %vm1515_vm0, %v10685_v45, -inf }
 0x877   : > { %7806 = vmatmul.msk.bf16.vlgmr.msra.gmra.mxu0 %vm1515_vm0, %v3812_v0 }
 0x878   : > { %4151 = vmatpush.bf16.msra.mxu0 %v4142_v55  ;;  %v3800_v55 = vmul.f32 %v8214_v60, %v10518_v5 }
 0x87a   : > { %v3816_v25 = vpack.c.bf16 %v3800_v55, %v3800_v55 }
 0x87b   : > { %v10679_v21 = vpop.permute.xlu1 %4094  ;;  %3657 = vmax.xlane.f32.xlu1 %v3656_v36 }
 0x87c   : > { %4355 = vrot.lane.b32.xlu0 %v12700_v62, %s8583_s11  ;;  %v3611_v62 = vsel %vm3579_vm12, %v3534_v50, %v3595_v42 }
 0x87d   : > { %v10699_v35 = vsel %vm9114_vm8, %v3611_v62, -1e+30 }
 0x87e   : > { %v3671_v33 = vsel %vm1515_vm0, %v10699_v35, -inf }
 0x880   : > { %v10687_v53 = vpop.xlane.xlu2 %3642 }
 0x883   : > { %v10692_v0 = vpop.permute.xlu1 %4187  ;;  %3660 = vmax.xlane.f32.xlu1 %v3659_v26 }
 0x884   : > { %4409 = vrot.lane.b32.xlu0 %v12705_v49, %s8582_s24 }
 0x887   : > { %7810 = vmatmul.msk.bf16.vlgmr.msrb.gmra.mxu0 %vm1515_vm0, %v3816_v25 }
 0x888   : > { %v3637_v36 = vpop.xlane.xlu2 %3636 }
 0x889   : > { %v3679_v5 = vsub.f32 %v10594_v40, %v3637_v36  ;;  %v3582_v40 = vmul.f32 0.2, %v10570_v48  ;;  %v3586_v36 = vmul.f32 0.2, %v10576_v6 }
 0x88b   : > { %v10704_v60 = vpop.permute.xlu1 %4159  ;;  %3672 = vmax.xlane.f32.xlu1 %v3671_v33  ;;  %v3697_v26 = vmul.f32 1.442695, %v3679_v5  ;;  %v3598_v62 = vsel %vm3566_vm14, %v10570_v48, %v3582_v40  ;;  %v3602_v33 = vsel %vm3570_vm2, %v10576_v6, %v3586_v36  ;;  %v3589_v48 = vmul.f32 0.2, %v10578_v11 }
 0x88c   : > { %v10718_v25 = vsel %vm8750_vm4, %v3598_v62, -1e+30  ;;  %v3587_v6 = vmul.f32 0.2, %v10651_v32 }
 0x88d   : > { %8215 = vpow2.f32 %v3697_v26  ;;  %v3632_v5 = vsel %vm1515_vm0, %v10718_v25, -inf  ;;  %v10727_v26 = vsel %vm8750_vm4, %v3602_v33, -1e+30 }
 0x88e   : > { %v3603_v36 = vsel %vm3571_vm6, %v10651_v32, %v3587_v6 }
 0x88f   : > { %v10747_v33 = vsel %vm8750_vm4, %v3603_v36, -1e+30 }
 0x893   : > { %v10706_v49 = vpop.eup %8215  ;;  %v10708_v50 = vpop.permute.xlu1 %4215 }
 0x894   : > { %v3731_v42 = vsel %vm1515_vm0, %v10706_v49, 0.0 }
 0x895   : > { %3732 = vadd.xlane.f32.xlu1 %v3731_v42  ;;  %v3644_v42 = vsel %vm1515_vm0, %v10727_v26, -inf }
 0x89b   : > { %v4244_v55 = vpop.permute.xlu1 %4243 }
 0x89c   : > { %7821 = vmatpush.xpose.msk.msrb.mxu0 %vm987_vm7, %v4244_v55  ;;  %v3605_v55 = vsel %vm3573_vm5, %v10578_v11, %v3589_v48  ;;  %v3647_v11 = vsel %vm1515_vm0, %v10747_v33, -inf }
 0x89d   : > { %v10736_v40 = vsel %vm9114_vm8, %v3605_v55, -1e+30 }
 0x89e   : > { %v3653_v62 = vsel %vm1515_vm0, %v10736_v40, -inf }
 0x8ae   : > { %3633 = vmax.xlane.f32.xlu0 %v3632_v5  ;;  %v10743_v5 = vpop.permute.xlu1 %4297 }
 0x8b6   : > { %3645 = vmax.xlane.f32.xlu0 %v3644_v42  ;;  %v10751_v48 = vpop.permute.xlu1 %4269  ;;  %v10753_v42 = vpop.permute.xlu0 %4115 }
 0x8be   : > { %3654 = vmax.xlane.f32.xlu0 %v3653_v62  ;;  %v10755_v34 = vpop.permute.xlu1 %4325 }
 0x8c6   : > { %3648 = vmax.xlane.f32.xlu0 %v3647_v11  ;;  %v10758_v56 = vpop.permute.xlu1 %4411 }
 0x8d3   : > { %v3772_v55 = vpop.xlane.xlu0 %3771 }
 0x8d4   : > { %8217 = vrcp.f32 %v3772_v55 }
 0x8da   : > { %v8218_v62 = vpop.eup %8217 }
 0x8db   : > { %v3804_v32 = vmul.f32 %v8218_v62, %v10640_v3 }
 0x8dd   : > { %v3820_v6 = vpack.c.bf16 %v3804_v32, %v3804_v32 }
 0x8df   : > { %7814 = vmatmul.msk.bf16.vlgmr.msra.gmra.mxu0 %vm1515_vm0, %v3820_v6 }
 0x8e4   : > { %v10761_v36 = vpop.f32.mrf.mxu0 }
 0x8e5   : > { %12706 = vst [vmem:[#allocation19_spill] sm:$0xff] %v10761_v36 }
 0x8e6   : > { %v3631_v14 = vpop.xlane.xlu1 %3630  ;;  %v10763_v11 = vpop.permute.xlu0 %4299 }
 0x8e7   : > { %v3677_v57 = vsub.f32 %v10658_v27, %v3631_v14 }
 0x8e9   : > { %v3693_v2 = vmul.f32 1.442695, %v3677_v57 }
 0x8eb   : > { %8219 = vpow2.f32 %v3693_v2 }
 0x8ec   : > { %v3903_v1 = vpop.f32.mrf.mxu0 }
 0x8ee   : > { %v3658_v63 = vpop.xlane.xlu1 %3657  ;;  %v4356_v55 = vpop.permute.xlu0 %4355 }
 0x8ef   : > { %7822 = vmatmul.msk.f32.vlgmr.msrb.gmra.mxu0 %vm987_vm7, %v10634_v24 }
 0x8f0   : > { %7829 = vmatpush.xpose.msk.msra.mxu0 %vm987_vm7, %v4356_v55 }
 0x8f1   : > { %v10769_v3 = vpop.eup %8219 }
 0x8f2   : > { %v3725_v62 = vsel %vm1515_vm0, %v10769_v3, 0.0 }
 0x8f3   : > { %3726 = vadd.xlane.f32.xlu2 %v3725_v62  ;;  %v4037_v62 = vsel %vm1727_vm15, %v10636_v41, 0 }
 0x8f4   : > { %v10773_v32 = vpop.f32.mrf.mxu0 }
 0x8f5   : > { %12707 = vst [vmem:[#allocation20_spill] sm:$0xff] %v10773_v32 }
 0x8f6   : > { %v10775_v6 = vpop.xlane.xlu1 %3660  ;;  %v10787_v32 = vpop.permute.xlu0 %4409 }
 0x8f7   : > { %7830 = vmatmul.msk.f32.vlgmr.msra.gmra.mxu0 %vm987_vm7, %v10654_v13 }
 0x8fc   : > { %v3987_v1 = vpop.f32.mrf.mxu0 }
 0x8fe   : > { %v10779_v2 = vpop.xlane.xlu1 %3672 }
 0x904   : > { %v10781_v14 = vpop.f32.mrf.mxu0 }
 0x905   : > { %12708 = vst [vmem:[#allocation22_spill] sm:$0xff] %v10781_v14  ;;  %v3681_v14 = vsub.f32 %v10584_v9, %v10687_v53 }
 0x908   : > { %v3733_v57 = vpop.xlane.xlu1 %3732 }
 0x909   : > { %8221 = vrcp.f32 %v3733_v57 }
 0x90c   : > { %v4071_v24 = vpop.f32.mrf.mxu0 }
 0x90d   : > { %v3701_v24 = vmul.f32 1.442695, %v3681_v14 }
 0x90f   : > { %v8222_v27 = vpop.eup %8221 }
 0x910   : > { %v3791_v55 = vmul.f32 %v8222_v27, %v10706_v49 }
 0x912   : > { %v3807_v36 = vpack.c.bf16 %v3791_v55, %v3791_v55 }
 0x914   : > { %7801 = vmatmul.msk.bf16.vlgmr.msrb.gmra.mxu3 %vm1515_vm0, %v3807_v36 }
 0x915   : > { %4046 = vmatpush.bf16.msrb.mxu3 %v4037_v62 }
 0x921   : > { %v3634_v13 = vpop.xlane.xlu0 %3633 }
 0x922   : > { %v3678_v1 = vsub.f32 %v10718_v25, %v3634_v13 }
 0x924   : > { %v3695_v57 = vmul.f32 1.442695, %v3678_v1 }
 0x926   : > { %8223 = vpow2.f32 %v3695_v57  ;;  %v3686_v57 = vsub.f32 %v10673_v4, %v3658_v63  ;;  %v3667_v4 = vpop.xlane.xlu2 %3666 }
 0x927   : > { %8225 = vpow2.f32 %v3701_v24 }
 0x929   : > { %v3646_v58 = vpop.xlane.xlu0 %3645 }
 0x92a   : > { %v3682_v49 = vsub.f32 %v10727_v26, %v3646_v58 }
 0x92c   : > { %v10793_v27 = vpop.eup %8223  ;;  %v3703_v41 = vmul.f32 1.442695, %v3682_v49  ;;  %v3711_v49 = vmul.f32 1.442695, %v3686_v57 }
 0x92d   : > { %v3728_v36 = vsel %vm1515_vm0, %v10793_v27, 0.0  ;;  %v10797_v25 = vpop.eup %8225 }
 0x92e   : > { %8227 = vpow2.f32 %v3703_v41  ;;  %3729 = vadd.xlane.f32.xlu0 %v3728_v36  ;;  %v3737_v58 = vsel %vm1515_vm0, %v10797_v25, 0.0 }
 0x931   : > { %v3655_v55 = vpop.xlane.xlu0 %3654 }
 0x932   : > { %v3685_v9 = vsub.f32 %v10736_v40, %v3655_v55 }
 0x934   : > { %v10800_v53 = vpop.eup %8227  ;;  %v3709_v14 = vmul.f32 1.442695, %v3685_v9 }
 0x935   : > { %v3740_v26 = vsel %vm1515_vm0, %v10800_v53, 0.0 }
 0x936   : > { %8229 = vpow2.f32 %v3709_v14  ;;  %3738 = vadd.xlane.f32.xlu0 %v3737_v58  ;;  %3741 = vadd.xlane.f32.xlu2 %v3740_v26  ;;  %v3670_v14 = vpop.xlane.xlu2 %3669  ;;  %v3687_v58 = vsub.f32 %v10685_v45, %v10775_v6 }
 0x939   : > { %v3649_v62 = vpop.xlane.xlu0 %3648 }
 0x93a   : > { %v3683_v13 = vsub.f32 %v10747_v33, %v3649_v62  ;;  %v12709_v33 = vld [vmem:[#allocation26_spill] sm:$0xff]  ;;  %v3689_v62 = vsub.f32 %v10604_v17, %v3667_v4  ;;  %v3995_v17 = vsel %vm1727_vm15, %v10596_v20, 0  ;;  %v3691_v20 = vsub.f32 %v10699_v35, %v10779_v2 }
 0x93b   : > { %v12713_v2 = vld [vmem:[#allocation30_spill] sm:$0xff] }
 0x93c   : > { %v10807_v1 = vpop.eup %8229  ;;  %v3705_v40 = vmul.f32 1.442695, %v3683_v13  ;;  %v3713_v13 = vmul.f32 1.442695, %v3687_v58 }
 0x93d   : > { %v3749_v24 = vsel %vm1515_vm0, %v10807_v1, 0.0 }
 0x93e   : > { %8231 = vpow2.f32 %v3705_v40  ;;  %3750 = vadd.xlane.f32.xlu1 %v3749_v24  ;;  %v3717_v40 = vmul.f32 1.442695, %v3689_v62  ;;  %v3690_v24 = vsub.f32 %v10614_v8, %v3670_v14  ;;  %v3721_v14 = vmul.f32 1.442695, %v3691_v20  ;;  %v12711_v62 = vld [vmem:[#allocation27_spill] sm:$0xff] }
 0x93f   : > { %8233 = vpow2.f32 %v3711_v49 }
 0x944   : > { %v10812_v41 = vpop.eup %8231 }
 0x945   : > { %v3743_v36 = vsel %vm1515_vm0, %v10812_v41, 0.0  ;;  %v10816_v55 = vpop.eup %8233 }
 0x946   : > { %3744 = vadd.xlane.f32.xlu1 %v3743_v36  ;;  %v3752_v63 = vsel %vm1515_vm0, %v10816_v55, 0.0  ;;  %v3719_v36 = vmul.f32 1.442695, %v3690_v24 }
 0x94a   : > { %4439 = vrot.lane.b32.xlu0 %v12709_v33, %s8583_s11 }
 0x94e   : > { %4437 = vrot.lane.b32.xlu2 %v12709_v33, %s8582_s24  ;;  %3753 = vadd.xlane.f32.xlu1 %v3752_v63 }
 0x95c   : > { %v10824_v9 = vpop.f32.mrf.mxu0 }
 0x964   : > { %v4155_v26 = vpop.f32.mrf.mxu0 }
 0x965   : > { %v12710_v26 = vld [vmem:[#allocation29_spill] sm:$0xff] }
 0x966   : > { %v3727_v57 = vpop.xlane.xlu2 %3726 }
 0x967   : > { %8235 = vrcp.f32 %v3727_v57  ;;  %4381 = vrot.lane.b32.xlu1 %v12701_v61, %s8582_s24  ;;  %v12712_v57 = vld [vmem:[#allocation28_spill] sm:$0xff] }
 0x968   : > { %8237 = vpow2.f32 %v3713_v13 }
 0x969   : > { %8239 = vpow2.f32 %v3717_v40 }
 0x96a   : > { %8241 = vpow2.f32 %v3719_v36 }
 0x96b   : > { %8243 = vpow2.f32 %v3721_v14  ;;  %v4079_v14 = vsel %vm1727_vm15, %v10608_v38, 0 }
 0x96d   : > { %v8236_v49 = vpop.eup %8235 }
 0x96e   : > { %v3789_v33 = vmul.f32 %v8236_v49, %v10769_v3  ;;  %v10833_v63 = vpop.eup %8237 }
 0x96f   : > { %v10838_v6 = vpop.eup %8239  ;;  %v3755_v61 = vsel %vm1515_vm0, %v10833_v63, 0.0 }
 0x970   : > { %v3805_v45 = vpack.c.bf16 %v3789_v33, %v3789_v33  ;;  %v3761_v8 = vsel %vm1515_vm0, %v10838_v6, 0.0  ;;  %v10844_v3 = vpop.eup %8241 }
 0x971   : > { %v3764_v4 = vsel %vm1515_vm0, %v10844_v3, 0.0  ;;  %v10850_v58 = vpop.eup %8243 }
 0x972   : > { %7799 = vmatmul.msk.bf16.vlgmr.msrb.gmra.mxu1 %vm1515_vm0, %v3805_v45  ;;  %v3767_v13 = vsel %vm1515_vm0, %v10850_v58, 0.0 }
 0x973   : > { %4004 = vmatpush.bf16.msrb.mxu1 %v3995_v17 }
 0x974   : > { %3756 = vadd.xlane.f32.xlu0 %v3755_v61  ;;  %v4016_v61 = vsel %vm1727_vm15, %v10574_v59, 0 }
 0x977   : > { %3762 = vadd.xlane.f32.xlu2 %v3761_v8 }
 0x97c   : > { %3765 = vadd.xlane.f32.xlu0 %v3764_v4 }
 0x98f   : > { %4523 = vrot.lane.b32.xlu2 %v12710_v26, %s8583_s11 }
 0x990   : > { %4465 = vrot.lane.b32.xlu0 %v12711_v62, %s8582_s24 }
 0x991   : > { %3768 = vadd.xlane.f32.xlu1 %v3767_v13  ;;  %v4266_v13 = vpop.f32.mrf.mxu0 }
 0x992   : > { %v4624_v38 = vmul.f32 0.2, %v4266_v13  ;;  %vm4608_vm9 = vcmp.gt.f32.partialorder %v4266_v13, 0.0 }
 0x997   : > { %4493 = vrot.lane.b32.xlu2 %v12712_v57, %s8582_s24  ;;  %v10860_v40 = vpop.f32.mrf.mxu3 }
 0x998   : > { %4495 = vrot.lane.b32.xlu0 %v12712_v57, %s8583_s11 }
 0x99f   : > { %4579 = vrot.lane.b32.xlu2 %v9444_v47, %s8583_s11  ;;  %v3882_v35 = vpop.f32.mrf.mxu3 }
 0x9a0   : > { %4549 = vrot.lane.b32.xlu0 %v12713_v2, %s8582_s24 }
 0x9a1   : > { %v3730_v24 = vpop.xlane.xlu0 %3729 }
 0x9a2   : > { %8245 = vrcp.f32 %v3730_v24 }
 0x9a7   : > { %4882 = vrot.lane.b32.xlu2 %v9975_v23, %s8584_s8 }
 0x9a8   : > { %v8246_v49 = vpop.eup %8245 }
 0x9a9   : > { %v3790_v36 = vmul.f32 %v8246_v49, %v10793_v27  ;;  %v3739_v33 = vpop.xlane.xlu0 %3738  ;;  %v3742_v17 = vpop.xlane.xlu2 %3741 }
 0x9aa   : > { %4467 = vrot.lane.b32.xlu1 %v12711_v62, %s8583_s11  ;;  %8247 = vrcp.f32 %v3739_v33 }
 0x9ab   : > { %v3806_v45 = vpack.c.bf16 %v3790_v36, %v3790_v36  ;;  %8249 = vrcp.f32 %v3742_v17  ;;  %v4640_v36 = vsel %vm4608_vm9, %v4266_v13, %v4624_v38  ;;  %v4378_v17 = vpop.f32.mrf.mxu0 }
 0x9ac   : > { %vm4612_vm10 = vcmp.gt.f32.partialorder %v4378_v17, 0.0 }
 0x9ad   : > { %7800 = vmatmul.msk.bf16.vlgmr.msra.gmra.mxu2 %vm1515_vm0, %v3806_v45 }
 0x9ae   : > { %4025 = vmatpush.bf16.msra.mxu2 %v4016_v61 }
 0x9b0   : > { %v8248_v8 = vpop.eup %8247 }
 0x9b1   : > { %v3751_v4 = vpop.xlane.xlu1 %3750  ;;  %v3793_v23 = vmul.f32 %v8248_v8, %v10797_v25  ;;  %v8250_v27 = vpop.eup %8249 }
 0x9b2   : > { %4521 = vrot.lane.b32.xlu1 %v12710_v26, %s8582_s24  ;;  %v3794_v59 = vmul.f32 %v8250_v27, %v10800_v53  ;;  %8251 = vrcp.f32 %v3751_v4  ;;  %v4100_v26 = vsel %vm1727_vm15, %v10679_v21, 0  ;;  %v4121_v21 = vsel %vm1727_vm15, %v10753_v42, 0  ;;  %v10912_v8 = vpop.permute.xlu2 %4437 }
 0x9b3   : > { %v3809_v20 = vpack.c.bf16 %v3793_v23, %v3793_v23 }
 0x9b4   : > { %v3810_v25 = vpack.c.bf16 %v3794_v59, %v3794_v59 }
 0x9b5   : > { %7803 = vmatmul.msk.bf16.vlgmr.msra.gmra.mxu1 %vm1515_vm0, %v3809_v20 }
 0x9b6   : > { %4088 = vmatpush.bf16.msra.mxu1 %v4079_v14 }
 0x9b8   : > { %v8252_v57 = vpop.eup %8251 }
 0x9b9   : > { %v3745_v62 = vpop.xlane.xlu1 %3744  ;;  %v3797_v53 = vmul.f32 %v8252_v57, %v10807_v1  ;;  %v10898_v1 = vsel %vm8750_vm4, %v4640_v36, -1e+30 }
 0x9ba   : > { %8253 = vrcp.f32 %v3745_v62  ;;  %4551 = vrot.lane.b32.xlu1 %v12713_v2, %s8583_s11  ;;  %v4678_v45 = vsel %vm1515_vm0, %v10898_v1, -inf }
 0x9bb   : > { %v3813_v33 = vpack.c.bf16 %v3797_v53, %v3797_v53 }
 0x9bc   : > { %v10910_v61 = vpop.permute.xlu0 %4439 }
 0x9bd   : > { %7804 = vmatmul.msk.bf16.vlgmr.msrb.gmra.mxu2 %vm1515_vm0, %v3810_v25 }
 0x9be   : > { %4109 = vmatpush.bf16.msrb.mxu2 %v4100_v26 }
 0x9c0   : > { %v8254_v35 = vpop.eup %8253 }
 0x9c1   : > { %v3795_v24 = vmul.f32 %v8254_v35, %v10812_v41  ;;  %v3754_v49 = vpop.xlane.xlu1 %3753 }
 0x9c2   : > { %8255 = vrcp.f32 %v3754_v49  ;;  %4577 = vrot.lane.b32.xlu1 %v9444_v47, %s8582_s24 }
 0x9c3   : > { %v3811_v2 = vpack.c.bf16 %v3795_v24, %v3795_v24 }
 0x9c5   : > { %7805 = vmatmul.msk.bf16.vlgmr.msra.gmra.mxu3 %vm1515_vm0, %v3811_v2  ;;  %7807 = vmatmul.msk.bf16.vlgmr.msrb.gmra.mxu1 %vm1515_vm0, %v3813_v33 }
 0x9c6   : > { %4130 = vmatpush.bf16.msra.mxu3 %v4121_v21  ;;  %7815 = vmatpush.xpose.msk.msrb.mxu1 %vm987_vm7, %v10704_v60  ;;  %v4628_v60 = vmul.f32 0.2, %v4378_v17 }
 0x9c8   : > { %v8256_v41 = vpop.eup %8255 }
 0x9c9   : > { %v3798_v47 = vmul.f32 %v8256_v41, %v10816_v55  ;;  %v4644_v55 = vsel %vm4612_vm10, %v4378_v17, %v4628_v60 }
 0x9ca   : > { %4679 = vmax.xlane.f32.xlu0 %v4678_v45  ;;  %v10918_v23 = vsel %vm8750_vm4, %v4644_v55, -1e+30 }
 0x9cb   : > { %v3814_v42 = vpack.c.bf16 %v3798_v47, %v3798_v47 }
 0x9cd   : > { %7808 = vmatmul.msk.bf16.vlgmr.msra.gmra.mxu2 %vm1515_vm0, %v3814_v42 }
 0x9ce   : > { %7817 = vmatpush.xpose.msk.msra.mxu2 %vm987_vm7, %v10692_v0 }
 0x9de   : > { %4861 = vrot.lane.b32.xlu0 %v9985_v29, %s8584_s8  ;;  %v4690_v29 = vsel %vm1515_vm0, %v10918_v23, -inf }
 0x9e6   : > { %4903 = vrot.lane.b32.xlu0 %v9980_v44, %s8584_s8 }
 0x9e7   : > { %v3757_v4 = vpop.xlane.xlu0 %3756 }
 0x9e8   : > { %8257 = vrcp.f32 %v3757_v4 }
 0x9ea   : > { %v3763_v0 = vpop.xlane.xlu2 %3762 }
 0x9eb   : > { %8259 = vrcp.f32 %v3763_v0 }
 0x9ec   : > { %4691 = vmax.xlane.f32.xlu1 %v4690_v29 }
 0x9ee   : > { %v8258_v27 = vpop.eup %8257  ;;  %4924 = vrot.lane.b32.xlu0 %v9869_v51, %s8584_s8 }
 0x9ef   : > { %v3799_v20 = vmul.f32 %v8258_v27, %v10833_v63  ;;  %v10925_v14 = vpop.f32.mrf.mxu1  ;;  %v3766_v44 = vpop.xlane.xlu0 %3765 }
 0x9f0   : > { %8261 = vrcp.f32 %v3766_v44 }
 0x9f1   : > { %v8260_v59 = vpop.eup %8259  ;;  %v3815_v62 = vpack.c.bf16 %v3799_v20, %v3799_v20 }
 0x9f2   : > { %v3801_v25 = vmul.f32 %v8260_v59, %v10838_v6  ;;  %v4524_v38 = vpop.permute.xlu2 %4523  ;;  %v4382_v6 = vpop.permute.xlu1 %4381 }
 0x9f3   : > { %7809 = vmatmul.msk.bf16.vlgmr.msrb.gmra.mxu3 %vm1515_vm0, %v3815_v62 }
 0x9f4   : > { %v3817_v13 = vpack.c.bf16 %v3801_v25, %v3801_v25  ;;  %7819 = vmatpush.xpose.msk.msrb.mxu3 %vm987_vm7, %v10708_v50 }
 0x9f6   : > { %v8262_v57 = vpop.eup %8261  ;;  %7811 = vmatmul.msk.bf16.vlgmr.msra.gmra.mxu1 %vm1515_vm0, %v3817_v13 }
 0x9f7   : > { %v3802_v51 = vmul.f32 %v8262_v57, %v10844_v3  ;;  %7823 = vmatpush.xpose.msk.msra.mxu1 %vm987_vm7, %v10638_v37  ;;  %v3840_v63 = vpop.f32.mrf.mxu1 }
 0x9f9   : > { %v3818_v26 = vpack.c.bf16 %v3802_v51, %v3802_v51 }
 0x9fa   : > { %v4494_v35 = vpop.permute.xlu2 %4493 }
 0x9fb   : > { %7812 = vmatmul.msk.bf16.vlgmr.msrb.gmra.mxu2 %vm1515_vm0, %v3818_v26 }
 0x9fc   : > { %7825 = vmatpush.xpose.msk.msrb.mxu2 %vm987_vm7, %v10763_v11 }
 0xa02   : > { %v4466_v53 = vpop.permute.xlu0 %4465  ;;  %v4580_v11 = vpop.permute.xlu2 %4579 }
 0xa04   : > { %v3769_v50 = vpop.xlane.xlu1 %3768 }
 0xa05   : > { %8263 = vrcp.f32 %v3769_v50  ;;  %4966 = vrot.lane.b32.xlu1 %v9864_v52, %s8584_s8 }
 0xa06   : > { %7816 = vmatmul.msk.f32.vlgmr.msrb.gmra.mxu1 %vm987_vm7, %v10626_v39 }
 0xa07   : > { %7831 = vmatpush.xpose.msk.msrb.mxu1 %vm987_vm7, %v10675_v19 }
 0xa0a   : > { %v4496_v49 = vpop.permute.xlu0 %4495  ;;  %v4883_v52 = vpop.permute.xlu2 %4882 }
 0xa0b   : > { %v8264_v37 = vpop.eup %8263  ;;  %7818 = vmatmul.msk.f32.vlgmr.msra.gmra.mxu2 %vm987_vm7, %v10618_v16 }
 0xa0c   : > { %v3803_v3 = vmul.f32 %v8264_v37, %v10850_v58  ;;  %7833 = vmatpush.xpose.msk.msra.mxu2 %vm987_vm7, %v10758_v56  ;;  %v4888_v56 = vsel %vm1727_vm15, %v4883_v52, 0 }
 0xa0e   : > { %v3819_v24 = vpack.c.bf16 %v3803_v3, %v3803_v3  ;;  %7824 = vmatmul.msk.f32.vlgmr.msra.gmra.mxu1 %vm987_vm7, %v10751_v48 }
 0xa0f   : > { %7839 = vmatpush.xpose.msk.msra.mxu1 %vm987_vm7, %v4496_v49 }
 0xa10   : > { %7813 = vmatmul.msk.bf16.vlgmr.msra.gmra.mxu3 %vm1515_vm0, %v3819_v24 }
 0xa11   : > { %7827 = vmatpush.xpose.msk.msra.mxu3 %vm987_vm7, %v10645_v31 }
 0xa12   : > { %v4550_v48 = vpop.permute.xlu0 %4549 }
 0xa13   : > { %7826 = vmatmul.msk.f32.vlgmr.msrb.gmra.mxu2 %vm987_vm7, %v10743_v5 }
 0xa14   : > { %7841 = vmatpush.xpose.msk.msrb.mxu2 %vm987_vm7, %v4524_v38 }
 0xa16   : > { %7832 = vmatmul.msk.f32.vlgmr.msrb.gmra.mxu1 %vm987_vm7, %v4382_v6 }
 0xa1b   : > { %7834 = vmatmul.msk.f32.vlgmr.msra.gmra.mxu2 %vm987_vm7, %v10787_v32 }
 0xa1c   : > { %4897 = vmatpush.bf16.msra.mxu2 %v4888_v56  ;;  %v4468_v16 = vpop.permute.xlu1 %4467 }
 0xa1d   : > { %7837 = vmatpush.xpose.msk.msrb.mxu0 %vm987_vm7, %v4468_v16 }
 0xa1e   : > { %7840 = vmatmul.msk.f32.vlgmr.msra.gmra.mxu1 %vm987_vm7, %v4494_v35 }
 0xa20   : > { %7820 = vmatmul.msk.f32.vlgmr.msrb.gmra.mxu3 %vm987_vm7, %v10630_v15  ;;  %7838 = vmatmul.msk.f32.vlgmr.msrb.gmra.mxu0 %vm987_vm7, %v4466_v53 }
 0xa21   : > { %7845 = vmatpush.xpose.msk.msra.mxu0 %vm987_vm7, %v4580_v11  ;;  %7835 = vmatpush.xpose.msk.msrb.mxu3 %vm987_vm7, %v10910_v61 }
 0xa24   : > { %v4522_v31 = vpop.permute.xlu1 %4521 }
 0xa25   : > { %7842 = vmatmul.msk.f32.vlgmr.msrb.gmra.mxu2 %vm987_vm7, %v4522_v31 }
 0xa28   : > { %7828 = vmatmul.msk.f32.vlgmr.msra.gmra.mxu3 %vm987_vm7, %v10755_v34 }
 0xa2c   : > { %v4552_v39 = vpop.permute.xlu1 %4551 }
 0xa2d   : > { %7843 = vmatpush.xpose.msk.msra.mxu3 %vm987_vm7, %v4552_v39 }
 0xa30   : > { %v10974_v19 = vpop.f32.mrf.mxu2  ;;  %7836 = vmatmul.msk.f32.vlgmr.msrb.gmra.mxu3 %vm987_vm7, %v10912_v8 }
 0xa32   : > { %v10978_v15 = vpop.f32.mrf.mxu1 }
 0xa34   : > { %v4578_v5 = vpop.permute.xlu1 %4577 }
 0xa35   : > { %7846 = vmatmul.msk.f32.vlgmr.msra.gmra.mxu0 %vm987_vm7, %v4578_v5 }
 0xa38   : > { %v3861_v32 = vpop.f32.mrf.mxu2  ;;  %7844 = vmatmul.msk.f32.vlgmr.msra.gmra.mxu3 %vm987_vm7, %v4550_v48 }
 0xa3a   : > { %v3924_v58 = vpop.f32.mrf.mxu1 }
 0xa3d   : > { %v4680_v2 = vpop.xlane.xlu0 %4679 }
 0xa3e   : > { %v4720_v34 = vsub.f32 %v10898_v1, %v4680_v2 }
 0xa40   : > { %v4739_v36 = vmul.f32 1.442695, %v4720_v34  ;;  %v10983_v33 = vpop.f32.mrf.mxu2 }
 0xa42   : > { %8265 = vpow2.f32 %v4739_v36  ;;  %v10985_v21 = vpop.f32.mrf.mxu1 }
 0xa48   : > { %v10987_v41 = vpop.eup %8265  ;;  %v3945_v47 = vpop.f32.mrf.mxu2 }
 0xa49   : > { %v10989_v45 = vpop.f32.mrf.mxu3  ;;  %v4774_v42 = vsel %vm1515_vm0, %v10987_v41, 0.0 }
 0xa4a   : > { %4775 = vadd.xlane.f32.xlu2 %v4774_v42  ;;  %v4008_v17 = vpop.f32.mrf.mxu1 }
 0xa50   : > { %v10993_v60 = vpop.f32.mrf.mxu2  ;;  %v4862_v1 = vpop.permute.xlu0 %4861 }
 0xa51   : > { %v3966_v61 = vpop.f32.mrf.mxu3  ;;  %v4867_v8 = vsel %vm1727_vm15, %v4862_v1, 0 }
 0xa52   : > { %4876 = vmatpush.bf16.msrb.mxu1 %v4867_v8 }
 0xa58   : > { %v4029_v55 = vpop.f32.mrf.mxu2  ;;  %v4904_v4 = vpop.permute.xlu0 %4903 }
 0xa59   : > { %v4909_v0 = vsel %vm1727_vm15, %v4904_v4, 0 }
 0xa5a   : > { %4918 = vmatpush.bf16.msrb.mxu3 %v4909_v0 }
 0xa5f   : > { %v4692_v20 = vpop.xlane.xlu1 %4691 }
 0xa60   : > { %v4925_v29 = vpop.permute.xlu0 %4924  ;;  %v4724_v48 = vsub.f32 %v10918_v23, %v4692_v20 }
 0xa61   : > { %v4930_v27 = vsel %vm1727_vm15, %v4925_v29, 0 }
 0xa62   : > { %4945 = vrot.lane.b32.xlu2 %v12702_v7, %s8584_s8  ;;  %4939 = vmatpush.bf16.msrb.mxu0 %v4930_v27  ;;  %v4747_v36 = vmul.f32 1.442695, %v4724_v48 }
 0xa64   : > { %8267 = vpow2.f32 %v4747_v36 }
 0xa6a   : > { %4987 = vrot.lane.b32.xlu2 %v10012_v46, %s8584_s8  ;;  %v11042_v29 = vpop.eup %8267 }
 0xa73   : > { %v11002_v44 = vpop.f32.mrf.mxu1 }
 0xa76   : > { %v11004_v59 = vpop.f32.mrf.mxu3 }
 0xa77   : > { %v4967_v62 = vpop.permute.xlu1 %4966 }
 0xa78   : > { %v4972_v25 = vsel %vm1727_vm15, %v4967_v62, 0 }
 0xa79   : > { %4981 = vmatpush.bf16.msrb.mxu2 %v4972_v25 }
 0xa7b   : > { %v4092_v13 = vpop.f32.mrf.mxu1 }
 0xa7c   : > { %v4786_v13 = vsel %vm1515_vm0, %v11042_v29, 0.0 }
 0xa7e   : > { %v4050_v57 = vpop.f32.mrf.mxu3  ;;  %v11007_v51 = vpop.f32.mrf.mxu2 }
 0xa83   : > { %v4182_v63 = vpop.f32.mrf.mxu1 }
 0xa84   : > { %v4621_v7 = vmul.f32 0.2, %v4182_v63  ;;  %vm4605_vm1 = vcmp.gt.f32.partialorder %v4182_v63, 0.0 }
 0xa86   : > { %v4113_v26 = vpop.f32.mrf.mxu2  ;;  %v4637_v6 = vsel %vm4605_vm1, %v4182_v63, %v4621_v7 }
 0xa87   : > { %v11015_v37 = vsel %vm8750_vm4, %v4637_v6, -1e+30 }
 0xa88   : > { %v4669_v11 = vsel %vm1515_vm0, %v11015_v37, -inf }
 0xa8b   : > { %v4294_v38 = vpop.f32.mrf.mxu1 }
 0xa8c   : > { %vm4609_vm13 = vcmp.gt.f32.partialorder %v4294_v38, 0.0  ;;  %v4625_v46 = vmul.f32 0.2, %v4294_v38 }
 0xa8e   : > { %v4210_v35 = vpop.f32.mrf.mxu2  ;;  %v4641_v53 = vsel %vm4609_vm13, %v4294_v38, %v4625_v46 }
 0xa8f   : > { %v11011_v50 = vsel %vm8750_vm4, %v4641_v53, -1e+30  ;;  %v4622_v20 = vmul.f32 0.2, %v4210_v35  ;;  %vm4606_vm9 = vcmp.gt.f32.partialorder %v4210_v35, 0.0 }
 0xa90   : > { %v4681_v3 = vsel %vm1515_vm0, %v11011_v50, -inf }
 0xa91   : > { %4682 = vmax.xlane.f32.xlu1 %v4681_v3  ;;  %v4638_v63 = vsel %vm4606_vm9, %v4210_v35, %v4622_v20  ;;  %vm12735_vm9 = vcmask 261120  }
 0xa92   : > { %v11058_v38 = vsel %vm8750_vm4, %v4638_v63, -1e+30 }
 0xa93   : > { %v11021_v24 = vpop.f32.mrf.mxu3  ;;  %v4406_v49 = vpop.f32.mrf.mxu1  ;;  %4670 = vmax.xlane.f32.xlu2 %v4669_v11  ;;  %v4672_v53 = vsel %vm1515_vm0, %v11058_v38, -inf }
 0xa94   : > { %vm4613_vm12 = vcmp.gt.f32.partialorder %v4406_v49, 0.0  ;;  %v4629_v52 = vmul.f32 0.2, %v4406_v49 }
 0xa96   : > { %v4645_v56 = vsel %vm4613_vm12, %v4406_v49, %v4629_v52  ;;  %v4322_v16 = vpop.f32.mrf.mxu2 }
 0xa97   : > { %vm4610_vm14 = vcmp.gt.f32.partialorder %v4322_v16, 0.0  ;;  %v4626_v31 = vmul.f32 0.2, %v4322_v16  ;;  %v11025_v39 = vsel %vm9114_vm8, %v4645_v56, -1e+30 }
 0xa98   : > { %v4693_v5 = vsel %vm1515_vm0, %v11025_v39, -inf }
 0xa99   : > { %4694 = vmax.xlane.f32.xlu1 %v4693_v5  ;;  %v4642_v32 = vsel %vm4610_vm14, %v4322_v16, %v4626_v31 }
 0xa9a   : > { %v11032_v58 = vsel %vm8750_vm4, %v4642_v32, -1e+30 }
 0xa9b   : > { %v4134_v2 = vpop.f32.mrf.mxu3  ;;  %v4684_v34 = vsel %vm1515_vm0, %v11032_v58, -inf  ;;  %v4518_v26 = vpop.f32.mrf.mxu1 }
 0xa9c   : > { %4685 = vmax.xlane.f32.xlu2 %v4684_v34  ;;  %v4633_v6 = vmul.f32 0.2, %v4518_v26  ;;  %vm4617_vm10 = vcmp.gt.f32.partialorder %v4518_v26, 0.0 }
 0xa9d   : > { %v4490_v47 = vpop.f32.mrf.mxu0 }
 0xa9e   : > { %vm4616_vm2 = vcmp.gt.f32.partialorder %v4490_v47, 0.0  ;;  %v4632_v42 = vmul.f32 0.2, %v4490_v47  ;;  %v4434_v1 = vpop.f32.mrf.mxu2  ;;  %v4649_v11 = vsel %vm4617_vm10, %v4518_v26, %v4633_v6  ;;  %vm12738_vm10 = vmmov %vm12735_vm9 }
 0xa9f   : > { %v4630_v4 = vmul.f32 0.2, %v4434_v1  ;;  %vm4614_vm6 = vcmp.gt.f32.partialorder %v4434_v1, 0.0  ;;  %v11072_v56 = vsel %vm9114_vm8, %v4649_v11, -1e+30 }
 0xaa0   : > { %v4648_v17 = vsel %vm4616_vm2, %v4490_v47, %v4632_v42  ;;  %v4705_v5 = vsel %vm1515_vm0, %v11072_v56, -inf }
 0xaa1   : > { %v11038_v23 = vsel %vm9114_vm8, %v4648_v17, -1e+30  ;;  %v4646_v25 = vsel %vm4614_vm6, %v4434_v1, %v4630_v4  ;;  %vm5422_vm6 = vcmask 392192  }
 0xaa2   : > { %v4702_v61 = vsel %vm1515_vm0, %v11038_v23, -inf  ;;  %v11054_v7 = vsel %vm9114_vm8, %v4646_v25, -1e+30 }
 0xaa3   : > { %v4238_v8 = vpop.f32.mrf.mxu3  ;;  %4703 = vmax.xlane.f32.xlu0 %v4702_v61  ;;  %v4696_v46 = vsel %vm1515_vm0, %v11054_v7, -inf }
 0xaa4   : > { %vm4607_vm5 = vcmp.gt.f32.partialorder %v4238_v8, 0.0  ;;  %v4623_v55 = vmul.f32 0.2, %v4238_v8 }
 0xaa6   : > { %v4639_v0 = vsel %vm4607_vm5, %v4238_v8, %v4623_v55  ;;  %vm5389_vm5 = vcmask 130048  }
 0xaa7   : > { %v11046_v27 = vsel %vm8750_vm4, %v4639_v0, -1e+30 }
 0xaa8   : > { %v4675_v62 = vsel %vm1515_vm0, %v11046_v27, -inf }
 0xaa9   : > { %4676 = vmax.xlane.f32.xlu1 %v4675_v62  ;;  %v4546_v62 = vpop.f32.mrf.mxu2 }
 0xaaa   : > { %vm4618_vm14 = vcmp.gt.f32.partialorder %v4546_v62, 0.0 }
 0xaab   : > { %v4350_v57 = vpop.f32.mrf.mxu3  ;;  %4787 = vadd.xlane.f32.xlu0 %v4786_v13 }
 0xaac   : > { %v4627_v16 = vmul.f32 0.2, %v4350_v57  ;;  %vm4611_vm13 = vcmp.gt.f32.partialorder %v4350_v57, 0.0 }
 0xab1   : > { %4697 = vmax.xlane.f32.xlu1 %v4696_v46 }
 0xab3   : > { %v4462_v3 = vpop.f32.mrf.mxu3  ;;  %4673 = vmax.xlane.f32.xlu0 %v4672_v53 }
 0xab4   : > { %vm4615_vm1 = vcmp.gt.f32.partialorder %v4462_v3, 0.0  ;;  %v4631_v35 = vmul.f32 0.2, %v4462_v3  ;;  %5008 = vrot.lane.b32.xlu2 %v10017_v18, %s8584_s8  ;;  %v4643_v18 = vsel %vm4611_vm13, %v4350_v57, %v4627_v16 }
 0xab5   : > { %v11080_v2 = vsel %vm8750_vm4, %v4643_v18, -1e+30 }
 0xab6   : > { %v4647_v49 = vsel %vm4615_vm1, %v4462_v3, %v4631_v35  ;;  %v4687_v36 = vsel %vm1515_vm0, %v11080_v2, -inf  ;;  %vm5580_vm1 = vcmask 523264  }
 0xab7   : > { %v11068_v52 = vsel %vm9114_vm8, %v4647_v49, -1e+30 }
 0xab8   : > { %v4699_v31 = vsel %vm1515_vm0, %v11068_v52, -inf }
 0xab9   : > { %4700 = vmax.xlane.f32.xlu1 %v4699_v31 }
 0xabb   : > { %4706 = vmax.xlane.f32.xlu0 %v4705_v5  ;;  %v4574_v48 = vpop.f32.mrf.mxu3 }
 0xabc   : > { %v4635_v34 = vmul.f32 0.2, %v4574_v48  ;;  %vm4619_vm12 = vcmp.gt.f32.partialorder %v4574_v48, 0.0 }
 0xabd   : > { %v4776_v32 = vpop.xlane.xlu2 %4775 }
 0xabe   : > { %8269 = vrcp.f32 %v4776_v32  ;;  %v4651_v42 = vsel %vm4619_vm12, %v4574_v48, %v4635_v34  ;;  %vm12741_vm12 = vmmov %vm12735_vm9 }
 0xabf   : > { %v11088_v55 = vsel %vm9114_vm8, %v4651_v42, -1e+30 }
 0xac0   : > { %v4711_v4 = vsel %vm1515_vm0, %v11088_v55, -inf }
 0xac3   : > { %4688 = vmax.xlane.f32.xlu0 %v4687_v36 }
 0xac4   : > { %v8270_v47 = vpop.eup %8269 }
 0xac5   : > { %v4832_v17 = vmul.f32 %v8270_v47, %v10987_v41  ;;  %v4946_v61 = vpop.permute.xlu2 %4945  ;;  %v4634_v41 = vmul.f32 0.2, %v4546_v62 }
 0xac6   : > { %v4951_v1 = vsel %vm1727_vm15, %v4946_v61, 0 }
 0xac7   : > { %v4848_v8 = vpack.c.bf16 %v4832_v17, %v4832_v17  ;;  %4960 = vmatpush.bf16.msra.mxu1 %v4951_v1  ;;  %v4650_v25 = vsel %vm4618_vm14, %v4546_v62, %v4634_v41  ;;  %vm12744_vm14 = vmmov %vm12735_vm9 }
 0xac8   : > { %v11096_v13 = vsel %vm9114_vm8, %v4650_v25, -1e+30 }
 0xac9   : > { %7850 = vmatmul.msk.bf16.vlgmr.msrb.gmra.mxu0 %vm1515_vm0, %v4848_v8  ;;  %v4708_v57 = vsel %vm1515_vm0, %v11096_v13, -inf }
 0xacb   : > { %4712 = vmax.xlane.f32.xlu0 %v4711_v4 }
 0xacd   : > { %v4988_v0 = vpop.permute.xlu2 %4987 }
 0xace   : > { %v4993_v20 = vsel %vm1727_vm15, %v4988_v0, 0 }
 0xacf   : > { %5002 = vmatpush.bf16.msra.mxu3 %v4993_v20 }
 0xadd   : > { %4709 = vmax.xlane.f32.xlu2 %v4708_v57 }
 0xb04   : > { %v4683_v63 = vpop.xlane.xlu1 %4682 }
 0xb05   : > { %v4721_v26 = vsub.f32 %v11011_v50, %v4683_v63 }
 0xb06   : > { %v4671_v6 = vpop.xlane.xlu2 %4670 }
 0xb07   : > { %v4741_v46 = vmul.f32 1.442695, %v4721_v26  ;;  %v4717_v53 = vsub.f32 %v11015_v37, %v4671_v6 }
 0xb09   : > { %8271 = vpow2.f32 %v4741_v46  ;;  %v4733_v3 = vmul.f32 1.442695, %v4717_v53 }
 0xb0b   : > { %8273 = vpow2.f32 %v4733_v3 }
 0xb0c   : > { %v4695_v35 = vpop.xlane.xlu1 %4694 }
 0xb0d   : > { %v4725_v11 = vsub.f32 %v11025_v39, %v4695_v35 }
 0xb0f   : > { %v11103_v49 = vpop.eup %8271  ;;  %v4749_v16 = vmul.f32 1.442695, %v4725_v11  ;;  %v4686_v31 = vpop.xlane.xlu2 %4685 }
 0xb10   : > { %v4777_v5 = vsel %vm1515_vm0, %v11103_v49, 0.0 }
 0xb11   : > { %v11107_v18 = vpop.eup %8273  ;;  %8275 = vpow2.f32 %v4749_v16  ;;  %4778 = vadd.xlane.f32.xlu1 %v4777_v5 }
 0xb12   : > { %v4765_v50 = vsel %vm1515_vm0, %v11107_v18, 0.0 }
 0xb13   : > { %4766 = vadd.xlane.f32.xlu0 %v4765_v50 }
 0xb16   : > { %v4704_v37 = vpop.xlane.xlu0 %4703 }
 0xb17   : > { %v11111_v48 = vpop.eup %8275  ;;  %v5009_v32 = vpop.permute.xlu2 %5008  ;;  %v4728_v6 = vsub.f32 %v11038_v23, %v4704_v37  ;;  %v4722_v23 = vsub.f32 %v11032_v58, %v4686_v31 }
 0xb18   : > { %v5014_v39 = vsel %vm1727_vm15, %v5009_v32, 0  ;;  %v4789_v34 = vsel %vm1515_vm0, %v11111_v48, 0.0 }
 0xb19   : > { %5023 = vmatpush.bf16.msra.mxu0 %v5014_v39  ;;  %v4755_v46 = vmul.f32 1.442695, %v4728_v6 }
 0xb1b   : > { %4790 = vadd.xlane.f32.xlu0 %v4789_v34 }
 0xb1c   : > { %v4677_v36 = vpop.xlane.xlu1 %4676 }
 0xb1d   : > { %v4719_v47 = vsub.f32 %v11046_v27, %v4677_v36  ;;  %v4602_v27 = vpop.f32.mrf.mxu0 }
 0xb1e   : > { %v4788_v42 = vpop.xlane.xlu0 %4787  ;;  %v4636_v25 = vmul.f32 0.2, %v4602_v27  ;;  %vm4620_vm2 = vcmp.gt.f32.partialorder %v4602_v27, 0.0 }
 0xb1f   : > { %v4737_v17 = vmul.f32 1.442695, %v4719_v47  ;;  %8277 = vrcp.f32 %v4788_v42 }
 0xb20   : > { %v4652_v57 = vsel %vm4620_vm2, %v4602_v27, %v4636_v25 }
 0xb21   : > { %8279 = vpow2.f32 %v4737_v17  ;;  %v11132_v63 = vsel %vm9114_vm8, %v4652_v57, -1e+30 }
 0xb22   : > { %v4714_v26 = vsel %vm1515_vm0, %v11132_v63, -inf }
 0xb24   : > { %v4698_v53 = vpop.xlane.xlu1 %4697 }
 0xb25   : > { %v8278_v61 = vpop.eup %8277  ;;  %v4726_v35 = vsub.f32 %v11054_v7, %v4698_v53  ;;  %v4743_v7 = vmul.f32 1.442695, %v4722_v23 }
 0xb26   : > { %v4836_v1 = vmul.f32 %v8278_v61, %v11042_v29  ;;  %v4674_v8 = vpop.xlane.xlu0 %4673 }
 0xb27   : > { %v11118_v4 = vpop.eup %8279  ;;  %v4718_v0 = vsub.f32 %v11058_v38, %v4674_v8  ;;  %v4751_v11 = vmul.f32 1.442695, %v4726_v35 }
 0xb28   : > { %v4852_v20 = vpack.c.bf16 %v4836_v1, %v4836_v1  ;;  %v4771_v62 = vsel %vm1515_vm0, %v11118_v4, 0.0 }
 0xb29   : > { %v4735_v41 = vmul.f32 1.442695, %v4718_v0  ;;  %4772 = vadd.xlane.f32.xlu1 %v4771_v62 }
 0xb2a   : > { %7854 = vmatmul.msk.bf16.vlgmr.msra.gmra.mxu0 %vm1515_vm0, %v4852_v20 }
 0xb2b   : > { %8281 = vpow2.f32 %v4735_v41 }
 0xb2c   : > { %8283 = vpow2.f32 %v4755_v46  ;;  %v4701_v34 = vpop.xlane.xlu1 %4700 }
 0xb2d   : > { %8285 = vpow2.f32 %v4751_v11  ;;  %v4727_v58 = vsub.f32 %v11068_v52, %v4701_v34 }
 0xb2e   : > { %v4707_v5 = vpop.xlane.xlu0 %4706  ;;  %8287 = vpow2.f32 %v4743_v7 }
 0xb2f   : > { %5029 = vrot.lane.b32.xlu0 %v12682_v43, %s8584_s8  ;;  %v4753_v31 = vmul.f32 1.442695, %v4727_v58  ;;  %v4729_v17 = vsub.f32 %v11072_v56, %v4707_v5  ;;  %v12714_v5 = vld [vmem:[#allocation50_spill] sm:$0xff] }
 0xb31   : > { %v11126_v29 = vpop.eup %8281  ;;  %v4757_v1 = vmul.f32 1.442695, %v4729_v17 }
 0xb32   : > { %v4768_v38 = vsel %vm1515_vm0, %v11126_v29, 0.0  ;;  %v11144_v16 = vpop.eup %8283 }
 0xb33   : > { %4769 = vadd.xlane.f32.xlu2 %v4768_v38  ;;  %v11151_v50 = vpop.eup %8285 }
 0xb34   : > { %v11156_v36 = vpop.eup %8287 }
 0xb36   : > { %v4689_v37 = vpop.xlane.xlu0 %4688 }
 0xb37   : > { %v4723_v32 = vsub.f32 %v11080_v2, %v4689_v37 }
 0xb39   : > { %v4745_v39 = vmul.f32 1.442695, %v4723_v32 }
 0xb3b   : > { %4715 = vmax.xlane.f32.xlu2 %v4714_v26  ;;  %8289 = vpow2.f32 %v4745_v39 }
 0xb3c   : > { %8291 = vpow2.f32 %v4753_v31  ;;  %v12717_v31 = vld [vmem:[#allocation61_spill] sm:$0xff] }
 0xb3d   : > { %8293 = vpow2.f32 %v4757_v1 }
 0xb3e   : > { %v4713_v56 = vpop.xlane.xlu0 %4712 }
 0xb3f   : > { %v4731_v25 = vsub.f32 %v11088_v55, %v4713_v56  ;;  %v12715_v55 = vld [vmem:[#allocation51_spill] sm:$0xff] }
 0xb41   : > { %v11161_v42 = vpop.eup %8289  ;;  %v4761_v6 = vmul.f32 1.442695, %v4731_v25 }
 0xb42   : > { %5050 = vrot.lane.b32.xlu1 %v9990_v22, %s8584_s8  ;;  %v4798_v22 = vsel %vm1515_vm0, %v11144_v16, 0.0  ;;  %v4783_v61 = vsel %vm1515_vm0, %v11161_v42, 0.0  ;;  %v11169_v8 = vpop.eup %8291 }
 0xb43   : > { %v4795_v0 = vsel %vm1515_vm0, %v11169_v8, 0.0  ;;  %v11173_v20 = vpop.eup %8293 }
 0xb44   : > { %v4801_v62 = vsel %vm1515_vm0, %v11173_v20, 0.0 }
 0xb46   : > { %v11138_v43 = vpop.f32.mrf.mxu0 }
 0xb4e   : > { %v4943_v3 = vpop.f32.mrf.mxu0 }
 0xb50   : > { %v4710_v47 = vpop.xlane.xlu2 %4709 }
 0xb51   : > { %v4730_v2 = vsub.f32 %v11096_v13, %v4710_v47 }
 0xb53   : > { %5071 = vrot.lane.b32.xlu2 %v9874_v54, %s8584_s8  ;;  %v4792_v54 = vsel %vm1515_vm0, %v11151_v50, 0.0  ;;  %v4759_v52 = vmul.f32 1.442695, %v4730_v2 }
 0xb55   : > { %8295 = vpow2.f32 %v4759_v52  ;;  %v12718_v52 = vld [vmem:[#allocation52_spill] sm:$0xff] }
 0xb59   : > { %4799 = vadd.xlane.f32.xlu0 %v4798_v22 }
 0xb5b   : > { %5092 = vrot.lane.b32.xlu2 %v12686_v28, %s8584_s8  ;;  %v4780_v28 = vsel %vm1515_vm0, %v11156_v36, 0.0  ;;  %v11175_v13 = vpop.eup %8295 }
 0xb61   : > { %4793 = vadd.xlane.f32.xlu0 %v4792_v54  ;;  %v12716_v54 = vld [vmem:[#allocation60_spill] sm:$0xff] }
 0xb6c   : > { %4781 = vadd.xlane.f32.xlu1 %v4780_v28 }
 0xb74   : > { %4784 = vadd.xlane.f32.xlu1 %v4783_v61 }
 0xb75   : > { %5134 = vrot.lane.b32.xlu0 %v12703_v10, %s8584_s8  ;;  %v4804_v10 = vsel %vm1515_vm0, %v11175_v13, 0.0 }
 0xb7c   : > { %4796 = vadd.xlane.f32.xlu1 %v4795_v0 }
 0xb84   : > { %4802 = vadd.xlane.f32.xlu2 %v4801_v62  ;;  %4805 = vadd.xlane.f32.xlu1 %v4804_v10  ;;  %v4779_v57 = vpop.xlane.xlu1 %4778 }
 0xb86   : > { %v4767_v41 = vpop.xlane.xlu0 %4766 }
 0xb87   : > { %8297 = vrcp.f32 %v4767_v41  ;;  %v12719_v41 = vld [vmem:[#allocation63_spill] sm:$0xff] }
 0xb88   : > { %8299 = vrcp.f32 %v4779_v57 }
 0xb89   : > { %8301 = vpow2.f32 %v4761_v6 }
 0xb8d   : > { %v8298_v27 = vpop.eup %8297 }
 0xb8e   : > { %v4829_v38 = vmul.f32 %v8298_v27, %v11107_v18  ;;  %v8300_v46 = vpop.eup %8299  ;;  %v4791_v53 = vpop.xlane.xlu0 %4790 }
 0xb8f   : > { %v11184_v3 = vpop.eup %8301  ;;  %v4833_v35 = vmul.f32 %v8300_v46, %v11103_v49 }
 0xb90   : > { %v4845_v26 = vpack.c.bf16 %v4829_v38, %v4829_v38  ;;  %v4807_v18 = vsel %vm1515_vm0, %v11184_v3, 0.0 }
 0xb91   : > { %v4849_v22 = vpack.c.bf16 %v4833_v35, %v4833_v35 }
 0xb92   : > { %7847 = vmatmul.msk.bf16.vlgmr.msrb.gmra.mxu1 %vm1515_vm0, %v4845_v26 }
 0xb9c   : > { %v4773_v11 = vpop.xlane.xlu1 %4772  ;;  %5155 = vrot.lane.b32.xlu2 %v12714_v5, %s8584_s8 }
 0xb9d   : > { %8303 = vrcp.f32 %v4773_v11  ;;  %5113 = vrot.lane.b32.xlu1 %v12715_v55, %s8584_s8 }
 0xb9e   : > { %8305 = vrcp.f32 %v4791_v53 }
 0xb9f   : > { %4808 = vadd.xlane.f32.xlu0 %v4807_v18  ;;  %v12720_v18 = vld [vmem:[#allocation19_spill] sm:$0xff] }
 0xba1   : > { %v5030_v23 = vpop.permute.xlu0 %5029 }
 0xba2   : > { %v5035_v7 = vsel %vm1727_vm15, %v5030_v23, 0  ;;  %7851 = vmatmul.msk.bf16.vlgmr.msra.gmra.mxu1 %vm1515_vm0, %v4849_v22 }
 0xba3   : > { %v8304_v37 = vpop.eup %8303  ;;  %5044 = vmatpush.bf16.msrb.mxu1 %v5035_v7 }
 0xba4   : > { %v4831_v49 = vmul.f32 %v8304_v37, %v11118_v4  ;;  %5213 = vrot.lane.b32.xlu2 %v12716_v54, %s8585_s15  ;;  %v8306_v58 = vpop.eup %8305  ;;  %v12721_v37 = vld [vmem:[#allocation62_spill] sm:$0xff] }
 0xba5   : > { %v4837_v28 = vmul.f32 %v8306_v58, %v11111_v48 }
 0xba6   : > { %v4847_v32 = vpack.c.bf16 %v4831_v49, %v4831_v49  ;;  %v4770_v39 = vpop.xlane.xlu2 %4769 }
 0xba7   : > { %8307 = vrcp.f32 %v4770_v39  ;;  %v11198_v34 = vpop.f32.mrf.mxu0  ;;  %v4853_v61 = vpack.c.bf16 %v4837_v28, %v4837_v28 }
 0xba8   : > { %7849 = vmatmul.msk.bf16.vlgmr.msrb.gmra.mxu3 %vm1515_vm0, %v4847_v32 }
 0xbac   : > { %5215 = vrot.lane.b32.xlu2 %v12717_v31, %s8585_s15 }
 0xbad   : > { %v8308_v47 = vpop.eup %8307 }
 0xbae   : > { %v4830_v4 = vmul.f32 %v8308_v47, %v11126_v29  ;;  %v4716_v17 = vpop.xlane.xlu2 %4715 }
 0xbaf   : > { %v5027_v2 = vpop.f32.mrf.mxu0  ;;  %v4732_v48 = vsub.f32 %v11132_v63, %v4716_v17 }
 0xbb0   : > { %v4846_v1 = vpack.c.bf16 %v4830_v4, %v4830_v4  ;;  %v12722_v4 = vld [vmem:[#allocation64_spill] sm:$0xff] }
 0xbb1   : > { %v4763_v10 = vmul.f32 1.442695, %v4732_v48  ;;  %v12724_v48 = vld [vmem:[#allocation11_spill] sm:$0xff] }
 0xbb2   : > { %7848 = vmatmul.msk.bf16.vlgmr.msra.gmra.mxu2 %vm1515_vm0, %v4846_v1  ;;  %7855 = vmatmul.msk.bf16.vlgmr.msrb.gmra.mxu1 %vm1515_vm0, %v4853_v61 }
 0xbb3   : > { %5176 = vrot.lane.b32.xlu0 %v12718_v52, %s8584_s8  ;;  %8309 = vpow2.f32 %v4763_v10 }
 0xbb4   : > { %v5051_v0 = vpop.permute.xlu1 %5050  ;;  %5279 = vrot.lane.b32.xlu2 %v10974_v19, %s8586_s10 }
 0xbb5   : > { %v5056_v29 = vsel %vm1727_vm15, %v5051_v0, 0 }
 0xbb6   : > { %5065 = vmatpush.bf16.msra.mxu2 %v5056_v29  ;;  %v5072_v56 = vpop.permute.xlu2 %5071 }
 0xbb7   : > { %v5077_v62 = vsel %vm1727_vm15, %v5072_v56, 0 }
 0xbb8   : > { %5086 = vmatpush.bf16.msrb.mxu3 %v5077_v62 }
 0xbb9   : > { %v11217_v38 = vpop.eup %8309 }
 0xbba   : > { %v4810_v19 = vsel %vm1515_vm0, %v11217_v38, 0.0 }
 0xbbb   : > { %5217 = vrot.lane.b32.xlu0 %v12719_v41, %s8585_s15 }
 0xbbe   : > { %v5093_v27 = vpop.permute.xlu2 %5092 }
 0xbbf   : > { %v5098_v25 = vsel %vm1727_vm15, %v5093_v27, 0  ;;  %v12725_v27 = vld [vmem:[#allocation54_spill] sm:$0xff] }
 0xbc0   : > { %5107 = vmatpush.bf16.msrb.mxu0 %v5098_v25 }
 0xbc7   : > { %4811 = vadd.xlane.f32.xlu1 %v4810_v19 }
 0xbcc   : > { %v4800_v63 = vpop.xlane.xlu0 %4799 }
 0xbcd   : > { %8311 = vrcp.f32 %v4800_v63 }
 0xbd3   : > { %v8312_v57 = vpop.eup %8311 }
 0xbd4   : > { %v4840_v26 = vmul.f32 %v8312_v57, %v11144_v16  ;;  %v4794_v53 = vpop.xlane.xlu0 %4793 }
 0xbd6   : > { %v4856_v6 = vpack.c.bf16 %v4840_v26, %v4840_v26 }
 0xbd8   : > { %7858 = vmatmul.msk.bf16.vlgmr.msrb.gmra.mxu0 %vm1515_vm0, %v4856_v6  ;;  %v12726_v6 = vld [vmem:[#allocation17_spill] sm:$0xff] }
 0xbdf   : > { %v4782_v46 = vpop.xlane.xlu1 %4781 }
 0xbe0   : > { %8313 = vrcp.f32 %v4782_v46  ;;  %5277 = vrot.lane.b32.xlu1 %v10925_v14, %s8586_s10 }
 0xbe6   : > { %v8314_v35 = vpop.eup %8313 }
 0xbe7   : > { %v4834_v11 = vmul.f32 %v8314_v35, %v11156_v36  ;;  %v4785_v5 = vpop.xlane.xlu1 %4784  ;;  %v5135_v55 = vpop.permute.xlu0 %5134  ;;  %v12727_v35 = vld [vmem:[#allocation22_spill] sm:$0xff] }
 0xbe8   : > { %8315 = vrcp.f32 %v4785_v5  ;;  %5283 = vrot.lane.b32.xlu1 %v12720_v18, %s8586_s10  ;;  %v5140_v16 = vsel %vm1727_vm15, %v5135_v55, 0 }
 0xbe9   : > { %v4850_v22 = vpack.c.bf16 %v4834_v11, %v4834_v11  ;;  %8317 = vrcp.f32 %v4794_v53  ;;  %v12728_v11 = vld [vmem:[#allocation49_spill] sm:$0xff] }
 0xbeb   : > { %7852 = vmatmul.msk.bf16.vlgmr.msrb.gmra.mxu2 %vm1515_vm0, %v4850_v22 }
 0xbec   : > { %5149 = vmatpush.bf16.msrb.mxu2 %v5140_v16  ;;  %v12729_v16 = vld [vmem:[#allocation53_spill] sm:$0xff] }
 0xbee   : > { %v8316_v23 = vpop.eup %8315 }
 0xbef   : > { %v4835_v7 = vmul.f32 %v8316_v23, %v11161_v42  ;;  %v4797_v14 = vpop.xlane.xlu1 %4796  ;;  %v8318_v49 = vpop.eup %8317 }
 0xbf0   : > { %5221 = vrot.lane.b32.xlu1 %v12721_v37, %s8585_s15  ;;  %8319 = vrcp.f32 %v4797_v14  ;;  %v4838_v54 = vmul.f32 %v8318_v49, %v11151_v50  ;;  %v12732_v49 = vld [vmem:[#allocation31_spill] sm:$0xff] }
 0xbf1   : > { %v4851_v36 = vpack.c.bf16 %v4835_v7, %v4835_v7 }
 0xbf2   : > { %v4854_v39 = vpack.c.bf16 %v4838_v54, %v4838_v54 }
 0xbf3   : > { %7853 = vmatmul.msk.bf16.vlgmr.msra.gmra.mxu3 %vm1515_vm0, %v4851_v36 }
 0xbf6   : > { %v8320_v28 = vpop.eup %8319 }
 0xbf7   : > { %v4803_v32 = vpop.xlane.xlu2 %4802  ;;  %v4806_v58 = vpop.xlane.xlu1 %4805  ;;  %v4839_v42 = vmul.f32 %v8320_v28, %v11169_v8  ;;  %v12723_v8 = vld [vmem:[#allocation20_spill] sm:$0xff] }
 0xbf8   : > { %5287 = vrot.lane.b32.xlu1 %v10983_v33, %s8586_s10  ;;  %8321 = vrcp.f32 %v4806_v58  ;;  %v5562_v33 = vld [vmem:[%s12493_s4 + $0x20] sm:$0x1] }
 0xbf9   : > { %v4855_v17 = vpack.c.bf16 %v4839_v42, %v4839_v42  ;;  %8323 = vrcp.f32 %v4803_v32  ;;  %v6134_v61 = vunpack.c.l.b16 %v5562_v33 }
 0xbfb   : > { %7856 = vmatmul.msk.bf16.vlgmr.msra.gmra.mxu2 %vm1515_vm0, %v4854_v39  ;;  %v6139_v52 = vpack.c.b16 %v6134_v61, %v6134_v61 }
 0xbfd   : > { %v6170_v29 = vand.u32 %v6139_v52, %v12724_v48 }
 0xbfe   : > { %v8322_v50 = vpop.eup %8321 }
 0xbff   : > { %v5156_v31 = vpop.permute.xlu2 %5155  ;;  %v4842_v2 = vmul.f32 %v8322_v50, %v11175_v13  ;;  %v8324_v0 = vpop.eup %8323 }
 0xc00   : > { %v5161_v47 = vsel %vm1727_vm15, %v5156_v31, 0  ;;  %5225 = vrot.lane.b32.xlu1 %v12722_v4, %s8585_s15  ;;  %v4841_v56 = vmul.f32 %v8324_v0, %v11173_v20  ;;  %v12733_v31 = vld [vmem:[#allocation48_spill] sm:$0xff]  ;;  %v11304_v4 = vld [vmem:[%s12492_s3] ss:$0 sm:$0xff] }
 0xc01   : > { %5170 = vmatpush.bf16.msra.mxu3 %v5161_v47  ;;  %v4858_v1 = vpack.c.bf16 %v4842_v2, %v4842_v2 }
 0xc02   : > { %v4857_v13 = vpack.c.bf16 %v4841_v56, %v4841_v56  ;;  %v12736_v56 = vld [vmem:[#allocation33_spill] sm:$0xff] }
 0xc03   : > { %7857 = vmatmul.msk.bf16.vlgmr.msrb.gmra.mxu3 %vm1515_vm0, %v4855_v17 }
 0xc07   : > { %v5214_v54 = vpop.permute.xlu2 %5213 }
 0xc08   : > { %5291 = vrot.lane.b32.xlu1 %v12723_v8, %s8586_s10 }
 0xc0b   : > { %7860 = vmatmul.msk.bf16.vlgmr.msrb.gmra.mxu2 %vm1515_vm0, %v4858_v1 }
 0xc0f   : > { %v5114_v62 = vpop.permute.xlu1 %5113  ;;  %v4878_v41 = vpop.f32.mrf.mxu1 }
 0xc10   : > { %v5119_v10 = vsel %vm1727_vm15, %v5114_v62, 0  ;;  %5229 = vrot.lane.b32.xlu1 %v12725_v27, %s8585_s15  ;;  %5341 = vrot.lane.b32.xlu0 %v4878_v41, %s8587_s14  ;;  %v5216_v58 = vpop.permute.xlu2 %5215 }
 0xc11   : > { %5128 = vmatpush.bf16.msra.mxu1 %v5119_v10  ;;  %v5391_v62 = vsel %vm5389_vm5, %v12736_v56, %v5216_v58  ;;  %v12737_v10 = vld [vmem:[#allocation56_spill] sm:$0xff] }
 0xc12   : > { %v4809_v25 = vpop.xlane.xlu0 %4808 }
 0xc13   : > { %8325 = vrcp.f32 %v4809_v25 }
 0xc14   : > { %7859 = vmatmul.msk.bf16.vlgmr.msra.gmra.mxu1 %vm1515_vm0, %v4857_v13 }
 0xc15   : > { %6175 = vmatpush.bf16.msrb.mxu1 %v6170_v29 }
 0xc17   : > { %v4880_v19 = vpop.f32.mrf.mxu1 }
 0xc18   : > { %5295 = vrot.lane.b32.xlu1 %v10993_v60, %s8586_s10  ;;  %5281 = vrot.lane.b32.xlu0 %v10860_v40, %s8586_s10  ;;  %v5280_v52 = vpop.permute.xlu2 %5279 }
 0xc19   : > { %v8326_v20 = vpop.eup %8325  ;;  %v5407_v41 = vsel %vm12738_vm10, %v5391_v62, %v5280_v52 }
 0xc1a   : > { %v4843_v63 = vmul.f32 %v8326_v20, %v11184_v3 }
 0xc1c   : > { %v4859_v57 = vpack.c.bf16 %v4843_v63, %v4843_v63 }
 0xc1e   : > { %7861 = vmatmul.msk.bf16.vlgmr.msra.gmra.mxu3 %vm1515_vm0, %v4859_v57 }
 0xc1f   : > { %v4962_v26 = vpop.f32.mrf.mxu1 }
 0xc20   : > { %5233 = vrot.lane.b32.xlu1 %v12726_v6, %s8585_s15  ;;  %5347 = vrot.lane.b32.xlu0 %v11138_v43, %s8587_s14 }
 0xc25   : > { %v5177_v46 = vpop.permute.xlu0 %5176 }
 0xc26   : > { %v5182_v53 = vsel %vm1727_vm15, %v5177_v46, 0 }
 0xc27   : > { %5191 = vmatpush.bf16.msra.mxu0 %v5182_v53  ;;  %v4964_v60 = vpop.f32.mrf.mxu1 }
 0xc28   : > { %5299 = vrot.lane.b32.xlu1 %v12727_v35, %s8586_s10  ;;  %5285 = vrot.lane.b32.xlu0 %v10978_v15, %s8586_s10  ;;  %v12730_v15 = vld [vmem:[#allocation18_spill] sm:$0xff] }
 0xc2b   : > { %v4920_v40 = vpop.f32.mrf.mxu3 }
 0xc2f   : > { %v5046_v3 = vpop.f32.mrf.mxu1 }
 0xc30   : > { %5237 = vrot.lane.b32.xlu1 %v12728_v11, %s8585_s15 }
 0xc33   : > { %v4922_v5 = vpop.f32.mrf.mxu3 }
 0xc35   : > { %v4899_v55 = vpop.f32.mrf.mxu2 }
 0xc36   : > { %5343 = vrot.lane.b32.xlu2 %v4899_v55, %s8587_s14  ;;  %v12740_v55 = vld [vmem:[#allocation35_spill] sm:$0xff] }
 0xc37   : > { %v5048_v43 = vpop.f32.mrf.mxu1 }
 0xc38   : > { %5303 = vrot.lane.b32.xlu1 %v11007_v51, %s8586_s10  ;;  %v12731_v51 = vld [vmem:[#allocation57_spill] sm:$0xff] }
 0xc3a   : > { %v4812_v18 = vpop.xlane.xlu1 %4811 }
 0xc3b   : > { %8327 = vrcp.f32 %v4812_v18 }
 0xc3d   : > { %v4901_v22 = vpop.f32.mrf.mxu2 }
 0xc3e   : > { %5219 = vrot.lane.b32.xlu2 %v12729_v16, %s8585_s15 }
 0xc40   : > { %5241 = vrot.lane.b32.xlu1 %v12730_v15, %s8585_s15 }
 0xc41   : > { %v8328_v23 = vpop.eup %8327 }
 0xc42   : > { %v4844_v7 = vmul.f32 %v8328_v23, %v11217_v38 }
 0xc44   : > { %v4860_v14 = vpack.c.bf16 %v4844_v7, %v4844_v7 }
 0xc46   : > { %5345 = vrot.lane.b32.xlu2 %v4920_v40, %s8587_s14  ;;  %7862 = vmatmul.msk.bf16.vlgmr.msra.gmra.mxu0 %vm1515_vm0, %v4860_v14 }
 0xc48   : > { %5307 = vrot.lane.b32.xlu1 %v10824_v9, %s8586_s10  ;;  %v5218_v9 = vpop.permute.xlu0 %5217 }
 0xc4e   : > { %5223 = vrot.lane.b32.xlu2 %v12731_v51, %s8585_s15 }
 0xc52   : > { %v5278_v47 = vpop.permute.xlu1 %5277 }
 0xc55   : > { %v11288_v37 = vpop.f32.mrf.mxu0 }
 0xc56   : > { %5349 = vrot.lane.b32.xlu2 %v4962_v26, %s8587_s14 }
 0xc5a   : > { %v5284_v11 = vpop.permute.xlu1 %5283 }
 0xc5d   : > { %v5111_v36 = vpop.f32.mrf.mxu0 }
 0xc5e   : > { %5227 = vrot.lane.b32.xlu2 %v12732_v49, %s8585_s15 }
 0xc6e   : > { %v4983_v38 = vpop.f32.mrf.mxu2 }
 0xc6f   : > { %5351 = vrot.lane.b32.xlu0 %v4983_v38, %s8587_s14 }
 0xc76   : > { %v4985_v32 = vpop.f32.mrf.mxu2  ;;  %v5004_v39 = vpop.f32.mrf.mxu3 }
 0xc77   : > { %5289 = vrot.lane.b32.xlu0 %v10989_v45, %s8586_s10  ;;  %5353 = vrot.lane.b32.xlu2 %v5004_v39, %s8587_s14  ;;  %v12734_v45 = vld [vmem:[#allocation32_spill] sm:$0xff] }
 0xc78   : > { %v5390_v17 = vsel %vm5389_vm5, %v12734_v45, %v5214_v54  ;;  %v12743_v32 = vld [vmem:[#allocation16_spill] sm:$0xff] }
 0xc79   : > { %v5406_v50 = vsel %vm12735_vm9, %v5390_v17, %v5278_v47 }
 0xc7e   : > { %v5006_v28 = vpop.f32.mrf.mxu3  ;;  %v5067_v42 = vpop.f32.mrf.mxu2 }
 0xc7f   : > { %5355 = vrot.lane.b32.xlu0 %v11198_v34, %s8587_s14  ;;  %5231 = vrot.lane.b32.xlu2 %v12733_v31, %s8585_s15 }
 0xc82   : > { %v5342_v33 = vpop.permute.xlu0 %5341 }
 0xc83   : > { %v5423_v2 = vsel %vm5422_vm6, %v5406_v50, %v5342_v33  ;;  %v12745_v50 = vld [vmem:[#allocation13_spill] sm:$0xff] }
 0xc84   : > { %v5442_v34 = vadd.f32 %v11304_v4, %v5423_v2 }
 0xc86   : > { %v5069_v61 = vpop.f32.mrf.mxu2  ;;  %v5088_v8 = vpop.f32.mrf.mxu3  ;;  %v5474_v1 = vmin.f32 %v5442_v34, 0.0  ;;  %vm5458_vm13 = vcmp.gt.f32.partialorder %v5442_v34, 0.0 }
 0xc87   : > { %5293 = vrot.lane.b32.xlu0 %v10985_v21, %s8586_s10  ;;  %5357 = vrot.lane.b32.xlu2 %v5046_v3, %s8587_s14 }
 0xc88   : > { %v5490_v0 = vmul.f32 1.442695, %v5474_v1 }
 0xc8a   : > { %8329 = vpow2.f32 %v5490_v0  ;;  %v5282_v27 = vpop.permute.xlu0 %5281 }
 0xc8e   : > { %v5090_v48 = vpop.f32.mrf.mxu3  ;;  %v11314_v29 = vpop.f32.mrf.mxu2 }
 0xc8f   : > { %5235 = vrot.lane.b32.xlu2 %v12737_v10, %s8585_s15  ;;  %5359 = vrot.lane.b32.xlu0 %v5067_v42, %s8587_s14 }
 0xc90   : > { %v5344_v21 = vpop.permute.xlu2 %5343  ;;  %v8330_v13 = vpop.eup %8329 }
 0xc91   : > { %v5424_v25 = vsel %vm5422_vm6, %v5407_v41, %v5344_v21  ;;  %v5130_v19 = vpop.f32.mrf.mxu1  ;;  %v7863_v20 = vadd.f32 -1.0, %v8330_v13 }
 0xc92   : > { %v5443_v63 = vadd.f32 %v11304_v4, %v5424_v25  ;;  %v5348_v22 = vpop.permute.xlu0 %5347 }
 0xc93   : > { %v5538_v57 = vsel %vm5458_vm13, %v5442_v34, %v7863_v20  ;;  %v5222_v20 = vpop.permute.xlu1 %5221 }
 0xc94   : > { %v5475_v26 = vmin.f32 %v5443_v63, 0.0  ;;  %v5564_v46 = vsel %vm8745_vm3, %v5538_v57, 0.0  ;;  %vm5459_vm2 = vcmp.gt.f32.partialorder %v5443_v63, 0.0 }
 0xc95   : > { %v5581_v53 = vsel %vm5580_vm1, %v5564_v46, 0.0 }
 0xc96   : > { %v5492_v60 = vmul.f32 1.442695, %v5475_v26  ;;  %v5153_v35 = vpop.f32.mrf.mxu2  ;;  %v5582_v40 = vrot.slane %v5581_v53, 4 }
 0xc97   : > { %5361 = vrot.lane.b32.xlu2 %v5088_v8, %s8587_s14  ;;  %5297 = vrot.lane.b32.xlu0 %v11004_v59, %s8586_s10  ;;  %v12742_v59 = vld [vmem:[#allocation34_spill] sm:$0xff]  ;;  %v12746_v35 = vld [vmem:[#allocation36_spill] sm:$0xff] }
 0xc98   : > { %8331 = vpow2.f32 %v5492_v60  ;;  %v5220_v3 = vpop.permute.xlu2 %5219  ;;  %v5583_v5 = vadd.f32 %v5582_v40, %v5581_v53  ;;  %v5392_v49 = vsel %vm5389_vm5, %v12742_v59, %v5218_v9  ;;  %v5394_v40 = vsel %vm5389_vm5, %v12746_v35, %v5222_v20 }
 0xc99   : > { %v5393_v43 = vsel %vm5389_vm5, %v12740_v55, %v5220_v3  ;;  %v5132_v18 = vpop.f32.mrf.mxu1  ;;  %v5408_v39 = vsel %vm12744_vm14, %v5392_v49, %v5282_v27 }
 0xc9a   : > { %v5409_v16 = vsel %vm12741_vm12, %v5393_v43, %v5284_v11  ;;  %v5584_v15 = vrot.slane %v5583_v5, 2  ;;  %v5286_v26 = vpop.permute.xlu0 %5285 }
 0xc9b   : > { %v5426_v23 = vsel %vm5422_vm6, %v5409_v16, %v5348_v22  ;;  %v5410_v18 = vsel %vm12738_vm10, %v5394_v40, %v5286_v26 }
 0xc9c   : > { %v5445_v7 = vadd.f32 %v11304_v4, %v5426_v23  ;;  %v5585_v14 = vadd.f32 %v5584_v15, %v5583_v5  ;;  %v12747_v5 = vld [vmem:[#allocation59_spill] sm:$0xff] }
 0xc9e   : > { %v8332_v51 = vpop.eup %8331  ;;  %v5477_v36 = vmin.f32 %v5445_v7, 0.0  ;;  %v5586_v38 = vrot.slane %v5585_v14, 1  ;;  %vm5461_vm9 = vcmp.gt.f32.partialorder %v5445_v7, 0.0 }
 0xc9f   : > { %v7864_v54 = vadd.f32 -1.0, %v8332_v51  ;;  %5239 = vrot.lane.b32.xlu2 %v12743_v32, %s8585_s15  ;;  %5363 = vrot.lane.b32.xlu0 %v11288_v37, %s8587_s14 }
 0xca0   : > { %v5496_v58 = vmul.f32 1.442695, %v5477_v36  ;;  %v5346_v28 = vpop.permute.xlu2 %5345  ;;  %v5587_v42 = vadd.f32 %v5586_v38, %v5585_v14 }
 0xca1   : > { %v5539_v31 = vsel %vm5459_vm2, %v5443_v63, %v7864_v54  ;;  %v5425_v47 = vsel %vm5422_vm6, %v5408_v39, %v5346_v28  ;;  %v11343_v45 = vpop.f32.mrf.mxu3 }
 0xca2   : > { %v5565_v9 = vsel %vm8745_vm3, %v5539_v31, 0.0  ;;  %8333 = vpow2.f32 %v5496_v58  ;;  %v5444_v17 = vadd.f32 %v11304_v4, %v5425_v47  ;;  %v5693_v33 = vmul.f32 %v5587_v42, %v12745_v50  ;;  %v7963_v47 = vld [vmem:[%s12493_s4 + $0x10] sm:$0xff] }
 0xca3   : > { %v5588_v37 = vsel %vm5580_vm1, %v5565_v9, 0.0 }
 0xca4   : > { %v5589_v2 = vrot.slane %v5588_v37, 4  ;;  %v5476_v34 = vmin.f32 %v5444_v17, 0.0  ;;  %v11350_v61 = vsub.f32 %v5538_v57, %v5693_v33  ;;  %vm5460_vm13 = vcmp.gt.f32.partialorder %v5444_v17, 0.0 }
 0xca6   : > { %v5590_v8 = vadd.f32 %v5589_v2, %v5588_v37  ;;  %v5494_v1 = vmul.f32 1.442695, %v5476_v34  ;;  %v5725_v52 = vsel %vm8745_vm3, %v11350_v61, 0.0 }
 0xca7   : > { %5365 = vrot.lane.b32.xlu2 %v5130_v19, %s8587_s14  ;;  %5301 = vrot.lane.b32.xlu0 %v11002_v44, %s8586_s10  ;;  %v5741_v48 = vmul.f32 %v5725_v52, %v5725_v52 }
 0xca8   : > { %v8334_v0 = vpop.eup %8333  ;;  %v5591_v56 = vrot.slane %v5590_v8, 2  ;;  %8335 = vpow2.f32 %v5494_v1  ;;  %v11358_v62 = vpop.permute.xlu2 %5223 }
 0xca9   : > { %v7866_v10 = vadd.f32 -1.0, %v8334_v0  ;;  %v5174_v41 = vpop.f32.mrf.mxu3  ;;  %v5757_v27 = vsel %vm5580_vm1, %v5741_v48, 0.0  ;;  %v7962_v48 = vld [vmem:[%s12493_s4 + $0x8] sm:$0xff] }
 0xcaa   : > { %v5592_v21 = vadd.f32 %v5591_v56, %v5590_v8  ;;  %v5758_v13 = vrot.slane %v5757_v27, 4  ;;  %v11400_v56 = vpop.permute.xlu1 %5287 }
 0xcab   : > { %v5541_v25 = vsel %vm5461_vm9, %v5445_v7, %v7866_v10 }
 0xcac   : > { %v5593_v63 = vrot.slane %v5592_v21, 1  ;;  %v5567_v19 = vsel %vm8745_vm3, %v5541_v25, 0.0  ;;  %v5759_v44 = vadd.f32 %v5758_v13, %v5757_v27  ;;  %v7961_v13 = vld [vmem:[%s12493_s4] sm:$0xff] }
 0xcad   : > { %v5602_v57 = vsel %vm5580_vm1, %v5567_v19, 0.0 }
 0xcae   : > { %v8336_v46 = vpop.eup %8335  ;;  %v5594_v53 = vadd.f32 %v5593_v63, %v5592_v21  ;;  %v5603_v60 = vrot.slane %v5602_v57, 4  ;;  %v5760_v3 = vrot.slane %v5759_v44, 2 }
 0xcaf   : > { %v7865_v11 = vadd.f32 -1.0, %v8336_v46  ;;  %5243 = vrot.lane.b32.xlu2 %v12747_v5, %s8585_s15  ;;  %5367 = vrot.lane.b32.xlu0 %v11314_v29, %s8587_s14  ;;  %v7964_v29 = vld [vmem:[%s12493_s4 + $0x18] sm:$0xff] }
 0xcb0   : > { %v5694_v55 = vmul.f32 %v5594_v53, %v12745_v50  ;;  %v5604_v43 = vadd.f32 %v5603_v60, %v5602_v57  ;;  %v5350_v22 = vpop.permute.xlu2 %5349  ;;  %v5761_v16 = vadd.f32 %v5760_v3, %v5759_v44  ;;  %6176 = vmatpush.bf16.msrb.mxu1 %v7964_v29 }
 0xcb1   : > { %v5540_v15 = vsel %vm5460_vm13, %v5444_v17, %v7865_v11  ;;  %v5427_v23 = vsel %vm5422_vm6, %v5410_v18, %v5350_v22 }
 0xcb2   : > { %v11373_v7 = vsub.f32 %v5539_v31, %v5694_v55  ;;  %v5605_v14 = vrot.slane %v5604_v43, 2  ;;  %v5566_v51 = vsel %vm8745_vm3, %v5540_v15, 0.0  ;;  %v5446_v36 = vadd.f32 %v11304_v4, %v5427_v23  ;;  %v11420_v18 = vpop.permute.xlu1 %5225 }
 0xcb3   : > { %v5762_v59 = vrot.slane %v5761_v16, 1  ;;  %v5595_v49 = vsel %vm5580_vm1, %v5566_v51, 0.0 }
 0xcb4   : > { %v5726_v38 = vsel %vm8745_vm3, %v11373_v7, 0.0  ;;  %v5606_v54 = vadd.f32 %v5605_v14, %v5604_v43  ;;  %v5596_v32 = vrot.slane %v5595_v49, 4  ;;  %v5478_v28 = vmin.f32 %v5446_v36, 0.0  ;;  %6177 = vmatpush.bf16.msrb.mxu1 %v7963_v47 }
 0xcb5   : > { %v5763_v39 = vadd.f32 %v5762_v59, %v5761_v16  ;;  %v5742_v58 = vmul.f32 %v5726_v38, %v5726_v38  ;;  %vm5462_vm12 = vcmp.gt.f32.partialorder %v5446_v36, 0.0 }
 0xcb6   : > { %v5607_v42 = vrot.slane %v5606_v54, 1  ;;  %v5597_v31 = vadd.f32 %v5596_v32, %v5595_v49  ;;  %v5498_v33 = vmul.f32 1.442695, %v5478_v28 }
 0xcb7   : > { %v5869_v9 = vmul.f32 %v5763_v39, %v12745_v50  ;;  %v5764_v17 = vsel %vm5580_vm1, %v5742_v58, 0.0  ;;  %5305 = vrot.lane.b32.xlu0 %v11021_v24, %s8586_s10  ;;  %5369 = vrot.lane.b32.xlu2 %v11343_v45, %s8587_s14 }
 0xcb8   : > { %v5765_v37 = vrot.slane %v5764_v17, 4  ;;  %v5608_v2 = vadd.f32 %v5607_v42, %v5606_v54  ;;  %v5598_v34 = vrot.slane %v5597_v31, 2  ;;  %8337 = vpow2.f32 %v5498_v33  ;;  %6178 = vmatpush.bf16.msrb.mxu1 %v7962_v48 }
 0xcb9   : > { %v11394_v8 = vadd.f32 1e-05, %v5869_v9 }
 0xcba   : > { %v5766_v1 = vadd.f32 %v5765_v37, %v5764_v17  ;;  %v5696_v52 = vmul.f32 %v5608_v2, %v12745_v50  ;;  %v5599_v0 = vadd.f32 %v5598_v34, %v5597_v31  ;;  %v11427_v17 = vpop.permute.xlu2 %5227  ;;  %v11430_v37 = vpop.permute.xlu1 %5291 }
 0xcbb   : > { %8339 = vrsqrt.f32 %v11394_v8  ;;  %vm5907_vm2 = vweird.f32 %v11394_v8 }
 0xcbc   : > { %v5767_v24 = vrot.slane %v5766_v1, 2  ;;  %v11403_v45 = vsub.f32 %v5541_v25, %v5696_v52  ;;  %v5600_v10 = vrot.slane %v5599_v0, 1  ;;  %6179 = vmatpush.bf16.msrb.mxu1 %v7961_v13 }
 0xcbe   : > { %v5768_v41 = vadd.f32 %v5767_v24, %v5766_v1  ;;  %v5728_v27 = vsel %vm8745_vm3, %v11403_v45, 0.0  ;;  %v5601_v21 = vadd.f32 %v5600_v10, %v5599_v0  ;;  %v8338_v20 = vpop.eup %8337 }
 0xcbf   : > { %v5744_v63 = vmul.f32 %v5728_v27, %v5728_v27  ;;  %v7867_v57 = vadd.f32 -1.0, %v8338_v20 }
 0xcc0   : > { %v5769_v19 = vrot.slane %v5768_v41, 1  ;;  %v5695_v44 = vmul.f32 %v5601_v21, %v12745_v50 }
 0xcc1   : > { %v8340_v25 = vpop.eup %8339  ;;  %v5778_v26 = vsel %vm5580_vm1, %v5744_v63, 0.0  ;;  %v5542_v40 = vsel %vm5462_vm12, %v5446_v36, %v7867_v57 }
 0xcc2   : > { %v5902_v46 = vmul.f32 %v8340_v25, %v11394_v8  ;;  %v5770_v53 = vadd.f32 %v5769_v19, %v5768_v41  ;;  %v5779_v60 = vrot.slane %v5778_v26, 4  ;;  %v11414_v35 = vsub.f32 %v5540_v15, %v5695_v44 }
 0xcc3   : > { %v5193_v3 = vpop.f32.mrf.mxu0  ;;  %v5568_v43 = vsel %vm8745_vm3, %v5542_v40, 0.0  ;;  %vm5908_vm14 = vweird.f32 %v8340_v25 }
 0xcc4   : > { %v5903_v11 = vmul.f32 %v8340_v25, %v5902_v46  ;;  %v5870_v5 = vmul.f32 %v5770_v53, %v12745_v50  ;;  %v5780_v55 = vadd.f32 %v5779_v60, %v5778_v26  ;;  %5371 = vrot.lane.b32.xlu0 %v5193_v3, %s8587_s14  ;;  %v5727_v22 = vsel %vm8745_vm3, %v11414_v35, 0.0  ;;  %vm5909_vm9 = vmor %vm5907_vm2, %vm5908_vm14  ;;  %v11441_v60 = vpop.permute.xlu1 %5229 }
 0xcc5   : > { %v5609_v16 = vsel %vm5580_vm1, %v5568_v43, 0.0  ;;  %v5743_v14 = vmul.f32 %v5727_v22, %v5727_v22  ;;  %vm6144_vm14 = vcmask 531456   ;;  %vm12749_vm2 = vcmask 261120  }
 0xcc6   : > { %v5886_v15 = vadd.f32 1e-05, %v5870_v5  ;;  %v5781_v23 = vrot.slane %v5780_v55, 2  ;;  %v5904_v51 = vmul.f32 0.5, %v5903_v11  ;;  %v5610_v36 = vrot.slane %v5609_v16, 4 }
 0xcc7   : > { %v5771_v59 = vsel %vm5580_vm1, %v5743_v14, 0.0 }
 0xcc8   : > { %8341 = vrsqrt.f32 %v5886_v15  ;;  %v5782_v29 = vadd.f32 %v5781_v23, %v5780_v55  ;;  %v5611_v49 = vadd.f32 %v5610_v36, %v5609_v16  ;;  %v5772_v54 = vrot.slane %v5771_v59, 4  ;;  %v12748_v16 = vld [vmem:[#allocation37_spill] sm:$0xff] }
 0xcc9   : > { %v5905_v32 = vsub.f32 1.5, %v5904_v51  ;;  %vm5917_vm13 = vweird.f32 %v5886_v15 }
 0xcca   : > { %v5783_v38 = vrot.slane %v5782_v29, 1  ;;  %v5612_v39 = vrot.slane %v5611_v49, 2  ;;  %v5773_v42 = vadd.f32 %v5772_v54, %v5771_v59 }
 0xccb   : > { %v5195_v58 = vpop.f32.mrf.mxu0  ;;  %v5906_v2 = vmul.f32 %v8340_v25, %v5905_v32 }
 0xccc   : > { %v5784_v28 = vadd.f32 %v5783_v38, %v5782_v29  ;;  %v5613_v31 = vadd.f32 %v5612_v39, %v5611_v49  ;;  %v5774_v9 = vrot.slane %v5773_v42, 2 }
 0xccd   : > { %v5910_v41 = vsel %vm5909_vm9, %v8340_v25, %v5906_v2 }
 0xcce   : > { %v8342_v47 = vpop.eup %8341  ;;  %v5872_v33 = vmul.f32 %v5784_v28, %v12745_v50  ;;  %v5614_v1 = vrot.slane %v5613_v31, 1  ;;  %v5775_v52 = vadd.f32 %v5774_v9, %v5773_v42  ;;  %v6061_v19 = vmul.f32 %v5910_v41, %v11350_v61  ;;  %v11460_v42 = vpop.permute.xlu1 %5295 }
 0xccf   : > { %v5912_v34 = vmul.f32 %v8342_v47, %v5886_v15  ;;  %vm5918_vm10 = vweird.f32 %v8342_v47  ;;  %v5395_v15 = vsel %vm5389_vm5, %v12748_v16, %v11358_v62 }
 0xcd0   : > { %v5888_v0 = vadd.f32 1e-05, %v5872_v33  ;;  %v5615_v24 = vadd.f32 %v5614_v1, %v5613_v31  ;;  %v5776_v10 = vrot.slane %v5775_v52, 1  ;;  %vm5919_vm12 = vmor %vm5917_vm13, %vm5918_vm10  ;;  %v6077_v61 = vsel %vm8745_vm3, %v6061_v19, 0.0 }
 0xcd1   : > { %v5913_v48 = vmul.f32 %v8342_v47, %v5912_v34  ;;  %v5354_v57 = vpop.permute.xlu2 %5353  ;;  %v6093_v23 = vsel %vm5580_vm1, %v6077_v61, 1.0  ;;  %v5411_v54 = vsel %vm12749_vm2, %v5395_v15, %v11400_v56 }
 0xcd2   : > { %8343 = vrsqrt.f32 %v5888_v0  ;;  %v5697_v21 = vmul.f32 %v5615_v24, %v12745_v50  ;;  %v5777_v13 = vadd.f32 %v5776_v10, %v5775_v52  ;;  %vm5937_vm10 = vweird.f32 %v5888_v0  ;;  %v12750_v10 = vld [vmem:[#allocation39_spill] sm:$0xff] }
 0xcd3   : > { %v5914_v27 = vmul.f32 0.5, %v5913_v48  ;;  %v5396_v41 = vsel %vm5389_vm5, %v12750_v10, %v11420_v18 }
 0xcd4   : > { %v11434_v63 = vsub.f32 %v5542_v40, %v5697_v21  ;;  %v5871_v44 = vmul.f32 %v5777_v13, %v12745_v50 }
 0xcd5   : > { %v5915_v20 = vsub.f32 1.5, %v5914_v27 }
 0xcd6   : > { %v5729_v26 = vsel %vm8745_vm3, %v11434_v63, 0.0  ;;  %v5887_v46 = vadd.f32 1e-05, %v5871_v44 }
 0xcd7   : > { %v5916_v8 = vmul.f32 %v8342_v47, %v5915_v20  ;;  %v5745_v53 = vmul.f32 %v5729_v26, %v5729_v26  ;;  %v11476_v26 = vpop.permute.xlu1 %5233 }
 0xcd8   : > { %v8344_v25 = vpop.eup %8343  ;;  %8345 = vrsqrt.f32 %v5887_v46  ;;  %vm5927_vm2 = vweird.f32 %v5887_v46 }
 0xcd9   : > { %v5920_v3 = vsel %vm5919_vm12, %v8342_v47, %v5916_v8  ;;  %v5932_v40 = vmul.f32 %v8344_v25, %v5888_v0  ;;  %v5785_v5 = vsel %vm5580_vm1, %v5745_v53, 0.0  ;;  %v11454_v38 = vpop.permute.xlu2 %5231  ;;  %vm5938_vm9 = vweird.f32 %v8344_v25 }
 0xcda   : > { %v6062_v11 = vmul.f32 %v5920_v3, %v11373_v7  ;;  %v5786_v55 = vrot.slane %v5785_v5, 4  ;;  %vm5939_vm13 = vmor %vm5937_vm10, %vm5938_vm9  ;;  %vm12751_vm10 = vcmask 261120   ;;  %v12752_v3 = vld [vmem:[#allocation38_spill] sm:$0xff] }
 0xcdb   : > { %v5933_v43 = vmul.f32 %v8344_v25, %v5932_v40 }
 0xcdc   : > { %v6078_v22 = vsel %vm8745_vm3, %v6062_v11, 0.0  ;;  %v5787_v51 = vadd.f32 %v5786_v55, %v5785_v5 }
 0xcdd   : > { %v6094_v14 = vsel %vm5580_vm1, %v6078_v22, 1.0  ;;  %v5934_v36 = vmul.f32 0.5, %v5933_v43 }
 0xcde   : > { %v6109_v7 = vpack.c.bf16 %v6094_v14, %v6093_v23  ;;  %v5788_v29 = vrot.slane %v5787_v51, 2  ;;  %v8346_v49 = vpop.eup %8345 }
 0xcdf   : > { %v5935_v59 = vsub.f32 1.5, %v5934_v36  ;;  %v5922_v32 = vmul.f32 %v8346_v49, %v5887_v46  ;;  %vm5928_vm12 = vweird.f32 %v8346_v49 }
 0xce0   : > { %7895 = vmatmul.msk.bf16.vlgmr.msrb.gmra.mxu1 %vm6144_vm14, %v6109_v7  ;;  %v5789_v62 = vadd.f32 %v5788_v29, %v5787_v51  ;;  %vm5929_vm9 = vmor %vm5927_vm2, %vm5928_vm12  ;;  %v11496_v29 = vpop.permute.xlu1 %5299 }
 0xce1   : > { %v5352_v39 = vpop.permute.xlu0 %5351  ;;  %v5936_v58 = vmul.f32 %v8344_v25, %v5935_v59  ;;  %v5923_v31 = vmul.f32 %v8346_v49, %v5922_v32  ;;  %v5358_v21 = vpop.permute.xlu2 %5357  ;;  %vm12753_vm12 = vmmov %vm12751_vm10 }
 0xce2   : > { %v5428_v28 = vsel %vm5422_vm6, %v5411_v54, %v5352_v39  ;;  %v5790_v47 = vrot.slane %v5789_v62, 1 }
 0xce3   : > { %v5447_v9 = vadd.f32 %v11304_v4, %v5428_v28  ;;  %v5924_v33 = vmul.f32 0.5, %v5923_v31  ;;  %v5940_v1 = vsel %vm5939_vm13, %v8344_v25, %v5936_v58 }
 0xce4   : > { %v5791_v2 = vadd.f32 %v5790_v47, %v5789_v62  ;;  %v6064_v24 = vmul.f32 %v5940_v1, %v11403_v45 }
 0xce5   : > { %v5479_v34 = vmin.f32 %v5447_v9, 0.0  ;;  %v5925_v56 = vsub.f32 1.5, %v5924_v33  ;;  %vm5463_vm13 = vcmp.gt.f32.partialorder %v5447_v9, 0.0 }
 0xce6   : > { %v5873_v48 = vmul.f32 %v5791_v2, %v12745_v50  ;;  %v6080_v18 = vsel %vm8745_vm3, %v6064_v24, 0.0 }
 0xce7   : > { %v5500_v52 = vmul.f32 1.442695, %v5479_v34  ;;  %v5926_v27 = vmul.f32 %v8346_v49, %v5925_v56  ;;  %v6096_v40 = vsel %vm5580_vm1, %v6080_v18, 1.0 }
 0xce8   : > { %v11471_v8 = vadd.f32 1e-05, %v5873_v48 }
 0xce9   : > { %8347 = vpow2.f32 %v5500_v52  ;;  %v5290_v0 = vpop.permute.xlu0 %5289  ;;  %v5930_v20 = vsel %vm5929_vm9, %v8346_v49, %v5926_v27  ;;  %v5236_v23 = vpop.permute.xlu2 %5235  ;;  %vm12755_vm9 = vmmov %vm12751_vm10  ;;  %v12756_v52 = vld [vmem:[#allocation41_spill] sm:$0xff] }
 0xcea   : > { %v5412_v13 = vsel %vm12751_vm10, %v5396_v41, %v5290_v0  ;;  %v6063_v44 = vmul.f32 %v5930_v20, %v11414_v35  ;;  %8349 = vrsqrt.f32 %v11471_v8  ;;  %v5399_v48 = vsel %vm5389_vm5, %v12756_v52, %v11454_v38  ;;  %v11513_v20 = vpop.permute.xlu1 %5237  ;;  %vm12757_vm10 = vmmov %vm12755_vm9 }
 0xceb   : > { %v5429_v19 = vsel %vm5422_vm6, %v5412_v13, %v5354_v57  ;;  %v5397_v57 = vsel %vm5389_vm5, %v12752_v3, %v11427_v17  ;;  %v5415_v18 = vsel %vm12757_vm10, %v5399_v48, %v11460_v42  ;;  %vm5947_vm10 = vweird.f32 %v11471_v8 }
 0xcec   : > { %v5448_v45 = vadd.f32 %v11304_v4, %v5429_v19  ;;  %v6079_v46 = vsel %vm8745_vm3, %v6063_v44, 0.0  ;;  %v5413_v22 = vsel %vm12753_vm12, %v5397_v57, %v11430_v37  ;;  %v12754_v37 = vld [vmem:[#allocation40_spill] sm:$0xff] }
 0xced   : > { %v6095_v35 = vsel %vm5580_vm1, %v6079_v46, 1.0  ;;  %v5398_v32 = vsel %vm5389_vm5, %v12754_v37, %v11441_v60 }
 0xcee   : > { %v5480_v25 = vmin.f32 %v5448_v45, 0.0  ;;  %v6110_v5 = vpack.c.bf16 %v6096_v40, %v6095_v35  ;;  %vm5464_vm2 = vcmp.gt.f32.partialorder %v5448_v45, 0.0 }
 0xcef   : > { %v8348_v53 = vpop.eup %8347 }
 0xcf0   : > { %v7868_v61 = vadd.f32 -1.0, %v8348_v53  ;;  %v5502_v11 = vmul.f32 1.442695, %v5480_v25  ;;  %7896 = vmatmul.msk.bf16.gmra.mxu1 %vm6144_vm14, %v6110_v5  ;;  %v11494_v36 = vpop.eup %8349 }
 0xcf1   : > { %v5356_v55 = vpop.permute.xlu0 %5355  ;;  %v5942_v62 = vmul.f32 %v11494_v36, %v11471_v8  ;;  %v5362_v10 = vpop.permute.xlu2 %5361  ;;  %vm5948_vm12 = vweird.f32 %v11494_v36 }
 0xcf2   : > { %v5543_v43 = vsel %vm5463_vm13, %v5447_v9, %v7868_v61  ;;  %8351 = vpow2.f32 %v5502_v11  ;;  %v5430_v16 = vsel %vm5422_vm6, %v5413_v22, %v5356_v55 }
 0xcf3   : > { %v5569_v17 = vsel %vm8745_vm3, %v5543_v43, 0.0  ;;  %v5449_v14 = vadd.f32 %v11304_v4, %v5430_v16  ;;  %v5943_v60 = vmul.f32 %v11494_v36, %v5942_v62 }
 0xcf4   : > { %v5616_v15 = vsel %vm5580_vm1, %v5569_v17, 0.0  ;;  %v12758_v17 = vld [vmem:[#allocation42_spill] sm:$0xff] }
 0xcf5   : > { %v5617_v51 = vrot.slane %v5616_v15, 4  ;;  %v5481_v7 = vmin.f32 %v5449_v14, 0.0  ;;  %v5944_v19 = vmul.f32 0.5, %v5943_v60  ;;  %vm5465_vm13 = vcmp.gt.f32.partialorder %v5449_v14, 0.0 }
 0xcf6   : > { %v5400_v16 = vsel %vm5389_vm5, %v12758_v17, %v11476_v26 }
 0xcf7   : > { %v5618_v59 = vadd.f32 %v5617_v51, %v5616_v15  ;;  %v5504_v54 = vmul.f32 1.442695, %v5481_v7  ;;  %v5945_v61 = vsub.f32 1.5, %v5944_v19  ;;  %v12759_v15 = vld [vmem:[#allocation43_spill] sm:$0xff] }
 0xcf8   : > { %v8352_v49 = vpop.eup %8351 }
 0xcf9   : > { %v5619_v39 = vrot.slane %v5618_v59, 2  ;;  %v7869_v58 = vadd.f32 -1.0, %v8352_v49  ;;  %v5294_v28 = vpop.permute.xlu0 %5293  ;;  %8353 = vpow2.f32 %v5504_v54  ;;  %v5240_v37 = vpop.permute.xlu2 %5239 }
 0xcfa   : > { %v5414_v31 = vsel %vm12755_vm9, %v5398_v32, %v5294_v28  ;;  %v5946_v32 = vmul.f32 %v11494_v36, %v5945_v61 }
 0xcfb   : > { %v5620_v47 = vadd.f32 %v5619_v39, %v5618_v59  ;;  %v5544_v9 = vsel %vm5464_vm2, %v5448_v45, %v7869_v58  ;;  %v5431_v33 = vsel %vm5422_vm6, %v5414_v31, %v5358_v21  ;;  %v11544_v31 = vpop.permute.xlu1 %5303 }
 0xcfc   : > { %v5570_v2 = vsel %vm8745_vm3, %v5544_v9, 0.0  ;;  %v5450_v34 = vadd.f32 %v11304_v4, %v5431_v33 }
 0xcfd   : > { %v5621_v1 = vrot.slane %v5620_v47, 1  ;;  %v5623_v56 = vsel %vm5580_vm1, %v5570_v2, 0.0 }
 0xcfe   : > { %v5624_v24 = vrot.slane %v5623_v56, 4  ;;  %v5482_v41 = vmin.f32 %v5450_v34, 0.0  ;;  %vm5466_vm2 = vcmp.gt.f32.partialorder %v5450_v34, 0.0 }
 0xcff   : > { %v5622_v27 = vadd.f32 %v5621_v1, %v5620_v47  ;;  %v8354_v0 = vpop.eup %8353 }
 0xd00   : > { %v5625_v21 = vadd.f32 %v5624_v24, %v5623_v56  ;;  %v5506_v13 = vmul.f32 1.442695, %v5482_v41  ;;  %v7870_v45 = vadd.f32 -1.0, %v8354_v0 }
 0xd01   : > { %v5698_v44 = vmul.f32 %v5622_v27, %v12745_v50  ;;  %v5360_v25 = vpop.permute.xlu0 %5359 }
 0xd02   : > { %v5626_v46 = vrot.slane %v5625_v21, 2  ;;  %8355 = vpow2.f32 %v5506_v13  ;;  %v5432_v38 = vsel %vm5422_vm6, %v5415_v18, %v5360_v25  ;;  %v11521_v3 = vsel %vm5465_vm13, %v5449_v14, %v7870_v45  ;;  %vm11552_vm13 = vmor %vm5947_vm10, %vm5948_vm12 }
 0xd03   : > { %v11519_v53 = vsub.f32 %v5543_v43, %v5698_v44  ;;  %v11524_v57 = vadd.f32 %v11304_v4, %v5432_v38  ;;  %v5571_v40 = vsel %vm8745_vm3, %v11521_v3, 0.0  ;;  %v5401_v14 = vsel %vm5389_vm5, %v12759_v15, %v5236_v23  ;;  %vm12763_vm12 = vmmov %vm12755_vm9 }
 0xd04   : > { %v5627_v35 = vadd.f32 %v5626_v46, %v5625_v21  ;;  %v5630_v11 = vsel %vm5580_vm1, %v5571_v40, 0.0  ;;  %v5417_v44 = vsel %vm12763_vm12, %v5401_v14, %v11496_v29  ;;  %v12764_v14 = vld [vmem:[#allocation44_spill] sm:$0xff] }
 0xd05   : > { %v5730_v42 = vsel %vm8745_vm3, %v11519_v53, 0.0  ;;  %v5483_v5 = vmin.f32 %v11524_v57, 0.0  ;;  %v5631_v22 = vrot.slane %v5630_v11, 4 }
 0xd06   : > { %v5746_v55 = vmul.f32 %v5730_v42, %v5730_v42  ;;  %v5628_v43 = vrot.slane %v5627_v35, 1 }
 0xd07   : > { %v5508_v51 = vmul.f32 1.442695, %v5483_v5  ;;  %v5632_v54 = vadd.f32 %v5631_v22, %v5630_v11  ;;  %v5366_v5 = vpop.permute.xlu2 %5365 }
 0xd08   : > { %v8356_v7 = vpop.eup %8355  ;;  %v5792_v59 = vsel %vm5580_vm1, %v5746_v55, 0.0  ;;  %v5629_v49 = vadd.f32 %v5628_v43, %v5627_v35 }
 0xd09   : > { %v5793_v62 = vrot.slane %v5792_v59, 4  ;;  %v7871_v39 = vadd.f32 -1.0, %v8356_v7  ;;  %8357 = vpow2.f32 %v5508_v51  ;;  %v5298_v58 = vpop.permute.xlu0 %5297  ;;  %v5633_v28 = vrot.slane %v5632_v54, 2  ;;  %v5242_v51 = vpop.permute.xlu1 %5241 }
 0xd0a   : > { %v5699_v26 = vmul.f32 %v5629_v49, %v12745_v50  ;;  %v5416_v23 = vsel %vm12755_vm9, %v5400_v16, %v5298_v58 }
 0xd0b   : > { %v5794_v47 = vadd.f32 %v5793_v62, %v5792_v59  ;;  %v11547_v33 = vsel %vm5466_vm2, %v5450_v34, %v7871_v39  ;;  %v5433_v2 = vsel %vm5422_vm6, %v5416_v23, %v5362_v10  ;;  %v5634_v56 = vadd.f32 %v5633_v28, %v5632_v54  ;;  %v12766_v23 = vld [vmem:[#allocation55_spill] sm:$0xff] }
 0xd0c   : > { %v11556_v1 = vsub.f32 %v5544_v9, %v5699_v26  ;;  %v5572_v48 = vsel %vm8910_vm11, %v11547_v33, 0.0  ;;  %v11562_v8 = vadd.f32 %v11304_v4, %v5433_v2  ;;  %v5950_v34 = vsel %vm11552_vm13, %v11494_v36, %v5946_v32  ;;  %v12765_v32 = vld [vmem:[#allocation45_spill] sm:$0xff]  ;;  %vm12768_vm13 = vmmov %vm12755_vm9 }
 0xd0d   : > { %v5795_v24 = vrot.slane %v5794_v47, 2  ;;  %v5637_v10 = vsel %vm5580_vm1, %v5572_v48, 0.0  ;;  %v5635_v41 = vrot.slane %v5634_v56, 1  ;;  %v6065_v45 = vmul.f32 %v5950_v34, %v11434_v63 }
 0xd0e   : > { %v5731_v9 = vsel %vm8745_vm3, %v11556_v1, 0.0  ;;  %v5638_v27 = vrot.slane %v5637_v10, 4  ;;  %v5484_v19 = vmin.f32 %v11562_v8, 0.0  ;;  %vm5467_vm2 = vcmp.gt.f32.partialorder %v11524_v57, 0.0 }
 0xd0f   : > { %v8358_v0 = vpop.eup %8357  ;;  %v5796_v21 = vadd.f32 %v5795_v24, %v5794_v47  ;;  %v5747_v13 = vmul.f32 %v5731_v9, %v5731_v9  ;;  %v5636_v36 = vadd.f32 %v5635_v41, %v5634_v56  ;;  %v5403_v62 = vsel %vm5389_vm5, %v12765_v32, %v5240_v37  ;;  %v12767_v41 = vld [vmem:[#allocation15_spill] sm:$0xff] }
 0xd10   : > { %v5639_v18 = vadd.f32 %v5638_v27, %v5637_v10  ;;  %v7872_v25 = vadd.f32 -1.0, %v8358_v0  ;;  %v5510_v35 = vmul.f32 1.442695, %v5484_v19  ;;  %v6081_v28 = vsel %vm8745_vm3, %v6065_v45, 0.0 }
 0xd11   : > { %v5797_v46 = vrot.slane %v5796_v21, 1  ;;  %v5799_v38 = vsel %vm5580_vm1, %v5747_v13, 0.0  ;;  %v5364_v40 = vpop.permute.xlu0 %5363  ;;  %v5700_v42 = vmul.f32 %v5636_v36, %v12745_v50  ;;  %v11607_v47 = vsel %vm5389_vm5, %v12766_v23, %v5242_v51 }
 0xd12   : > { %v5800_v61 = vrot.slane %v5799_v38, 4  ;;  %v5640_v11 = vrot.slane %v5639_v18, 2  ;;  %v11579_v55 = vsel %vm5467_vm2, %v11524_v57, %v7872_v25  ;;  %8359 = vpow2.f32 %v5510_v35  ;;  %v5244_v25 = vpop.permute.xlu2 %5243 }
 0xd13   : > { %v5798_v29 = vadd.f32 %v5797_v46, %v5796_v21  ;;  %v5573_v63 = vsel %vm8910_vm11, %v11579_v55, 0.0  ;;  %v5434_v43 = vsel %vm5422_vm6, %v5417_v44, %v5364_v40  ;;  %v11586_v17 = vsub.f32 %v11521_v3, %v5700_v42 }
 0xd14   : > { %v5801_v22 = vadd.f32 %v5800_v61, %v5799_v38  ;;  %v5641_v16 = vadd.f32 %v5640_v11, %v5639_v18  ;;  %v5644_v15 = vsel %vm5580_vm1, %v5573_v63, 0.0  ;;  %v5402_v57 = vsel %vm5389_vm5, %v12764_v14, %v11513_v20  ;;  %v12769_v63 = vld [vmem:[#allocation58_spill] sm:$0xff] }
 0xd15   : > { %v5874_v7 = vmul.f32 %v5798_v29, %v12745_v50  ;;  %v5645_v59 = vrot.slane %v5644_v15, 4  ;;  %v11594_v49 = vadd.f32 %v11304_v4, %v5434_v43  ;;  %v5732_v3 = vsel %vm8745_vm3, %v11586_v17, 0.0 }
 0xd16   : > { %v5802_v54 = vrot.slane %v5801_v22, 2  ;;  %v5642_v39 = vrot.slane %v5641_v16, 1  ;;  %v5748_v26 = vmul.f32 %v5732_v3, %v5732_v3  ;;  %v5419_v10 = vsel %vm12755_vm9, %v5403_v62, %v11544_v31 }
 0xd17   : > { %v11601_v58 = vadd.f32 1e-05, %v5874_v7  ;;  %v5646_v20 = vadd.f32 %v5645_v59, %v5644_v15  ;;  %v5485_v56 = vmin.f32 %v11594_v49, 0.0  ;;  %v11616_v21 = vsel %vm5580_vm1, %v6081_v28, 1.0 }
 0xd18   : > { %v5803_v2 = vadd.f32 %v5802_v54, %v5801_v22  ;;  %v5643_v60 = vadd.f32 %v5642_v39, %v5641_v16  ;;  %v8360_v48 = vpop.eup %8359  ;;  %v5806_v37 = vsel %vm5580_vm1, %v5748_v26, 0.0  ;;  %vm5468_vm10 = vcmp.gt.f32.partialorder %v11562_v8, 0.0 }
 0xd19   : > { %8361 = vrsqrt.f32 %v11601_v58  ;;  %v5647_v34 = vrot.slane %v5646_v20, 2  ;;  %v5302_v24 = vpop.permute.xlu0 %5301  ;;  %v5807_v9 = vrot.slane %v5806_v37, 4  ;;  %v7873_v0 = vadd.f32 -1.0, %v8360_v48 }
 0xd1a   : > { %v5701_v27 = vmul.f32 %v5643_v60, %v12767_v41  ;;  %v5512_v19 = vmul.f32 1.442695, %v5485_v56  ;;  %v5418_v44 = vsel %vm12768_vm13, %v5402_v57, %v5302_v24  ;;  %v5804_v45 = vrot.slane %v5803_v2, 1 }
 0xd1b   : > { %v5648_v13 = vadd.f32 %v5647_v34, %v5646_v20  ;;  %v5808_v36 = vadd.f32 %v5807_v9, %v5806_v37  ;;  %v11624_v31 = vsel %vm5468_vm10, %v11562_v8, %v7873_v0  ;;  %v5435_v35 = vsel %vm5422_vm6, %v5418_v44, %v5366_v5 }
 0xd1c   : > { %v11621_v18 = vsub.f32 %v11547_v33, %v5701_v27  ;;  %v5574_v38 = vsel %vm8910_vm11, %v11624_v31, 0.0  ;;  %8363 = vpow2.f32 %v5512_v19  ;;  %v11635_v42 = vadd.f32 %v11304_v4, %v5435_v35 }
 0xd1d   : > { %v5649_v46 = vrot.slane %v5648_v13, 1  ;;  %v5809_v40 = vrot.slane %v5808_v36, 2  ;;  %v5651_v33 = vsel %vm5580_vm1, %v5574_v38, 0.0  ;;  %v11639_v43 = vsel %vm5389_vm5, %v12769_v63, %v5244_v25 }
 0xd1e   : > { %v5733_v61 = vsel %vm8910_vm11, %v11621_v18, 0.0  ;;  %v5652_v22 = vrot.slane %v5651_v33, 4  ;;  %v5805_v16 = vadd.f32 %v5804_v45, %v5803_v2  ;;  %vm5469_vm12 = vcmp.gt.f32.partialorder %v11594_v49, 0.0 }
 0xd1f   : > { %v8362_v8 = vpop.eup %8361  ;;  %v5749_v11 = vmul.f32 %v5733_v61, %v5733_v61  ;;  %v5650_v29 = vadd.f32 %v5649_v46, %v5648_v13  ;;  %v5810_v15 = vadd.f32 %v5809_v40, %v5808_v36  ;;  %v5486_v7 = vmin.f32 %v11635_v42, 0.0 }
 0xd20   : > { %v5952_v5 = vmul.f32 %v8362_v8, %v11601_v58  ;;  %v5653_v51 = vadd.f32 %v5652_v22, %v5651_v33  ;;  %v5875_v24 = vmul.f32 %v5805_v16, %v12745_v50  ;;  %vm5958_vm5 = vweird.f32 %v8362_v8  ;;  %v5370_v16 = vpop.permute.xlu2 %5369 }
 0xd21   : > { %v5813_v14 = vsel %vm5580_vm1, %v5749_v11, 0.0  ;;  %v5702_v57 = vmul.f32 %v5650_v29, %v12767_v41  ;;  %v5368_v59 = vpop.permute.xlu0 %5367  ;;  %v5811_v3 = vrot.slane %v5810_v15, 1  ;;  %v5514_v28 = vmul.f32 1.442695, %v5486_v7 }
 0xd22   : > { %v5953_v54 = vmul.f32 %v8362_v8, %v5952_v5  ;;  %v5814_v32 = vrot.slane %v5813_v14, 4  ;;  %v5436_v62 = vsel %vm5422_vm6, %v5419_v10, %v5368_v59  ;;  %v8364_v39 = vpop.eup %8363  ;;  %v5654_v20 = vrot.slane %v5653_v51, 2 }
 0xd23   : > { %v11648_v26 = vsub.f32 %v11579_v55, %v5702_v57  ;;  %v11651_v23 = vadd.f32 %v11304_v4, %v5436_v62  ;;  %v5812_v60 = vadd.f32 %v5811_v3, %v5810_v15  ;;  %v7874_v48 = vadd.f32 -1.0, %v8364_v39 }
 0xd24   : > { %v5954_v2 = vmul.f32 0.5, %v5953_v54  ;;  %v5815_v56 = vadd.f32 %v5814_v32, %v5813_v14  ;;  %v5655_v34 = vadd.f32 %v5654_v20, %v5653_v51  ;;  %8365 = vpow2.f32 %v5514_v28  ;;  %v8457_v54 = vld [vmem:[%s12492_s3] ss:$0 sm:$0xff] }
 0xd25   : > { %v5734_v37 = vsel %vm8910_vm11, %v11648_v26, 0.0  ;;  %v5876_v55 = vmul.f32 %v5812_v60, %v12745_v50  ;;  %vm5957_vm2 = vweird.f32 %v11601_v58  ;;  %v11662_v27 = vsel %vm5469_vm12, %v11594_v49, %v7874_v48 }
 0xd26   : > { %v5955_v10 = vsub.f32 1.5, %v5954_v2  ;;  %v5750_v9 = vmul.f32 %v5734_v37, %v5734_v37  ;;  %v5656_v4 = vrot.slane %v5655_v34, 1  ;;  %v5487_v0 = vmin.f32 %v11651_v23, 0.0  ;;  %vm5959_vm9 = vmor %vm5957_vm2, %vm5958_vm5 }
 0xd27   : > { %v11665_v19 = vadd.f32 1e-05, %v5876_v55  ;;  %v5816_v44 = vrot.slane %v5815_v56, 2  ;;  %v5575_v58 = vsel %vm8910_vm11, %v11662_v27, 0.0  ;;  %vm5470_vm10 = vcmp.gt.f32.partialorder %v11635_v42, 0.0  ;;  %vm12770_vm5 = vmmov %vm12768_vm13 }
 0xd28   : > { %v5956_v13 = vmul.f32 %v8362_v8, %v5955_v10  ;;  %v5820_v45 = vsel %vm5580_vm1, %v5750_v9, 0.0  ;;  %v5657_v50 = vadd.f32 %v5656_v4, %v5655_v34  ;;  %v5516_v25 = vmul.f32 1.442695, %v5487_v0 }
 0xd29   : > { %v5821_v36 = vrot.slane %v5820_v45, 4  ;;  %8367 = vrsqrt.f32 %v11665_v19  ;;  %v5306_v49 = vpop.permute.xlu0 %5305  ;;  %v11673_v38 = vadd.f32 1e-05, %v5875_v24  ;;  %v5658_v11 = vsel %vm5580_vm1, %v5575_v58, 0.0 }
 0xd2a   : > { %v5960_v46 = vsel %vm5959_vm9, %v8362_v8, %v5956_v13  ;;  %v8366_v35 = vpop.eup %8365  ;;  %v5703_v33 = vmul.f32 %v5657_v50, %v12767_v41  ;;  %v5817_v29 = vadd.f32 %v5816_v44, %v5815_v56  ;;  %v5659_v63 = vrot.slane %v5658_v11, 4  ;;  %v5308_v44 = vpop.permute.xlu1 %5307 }
 0xd2b   : > { %v6066_v40 = vmul.f32 %v5960_v46, %v11519_v53  ;;  %v5822_v61 = vadd.f32 %v5821_v36, %v5820_v45  ;;  %v7875_v22 = vadd.f32 -1.0, %v8366_v35  ;;  %8369 = vpow2.f32 %v5516_v25 }
 0xd2c   : > { %v11679_v5 = vsub.f32 %v11624_v31, %v5703_v33  ;;  %v5420_v15 = vsel %vm12768_vm13, %v11607_v47, %v5306_v49  ;;  %v5660_v14 = vadd.f32 %v5659_v63, %v5658_v11  ;;  %vm5471_vm12 = vcmp.gt.f32.partialorder %v11651_v23, 0.0 }
 0xd2d   : > { %v5823_v8 = vrot.slane %v5822_v61, 2  ;;  %v6082_v53 = vsel %vm8745_vm3, %v6066_v40, 0.0  ;;  %v11688_v57 = vsel %vm5470_vm10, %v11635_v42, %v7875_v22  ;;  %v5437_v51 = vsel %vm5422_vm6, %v5420_v15, %v5370_v16 }
 0xd2e   : > { %v6098_v7 = vsel %vm5580_vm1, %v6082_v53, 1.0  ;;  %v5735_v31 = vsel %vm8910_vm11, %v11679_v5, 0.0  ;;  %v5576_v47 = vsel %vm8910_vm11, %v11688_v57, 0.0  ;;  %v11701_v3 = vadd.f32 %v8457_v54, %v5437_v51 }
 0xd2f   : > { %v5824_v59 = vadd.f32 %v5823_v8, %v5822_v61  ;;  %v11703_v42 = vpop.eup %8367  ;;  %v5751_v32 = vmul.f32 %v5735_v31, %v5735_v31  ;;  %v5661_v62 = vrot.slane %v5660_v14, 2  ;;  %v5665_v39 = vsel %vm5580_vm1, %v5576_v47, 0.0 }
 0xd30   : > { %v6111_v20 = vpack.c.bf16 %v6098_v7, %v11616_v21  ;;  %v5972_v28 = vmul.f32 %v11703_v42, %v11665_v19  ;;  %v5666_v60 = vrot.slane %v5665_v39, 4  ;;  %v5818_v48 = vrot.slane %v5817_v29, 1 }
 0xd31   : > { %v5825_v2 = vrot.slane %v5824_v59, 1  ;;  %v8370_v56 = vpop.eup %8369  ;;  %v5827_v37 = vsel %vm5580_vm1, %v5751_v32, 0.0  ;;  %v5662_v34 = vadd.f32 %v5661_v62, %v5660_v14  ;;  %v5488_v24 = vmin.f32 %v11701_v3, 0.0 }
 0xd32   : > { %7897 = vmatmul.msk.bf16.gmra.mxu1 %vm6144_vm14, %v6111_v20  ;;  %v5973_v10 = vmul.f32 %v11703_v42, %v5972_v28  ;;  %v5828_v21 = vrot.slane %v5827_v37, 4  ;;  %v5667_v9 = vadd.f32 %v5666_v60, %v5665_v39  ;;  %v7876_v0 = vadd.f32 -1.0, %v8370_v56 }
 0xd33   : > { %v5826_v55 = vadd.f32 %v5825_v2, %v5824_v59  ;;  %v5663_v4 = vrot.slane %v5662_v34, 1  ;;  %v5518_v13 = vmul.f32 1.442695, %v5488_v24  ;;  %8371 = vrsqrt.f32 %v11673_v38 }
 0xd34   : > { %v5974_v45 = vmul.f32 0.5, %v5973_v10  ;;  %v5829_v50 = vadd.f32 %v5828_v21, %v5827_v37  ;;  %v5668_v58 = vrot.slane %v5667_v9, 2  ;;  %v11719_v46 = vsel %vm5471_vm12, %v11651_v23, %v7876_v0 }
 0xd35   : > { %v5878_v36 = vmul.f32 %v5826_v55, %v12767_v41  ;;  %v5664_v25 = vadd.f32 %v5663_v4, %v5662_v34  ;;  %8373 = vpow2.f32 %v5518_v13  ;;  %v5421_v49 = vsel %vm12770_vm5, %v11639_v43, %v5308_v44 }
 0xd36   : > { %v5372_v35 = vpop.permute.xlu0 %5371  ;;  %v5975_v40 = vsub.f32 1.5, %v5974_v45  ;;  %v5830_v33 = vrot.slane %v5829_v50, 2  ;;  %v5669_v11 = vadd.f32 %v5668_v58, %v5667_v9  ;;  %v5577_v22 = vsel %vm8910_vm11, %v11719_v46, 0.0 }
 0xd37   : > { %v11723_v61 = vadd.f32 1e-05, %v5878_v36  ;;  %v5704_v63 = vmul.f32 %v5664_v25, %v12767_v41  ;;  %v5438_v8 = vsel %vm5422_vm6, %v5421_v49, %v5372_v35  ;;  %vm5978_vm2 = vweird.f32 %v11703_v42 }
 0xd38   : > { %v5976_v23 = vmul.f32 %v11703_v42, %v5975_v40  ;;  %v5819_v16 = vadd.f32 %v5818_v48, %v5817_v29  ;;  %v5670_v53 = vrot.slane %v5669_v11, 1  ;;  %v5672_v14 = vsel %vm5580_vm1, %v5577_v22, 0.0 }
 0xd39   : > { %8375 = vrsqrt.f32 %v11723_v61  ;;  %v11733_v43 = vpop.eup %8371  ;;  %v11736_v15 = vsub.f32 %v11662_v27, %v5704_v63  ;;  %v11739_v51 = vadd.f32 %v8457_v54, %v5438_v8  ;;  %vm5977_vm9 = vweird.f32 %v11665_v19 }
 0xd3a   : > { %v5831_v7 = vadd.f32 %v5830_v33, %v5829_v50  ;;  %v5673_v59 = vrot.slane %v5672_v14, 4  ;;  %v5962_v31 = vmul.f32 %v11733_v43, %v11673_v38  ;;  %vm11744_vm6 = vmor %vm5977_vm9, %vm5978_vm2  ;;  %v5671_v32 = vadd.f32 %v5670_v53, %v5669_v11 }
 0xd3b   : > { %v8374_v29 = vpop.eup %8373  ;;  %v5736_v27 = vsel %vm8910_vm11, %v11736_v15, 0.0  ;;  %vm5472_vm10 = vcmp.gt.f32.partialorder %v11701_v3, 0.0  ;;  %v5980_v19 = vsel %vm11744_vm6, %v11703_v42, %v5976_v23  ;;  %v5489_v28 = vmin.f32 %v11739_v51, 0.0 }
 0xd3c   : > { %v5752_v54 = vmul.f32 %v5736_v27, %v5736_v27  ;;  %v5674_v62 = vadd.f32 %v5673_v59, %v5672_v14  ;;  %v7877_v39 = vadd.f32 -1.0, %v8374_v29  ;;  %v5705_v20 = vmul.f32 %v5671_v32, %v12767_v41 }
 0xd3d   : > { %v5963_v2 = vmul.f32 %v11733_v43, %v5962_v31  ;;  %vm5967_vm13 = vweird.f32 %v11673_v38  ;;  %v5877_v60 = vmul.f32 %v5819_v16, %v12767_v41  ;;  %v5832_v48 = vrot.slane %v5831_v7, 1 }
 0xd3e   : > { %v5834_v37 = vsel %vm5580_vm1, %v5752_v54, 0.0  ;;  %v5675_v34 = vrot.slane %v5674_v62, 2  ;;  %v11764_v42 = vsel %vm5472_vm10, %v11701_v3, %v7877_v39  ;;  %v6068_v24 = vmul.f32 %v5980_v19, %v11586_v17 }
 0xd3f   : > { %v11760_v56 = vpop.eup %8375  ;;  %v5835_v55 = vrot.slane %v5834_v37, 4  ;;  %v11770_v21 = vsub.f32 %v11688_v57, %v5705_v20  ;;  %v5578_v4 = vsel %vm8910_vm11, %v11764_v42, 0.0  ;;  %v5520_v0 = vmul.f32 1.442695, %v5489_v28 }
 0xd40   : > { %v5992_v10 = vmul.f32 %v11760_v56, %v11723_v61  ;;  %v5676_v9 = vadd.f32 %v5675_v34, %v5674_v62  ;;  %v5964_v13 = vmul.f32 0.5, %v5963_v2  ;;  %v5679_v45 = vsel %vm5580_vm1, %v5578_v4, 0.0 }
 0xd41   : > { %v5836_v3 = vadd.f32 %v5835_v55, %v5834_v37  ;;  %v5737_v17 = vsel %vm8910_vm11, %v11770_v21, 0.0  ;;  %v5680_v57 = vrot.slane %v5679_v45, 4  ;;  %vm5473_vm12 = vcmp.gt.f32.partialorder %v11739_v51, 0.0 }
 0xd42   : > { %v5993_v44 = vmul.f32 %v11760_v56, %v5992_v10  ;;  %v5753_v36 = vmul.f32 %v5737_v17, %v5737_v17  ;;  %v5677_v50 = vrot.slane %v5676_v9, 1  ;;  %8377 = vpow2.f32 %v5520_v0 }
 0xd43   : > { %v5837_v25 = vrot.slane %v5836_v3, 2  ;;  %v5965_v49 = vsub.f32 1.5, %v5964_v13  ;;  %vm5968_vm5 = vweird.f32 %v11733_v43  ;;  %v5681_v33 = vadd.f32 %v5680_v57, %v5679_v45 }
 0xd44   : > { %v5994_v58 = vmul.f32 0.5, %v5993_v44  ;;  %v5841_v35 = vsel %vm5580_vm1, %v5753_v36, 0.0  ;;  %v5678_v40 = vadd.f32 %v5677_v50, %v5676_v9  ;;  %v11783_v11 = vadd.f32 1e-05, %v5877_v60  ;;  %vm5969_vm2 = vmor %vm5967_vm13, %vm5968_vm5 }
 0xd45   : > { %v5838_v63 = vadd.f32 %v5837_v25, %v5836_v3  ;;  %v5842_v22 = vrot.slane %v5841_v35, 4  ;;  %v5966_v8 = vmul.f32 %v11733_v43, %v5965_v49  ;;  %v6084_v23 = vsel %vm8745_vm3, %v6068_v24, 0.0 }
 0xd46   : > { %v5995_v16 = vsub.f32 1.5, %v5994_v58  ;;  %v5706_v53 = vmul.f32 %v5678_v40, %v12767_v41  ;;  %v5682_v14 = vrot.slane %v5681_v33, 2  ;;  %8379 = vrsqrt.f32 %v11783_v11 }
 0xd47   : > { %v5833_v59 = vadd.f32 %v5832_v48, %v5831_v7  ;;  %v5839_v31 = vrot.slane %v5838_v63, 1  ;;  %v5843_v29 = vadd.f32 %v5842_v22, %v5841_v35  ;;  %v5970_v47 = vsel %vm5969_vm2, %v11733_v43, %v5966_v8 }
 0xd48   : > { %v8378_v27 = vpop.eup %8377  ;;  %vm5998_vm9 = vweird.f32 %v11760_v56  ;;  %v11795_v32 = vsub.f32 %v11719_v46, %v5706_v53  ;;  %v5683_v19 = vadd.f32 %v5682_v14, %v5681_v33  ;;  %v6067_v54 = vmul.f32 %v5970_v47, %v11556_v1 }
 0xd49   : > { %v5840_v62 = vadd.f32 %v5839_v31, %v5838_v63  ;;  %v5844_v39 = vrot.slane %v5843_v29, 2  ;;  %v7878_v38 = vadd.f32 -1.0, %v8378_v27  ;;  %v6100_v20 = vsel %vm5580_vm1, %v6084_v23, 1.0 }
 0xd4a   : > { %v5996_v7 = vmul.f32 %v11760_v56, %v5995_v16  ;;  %v5738_v43 = vsel %vm8910_vm11, %v11795_v32, 0.0  ;;  %v5684_v28 = vrot.slane %v5683_v19, 1  ;;  %v6083_v2 = vsel %vm8745_vm3, %v6067_v54, 0.0 }
 0xd4b   : > { %v5880_v46 = vmul.f32 %v5840_v62, %v12767_v41  ;;  %v5845_v60 = vadd.f32 %v5844_v39, %v5843_v29  ;;  %v5754_v48 = vmul.f32 %v5738_v43, %v5738_v43  ;;  %v11809_v1 = vsel %vm5473_vm12, %v11739_v51, %v7878_v38 }
 0xd4c   : > { %v8380_v37 = vpop.eup %8379  ;;  %v5685_v34 = vadd.f32 %v5684_v28, %v5683_v19  ;;  %v5579_v24 = vsel %vm8910_vm11, %v11809_v1, 0.0  ;;  %v6099_v10 = vsel %vm5580_vm1, %v6083_v2, 1.0  ;;  %v5879_v6 = vmul.f32 %v5833_v59, %v12767_v41 }
 0xd4d   : > { %v11816_v55 = vadd.f32 1e-05, %v5880_v46  ;;  %v5846_v9 = vrot.slane %v5845_v60, 1  ;;  %v5848_v4 = vsel %vm5580_vm1, %v5754_v48, 0.0  ;;  %v5686_v0 = vsel %vm5580_vm1, %v5579_v24, 0.0 }
 0xd4e   : > { %v5849_v13 = vrot.slane %v5848_v4, 4  ;;  %v5707_v51 = vmul.f32 %v5685_v34, %v12767_v41  ;;  %v5687_v44 = vrot.slane %v5686_v0, 4  ;;  %v6112_v3 = vpack.c.bf16 %v6100_v20, %v6099_v10 }
 0xd4f   : > { %vm5997_vm3 = vweird.f32 %v11723_v61  ;;  %8381 = vrsqrt.f32 %v11816_v55  ;;  %v5847_v17 = vadd.f32 %v5846_v9, %v5845_v60  ;;  %v5982_v45 = vmul.f32 %v8380_v37, %v11783_v11 }
 0xd50   : > { %vm5999_vm6 = vmor %vm5997_vm3, %vm5998_vm9  ;;  %v5850_v36 = vadd.f32 %v5849_v13, %v5848_v4  ;;  %v11827_v50 = vsub.f32 %v11764_v42, %v5707_v51  ;;  %v5688_v57 = vadd.f32 %v5687_v44, %v5686_v0  ;;  %7898 = vmatmul.msk.bf16.gmra.mxu1 %vm6144_vm14, %v6112_v3  ;;  %v11831_v49 = vadd.f32 1e-05, %v5879_v6 }
 0xd51   : > { %v6000_v58 = vsel %vm5999_vm6, %v11760_v56, %v5996_v7  ;;  %v5983_v25 = vmul.f32 %v8380_v37, %v5982_v45  ;;  %v5881_v61 = vmul.f32 %v5847_v17, %v12767_v41  ;;  %vm5988_vm10 = vweird.f32 %v8380_v37 }
 0xd52   : > { %v5851_v35 = vrot.slane %v5850_v36, 2  ;;  %v5739_v40 = vsel %vm8910_vm11, %v11827_v50, 0.0  ;;  %v5689_v33 = vrot.slane %v5688_v57, 2  ;;  %8383 = vrsqrt.f32 %v11831_v49 }
 0xd53   : > { %v5755_v63 = vmul.f32 %v5739_v40, %v5739_v40  ;;  %v5984_v22 = vmul.f32 0.5, %v5983_v25  ;;  %v6070_v42 = vmul.f32 %v6000_v58, %v11648_v26  ;;  %v11839_v56 = vadd.f32 1e-05, %v5881_v61 }
 0xd54   : > { %v5852_v8 = vadd.f32 %v5851_v35, %v5850_v36  ;;  %v5690_v23 = vadd.f32 %v5689_v33, %v5688_v57  ;;  %vm5987_vm13 = vweird.f32 %v11783_v11  ;;  %vm6017_vm2 = vweird.f32 %v11816_v55 }
 0xd55   : > { %v8382_v16 = vpop.eup %8381  ;;  %v5855_v53 = vsel %vm5580_vm1, %v5755_v63, 0.0  ;;  %v5985_v14 = vsub.f32 1.5, %v5984_v22  ;;  %8385 = vrsqrt.f32 %v11839_v56  ;;  %vm5989_vm12 = vmor %vm5987_vm13, %vm5988_vm10  ;;  %v6086_v62 = vsel %vm8910_vm11, %v6070_v42, 0.0 }
 0xd56   : > { %v6012_v59 = vmul.f32 %v8382_v16, %v11816_v55  ;;  %v5853_v31 = vrot.slane %v5852_v8, 1  ;;  %v5856_v29 = vrot.slane %v5855_v53, 4  ;;  %v5691_v47 = vrot.slane %v5690_v23, 1 }
 0xd57   : > { %v5986_v27 = vmul.f32 %v8380_v37, %v5985_v14  ;;  %vm6018_vm5 = vweird.f32 %v8382_v16  ;;  %v6102_v46 = vsel %vm5580_vm1, %v6086_v62, 1.0  ;;  %vm6007_vm6 = vweird.f32 %v11831_v49 }
 0xd58   : > { %v6013_v26 = vmul.f32 %v8382_v16, %v6012_v59  ;;  %v5854_v19 = vadd.f32 %v5853_v31, %v5852_v8  ;;  %v5857_v54 = vadd.f32 %v5856_v29, %v5855_v53  ;;  %v8384_v39 = vpop.eup %8383  ;;  %v5692_v38 = vadd.f32 %v5691_v47, %v5690_v23  ;;  %vm6019_vm9 = vmor %vm6017_vm2, %vm6018_vm5 }
 0xd59   : > { %v5990_v20 = vsel %vm5989_vm12, %v8380_v37, %v5986_v27  ;;  %v6002_v60 = vmul.f32 %v8384_v39, %v11831_v49  ;;  %vm6008_vm3 = vweird.f32 %v8384_v39 }
 0xd5a   : > { %v6014_v7 = vmul.f32 0.5, %v6013_v26  ;;  %v5882_v43 = vmul.f32 %v5854_v19, %v12767_v41  ;;  %v5858_v28 = vrot.slane %v5857_v54, 2  ;;  %v6069_v2 = vmul.f32 %v5990_v20, %v11621_v18  ;;  %vm6009_vm10 = vmor %vm6007_vm6, %vm6008_vm3 }
 0xd5b   : > { %v5708_v11 = vmul.f32 %v5692_v38, %v12767_v41  ;;  %v11858_v6 = vpop.eup %8385  ;;  %v6003_v9 = vmul.f32 %v8384_v39, %v6002_v60 }
 0xd5c   : > { %v6015_v48 = vsub.f32 1.5, %v6014_v7  ;;  %v11852_v34 = vadd.f32 1e-05, %v5882_v43  ;;  %v5859_v24 = vadd.f32 %v5858_v28, %v5857_v54  ;;  %v6085_v37 = vsel %vm8910_vm11, %v6069_v2, 0.0 }
 0xd5d   : > { %v11856_v10 = vpop.f32.mrf.mxu1  ;;  %v11862_v18 = vsub.f32 %v11809_v1, %v5708_v11  ;;  %v6101_v13 = vsel %vm5580_vm1, %v6085_v37, 1.0  ;;  %v6004_v51 = vmul.f32 0.5, %v6003_v9  ;;  %v6022_v44 = vmul.f32 %v11858_v6, %v11839_v56 }
 0xd5e   : > { %6222 = vrot.lane.b32.xlu2 %v11856_v10, %s8581_s23  ;;  %6224 = vrot.lane.b32.xlu1 %v11856_v10, %s8588_s29  ;;  %v6016_v4 = vmul.f32 %v8382_v16, %v6015_v48  ;;  %8387 = vrsqrt.f32 %v11852_v34  ;;  %v5860_v0 = vrot.slane %v5859_v24, 1  ;;  %v6113_v55 = vpack.c.bf16 %v6102_v46, %v6101_v13 }
 0xd5f   : > { %v5740_v1 = vsel %vm8910_vm11, %v11862_v18, 0.0  ;;  %v6005_v36 = vsub.f32 1.5, %v6004_v51  ;;  %v6023_v58 = vmul.f32 %v11858_v6, %v6022_v44  ;;  %vm6037_vm12 = vweird.f32 %v11852_v34 }
 0xd60   : > { %v6020_v3 = vsel %vm6019_vm9, %v8382_v16, %v6016_v4  ;;  %v5861_v17 = vadd.f32 %v5860_v0, %v5859_v24  ;;  %v5756_v45 = vmul.f32 %v5740_v1, %v5740_v1  ;;  %7899 = vmatmul.msk.bf16.gmra.mxu1 %vm6144_vm14, %v6113_v55  ;;  %vm6028_vm5 = vweird.f32 %v11858_v6 }
 0xd61   : > { %v6072_v61 = vmul.f32 %v6020_v3, %v11736_v15  ;;  %v6006_v40 = vmul.f32 %v8384_v39, %v6005_v36  ;;  %v6024_v53 = vmul.f32 0.5, %v6023_v58  ;;  %vm6027_vm9 = vweird.f32 %v11839_v56 }
 0xd62   : > { %v5862_v57 = vsel %vm5580_vm1, %v5756_v45, 0.0  ;;  %v5883_v25 = vmul.f32 %v5861_v17, %v12767_v41  ;;  %vm6029_vm3 = vmor %vm6027_vm9, %vm6028_vm5 }
 0xd63   : > { %v5863_v35 = vrot.slane %v5862_v57, 4  ;;  %v6010_v23 = vsel %vm6009_vm10, %v8384_v39, %v6006_v40  ;;  %v6088_v49 = vsel %vm8910_vm11, %v6072_v61, 0.0  ;;  %v6025_v27 = vsub.f32 1.5, %v6024_v53 }
 0xd64   : > { %v8388_v33 = vpop.eup %8387  ;;  %v11884_v22 = vadd.f32 1e-05, %v5883_v25  ;;  %v6071_v16 = vmul.f32 %v6010_v23, %v11679_v5  ;;  %v6104_v47 = vsel %vm5580_vm1, %v6088_v49, 1.0 }
 0xd65   : > { %v11882_v63 = vpop.f32.mrf.mxu1  ;;  %v6032_v42 = vmul.f32 %v8388_v33, %v11852_v34  ;;  %v5864_v8 = vadd.f32 %v5863_v35, %v5862_v57  ;;  %vm6038_vm13 = vweird.f32 %v8388_v33  ;;  %v6026_v7 = vmul.f32 %v11858_v6, %v6025_v27 }
 0xd66   : > { %8389 = vrsqrt.f32 %v11884_v22  ;;  %v6087_v29 = vsel %vm8910_vm11, %v6071_v16, 0.0  ;;  %vm6039_vm2 = vmor %vm6037_vm12, %vm6038_vm13  ;;  %vm6047_vm13 = vweird.f32 %v11884_v22 }
 0xd67   : > { %v6033_v15 = vmul.f32 %v8388_v33, %v6032_v42  ;;  %v5865_v14 = vrot.slane %v5864_v8, 2  ;;  %v6103_v5 = vsel %vm5580_vm1, %v6087_v29, 1.0  ;;  %v6030_v46 = vsel %vm6029_vm3, %v11858_v6, %v6026_v7 }
 0xd68   : > { %v6114_v38 = vpack.c.bf16 %v6104_v47, %v6103_v5  ;;  %v6073_v34 = vmul.f32 %v6030_v46, %v11770_v21 }
 0xd69   : > { %v6034_v59 = vmul.f32 0.5, %v6033_v15  ;;  %v5866_v31 = vadd.f32 %v5865_v14, %v5864_v8 }
 0xd6b   : > { %v6035_v26 = vsub.f32 1.5, %v6034_v59  ;;  %v5867_v19 = vrot.slane %v5866_v31, 1 }
 0xd6c   : > { %v8390_v54 = vpop.eup %8389 }
 0xd6d   : > { %v6036_v62 = vmul.f32 %v8388_v33, %v6035_v26  ;;  %v5868_v39 = vadd.f32 %v5867_v19, %v5866_v31  ;;  %v11896_v20 = vpop.f32.mrf.mxu1  ;;  %v6042_v43 = vmul.f32 %v8390_v54, %v11884_v22  ;;  %vm6048_vm6 = vweird.f32 %v8390_v54 }
 0xd6e   : > { %6282 = vrot.lane.b32.xlu2 %v11896_v20, %s8588_s29  ;;  %vm6049_vm12 = vmor %vm6047_vm13, %vm6048_vm6 }
 0xd6f   : > { %v5884_v28 = vmul.f32 %v5868_v39, %v12767_v41  ;;  %v6040_v2 = vsel %vm6039_vm2, %v8388_v33, %v6036_v62  ;;  %v6043_v60 = vmul.f32 %v8390_v54, %v6042_v43 }
 0xd70   : > { %7900 = vmatmul.msk.bf16.gmra.mxu1 %vm6144_vm14, %v6114_v38  ;;  %v6074_v48 = vmul.f32 %v6040_v2, %v11795_v32  ;;  %v6089_v32 = vsel %vm8910_vm11, %v6073_v34, 0.0 }
 0xd71   : > { %v5900_v11 = vadd.f32 1e-05, %v5884_v28  ;;  %v6044_v41 = vmul.f32 0.5, %v6043_v60  ;;  %v6105_v0 = vsel %vm5580_vm1, %v6089_v32, 1.0 }
 0xd72   : > { %v6090_v37 = vsel %vm8910_vm11, %v6074_v48, 0.0 }
 0xd73   : > { %8391 = vrsqrt.f32 %v5900_v11  ;;  %v6106_v6 = vsel %vm5580_vm1, %v6090_v37, 1.0  ;;  %v6045_v9 = vsub.f32 1.5, %v6044_v41  ;;  %vm6057_vm5 = vweird.f32 %v5900_v11 }
 0xd74   : > { %v6115_v13 = vpack.c.bf16 %v6106_v6, %v6105_v0 }
 0xd75   : > { %v11909_v24 = vpop.f32.mrf.mxu1  ;;  %v6046_v55 = vmul.f32 %v8390_v54, %v6045_v9 }
 0xd76   : > { %6251 = vrot.lane.b32.xlu2 %v11882_v63, %s8581_s23  ;;  %6309 = vrot.lane.b32.xlu1 %v11909_v24, %s8581_s23 }
 0xd77   : > { %6311 = vrot.lane.b32.xlu0 %v11909_v24, %s8588_s29  ;;  %v6050_v3 = vsel %vm6049_vm12, %v8390_v54, %v6046_v55 }
 0xd78   : > { %v6075_v36 = vmul.f32 %v6050_v3, %v11827_v50 }
 0xd79   : > { %v8392_v56 = vpop.eup %8391 }
 0xd7a   : > { %v6052_v21 = vmul.f32 %v8392_v56, %v5900_v11  ;;  %vm6058_vm10 = vweird.f32 %v8392_v56  ;;  %v6091_v58 = vsel %vm8910_vm11, %v6075_v36, 0.0 }
 0xd7b   : > { %vm6059_vm2 = vmor %vm6057_vm5, %vm6058_vm10  ;;  %v6107_v61 = vsel %vm5580_vm1, %v6091_v58, 1.0 }
 0xd7c   : > { %v6053_v4 = vmul.f32 %v8392_v56, %v6052_v21 }
 0xd7e   : > { %v6054_v1 = vmul.f32 0.5, %v6053_v4  ;;  %6280 = vrot.lane.b32.xlu1 %v11896_v20, %s8581_s23 }
 0xd7f   : > { %6253 = vrot.lane.b32.xlu0 %v11882_v63, %s8588_s29 }
 0xd80   : > { %v6055_v51 = vsub.f32 1.5, %v6054_v1  ;;  %7901 = vmatmul.msk.bf16.gmra.mxu1 %vm6144_vm14, %v6115_v13 }
 0xd82   : > { %v6056_v44 = vmul.f32 %v8392_v56, %v6055_v51 }
 0xd84   : > { %v6060_v17 = vsel %vm6059_vm2, %v8392_v56, %v6056_v44 }
 0xd85   : > { %v6076_v45 = vmul.f32 %v6060_v17, %v11862_v18  ;;  %v6942_v17 = vpack.c.bf16 %v11882_v63, %v11882_v63 }
 0xd87   : > { %v6092_v57 = vsel %vm8910_vm11, %v6076_v45, 0.0 }
 0xd88   : > { %v6108_v25 = vsel %vm5580_vm1, %v6092_v57, 1.0 }
 0xd89   : > { %v6116_v35 = vpack.c.bf16 %v6108_v25, %v6107_v61  ;;  %v6983_v61 = vsel %vm1727_vm15, %v6942_v17, 0 }
 0xd90   : > { %7902 = vmatmul.msk.bf16.gmra.mxu1 %vm6144_vm14, %v6116_v35 }
 0xdaf   : > { %v11938_v40 = vpop.f32.mrf.mxu1 }
 0xdb7   : > { %v11940_v33 = vpop.f32.mrf.mxu1 }
 0xdb8   : > { %6369 = vrot.lane.b32.xlu2 %v11940_v33, %s8588_s29  ;;  %v6223_v50 = vpop.permute.xlu2 %6222 }
 0xdc0   : > { %6338 = vrot.lane.b32.xlu2 %v11938_v40, %s8581_s23 }
 0xdc8   : > { %v6283_v52 = vpop.permute.xlu2 %6282 }
 0xdc9   : > { %7907 = vmatpush.xpose.msk.msrb.mxu0 %vm987_vm7, %v6283_v52 }
 0xdcd   : > { %v11947_v18 = vpop.f32.mrf.mxu1 }
 0xdce   : > { %6396 = vrot.lane.b32.xlu1 %v11947_v18, %s8581_s23  ;;  %6398 = vrot.lane.b32.xlu0 %v11947_v18, %s8588_s29 }
 0xdd0   : > { %v6225_v22 = vpop.permute.xlu1 %6224  ;;  %v6252_v59 = vpop.permute.xlu2 %6251 }
 0xdd1   : > { %7903 = vmatpush.xpose.msk.msra.mxu2 %vm987_vm7, %v6225_v22  ;;  %v6943_v22 = vpack.c.bf16 %v11896_v20, %v11896_v20  ;;  %v6941_v20 = vpack.c.bf16 %v11856_v10, %v11856_v10 }
 0xdd4   : > { %7904 = vmatmul.msk.f32.vlgmr.msra.gmra.mxu2 %vm987_vm7, %v6223_v50 }
 0xdd5   : > { %v11955_v42 = vpop.f32.mrf.mxu1 }
 0xdd6   : > { %6367 = vrot.lane.b32.xlu1 %v11940_v33, %s8581_s23  ;;  %6340 = vrot.lane.b32.xlu0 %v11938_v40, %s8588_s29 }
 0xddd   : > { %v11961_v8 = vpop.f32.mrf.mxu1 }
 0xdde   : > { %6456 = vrot.lane.b32.xlu2 %v11961_v8, %s8588_s29 }
 0xde5   : > { %v11965_v23 = vpop.f32.mrf.mxu1 }
 0xde6   : > { %6425 = vrot.lane.b32.xlu2 %v11955_v42, %s8581_s23  ;;  %6483 = vrot.lane.b32.xlu1 %v11965_v23, %s8581_s23 }
 0xde7   : > { %6485 = vrot.lane.b32.xlu0 %v11965_v23, %s8588_s29 }
 0xde8   : > { %v6310_v16 = vpop.permute.xlu1 %6309 }
 0xde9   : > { %v6312_v53 = vpop.permute.xlu0 %6311 }
 0xdea   : > { %7909 = vmatpush.xpose.msk.msrb.mxu2 %vm987_vm7, %v6312_v53  ;;  %v6946_v53 = vpack.c.bf16 %v11940_v33, %v11940_v33  ;;  %v6944_v33 = vpack.c.bf16 %v11909_v24, %v11909_v24 }
 0xdec   : > { %v7021_v10 = vsel %vm1727_vm15, %v6944_v33, 0 }
 0xded   : > { %v11974_v15 = vpop.f32.mrf.mxu1  ;;  %7910 = vmatmul.msk.f32.vlgmr.msrb.gmra.mxu2 %vm987_vm7, %v6310_v16 }
 0xdee   : > { %6454 = vrot.lane.b32.xlu1 %v11961_v8, %s8581_s23 }
 0xdef   : > { %6427 = vrot.lane.b32.xlu0 %v11955_v42, %s8588_s29 }
 0xdf0   : > { %v6281_v14 = vpop.permute.xlu1 %6280 }
 0xdf1   : > { %v6254_v49 = vpop.permute.xlu0 %6253  ;;  %7908 = vmatmul.msk.f32.vlgmr.msrb.gmra.mxu0 %vm987_vm7, %v6281_v14 }
 0xdf2   : > { %7905 = vmatpush.xpose.msk.msrb.mxu3 %vm987_vm7, %v6254_v49  ;;  %v7002_v49 = vsel %vm1727_vm15, %v6943_v22, 0 }
 0xdf5   : > { %v11983_v31 = vpop.f32.mrf.mxu1  ;;  %7906 = vmatmul.msk.f32.vlgmr.msrb.gmra.mxu3 %vm987_vm7, %v6252_v59  ;;  %v6945_v59 = vpack.c.bf16 %v11938_v40, %v11938_v40  ;;  %v6964_v40 = vsel %vm1727_vm15, %v6941_v20, 0 }
 0xdf6   : > { %6543 = vrot.lane.b32.xlu2 %v11983_v31, %s8588_s29 }
 0xdfd   : > { %v11988_v29 = vpop.f32.mrf.mxu1 }
 0xdfe   : > { %6512 = vrot.lane.b32.xlu2 %v11974_v15, %s8581_s23  ;;  %6570 = vrot.lane.b32.xlu1 %v11988_v29, %s8581_s23 }
 0xdff   : > { %6572 = vrot.lane.b32.xlu0 %v11988_v29, %s8588_s29 }
 0xe05   : > { %v11996_v47 = vpop.f32.mrf.mxu1 }
 0xe06   : > { %6541 = vrot.lane.b32.xlu1 %v11983_v31, %s8581_s23 }
 0xe07   : > { %6514 = vrot.lane.b32.xlu0 %v11974_v15, %s8588_s29 }
 0xe0d   : > { %v12002_v27 = vpop.f32.mrf.mxu1 }
 0xe0e   : > { %6630 = vrot.lane.b32.xlu2 %v12002_v27, %s8588_s29 }
 0xe12   : > { %v6370_v26 = vpop.permute.xlu2 %6369 }
 0xe13   : > { %7913 = vmatpush.xpose.msk.msra.mxu0 %vm987_vm7, %v6370_v26  ;;  %v7059_v26 = vsel %vm1727_vm15, %v6946_v53, 0 }
 0xe15   : > { %v12007_v19 = vpop.f32.mrf.mxu1 }
 0xe16   : > { %6599 = vrot.lane.b32.xlu2 %v11996_v47, %s8581_s23  ;;  %6657 = vrot.lane.b32.xlu1 %v12007_v19, %s8581_s23 }
 0xe17   : > { %6659 = vrot.lane.b32.xlu0 %v12007_v19, %s8588_s29 }
 0xe1a   : > { %v6339_v54 = vpop.permute.xlu2 %6338 }
 0xe1e   : > { %6628 = vrot.lane.b32.xlu1 %v12002_v27, %s8581_s23 }
 0xe1f   : > { %6601 = vrot.lane.b32.xlu0 %v11996_v47, %s8588_s29 }
 0xe38   : > { %v6457_v5 = vpop.permute.xlu2 %6456 }
 0xe39   : > { %7919 = vmatpush.xpose.msk.msrb.mxu0 %vm987_vm7, %v6457_v5 }
 0xe40   : > { %v6397_v62 = vpop.permute.xlu1 %6396  ;;  %v6399_v39 = vpop.permute.xlu0 %6398 }
 0xe41   : > { %7915 = vmatpush.xpose.msk.msra.mxu2 %vm987_vm7, %v6399_v39  ;;  %v6426_v43 = vpop.permute.xlu2 %6425 }
 0xe44   : > { %7916 = vmatmul.msk.f32.vlgmr.msra.gmra.mxu2 %vm987_vm7, %v6397_v62  ;;  %v7040_v62 = vsel %vm1727_vm15, %v6945_v59, 0 }
 0xe48   : > { %v6368_v38 = vpop.permute.xlu1 %6367  ;;  %v6341_v7 = vpop.permute.xlu0 %6340 }
 0xe49   : > { %7911 = vmatpush.xpose.msk.msra.mxu3 %vm987_vm7, %v6341_v7  ;;  %7914 = vmatmul.msk.f32.vlgmr.msra.gmra.mxu0 %vm987_vm7, %v6368_v38 }
 0xe4c   : > { %7912 = vmatmul.msk.f32.vlgmr.msra.gmra.mxu3 %vm987_vm7, %v6339_v54 }
 0xe50   : > { %v6544_v28 = vpop.permute.xlu2 %6543 }
 0xe51   : > { %7925 = vmatpush.xpose.msk.msra.mxu0 %vm987_vm7, %v6544_v28 }
 0xe57   : > { %v6247_v2 = vpop.f32.mrf.mxu2 }
 0xe58   : > { %vm6685_vm11 = vcmp.gt.f32.partialorder %v6247_v2, 0.0  ;;  %v6701_v11 = vmul.f32 0.2, %v6247_v2  ;;  %v6484_v46 = vpop.permute.xlu1 %6483  ;;  %v6513_v37 = vpop.permute.xlu2 %6512 }
 0xe59   : > { %v6486_v48 = vpop.permute.xlu0 %6485 }
 0xe5a   : > { %v6717_v60 = vsel %vm6685_vm11, %v6247_v2, %v6701_v11  ;;  %7921 = vmatpush.xpose.msk.msrb.mxu2 %vm987_vm7, %v6486_v48 }
 0xe5b   : > { %v12028_v34 = vsel %vm8750_vm4, %v6717_v60, -1e+30 }
 0xe5c   : > { %v6749_v41 = vsel %vm1515_vm0, %v12028_v34, -inf }
 0xe5d   : > { %6750 = vmax.xlane.f32.xlu0 %v6749_v41  ;;  %7922 = vmatmul.msk.f32.vlgmr.msrb.gmra.mxu2 %vm987_vm7, %v6484_v46 }
 0xe60   : > { %v6455_v56 = vpop.permute.xlu1 %6454 }
 0xe61   : > { %v6428_v32 = vpop.permute.xlu0 %6427  ;;  %7920 = vmatmul.msk.f32.vlgmr.msrb.gmra.mxu0 %vm987_vm7, %v6455_v56 }
 0xe62   : > { %7917 = vmatpush.xpose.msk.msrb.mxu3 %vm987_vm7, %v6428_v32 }
 0xe65   : > { %7918 = vmatmul.msk.f32.vlgmr.msrb.gmra.mxu3 %vm987_vm7, %v6426_v43 }
 0xe68   : > { %v6631_v21 = vpop.permute.xlu2 %6630 }
 0xe69   : > { %7931 = vmatpush.xpose.msk.msrb.mxu0 %vm987_vm7, %v6631_v21 }
 0xe6e   : > { %v6305_v6 = vpop.f32.mrf.mxu0 }
 0xe6f   : > { %vm6687_vm14 = vcmp.gt.f32.partialorder %v6305_v6, 0.0  ;;  %v6703_v9 = vmul.f32 0.2, %v6305_v6 }
 0xe70   : > { %v6571_v4 = vpop.permute.xlu1 %6570  ;;  %v6334_v1 = vpop.f32.mrf.mxu2 }
 0xe71   : > { %v6573_v0 = vpop.permute.xlu0 %6572  ;;  %v6719_v13 = vsel %vm6687_vm14, %v6305_v6, %v6703_v9  ;;  %vm6688_vm9 = vcmp.gt.f32.partialorder %v6334_v1, 0.0  ;;  %v6704_v55 = vmul.f32 0.2, %v6334_v1  ;;  %v6600_v39 = vpop.permute.xlu2 %6599 }
 0xe72   : > { %7927 = vmatpush.xpose.msk.msra.mxu2 %vm987_vm7, %v6573_v0  ;;  %v12041_v51 = vsel %vm8750_vm4, %v6719_v13, -1e+30 }
 0xe73   : > { %v6755_v44 = vsel %vm1515_vm0, %v12041_v51, -inf  ;;  %v6720_v3 = vsel %vm6688_vm9, %v6334_v1, %v6704_v55 }
 0xe74   : > { %6756 = vmax.xlane.f32.xlu1 %v6755_v44  ;;  %v12050_v45 = vsel %vm8750_vm4, %v6720_v3, -1e+30 }
 0xe75   : > { %7928 = vmatmul.msk.f32.vlgmr.msra.gmra.mxu2 %vm987_vm7, %v6571_v4  ;;  %v6758_v36 = vsel %vm1515_vm0, %v12050_v45, -inf }
 0xe76   : > { %6759 = vmax.xlane.f32.xlu2 %v6758_v36 }
 0xe78   : > { %v6542_v57 = vpop.permute.xlu1 %6541  ;;  %v6276_v58 = vpop.f32.mrf.mxu3 }
 0xe79   : > { %v6515_v25 = vpop.permute.xlu0 %6514  ;;  %7926 = vmatmul.msk.f32.vlgmr.msra.gmra.mxu0 %vm987_vm7, %v6542_v57  ;;  %vm6686_vm3 = vcmp.gt.f32.partialorder %v6276_v58, 0.0  ;;  %v6702_v35 = vmul.f32 0.2, %v6276_v58 }
 0xe7a   : > { %7923 = vmatpush.xpose.msk.msra.mxu3 %vm987_vm7, %v6515_v25  ;;  %6992 = vmatpush.bf16.msra.mxu0 %v6983_v61 }
 0xe7b   : > { %v6718_v63 = vsel %vm6686_vm3, %v6276_v58, %v6702_v35 }
 0xe7c   : > { %v12059_v50 = vsel %vm8750_vm4, %v6718_v63, -1e+30 }
 0xe7d   : > { %7924 = vmatmul.msk.f32.vlgmr.msra.gmra.mxu3 %vm987_vm7, %v6513_v37  ;;  %v6752_v52 = vsel %vm1515_vm0, %v12059_v50, -inf }
 0xe7e   : > { %6753 = vmax.xlane.f32.xlu0 %v6752_v52 }
 0xe88   : > { %v6658_v16 = vpop.permute.xlu1 %6657 }
 0xe89   : > { %v6660_v14 = vpop.permute.xlu0 %6659 }
 0xe8a   : > { %7933 = vmatpush.xpose.msk.msrb.mxu2 %vm987_vm7, %v6660_v14 }
 0xe8d   : > { %7934 = vmatmul.msk.f32.vlgmr.msrb.gmra.mxu2 %vm987_vm7, %v6658_v16 }
 0xe8e   : > { %7011 = vmatpush.bf16.msra.mxu2 %v7002_v49 }
 0xe90   : > { %v6629_v54 = vpop.permute.xlu1 %6628 }
 0xe91   : > { %v6602_v5 = vpop.permute.xlu0 %6601  ;;  %7932 = vmatmul.msk.f32.vlgmr.msrb.gmra.mxu0 %vm987_vm7, %v6629_v54 }
 0xe92   : > { %7068 = vmatpush.bf16.msrb.mxu2 %v7059_v26  ;;  %7929 = vmatpush.xpose.msk.msrb.mxu3 %vm987_vm7, %v6602_v5 }
 0xe93   : > { %7049 = vmatpush.bf16.msrb.mxu0 %v7040_v62 }
 0xe95   : > { %7930 = vmatmul.msk.f32.vlgmr.msrb.gmra.mxu3 %vm987_vm7, %v6600_v39 }
 0xe96   : > { %6973 = vmatpush.bf16.msra.mxu3 %v6964_v40 }
 0xe9a   : > { %7030 = vmatpush.bf16.msrb.mxu3 %v7021_v10 }
 0xec6   : > { %v6392_v38 = vpop.f32.mrf.mxu0 }
 0xec7   : > { %vm6690_vm6 = vcmp.gt.f32.partialorder %v6392_v38, 0.0  ;;  %v6706_v24 = vmul.f32 0.2, %v6392_v38  ;;  %v6421_v7 = vpop.f32.mrf.mxu2 }
 0xec8   : > { %vm6691_vm10 = vcmp.gt.f32.partialorder %v6421_v7, 0.0  ;;  %v6707_v43 = vmul.f32 0.2, %v6421_v7 }
 0xec9   : > { %v6722_v28 = vsel %vm6690_vm6, %v6392_v38, %v6706_v24 }
 0xeca   : > { %v6723_v2 = vsel %vm6691_vm10, %v6421_v7, %v6707_v43  ;;  %v12086_v11 = vsel %vm8750_vm4, %v6722_v28, -1e+30 }
 0xecb   : > { %v6764_v46 = vsel %vm1515_vm0, %v12086_v11, -inf  ;;  %v12092_v60 = vsel %vm8750_vm4, %v6723_v2, -1e+30 }
 0xecc   : > { %6765 = vmax.xlane.f32.xlu1 %v6764_v46  ;;  %v6767_v48 = vsel %vm1515_vm0, %v12092_v60, -inf }
 0xecd   : > { %6768 = vmax.xlane.f32.xlu2 %v6767_v48 }
 0xecf   : > { %v6363_v41 = vpop.f32.mrf.mxu3 }
 0xed0   : > { %v6751_v37 = vpop.xlane.xlu0 %6750  ;;  %vm6689_vm7 = vcmp.gt.f32.partialorder %v6363_v41, 0.0  ;;  %v6705_v56 = vmul.f32 0.2, %v6363_v41 }
 0xed1   : > { %v6797_v32 = vsub.f32 %v12028_v34, %v6751_v37 }
 0xed2   : > { %v6721_v21 = vsel %vm6689_vm7, %v6363_v41, %v6705_v56 }
 0xed3   : > { %v6813_v6 = vmul.f32 1.442695, %v6797_v32  ;;  %v12099_v9 = vsel %vm8750_vm4, %v6721_v21, -1e+30 }
 0xed4   : > { %v6761_v4 = vsel %vm1515_vm0, %v12099_v9, -inf }
 0xed5   : > { %8393 = vpow2.f32 %v6813_v6  ;;  %6762 = vmax.xlane.f32.xlu0 %v6761_v4 }
 0xedb   : > { %v12103_v0 = vpop.eup %8393 }
 0xedc   : > { %v6845_v13 = vsel %vm1515_vm0, %v12103_v0, 0.0 }
 0xedd   : > { %6846 = vadd.xlane.f32.xlu0 %v6845_v13 }
 0xede   : > { %v6479_v1 = vpop.f32.mrf.mxu0 }
 0xedf   : > { %vm6693_vm13 = vcmp.gt.f32.partialorder %v6479_v1, 0.0  ;;  %v6709_v34 = vmul.f32 0.2, %v6479_v1 }
 0xee0   : > { %v6508_v55 = vpop.f32.mrf.mxu2 }
 0xee1   : > { %v6725_v44 = vsel %vm6693_vm13, %v6479_v1, %v6709_v34  ;;  %vm6694_vm12 = vcmp.gt.f32.partialorder %v6508_v55, 0.0  ;;  %v6710_v3 = vmul.f32 0.2, %v6508_v55 }
 0xee2   : > { %v12109_v17 = vsel %vm9114_vm8, %v6725_v44, -1e+30 }
 0xee3   : > { %v6726_v36 = vsel %vm6694_vm12, %v6508_v55, %v6710_v3  ;;  %v6773_v57 = vsel %vm1515_vm0, %v12109_v17, -inf }
 0xee4   : > { %6774 = vmax.xlane.f32.xlu1 %v6773_v57  ;;  %v12115_v58 = vsel %vm9114_vm8, %v6726_v36, -1e+30 }
 0xee5   : > { %v6776_v25 = vsel %vm1515_vm0, %v12115_v58, -inf }
 0xee6   : > { %6777 = vmax.xlane.f32.xlu2 %v6776_v25 }
 0xee7   : > { %v6757_v61 = vpop.xlane.xlu1 %6756 }
 0xee8   : > { %v6450_v35 = vpop.f32.mrf.mxu3  ;;  %v6799_v63 = vsub.f32 %v12041_v51, %v6757_v61 }
 0xee9   : > { %vm6692_vm5 = vcmp.gt.f32.partialorder %v6450_v35, 0.0  ;;  %v6708_v52 = vmul.f32 0.2, %v6450_v35  ;;  %v6760_v49 = vpop.xlane.xlu2 %6759 }
 0xeea   : > { %v6817_v22 = vmul.f32 1.442695, %v6799_v63  ;;  %v6800_v59 = vsub.f32 %v12050_v45, %v6760_v49 }
 0xeeb   : > { %v6724_v16 = vsel %vm6692_vm5, %v6450_v35, %v6708_v52 }
 0xeec   : > { %v12122_v53 = vsel %vm8750_vm4, %v6724_v16, -1e+30  ;;  %8395 = vpow2.f32 %v6817_v22  ;;  %v6819_v33 = vmul.f32 1.442695, %v6800_v59 }
 0xeed   : > { %v6770_v14 = vsel %vm1515_vm0, %v12122_v53, -inf }
 0xeee   : > { %6771 = vmax.xlane.f32.xlu1 %v6770_v14 }
 0xef1   : > { %v6754_v26 = vpop.xlane.xlu0 %6753 }
 0xef2   : > { %v12127_v20 = vpop.eup %8395  ;;  %v6798_v51 = vsub.f32 %v12059_v50, %v6754_v26 }
 0xef3   : > { %v6851_v54 = vsel %vm1515_vm0, %v12127_v20, 0.0 }
 0xef4   : > { %v6815_v12 = vmul.f32 1.442695, %v6798_v51 }
 0xef6   : > { %v6566_v5 = vpop.f32.mrf.mxu0  ;;  %8397 = vpow2.f32 %v6815_v12  ;;  %6852 = vadd.xlane.f32.xlu1 %v6851_v54 }
 0xef7   : > { %vm6696_vm4 = vcmp.gt.f32.partialorder %v6566_v5, 0.0  ;;  %v6712_v62 = vmul.f32 0.2, %v6566_v5  ;;  %8399 = vpow2.f32 %v6819_v33 }
 0xef8   : > { %v6595_v40 = vpop.f32.mrf.mxu2 }
 0xef9   : > { %v6728_v39 = vsel %vm6696_vm4, %v6566_v5, %v6712_v62  ;;  %vm6697_vm2 = vcmp.gt.f32.partialorder %v6595_v40, 0.0  ;;  %v6713_v45 = vmul.f32 0.2, %v6595_v40 }
 0xefa   : > { %v12134_v10 = vsel %vm9114_vm8, %v6728_v39, -1e+30 }
 0xefb   : > { %v6729_v50 = vsel %vm6697_vm2, %v6595_v40, %v6713_v45  ;;  %v6782_v38 = vsel %vm1515_vm0, %v12134_v10, -inf  ;;  %v6947_v40 = vpack.c.bf16 %v11947_v18, %v11947_v18 }
 0xefc   : > { %v12138_v24 = vpop.eup %8397  ;;  %6783 = vmax.xlane.f32.xlu2 %v6782_v38  ;;  %v12142_v7 = vsel %vm9114_vm8, %v6729_v50, -1e+30 }
 0xefd   : > { %v6785_v43 = vsel %vm1515_vm0, %v12142_v7, -inf  ;;  %v6848_v28 = vsel %vm1515_vm0, %v12138_v24, 0.0  ;;  %v12148_v2 = vpop.eup %8399 }
 0xefe   : > { %6786 = vmax.xlane.f32.xlu0 %v6785_v43  ;;  %6849 = vadd.xlane.f32.xlu1 %v6848_v28  ;;  %v6854_v41 = vsel %vm1515_vm0, %v12148_v2, 0.0 }
 0xf00   : > { %v6537_v46 = vpop.f32.mrf.mxu3 }
 0xf01   : > { %vm6695_vm11 = vcmp.gt.f32.partialorder %v6537_v46, 0.0  ;;  %v6711_v48 = vmul.f32 0.2, %v6537_v46 }
 0xf03   : > { %v6727_v37 = vsel %vm6695_vm11, %v6537_v46, %v6711_v48  ;;  %v7078_v48 = vsel %vm1727_vm15, %v6947_v40, 0 }
 0xf04   : > { %6855 = vadd.xlane.f32.xlu2 %v6854_v41  ;;  %v12154_v56 = vsel %vm9114_vm8, %v6727_v37, -1e+30 }
 0xf05   : > { %v6779_v32 = vsel %vm1515_vm0, %v12154_v56, -inf }
 0xf06   : > { %6780 = vmax.xlane.f32.xlu0 %v6779_v32 }
 0xf0e   : > { %v6653_v21 = vpop.f32.mrf.mxu0 }
 0xf0f   : > { %vm6699_vm14 = vcmp.gt.f32.partialorder %v6653_v21, 0.0  ;;  %v6715_v6 = vmul.f32 0.2, %v6653_v21 }
 0xf10   : > { %v6682_v4 = vpop.f32.mrf.mxu2 }
 0xf11   : > { %v6731_v13 = vsel %vm6699_vm14, %v6653_v21, %v6715_v6  ;;  %vm6700_vm9 = vcmp.gt.f32.partialorder %v6682_v4, 0.0  ;;  %v6716_v1 = vmul.f32 0.2, %v6682_v4 }
 0xf12   : > { %v12160_v34 = vsel %vm9114_vm8, %v6731_v13, -1e+30 }
 0xf13   : > { %v6732_v55 = vsel %vm6700_vm9, %v6682_v4, %v6716_v1  ;;  %v6791_v44 = vsel %vm1515_vm0, %v12160_v34, -inf }
 0xf14   : > { %6792 = vmax.xlane.f32.xlu2 %v6791_v44  ;;  %v12166_v3 = vsel %vm9114_vm8, %v6732_v55, -1e+30  ;;  %v6949_v44 = vpack.c.bf16 %v11961_v8, %v11961_v8  ;;  %v6948_v8 = vpack.c.bf16 %v11955_v42, %v11955_v42 }
 0xf15   : > { %v6794_v36 = vsel %vm1515_vm0, %v12166_v3, -inf }
 0xf16   : > { %6795 = vmax.xlane.f32.xlu0 %v6794_v36  ;;  %v7097_v42 = vsel %vm1727_vm15, %v6948_v8, 0 }
 0xf18   : > { %v6624_v57 = vpop.f32.mrf.mxu3 }
 0xf19   : > { %vm6698_vm3 = vcmp.gt.f32.partialorder %v6624_v57, 0.0  ;;  %v6714_v25 = vmul.f32 0.2, %v6624_v57 }
 0xf1b   : > { %v6730_v61 = vsel %vm6698_vm3, %v6624_v57, %v6714_v25 }
 0xf1c   : > { %v12172_v35 = vsel %vm9114_vm8, %v6730_v61, -1e+30  ;;  %vm7265_vm8 = vcmask 1047556  }
 0xf1d   : > { %v6788_v63 = vsel %vm1515_vm0, %v12172_v35, -inf }
 0xf1e   : > { %6789 = vmax.xlane.f32.xlu0 %v6788_v63 }
 0xf3f   : > { %v6766_v52 = vpop.xlane.xlu1 %6765 }
 0xf40   : > { %v6802_v22 = vsub.f32 %v12086_v11, %v6766_v52  ;;  %v6769_v16 = vpop.xlane.xlu2 %6768 }
 0xf41   : > { %v6803_v14 = vsub.f32 %v12092_v60, %v6769_v16  ;;  %v7116_v16 = vsel %vm1727_vm15, %v6949_v44, 0 }
 0xf42   : > { %v6823_v49 = vmul.f32 1.442695, %v6802_v22 }
 0xf43   : > { %v6825_v59 = vmul.f32 1.442695, %v6803_v14 }
 0xf44   : > { %8401 = vpow2.f32 %v6823_v49 }
 0xf45   : > { %8403 = vpow2.f32 %v6825_v59 }
 0xf48   : > { %v6763_v26 = vpop.xlane.xlu0 %6762 }
 0xf49   : > { %v6801_v51 = vsub.f32 %v12099_v9, %v6763_v26 }
 0xf4a   : > { %v12179_v30 = vpop.eup %8401 }
 0xf4b   : > { %v12181_v54 = vpop.eup %8403  ;;  %v6821_v33 = vmul.f32 1.442695, %v6801_v51  ;;  %v6860_v12 = vsel %vm1515_vm0, %v12179_v30, 0.0 }
 0xf4c   : > { %6861 = vadd.xlane.f32.xlu1 %v6860_v12  ;;  %v6863_v11 = vsel %vm1515_vm0, %v12181_v54, 0.0 }
 0xf4d   : > { %8405 = vpow2.f32 %v6821_v33  ;;  %6864 = vadd.xlane.f32.xlu2 %v6863_v11 }
 0xf50   : > { %v6847_v60 = vpop.xlane.xlu0 %6846 }
 0xf51   : > { %8407 = vrcp.f32 %v6847_v60 }
 0xf53   : > { %v12187_v5 = vpop.eup %8405 }
 0xf54   : > { %v6857_v9 = vsel %vm1515_vm0, %v12187_v5, 0.0 }
 0xf55   : > { %6858 = vadd.xlane.f32.xlu1 %v6857_v9 }
 0xf57   : > { %v8408_v62 = vpop.eup %8407  ;;  %v6775_v39 = vpop.xlane.xlu1 %6774 }
 0xf58   : > { %v6909_v45 = vmul.f32 %v8408_v62, %v12103_v0  ;;  %v6805_v50 = vsub.f32 %v12109_v17, %v6775_v39 }
 0xf59   : > { %v6778_v38 = vpop.xlane.xlu2 %6777 }
 0xf5a   : > { %v6925_v43 = vpack.c.bf16 %v6909_v45, %v6909_v45  ;;  %v6829_v28 = vmul.f32 1.442695, %v6805_v50  ;;  %v6806_v46 = vsub.f32 %v12115_v58, %v6778_v38 }
 0xf5c   : > { %7935 = vmatmul.msk.bf16.vlgmr.msra.gmra.mxu3 %vm1515_vm0, %v6925_v43  ;;  %8409 = vpow2.f32 %v6829_v28  ;;  %v6831_v41 = vmul.f32 1.442695, %v6806_v46 }
 0xf5d   : > { %7087 = vmatpush.bf16.msra.mxu3 %v7078_v48 }
 0xf5e   : > { %8411 = vpow2.f32 %v6831_v41 }
 0xf61   : > { %v6772_v37 = vpop.xlane.xlu1 %6771 }
 0xf62   : > { %v12198_v18 = vpop.eup %8409  ;;  %v6804_v0 = vsub.f32 %v12122_v53, %v6772_v37 }
 0xf63   : > { %v6869_v17 = vsel %vm1515_vm0, %v12198_v18, 0.0 }
 0xf64   : > { %v12203_v32 = vpop.eup %8411  ;;  %v6827_v21 = vmul.f32 1.442695, %v6804_v0  ;;  %6870 = vadd.xlane.f32.xlu2 %v6869_v17 }
 0xf65   : > { %v6872_v58 = vsel %vm1515_vm0, %v12203_v32, 0.0 }
 0xf66   : > { %8413 = vpow2.f32 %v6827_v21  ;;  %6873 = vadd.xlane.f32.xlu0 %v6872_v58 }
 0xf69   : > { %v6853_v6 = vpop.xlane.xlu1 %6852 }
 0xf6a   : > { %8415 = vrcp.f32 %v6853_v6 }
 0xf6c   : > { %v12207_v4 = vpop.eup %8413 }
 0xf6d   : > { %v6866_v13 = vsel %vm1515_vm0, %v12207_v4, 0.0 }
 0xf6e   : > { %6867 = vadd.xlane.f32.xlu1 %v6866_v13  ;;  %v6952_v13 = vpack.c.bf16 %v11983_v31, %v11983_v31 }
 0xf6f   : > { %v6784_v53 = vpop.xlane.xlu2 %6783 }
 0xf70   : > { %v8416_v1 = vpop.eup %8415  ;;  %v6808_v55 = vsub.f32 %v12134_v10, %v6784_v53 }
 0xf71   : > { %v6787_v36 = vpop.xlane.xlu0 %6786  ;;  %v6911_v57 = vmul.f32 %v8416_v1, %v12127_v20  ;;  %v6850_v25 = vpop.xlane.xlu1 %6849  ;;  %v6953_v1 = vpack.c.bf16 %v11988_v29, %v11988_v29  ;;  %v6951_v29 = vpack.c.bf16 %v11974_v15, %v11974_v15 }
 0xf72   : > { %v6835_v61 = vmul.f32 1.442695, %v6808_v55  ;;  %v6809_v63 = vsub.f32 %v12142_v7, %v6787_v36  ;;  %8417 = vrcp.f32 %v6850_v25  ;;  %v7173_v25 = vsel %vm1727_vm15, %v6952_v13, 0 }
 0xf73   : > { %v6927_v52 = vpack.c.bf16 %v6911_v57, %v6911_v57  ;;  %v7192_v31 = vsel %vm1727_vm15, %v6953_v1, 0 }
 0xf74   : > { %8419 = vpow2.f32 %v6835_v61  ;;  %v6837_v22 = vmul.f32 1.442695, %v6809_v63  ;;  %v7154_v63 = vsel %vm1727_vm15, %v6951_v29, 0 }
 0xf75   : > { %7937 = vmatmul.msk.bf16.vlgmr.msra.gmra.mxu2 %vm1515_vm0, %v6927_v52 }
 0xf76   : > { %8421 = vpow2.f32 %v6837_v22  ;;  %7125 = vmatpush.bf16.msra.mxu2 %v7116_v16 }
 0xf77   : > { %v6856_v10 = vpop.xlane.xlu2 %6855 }
 0xf78   : > { %v8418_v14 = vpop.eup %8417  ;;  %8423 = vrcp.f32 %v6856_v10 }
 0xf79   : > { %v6781_v20 = vpop.xlane.xlu0 %6780  ;;  %v6910_v49 = vmul.f32 %v8418_v14, %v12138_v24  ;;  %v6955_v14 = vpack.c.bf16 %v12002_v27, %v12002_v27 }
 0xf7a   : > { %v12221_v7 = vpop.eup %8419  ;;  %v6807_v59 = vsub.f32 %v12154_v56, %v6781_v20  ;;  %v6950_v56 = vpack.c.bf16 %v11965_v23, %v11965_v23 }
 0xf7b   : > { %v6878_v26 = vsel %vm1515_vm0, %v12221_v7, 0.0  ;;  %v6926_v51 = vpack.c.bf16 %v6910_v49, %v6910_v49 }
 0xf7c   : > { %v12226_v33 = vpop.eup %8421  ;;  %v6833_v12 = vmul.f32 1.442695, %v6807_v59  ;;  %6879 = vadd.xlane.f32.xlu2 %v6878_v26  ;;  %v7135_v62 = vsel %vm1727_vm15, %v6950_v56, 0  ;;  %v12289_v56 = vld [vmem:[%s12494_s5] ss:$0 sm:$0xff] }
 0xf7d   : > { %v6881_v11 = vsel %vm1515_vm0, %v12226_v33, 0.0  ;;  %7936 = vmatmul.msk.bf16.vlgmr.msra.gmra.mxu0 %vm1515_vm0, %v6926_v51  ;;  %v7230_v51 = vsel %vm1727_vm15, %v6955_v14, 0 }
 0xf7e   : > { %v8424_v24 = vpop.eup %8423  ;;  %8425 = vpow2.f32 %v6833_v12  ;;  %6882 = vadd.xlane.f32.xlu0 %v6881_v11  ;;  %7106 = vmatpush.bf16.msra.mxu0 %v7097_v42 }
 0xf7f   : > { %v6912_v60 = vmul.f32 %v8424_v24, %v12148_v2 }
 0xf81   : > { %v6928_v9 = vpack.c.bf16 %v6912_v60, %v6912_v60 }
 0xf83   : > { %7938 = vmatmul.msk.bf16.vlgmr.msrb.gmra.mxu3 %vm1515_vm0, %v6928_v9 }
 0xf84   : > { %v12237_v40 = vpop.eup %8425  ;;  %7144 = vmatpush.bf16.msrb.mxu3 %v7135_v62 }
 0xf85   : > { %v6875_v39 = vsel %vm1515_vm0, %v12237_v40, 0.0 }
 0xf86   : > { %6876 = vadd.xlane.f32.xlu1 %v6875_v39 }
 0xf87   : > { %v6793_v45 = vpop.xlane.xlu2 %6792 }
 0xf88   : > { %v6811_v50 = vsub.f32 %v12160_v34, %v6793_v45 }
 0xf89   : > { %v6796_v38 = vpop.xlane.xlu0 %6795 }
 0xf8a   : > { %v6841_v43 = vmul.f32 1.442695, %v6811_v50  ;;  %v6812_v23 = vsub.f32 %v12166_v3, %v6796_v38 }
 0xf8c   : > { %8427 = vpow2.f32 %v6841_v43  ;;  %v6843_v2 = vmul.f32 1.442695, %v6812_v23 }
 0xf8e   : > { %8429 = vpow2.f32 %v6843_v2 }
 0xf91   : > { %v6790_v28 = vpop.xlane.xlu0 %6789 }
 0xf92   : > { %v12243_v46 = vpop.eup %8427  ;;  %v6810_v48 = vsub.f32 %v12172_v35, %v6790_v28 }
 0xf93   : > { %v6887_v41 = vsel %vm1515_vm0, %v12243_v46, 0.0 }
 0xf94   : > { %v12248_v37 = vpop.eup %8429  ;;  %v6839_v0 = vmul.f32 1.442695, %v6810_v48  ;;  %6888 = vadd.xlane.f32.xlu2 %v6887_v41 }
 0xf95   : > { %v6890_v34 = vsel %vm1515_vm0, %v12248_v37, 0.0 }
 0xf96   : > { %8431 = vpow2.f32 %v6839_v0  ;;  %6891 = vadd.xlane.f32.xlu0 %v6890_v34  ;;  %v8589_v0 = vmov 1983009808  }
 0xf97   : > { %v7270_v34 = vunpack.c.l.s4 %v8589_v0 }
 0xf9c   : > { %v12252_v3 = vpop.eup %8431 }
 0xf9d   : > { %v6884_v17 = vsel %vm1515_vm0, %v12252_v3, 0.0 }
 0xf9e   : > { %6885 = vadd.xlane.f32.xlu1 %v6884_v17 }
 0xfbf   : > { %v6862_v21 = vpop.xlane.xlu1 %6861 }
 0xfc0   : > { %8433 = vrcp.f32 %v6862_v21  ;;  %v6865_v35 = vpop.xlane.xlu2 %6864 }
 0xfc1   : > { %8435 = vrcp.f32 %v6865_v35 }
 0xfc6   : > { %v8434_v58 = vpop.eup %8433 }
 0xfc7   : > { %v8436_v6 = vpop.eup %8435  ;;  %v6914_v53 = vmul.f32 %v8434_v58, %v12179_v30  ;;  %v12301_v58 = vunpack.c.0.s8 %v7270_v34 }
 0xfc8   : > { %v6915_v55 = vmul.f32 %v8436_v6, %v12181_v54  ;;  %v6859_v44 = vpop.xlane.xlu1 %6858 }
 0xfc9   : > { %v6930_v36 = vpack.c.bf16 %v6914_v53, %v6914_v53  ;;  %8437 = vrcp.f32 %v6859_v44 }
 0xfca   : > { %v6931_v57 = vpack.c.bf16 %v6915_v55, %v6915_v55 }
 0xfcb   : > { %7940 = vmatmul.msk.bf16.vlgmr.msrb.gmra.mxu2 %vm1515_vm0, %v6930_v36 }
 0xfcc   : > { %7182 = vmatpush.bf16.msrb.mxu2 %v7173_v25  ;;  %7941 = vmatmul.msk.bf16.vlgmr.msra.gmra.mxu3 %vm1515_vm0, %v6931_v57 }
 0xfcd   : > { %7201 = vmatpush.bf16.msra.mxu3 %v7192_v31 }
 0xfcf   : > { %v8438_v30 = vpop.eup %8437 }
 0xfd0   : > { %v6913_v54 = vmul.f32 %v8438_v30, %v12187_v5  ;;  %v6956_v5 = vpack.c.bf16 %v12007_v19, %v12007_v19  ;;  %v6954_v19 = vpack.c.bf16 %v11996_v47, %v11996_v47 }
 0xfd2   : > { %v6929_v61 = vpack.c.bf16 %v6913_v54, %v6913_v54  ;;  %v7249_v27 = vsel %vm1727_vm15, %v6956_v5, 0  ;;  %v7211_v42 = vsel %vm1727_vm15, %v6954_v19, 0  ;;  %vm7541_vm15 = vcmask 785408  }
 0xfd4   : > { %7939 = vmatmul.msk.bf16.vlgmr.msrb.gmra.mxu0 %vm1515_vm0, %v6929_v61 }
 0xfd5   : > { %7163 = vmatpush.bf16.msrb.mxu0 %v7154_v63 }
 0xfd7   : > { %v6871_v52 = vpop.xlane.xlu2 %6870 }
 0xfd8   : > { %8439 = vrcp.f32 %v6871_v52 }
 0xfd9   : > { %v6874_v22 = vpop.xlane.xlu0 %6873 }
 0xfda   : > { %8441 = vrcp.f32 %v6874_v22 }
 0xfde   : > { %v8440_v16 = vpop.eup %8439 }
 0xfdf   : > { %v6975_v10 = vpop.f32.mrf.mxu3  ;;  %v6917_v8 = vmul.f32 %v8440_v16, %v12198_v18 }
 0xfe0   : > { %v8442_v15 = vpop.eup %8441  ;;  %v6976_v9 = vadd.f32 %v12289_v56, %v6975_v10 }
 0xfe1   : > { %v6933_v20 = vpack.c.bf16 %v6917_v8, %v6917_v8  ;;  %v6918_v49 = vmul.f32 %v8442_v15, %v12203_v32  ;;  %v6868_v59 = vpop.xlane.xlu1 %6867 }
 0xfe2   : > { %8443 = vrcp.f32 %v6868_v59  ;;  %v7267_v45 = vrot.slane %v6976_v9, 4 }
 0xfe3   : > { %v6934_v26 = vpack.c.bf16 %v6918_v49, %v6918_v49  ;;  %7943 = vmatmul.msk.bf16.vlgmr.msra.gmra.mxu2 %vm1515_vm0, %v6933_v20 }
 0xfe4   : > { %7239 = vmatpush.bf16.msra.mxu2 %v7230_v51 }
 0xfe5   : > { %7944 = vmatmul.msk.bf16.vlgmr.msrb.gmra.mxu3 %vm1515_vm0, %v6934_v26 }
 0xfe6   : > { %7258 = vmatpush.bf16.msrb.mxu3 %v7249_v27 }
 0xfe7   : > { %v6977_v18 = vpop.f32.mrf.mxu3 }
 0xfe8   : > { %v8444_v12 = vpop.eup %8443 }
 0xfe9   : > { %v6916_v32 = vmul.f32 %v8444_v12, %v12207_v4 }
 0xfeb   : > { %v6932_v11 = vpack.c.bf16 %v6916_v32, %v6916_v32 }
 0xfed   : > { %7942 = vmatmul.msk.bf16.vlgmr.msra.gmra.mxu0 %vm1515_vm0, %v6932_v11 }
 0xfee   : > { %7220 = vmatpush.bf16.msra.mxu0 %v7211_v42 }
 0xfef   : > { %v6880_v24 = vpop.xlane.xlu2 %6879 }
 0xff0   : > { %8445 = vrcp.f32 %v6880_v24 }
 0xff1   : > { %v6883_v60 = vpop.xlane.xlu0 %6882 }
 0xff2   : > { %8447 = vrcp.f32 %v6883_v60 }
 0xff6   : > { %v8446_v47 = vpop.eup %8445 }
 0xff7   : > { %v6920_v4 = vmul.f32 %v8446_v47, %v12221_v7 }
 0xff8   : > { %v8448_v62 = vpop.eup %8447  ;;  %v7013_v39 = vpop.f32.mrf.mxu2 }
 0xff9   : > { %v6936_v50 = vpack.c.bf16 %v6920_v4, %v6920_v4  ;;  %v6921_v38 = vmul.f32 %v8448_v62, %v12226_v33  ;;  %v6877_v43 = vpop.xlane.xlu1 %6876  ;;  %v7014_v23 = vadd.f32 %v12289_v56, %v7013_v39 }
 0xffa   : > { %8449 = vrcp.f32 %v6877_v43  ;;  %v6994_v2 = vpop.f32.mrf.mxu0 }
 0xffb   : > { %v6937_v28 = vpack.c.bf16 %v6921_v38, %v6921_v38  ;;  %7946 = vmatmul.msk.bf16.vlgmr.msrb.gmra.mxu2 %vm1515_vm0, %v6936_v50  ;;  %v7264_v48 = vrot.slane %v7014_v23, 4  ;;  %v7268_v41 = vsel %vm7265_vm8, %v7014_v23, %v7267_v45  ;;  %v6995_v35 = vadd.f32 %v12289_v56, %v6994_v2 }
 0xffc   : > { %v7276_v55 = vperm.slane %v7268_v41, %v12301_v58  ;;  %v8590_v50 = vmov 1934713408  }
 0xffd   : > { %7947 = vmatmul.msk.bf16.vlgmr.msra.gmra.mxu3 %vm1515_vm0, %v6937_v28  ;;  %v7266_v7 = vsel %vm7265_vm8, %v7264_v48, %v6976_v9  ;;  %v7279_v53 = vrot.slane %v6995_v35, 4  ;;  %v7318_v38 = vunpack.c.l.s4 %v8590_v50 }
 0xffe   : > { %v7272_v1 = vperm.slane %v7266_v7, %v12301_v58  ;;  %v7327_v29 = vrot.slane %v7276_v55, 4 }
 0xfff   : > { %v12331_v0 = vunpack.c.0.s8 %v7318_v38 }
0x1000   : > { %v8450_v17 = vpop.eup %8449  ;;  %v7015_v21 = vpop.f32.mrf.mxu2  ;;  %v7315_v30 = vrot.slane %v7272_v1, 4 }
0x1001   : > { %v6919_v33 = vmul.f32 %v8450_v17, %v12237_v40 }
0x1002   : > { %v6996_v6 = vpop.f32.mrf.mxu0 }
0x1003   : > { %v6935_v13 = vpack.c.bf16 %v6919_v33, %v6919_v33 }
0x1005   : > { %7945 = vmatmul.msk.bf16.vlgmr.msrb.gmra.mxu0 %vm1515_vm0, %v6935_v13 }
0x1006   : > { %v7032_v44 = vpop.f32.mrf.mxu3 }
0x1007   : > { %v7033_v36 = vadd.f32 %v12289_v56, %v7032_v44  ;;  %v6889_v57 = vpop.xlane.xlu2 %6888 }
0x1008   : > { %8451 = vrcp.f32 %v6889_v57 }
0x1009   : > { %v7277_v25 = vrot.slane %v7033_v36, 4  ;;  %v7280_v40 = vsel %vm7265_vm8, %v7033_v36, %v7279_v53  ;;  %v6892_v31 = vpop.xlane.xlu0 %6891 }
0x100a   : > { %v7288_v54 = vperm.slane %v7280_v40, %v12301_v58  ;;  %8453 = vrcp.f32 %v6892_v31 }
0x100b   : > { %v7278_v61 = vsel %vm7265_vm8, %v7277_v25, %v6995_v35 }
0x100c   : > { %v7284_v63 = vperm.slane %v7278_v61, %v12301_v58  ;;  %v7325_v52 = vrot.slane %v7288_v54, 4  ;;  %v7328_v22 = vsel %vm7265_vm8, %v7288_v54, %v7327_v29 }
0x100e   : > { %v8452_v16 = vpop.eup %8451  ;;  %v7313_v10 = vrot.slane %v7284_v63, 4  ;;  %v12313_v14 = vsel %vm7265_vm8, %v7284_v63, %v7315_v30  ;;  %v7034_v8 = vpop.f32.mrf.mxu3  ;;  %v7326_v15 = vsel %vm7265_vm8, %v7325_v52, %v7276_v55  ;;  %v12349_v30 = vperm.slane %v7328_v22, %v12331_v0 }
0x100f   : > { %v6923_v5 = vmul.f32 %v8452_v16, %v12243_v46  ;;  %v12337_v6 = vperm.slane %v7326_v15, %v12331_v0 }
0x1010   : > { %v8454_v20 = vpop.eup %8453  ;;  %v7314_v49 = vsel %vm7265_vm8, %v7313_v10, %v7272_v1 }
0x1011   : > { %v6939_v59 = vpack.c.bf16 %v6923_v5, %v6923_v5  ;;  %v6924_v26 = vmul.f32 %v8454_v20, %v12248_v37  ;;  %v6886_v51 = vpop.xlane.xlu1 %6885  ;;  %v12345_v36 = vperm.slane %v7314_v49, %v12331_v0  ;;  %v7371_v61 = vrot.slane %v12337_v6, 4 }
0x1012   : > { %8455 = vrcp.f32 %v6886_v51  ;;  %v7324_v5 = vperm.slane %v12313_v14, %v12331_v0 }
0x1013   : > { %v6940_v27 = vpack.c.bf16 %v6924_v26, %v6924_v26  ;;  %7949 = vmatmul.msk.bf16.vlgmr.msra.gmra.mxu2 %vm1515_vm0, %v6939_v59  ;;  %v7363_v8 = vrot.slane %v12345_v36, 4 }
0x1014   : > { %v7367_v49 = vrot.slane %v7324_v5, 4 }
0x1015   : > { %7950 = vmatmul.msk.bf16.vlgmr.msrb.gmra.mxu3 %vm1515_vm0, %v6940_v27 }
0x1018   : > { %v8456_v18 = vpop.eup %8455 }
0x1019   : > { %v6922_v12 = vmul.f32 %v8456_v18, %v12252_v3 }
0x101b   : > { %v6938_v19 = vpack.c.bf16 %v6922_v12, %v6922_v12 }
0x101d   : > { %7948 = vmatmul.msk.bf16.vlgmr.msra.gmra.mxu0 %vm1515_vm0, %v6938_v19  ;;  %vm12773_vm0 = vcmask 261120  }
0x101e   : > { %vm12774_vm6 = vmmov %vm12773_vm0 }
0x101f   : > { %vm12775_vm10 = vmmov %vm12773_vm0 }
0x1020   : > { %vm12776_vm7 = vmmov %vm12773_vm0 }
0x104e   : > { %v7070_v46 = vpop.f32.mrf.mxu2 }
0x104f   : > { %v7089_v32 = vpop.f32.mrf.mxu3  ;;  %v7071_v62 = vadd.f32 %v12289_v56, %v7070_v46 }
0x1050   : > { %v7090_v9 = vadd.f32 %v12289_v56, %v7089_v32 }
0x1051   : > { %v7051_v11 = vpop.f32.mrf.mxu0  ;;  %v7303_v2 = vrot.slane %v7071_v62, 4 }
0x1052   : > { %v7052_v37 = vadd.f32 %v12289_v56, %v7051_v11  ;;  %v7289_v39 = vrot.slane %v7090_v9, 4 }
0x1054   : > { %v7291_v47 = vrot.slane %v7052_v37, 4  ;;  %v7290_v28 = vsel %vm7265_vm8, %v7289_v39, %v7052_v37 }
0x1055   : > { %v7296_v34 = vperm.slane %v7290_v28, %v12301_v58 }
0x1056   : > { %v7072_v42 = vpop.f32.mrf.mxu2  ;;  %v7292_v3 = vsel %vm7265_vm8, %v7090_v9, %v7291_v47 }
0x1057   : > { %v7091_v24 = vpop.f32.mrf.mxu3  ;;  %v7300_v43 = vperm.slane %v7292_v3, %v12301_v58  ;;  %v7339_v57 = vrot.slane %v7296_v34, 4 }
0x1059   : > { %v7053_v60 = vpop.f32.mrf.mxu0  ;;  %v7351_v17 = vrot.slane %v7300_v43, 4 }
0x1066   : > { %v7127_v4 = vpop.f32.mrf.mxu2 }
0x1067   : > { %v7128_v24 = vadd.f32 %v12289_v56, %v7127_v4 }
0x1068   : > { %v7146_v45 = vpop.f32.mrf.mxu3 }
0x1069   : > { %v7147_v11 = vadd.f32 %v12289_v56, %v7146_v45  ;;  %v7379_v39 = vrot.slane %v7128_v24, 4 }
0x106a   : > { %v7108_v23 = vpop.f32.mrf.mxu0 }
0x106b   : > { %v7109_v48 = vadd.f32 %v12289_v56, %v7108_v23  ;;  %v7391_v37 = vrot.slane %v7147_v11, 4 }
0x106d   : > { %v7301_v41 = vrot.slane %v7109_v48, 4  ;;  %v7304_v7 = vsel %vm7265_vm8, %v7109_v48, %v7303_v2 }
0x106e   : > { %v7312_v21 = vperm.slane %v7304_v7, %v12301_v58  ;;  %v7129_v33 = vpop.f32.mrf.mxu2 }
0x106f   : > { %v7302_v35 = vsel %vm7265_vm8, %v7301_v41, %v7071_v62 }
0x1070   : > { %v7308_v13 = vperm.slane %v7302_v35, %v12301_v58  ;;  %v7349_v53 = vrot.slane %v7312_v21, 4  ;;  %v7352_v1 = vsel %vm7265_vm8, %v7312_v21, %v7351_v17  ;;  %v7148_v55 = vpop.f32.mrf.mxu3 }
0x1071   : > { %v12342_v44 = vperm.slane %v7352_v1, %v12331_v0 }
0x1072   : > { %v7337_v25 = vrot.slane %v7308_v13, 4  ;;  %v7110_v40 = vpop.f32.mrf.mxu0  ;;  %v7350_v31 = vsel %vm7265_vm8, %v7349_v53, %v7300_v43  ;;  %v7340_v52 = vsel %vm7265_vm8, %v7308_v13, %v7339_v57 }
0x1073   : > { %v7373_v29 = vrot.slane %v12342_v44, 4  ;;  %v12353_v54 = vperm.slane %v7350_v31, %v12331_v0  ;;  %v7348_v20 = vperm.slane %v7340_v52, %v12331_v0 }
0x1074   : > { %v7338_v63 = vsel %vm7265_vm8, %v7337_v25, %v7296_v34 }
0x1075   : > { %v7374_v16 = vsel %vm7265_vm8, %v7373_v29, %v12349_v30  ;;  %v7372_v10 = vsel %vm7265_vm8, %v12353_v54, %v7371_v61  ;;  %v12363_v22 = vperm.slane %v7338_v63, %v12331_v0  ;;  %v7365_v59 = vrot.slane %v7348_v20, 4 }
0x1076   : > { %7523 = vrot.lane.b32.xlu0 %v7374_v16, %s8575_s18  ;;  %7515 = vrot.lane.b32.xlu1 %v7372_v10, %s8586_s10  ;;  %v7368_v26 = vsel %vm7265_vm8, %v7348_v20, %v7367_v49 }
0x1077   : > { %v7364_v15 = vsel %vm7265_vm8, %v12363_v22, %v7363_v8  ;;  %v7366_v27 = vsel %vm7265_vm8, %v7365_v59, %v7324_v5 }
0x1078   : > { %7491 = vrot.lane.b32.xlu2 %v7364_v15, %s8586_s10 }
0x107e   : > { %7507 = vrot.lane.b32.xlu1 %v7368_v26, %s8581_s23  ;;  %v7184_v51 = vpop.f32.mrf.mxu2 }
0x107f   : > { %v7185_v42 = vadd.f32 %v12289_v56, %v7184_v51 }
0x1080   : > { %7499 = vrot.lane.b32.xlu2 %v7366_v27, %s8575_s18  ;;  %v7203_v18 = vpop.f32.mrf.mxu3 }
0x1081   : > { %v7389_v9 = vrot.slane %v7185_v42, 4  ;;  %v7392_v47 = vsel %vm7265_vm8, %v7185_v42, %v7391_v37  ;;  %v7204_v62 = vadd.f32 %v12289_v56, %v7203_v18 }
0x1082   : > { %v7165_v12 = vpop.f32.mrf.mxu0  ;;  %v7400_v50 = vperm.slane %v7392_v47, %v12301_v58 }
0x1083   : > { %v7166_v32 = vadd.f32 %v12289_v56, %v7165_v12  ;;  %v7390_v45 = vsel %vm7265_vm8, %v7389_v9, %v7147_v11  ;;  %v7403_v23 = vrot.slane %v7204_v62, 4 }
0x1084   : > { %v7396_v17 = vperm.slane %v7390_v45, %v12301_v58  ;;  %v7437_v21 = vrot.slane %v7400_v50, 4 }
0x1085   : > { %v7377_v60 = vrot.slane %v7166_v32, 4  ;;  %v7380_v38 = vsel %vm7265_vm8, %v7166_v32, %v7379_v39 }
0x1086   : > { %v7186_v19 = vpop.f32.mrf.mxu2  ;;  %v7388_v48 = vperm.slane %v7380_v38, %v12301_v58  ;;  %v7425_v29 = vrot.slane %v7396_v17, 4 }
0x1087   : > { %v7378_v3 = vsel %vm7265_vm8, %v7377_v60, %v7128_v24 }
0x1088   : > { %v7205_v46 = vpop.f32.mrf.mxu3  ;;  %v7384_v4 = vperm.slane %v7378_v3, %v12301_v58  ;;  %v7439_v25 = vrot.slane %v7388_v48, 4  ;;  %v7438_v61 = vsel %vm7265_vm8, %v7437_v21, %v7388_v48 }
0x1089   : > { %v7444_v51 = vperm.slane %v7438_v61, %v12331_v0 }
0x108a   : > { %v7167_v14 = vpop.f32.mrf.mxu0  ;;  %v7427_v35 = vrot.slane %v7384_v4, 4  ;;  %v7440_v26 = vsel %vm7265_vm8, %v7400_v50, %v7439_v25  ;;  %v7426_v19 = vsel %vm7265_vm8, %v7425_v29, %v7384_v4 }
0x108b   : > { %v7448_v42 = vperm.slane %v7440_v26, %v12331_v0  ;;  %v7483_v47 = vrot.slane %v7444_v51, 4 }
0x108c   : > { %v7428_v8 = vsel %vm7265_vm8, %v7396_v17, %v7427_v35 }
0x1096   : > { %v7241_v43 = vpop.f32.mrf.mxu2 }
0x1097   : > { %v7242_v2 = vadd.f32 %v12289_v56, %v7241_v43 }
0x1098   : > { %v7260_v28 = vpop.f32.mrf.mxu3 }
0x1099   : > { %v7401_v41 = vrot.slane %v7242_v2, 4  ;;  %v7404_v7 = vsel %vm7265_vm8, %v7242_v2, %v7403_v23  ;;  %v7261_v34 = vadd.f32 %v12289_v56, %v7260_v28  ;;  %v7487_v23 = vrot.slane %v7448_v42, 4 }
0x109a   : > { %v7222_v33 = vpop.f32.mrf.mxu0  ;;  %v7412_v57 = vperm.slane %v7404_v7, %v12301_v58 }
0x109b   : > { %v7402_v13 = vsel %vm7265_vm8, %v7401_v41, %v7204_v62  ;;  %v7413_v53 = vrot.slane %v7261_v34, 4  ;;  %v7223_v1 = vadd.f32 %v12289_v56, %v7222_v33  ;;  %v7432_v62 = vperm.slane %v7426_v19, %v12331_v0 }
0x109c   : > { %v7408_v55 = vperm.slane %v7402_v13, %v12301_v58  ;;  %v7463_v56 = vrot.slane %v7412_v57, 4 }
0x109d   : > { %v7414_v40 = vsel %vm7265_vm8, %v7413_v53, %v7223_v1  ;;  %v7415_v31 = vrot.slane %v7223_v1, 4  ;;  %v7475_v2 = vrot.slane %v7432_v62, 4  ;;  %v7369_v1 = vrot.slane %v12353_v54, 4 }
0x109e   : > { %v7451_v63 = vrot.slane %v7408_v55, 4  ;;  %v7420_v52 = vperm.slane %v7414_v40, %v12301_v58  ;;  %v7243_v16 = vpop.f32.mrf.mxu2 }
0x109f   : > { %v7416_v10 = vsel %vm7265_vm8, %v7261_v34, %v7415_v31 }
0x10a0   : > { %v7424_v15 = vperm.slane %v7416_v10, %v12301_v58  ;;  %v7449_v5 = vrot.slane %v7420_v52, 4  ;;  %v7452_v20 = vsel %vm7265_vm8, %v7420_v52, %v7451_v63  ;;  %v7262_v49 = vpop.f32.mrf.mxu3  ;;  %v7436_v58 = vperm.slane %v7428_v8, %v12331_v0 }
0x10a1   : > { %v7460_v59 = vperm.slane %v7452_v20, %v12331_v0 }
0x10a2   : > { %v7461_v27 = vrot.slane %v7424_v15, 4  ;;  %v7224_v18 = vpop.f32.mrf.mxu0  ;;  %v7464_v12 = vsel %vm7265_vm8, %v7424_v15, %v7463_v56  ;;  %v7450_v46 = vsel %vm7265_vm8, %v7449_v5, %v7408_v55  ;;  %v7479_v41 = vrot.slane %v7436_v58, 4 }
0x10a3   : > { %v7477_v14 = vrot.slane %v7460_v59, 4  ;;  %v7472_v32 = vperm.slane %v7464_v12, %v12331_v0  ;;  %v7456_v11 = vperm.slane %v7450_v46, %v12331_v0 }
0x10a4   : > { %v7462_v24 = vsel %vm7265_vm8, %v7461_v27, %v7412_v57  ;;  %v7480_v7 = vsel %vm7265_vm8, %v7460_v59, %v7479_v41 }
0x10a5   : > { %v7478_v60 = vsel %vm7265_vm8, %v7477_v14, %v7436_v58  ;;  %v7485_v37 = vrot.slane %v7472_v32, 4  ;;  %v7468_v9 = vperm.slane %v7462_v24, %v12331_v0  ;;  %v7473_v39 = vrot.slane %v7456_v11, 4 }
0x10a6   : > { %7501 = vrot.lane.b32.xlu1 %v7478_v60, %s8575_s18  ;;  %v7488_v4 = vsel %vm7265_vm8, %v7472_v32, %v7487_v23  ;;  %v7375_v0 = vrot.slane %v12349_v30, 4  ;;  %v7476_v48 = vsel %vm7265_vm8, %v7456_v11, %v7475_v2  ;;  %v7361_v30 = vrot.slane %v12363_v22, 4 }
0x10a7   : > { %v7486_v3 = vsel %vm7265_vm8, %v7485_v37, %v7448_v42  ;;  %v7484_v50 = vsel %vm7265_vm8, %v7468_v9, %v7483_v47  ;;  %v7481_v38 = vrot.slane %v7468_v9, 4  ;;  %v7474_v43 = vsel %vm7265_vm8, %v7473_v39, %v7432_v62 }
0x10a8   : > { %7525 = vrot.lane.b32.xlu2 %v7486_v3, %s8575_s18  ;;  %7517 = vrot.lane.b32.xlu0 %v7484_v50, %s8586_s10  ;;  %v7376_v28 = vsel %vm7265_vm8, %v12342_v44, %v7375_v0  ;;  %s7653_s18 = sshll.u32 %s8716_s19, 5  ;;  %v7362_v44 = vsel %vm7265_vm8, %v7361_v30, %v12345_v36  ;;  %v7370_v22 = vsel %vm7265_vm8, %v7369_v1, %v12337_v6 }
0x10a9   : > { %v7482_v45 = vsel %vm7265_vm8, %v7481_v38, %v7444_v51 }
0x10ae   : > { %7533 = vrot.lane.b32.xlu1 %v7488_v4, %s8581_s23 }
0x10b0   : > { %7531 = vrot.lane.b32.xlu2 %v7376_v28, %s8581_s23  ;;  %7493 = vrot.lane.b32.xlu0 %v7476_v48, %s8586_s10  ;;  %s254_s10 = scalar_lea.vmem [#allocation7], %s7653_s18 }
0x10b1   : > { %s7568_s8 = sshll.u32 %s254_s10, 4  ;;  %s7569_s8 = int_to_ptr.vmem [resolvable:$true] %s7568_s8 }
0x10b8   : > { %7509 = vrot.lane.b32.xlu0 %v7480_v7, %s8581_s23  ;;  %s7966_s23 = sshll.u32 %s8651_s0, 5  ;;  %s7555_s0 = scalar_lea.sflag [#allocation6], %s8716_s19 }
0x10b9   : > { %s7567_s11 = scalar_lea.hbm %s12495_s6, %s7966_s23 }
0x10ba   : > { %s7570_s16 = sshll.u32 %s7567_s11, 4  ;;  %s7571_s16 = int_to_ptr.hbm [resolvable:$true] %s7570_s16 }
0x10bb   : > { %s8514_s17 = sshra.s32 %s7571_s16, 4  ;;  %s8515_s17 = int_to_ptr.hbm [resolvable:$true] %s8514_s17 }
0x10bc   : > { %s8516_s14 = scalar_lea.hbm %s8515_s17, 32  ;;  %p8521_p0 = scmp.lt.s32.totalorder %s8515_s17, %s12495_s6 }
0x10bd   : > { %p8517_p6 = scmp.ne.s32.totalorder %s8515_s17, %s8516_s14  ;;  %p8522_p1 = scmp.lt.s32.totalorder %s8520_s7, %s8516_s14 }
0x10bf   : > { %p8518_p9 = pnand %p8517_p6, %p8680_p11  ;;  %p8523_p3 = por %p8522_p1, %p8521_p0 }
0x10c1   : > { %p8519_p13 = pneg %p8518_p9 }
0x10c3   : > { %p8524_p4 = pnand %p8523_p3, %p8519_p13 }
0x10d2   : > { %v7492_v34 = vpop.permute.xlu2 %7491 }
0x10d3   : > { %v7537_v33 = vsel %vm12773_vm0, %v7362_v44, %v7492_v34 }
0x10da   : > { %v7500_v21 = vpop.permute.xlu2 %7499 }
0x10db   : > { %v7539_v35 = vsel %vm5580_vm1, %v7537_v33, %v7500_v21 }
0x10e8   : > { %v7516_v17 = vpop.permute.xlu1 %7515  ;;  %v7524_v36 = vpop.permute.xlu0 %7523 }
0x10e9   : > { %v7544_v57 = vsel %vm12774_vm6, %v7370_v22, %v7516_v17 }
0x10ea   : > { %v7546_v25 = vsel %vm5580_vm1, %v7544_v57, %v7524_v36 }
0x10f0   : > { %v7508_v13 = vpop.permute.xlu1 %7507 }
0x10f1   : > { %v7542_v53 = vsel %vm7541_vm15, %v7539_v35, %v7508_v13 }
0x10f2   : > { %7550 = vst [vmem:[%s254_s10] sm:$0xff] %v7542_v53 }
0x1102   : > { %v7526_v55 = vpop.permute.xlu2 %7525 }
0x110a   : > { %v7532_v40 = vpop.permute.xlu2 %7531 }
0x110b   : > { %v7548_v31 = vsel %vm7541_vm15, %v7546_v25, %v7532_v40 }
0x110c   : > { %7551 = vst [vmem:[%s254_s10 + $0x8] sm:$0xff] %v7548_v31 }
0x1118   : > { %v7502_v29 = vpop.permute.xlu1 %7501 }
0x111a   : > { %v7518_v61 = vpop.permute.xlu0 %7517 }
0x111b   : > { %v7545_v63 = vsel %vm12775_vm10, %v7482_v45, %v7518_v61 }
0x111c   : > { %v7547_v54 = vsel %vm5580_vm1, %v7545_v63, %v7526_v55 }
0x1120   : > { %v7534_v52 = vpop.permute.xlu1 %7533 }
0x1121   : > { %v7549_v16 = vsel %vm7541_vm15, %v7547_v54, %v7534_v52 }
0x1122   : > { %7553 = vst [vmem:[%s254_s10 + $0x18] sm:$0xff] %v7549_v16  ;;  %v7494_v6 = vpop.permute.xlu0 %7493 }
0x1123   : > { %v7538_v10 = vsel %vm12776_vm7, %v7474_v43, %v7494_v6 }
0x1124   : > { %v7540_v8 = vsel %vm5580_vm1, %v7538_v10, %v7502_v29 }
0x112a   : > { %v7510_v56 = vpop.permute.xlu0 %7509 }
0x112b   : > { %v7543_v15 = vsel %vm7541_vm15, %v7540_v8, %v7510_v56 }
0x112c   : > { %7552 = vst [vmem:[%s254_s10 + $0x10] sm:$0xff] %v7543_v15 }
0x112d   : > { %8527 = shalt.err (!%p8524_p4)
}
0x112e   : > { %s8591_s19 = smov 256  }
0x112f   : > { %7969 = dma.vmem_to_hbm [thread:$0]  (%p8680_p11), %s7569_s8, 512, %s7571_s16, %s7555_s0, %s8591_s19, %s8591_s19, %s8585_s15  }
0x1130 PF: > { %s7585_s10 = sand.u32 1, %s8556_s25   ;;  %p12777_p7 = scmp.ge.s32.totalorder %s8568_s28, 2 }
0x1131   : > { %s7586_s23 = scalar_lea.sflag [#allocation6], %s7585_s10 }
0x1132   : > { %p7976_p5 = pnand %p12777_p7, %p8684_p12 }
0x1134   : > { %p7977_p8 = pneg %p7976_p5 }
0x1136   : > { %8551 = dma.done.wait (%p7977_p8), %s7586_s23, 512  }
0x1137   : > { %8553 = vsyncadd (%p7977_p8), %s7586_s23, 4294966784  ;;  %p27_p10 = scmp.ge.s32.totalorder %s8655_s30, 4   ;;  %s12778_s25 = smov %s8560_s26 }
0x1138   : > { %s12779_s26 = smov %s8564_s27  ;;  %s12780_s27 = smov %s8667_s9 }
0x1139   : > { %s12781_s28 = smov %s8655_s30  ;;  %29 = sbr.rel (!%p27_p10) target bundleno = 11 (0xb), region = 85 }
0x113e   :  { %7592 = vsyncpa [#allocation5], 1 }
0x113f   :  { %7594 = vsyncpa [#allocation5 + $0x1], 1 }
0x1140   :  { %7595 = vsyncpa [#allocation6], 1 }
0x1141   :  { %7597 = vsyncpa [#allocation6 + $0x1], 1 }

</bundles_post_ra>
